<compile_context>
chip_gen: v7x
topology: tpu7x:2x2x1
jax: 0.10.0
libtpu: 0.0.40
codegen_flags: <defaults>
</compile_context>

<pallas_src>
import functools

import numpy as np
import jax
import jax.numpy as jnp
from jax.experimental import pallas as pl
from jax.experimental.pallas import tpu as pltpu


# ---------------------------------------------------------------------------
# Helpers
# ---------------------------------------------------------------------------
def _round_up(x, m):
    return ((x + m - 1) // m) * m


def _pick_tile(size, candidates):
    for c in candidates:
        if size % c == 0:
            return c
    raise ValueError(f"no tile in {candidates} divides {size}")


_VMEM_LIMIT = None


def _vmem_limit_bytes():
    """Chip-aware scoped-VMEM limit (v7x: 64 MiB physical -> 32; v5e/v6e -> 64)."""
    global _VMEM_LIMIT
    if _VMEM_LIMIT is None:
        try:
            cap = int(pltpu.get_tpu_info().vmem_capacity_bytes)
        except Exception:
            cap = 64 * 1024 * 1024
        _VMEM_LIMIT = max(32 * 1024 * 1024, min(cap // 2, 96 * 1024 * 1024))
    return _VMEM_LIMIT


# ---------------------------------------------------------------------------
# Direct 3x3 SAME conv kernel (no im2col): 9 accumulating MXU dots per block
# ---------------------------------------------------------------------------
def _conv3x3_kernel(xp_ref, w_ref, b_ref, o_ref, acc_ref, *, H, W, fuse_relu):
    # xp_ref: (1, H+2, W+2, Cin_p) bf16 (one spatially padded image)
    # w_ref : (3, 3, Cin_p, tco)   bf16
    # b_ref : (1, tco)             f32
    # o_ref : (1, H*W, tco)        bf16
    # acc   : (H*W, tco)           f32 scratch
    acc_ref[...] = jnp.zeros_like(acc_ref)
    cin = w_ref.shape[2]
    for ky in range(3):
        for kx in range(3):
            a = xp_ref[0, ky:ky + H, kx:kx + W, :].reshape(H * W, cin)
            acc_ref[...] += jnp.dot(a, w_ref[ky, kx],
                                    preferred_element_type=jnp.float32)
    out = acc_ref[...] + b_ref[...]
    if fuse_relu:
        out = jnp.maximum(out, 0.0)
    o_ref[...] = out.reshape(1, H * W, -1).astype(o_ref.dtype)


class Conv3x3Same:
    """3x3, stride 1, padding 1 conv on padded-channel NHWC bf16 activations."""
    supports_relu_fusion = True

    def __init__(self, w_oihw, b):
        cout, cin = int(w_oihw.shape[0]), int(w_oihw.shape[1])
        self.cout = cout
        self.cinp = _round_up(cin, 128)
        self.coutp = _round_up(cout, 128)
        # (Cout, Cin, KH, KW) -> (KH, KW, Cin_p, Cout_p), pad + cast ONCE.
        w = jnp.transpose(jnp.asarray(w_oihw, jnp.float32), (2, 3, 1, 0))
        w = jnp.pad(w, ((0, 0), (0, 0),
                        (0, self.cinp - cin), (0, self.coutp - cout)))
        self.w = w.astype(jnp.bfloat16)
        bb = jnp.pad(jnp.asarray(b, jnp.float32), (0, self.coutp - cout))
        self.b = bb.reshape(1, self.coutp)

    def __call__(self, x, relu=False):
        # x: (N, H, W, Cin_p) bf16, channels already padded to a lane multiple.
        N, H, W, C = x.shape
        assert C == self.cinp
        # TODO(synk): for large spatial extents (real VGG) the per-image block
        # should be split into halo'd row blocks; one image per block is fine here.
        xp = jnp.pad(x, ((0, 0), (1, 1), (1, 1), (0, 0)))
        tco = _pick_tile(self.coutp, (256, 128))
        grid = (N, self.coutp // tco)
        out = pl.pallas_call(
            functools.partial(_conv3x3_kernel, H=H, W=W, fuse_relu=relu),
            out_shape=jax.ShapeDtypeStruct((N, H * W, self.coutp), jnp.bfloat16),
            grid_spec=pltpu.PrefetchScalarGridSpec(
                num_scalar_prefetch=0,
                grid=grid,
                in_specs=[
                    pl.BlockSpec((1, H + 2, W + 2, C), lambda n, co: (n, 0, 0, 0)),
                    pl.BlockSpec((3, 3, C, tco), lambda n, co: (0, 0, 0, co)),
                    pl.BlockSpec((1, tco), lambda n, co: (0, co)),
                ],
                out_specs=pl.BlockSpec((1, H * W, tco), lambda n, co: (n, 0, co)),
                scratch_shapes=[pltpu.VMEM((H * W, tco), jnp.float32)],
            ),
            compiler_params=pltpu.CompilerParams(
                dimension_semantics=("parallel", "parallel"),
                vmem_limit_bytes=_vmem_limit_bytes()),
        )(xp, self.w, self.b)
        return out.reshape(N, H, W, self.coutp)


# ---------------------------------------------------------------------------
# Tiled matmul + bias (+ optional fused ReLU) for the classifier Linear layers
# ---------------------------------------------------------------------------
def _matmul_bias_kernel(a_ref, b_ref, bias_ref, o_ref, acc_ref, *, fuse_relu):
    @pl.when(pl.program_id(2) == 0)
    def _():
        acc_ref[...] = jnp.zeros_like(acc_ref)

    acc_ref[...] += jnp.dot(a_ref[...], b_ref[...],
                            preferred_element_type=jnp.float32)

    @pl.when(pl.program_id(2) == pl.num_programs(2) - 1)
    def _():
        out = acc_ref[...] + bias_ref[...]
        if fuse_relu:
            out = jnp.maximum(out, 0.0)
        o_ref[...] = out.astype(o_ref.dtype)


def _linear_matmul(a, wp, bias2d, n_true, *, relu=False):
    """a: [M, K_true], wp: pre-padded bf16 [Kp, Np], bias2d: f32 [1, Np]."""
    M, K = a.shape
    Kp, Np = wp.shape
    Mp = _round_up(M, 8)
    a = a.astype(jnp.bfloat16)
    if (Mp, Kp) != (M, K):
        a = jnp.pad(a, ((0, Mp - M), (0, Kp - K)))

    tm = _pick_tile(Mp, (256, 128, 64, 32, 16, 8))
    tn = _pick_tile(Np, (512, 256, 128))
    # Collapse K to a single grid step when the weight tile comfortably fits VMEM
    # (removes the accumulator loop / per-step overhead for the tiny fc layers).
    if Kp * tn * 2 <= 8 * 1024 * 1024:
        tk = Kp
    else:
        tk = _pick_tile(Kp, (512, 256, 128))
    grid = (Mp // tm, Np // tn, Kp // tk)

    out = pl.pallas_call(
        functools.partial(_matmul_bias_kernel, fuse_relu=relu),
        out_shape=jax.ShapeDtypeStruct((Mp, Np), jnp.float32),
        grid_spec=pltpu.PrefetchScalarGridSpec(
            num_scalar_prefetch=0,
            grid=grid,
            in_specs=[
                pl.BlockSpec((tm, tk), lambda i, j, k: (i, k)),
                pl.BlockSpec((tk, tn), lambda i, j, k: (k, j)),
                pl.BlockSpec((1, tn), lambda i, j, k: (0, j)),
            ],
            out_specs=pl.BlockSpec((tm, tn), lambda i, j, k: (i, j)),
            scratch_shapes=[pltpu.VMEM((tm, tn), jnp.float32)],
        ),
        compiler_params=pltpu.CompilerParams(
            dimension_semantics=("parallel", "parallel", "arbitrary"),
            vmem_limit_bytes=_vmem_limit_bytes()),
    )(a, wp, bias2d)
    return out[:M, :n_true]


class Linear:
    supports_relu_fusion = True

    def __init__(self, w, b):
        out_f, in_f = int(w.shape[0]), int(w.shape[1])
        self.n_true = out_f
        kp = _round_up(in_f, 128)
        np_ = _round_up(out_f, 128)
        wt = jnp.asarray(w, jnp.float32).T                     # (in, out), once
        wt = jnp.pad(wt, ((0, kp - in_f), (0, np_ - out_f)))
        self.w = wt.astype(jnp.bfloat16)                        # pre-padded bf16
        bb = jnp.pad(jnp.asarray(b, jnp.float32), (0, np_ - out_f))
        self.b = bb.reshape(1, np_)

    def __call__(self, x, relu=False):
        return _linear_matmul(x, self.w, self.b, self.n_true, relu=relu)


# ---------------------------------------------------------------------------
# 2x2 max-pool (padded-channel NHWC, lane-dense, large row tiles)
# ---------------------------------------------------------------------------
def _maxpool_kernel(x_ref, o_ref):
    x = x_ref[...]                                    # (tr, 2, Wo, 2, C)
    h = jnp.maximum(x[:, 0], x[:, 1])                 # reduce the two pooled rows
    o_ref[...] = jnp.maximum(h[:, :, 0, :], h[:, :, 1, :])   # reduce the two cols


class MaxPool2x2:
    supports_relu_fusion = False

    def __call__(self, x):
        # x: (N, H, W, Cp) bf16, Cp multiple of 128 (lane-dense), H/W even.
        N, H, W, C = x.shape
        Ho, Wo = H // 2, W // 2
        rows = N * Ho
        xr = x.reshape(rows, 2, Wo, 2, C)
        bytes_per_row = 2 * Wo * 2 * C * x.dtype.itemsize
        target = max(1, min(rows, (4 * 1024 * 1024) // max(1, bytes_per_row)))
        tr = 1
        for c in range(target, 0, -1):
            if rows % c == 0:
                tr = c
                break
        out = pl.pallas_call(
            _maxpool_kernel,
            out_shape=jax.ShapeDtypeStruct((rows, Wo, C), x.dtype),
            grid=(rows // tr,),
            in_specs=[pl.BlockSpec((tr, 2, Wo, 2, C), lambda i: (i, 0, 0, 0, 0))],
            out_specs=pl.BlockSpec((tr, Wo, C), lambda i: (i, 0, 0)),
            compiler_params=pltpu.CompilerParams(
                dimension_semantics=("parallel",),
                vmem_limit_bytes=_vmem_limit_bytes()),
        )(xr)
        return out.reshape(N, Ho, Wo, C)


# ---------------------------------------------------------------------------
# Standalone ReLU (tiled) — only where fusion is not allowed (the pre-activation
# output is itself an extracted layer).
# ---------------------------------------------------------------------------
def _relu_kernel(x_ref, o_ref):
    o_ref[...] = jnp.maximum(x_ref[...], 0).astype(o_ref.dtype)


def relu_pallas(x):
    shape = x.shape
    x2 = x.reshape(-1, shape[-1]) if x.ndim > 1 else x.reshape(1, -1)
    rows, cols = x2.shape
    bytes_per_row = cols * x2.dtype.itemsize
    target = max(1, min(rows, (4 * 1024 * 1024) // max(1, bytes_per_row)))
    if rows % 8 == 0:
        tr = 8
        for c in range(max(8, (target // 8) * 8), 7, -8):
            if rows % c == 0:
                tr = c
                break
    else:
        tr = rows                      # single block: dims equal full array dims
    out = pl.pallas_call(
        _relu_kernel,
        out_shape=jax.ShapeDtypeStruct((rows, cols), x2.dtype),
        grid=(rows // tr,),
        in_specs=[pl.BlockSpec((tr, cols), lambda i: (i, 0))],
        out_specs=pl.BlockSpec((tr, cols), lambda i: (i, 0)),
        compiler_params=pltpu.CompilerParams(
            dimension_semantics=("parallel",),
            vmem_limit_bytes=_vmem_limit_bytes()),
    )(x2)
    return out.reshape(shape)


class ReLU:
    supports_relu_fusion = False

    def __call__(self, x):
        return relu_pallas(x)


# ---------------------------------------------------------------------------
# Synthetic VGG-like submodule + FeatureExtractor (mirrors the PyTorch class)
# ---------------------------------------------------------------------------
class SyntheticVGG:
    """Tiny VGG-style net: features = [conv,relu,pool]x2, classifier = fc,relu,fc."""

    def __init__(self, key, in_ch=4, mid_ch=8, img=16, hidden=32, n_classes=10):
        ks = jax.random.split(key, 6)
        s = 0.05
        self.w0 = jax.random.normal(ks[0], (mid_ch, in_ch, 3, 3), jnp.float32) * s
        self.b0 = jax.random.normal(ks[1], (mid_ch,), jnp.float32) * s
        self.w1 = jax.random.normal(ks[2], (mid_ch, mid_ch, 3, 3), jnp.float32) * s
        self.b1 = jax.random.normal(ks[3], (mid_ch,), jnp.float32) * s
        flat = mid_ch * (img // 4) * (img // 4)
        self.fc0_w = jax.random.normal(ks[4], (hidden, flat), jnp.float32) * s
        self.fc0_b = jnp.zeros((hidden,), jnp.float32)
        self.fc1_w = jax.random.normal(ks[5], (n_classes, hidden), jnp.float32) * s
        self.fc1_b = jnp.zeros((n_classes,), jnp.float32)

        # ordered (name, module) pairs mirroring nn.Sequential._modules
        self._modules = {
            'features': [
                ('0', Conv3x3Same(self.w0, self.b0)),
                ('1', ReLU()),
                ('2', MaxPool2x2()),
                ('3', Conv3x3Same(self.w1, self.b1)),
                ('4', ReLU()),
                ('5', MaxPool2x2()),
            ],
            'classifier': [
                ('0', Linear(self.fc0_w, self.fc0_b)),
                ('1', ReLU()),
                # TODO(synk): nn.Dropout omitted (identity in eval mode anyway).
                ('2', Linear(self.fc1_w, self.fc1_b)),
            ],
        }


class FeatureExtractor:
    def __init__(self, submodule, extracted_layers):
        self.submodule = submodule
        self.extracted_layers = extracted_layers
        for name, module in self.submodule._modules.items():
            if name == 'features':
                self.feature = module
            if name == 'classifier':
                self.classifier = module
        if 'feature' in self.extracted_layers.keys():
            self.feature_layerlist = self.extracted_layers['feature']
        if 'classifier' in self.extracted_layers.keys():
            self.classifier_layerlist = self.extracted_layers['classifier']
        self._jit_forward = jax.jit(self._device_forward)

    def _device_forward(self, x):
        outputs = []
        feat_list = getattr(self, 'feature_layerlist', [])
        cls_list = getattr(self, 'classifier_layerlist', [])

        # NCHW (PyTorch) -> NHWC, pad channels to a lane multiple, bf16 — ONCE.
        x = jnp.transpose(x, (0, 2, 3, 1))
        c_true = x.shape[-1]
        cp = _round_up(c_true, 128)
        x = jnp.pad(x, ((0, 0), (0, 0), (0, 0), (0, cp - c_true))).astype(jnp.bfloat16)

        # ---- feature stack (padded-channel NHWC bf16) ----
        layers = self.feature
        i, n = 0, len(layers)
        while i < n:
            name, module = layers[i]
            if (getattr(module, 'supports_relu_fusion', False) and i + 1 < n
                    and isinstance(layers[i + 1][1], ReLU)
                    and name not in feat_list):
                # Fuse the following ReLU into the conv epilogue. Safe because
                # the pre-activation layer is not being extracted.
                x = module(x, relu=True)
                i += 1
                name = layers[i][0]          # ReLU's name; x is its output
            else:
                x = module(x)
            if isinstance(module, Conv3x3Same):
                c_true = module.cout
            if name in feat_list:
                outputs.append(                       # extract as NCHW f32
                    jnp.transpose(x[..., :c_true], (0, 3, 1, 2)).astype(jnp.float32))
            i += 1

        # PyTorch-style flatten x.view(N, -1) over (C, H, W).
        N, H, W, _ = x.shape
        x = jnp.transpose(x[..., :c_true], (0, 3, 1, 2)).reshape(N, c_true * H * W)

        # ---- classifier ----
        layers = self.classifier
        i, n = 0, len(layers)
        while i < n:
            name, module = layers[i]
            if (getattr(module, 'supports_relu_fusion', False) and i + 1 < n
                    and isinstance(layers[i + 1][1], ReLU)
                    and name not in cls_list):
                x = module(x, relu=True)
                i += 1
                name = layers[i][0]
            else:
                x = module(x)
            if name in cls_list:
                outputs.append(x.astype(jnp.float32))
            i += 1

        return tuple(outputs), x

    def forward(self, x):
        dev_outputs, last = self._jit_forward(x)
        jax.block_until_ready(last)
        # Single host sync for all extracted tensors (PyTorch did per-layer .cpu()).
        return [np.asarray(o) for o in jax.device_get(list(dev_outputs))]

    __call__ = forward


# ---------------------------------------------------------------------------
# Pure-jnp f32 reference (NCHW, PyTorch semantics) for a loose numeric check.
# ---------------------------------------------------------------------------
def _reference_forward(model, x):
    def conv(t, w, b):
        y = jax.lax.conv_general_dilated(
            t, w, window_strides=(1, 1), padding="SAME",
            dimension_numbers=("NCHW", "OIHW", "NCHW"))
        return y + b[None, :, None, None]

    def pool(t):
        return jax.lax.reduce_window(t, -jnp.inf, jax.lax.max,
                                     (1, 1, 2, 2), (1, 1, 2, 2), "VALID")

    f1 = jnp.maximum(conv(x, model.w0, model.b0), 0.0)
    y = pool(f1)
    y = jnp.maximum(conv(y, model.w1, model.b1), 0.0)
    y = pool(y)
    y = y.reshape(y.shape[0], -1)
    y = jnp.maximum(y @ model.fc0_w.T + model.fc0_b, 0.0)
    y = y @ model.fc1_w.T + model.fc1_b
    return f1, y


# ---------------------------------------------------------------------------
if __name__ == "__main__":
    key = jax.random.PRNGKey(0)
    k_model, k_x = jax.random.split(key)

    model = SyntheticVGG(k_model, in_ch=4, mid_ch=8, img=16, hidden=32, n_classes=10)
    extracted = {'feature': ['1', '4'], 'classifier': ['0', '2']}
    fe = FeatureExtractor(model, extracted)

    x = jax.random.normal(k_x, (2, 4, 16, 16), jnp.float32)   # NCHW input
    outputs = fe.forward(x)

    expected_shapes = [(2, 8, 16, 16), (2, 8, 8, 8), (2, 32), (2, 10)]
    assert len(outputs) == len(expected_shapes), (len(outputs), len(expected_shapes))
    for o, s in zip(outputs, expected_shapes):
        assert o.shape == s, (o.shape, s)
        assert np.all(np.isfinite(o))

    # Loose numeric check vs f32 reference (bf16 MXU operands => small error).
    ref_feat1, ref_last = _reference_forward(model, x)
    ref_feat1 = np.asarray(jax.block_until_ready(ref_feat1))
    ref_last = np.asarray(jax.block_until_ready(ref_last))
    assert np.allclose(outputs[0], ref_feat1, rtol=0.1, atol=0.05)
    assert np.allclose(outputs[-1], ref_last, rtol=0.1, atol=0.05)

    print("KERNEL_OK")
</pallas_src>

<mosaic_0001>
module attributes {stable_mosaic.version = 11 : i64} {
  func.func @_conv3x3_kernel(%arg0: i32, %arg1: i32, %arg2: memref<1x18x18x128xbf16, #tpu.memory_space<vmem>>, %arg3: memref<3x3x128x128xbf16, #tpu.memory_space<vmem>>, %arg4: memref<1x128xf32, #tpu.memory_space<vmem>>, %arg5: memref<1x256x128xbf16, #tpu.memory_space<vmem>>, %arg6: memref<256x128xf32, #tpu.memory_space<vmem>>) attributes {dimension_semantics = [#tpu.dimension_semantics<parallel>, #tpu.dimension_semantics<parallel>], iteration_bounds = array<i64: 2, 1>, scalar_prefetch = 0 : i64, scratch_operands = 1 : i64, tpu.core_type = #tpu.core_type<tc>, window_params = [{transform_indices = @transform_0, window_bounds = array<i64: 1, 18, 18, 128>}, {transform_indices = @transform_1, window_bounds = array<i64: 3, 3, 128, 128>}, {transform_indices = @transform_2, window_bounds = array<i64: 1, 128>}, {transform_indices = @transform_3, window_bounds = array<i64: 1, 256, 128>}]} {
    %cst = arith.constant 0.000000e+00 : f32
    %0 = vector.broadcast %cst : f32 to vector<256x128xf32>
    %c0 = arith.constant 0 : index
    %c0_0 = arith.constant 0 : index
    %1 = vector.load %arg6[%c0, %c0_0] : memref<256x128xf32, #tpu.memory_space<vmem>>, vector<256x128xf32>
    tpu.vector_store %arg6[%c0, %c0_0], %0 {strides = array<i32>} : memref<256x128xf32, #tpu.memory_space<vmem>>, vector<256x128xf32>,
    %c0_1 = arith.constant 0 : index
    %c0_2 = arith.constant 0 : index
    %c0_3 = arith.constant 0 : index
    %c0_4 = arith.constant 0 : index
    %2 = vector.load %arg2[%c0_1, %c0_2, %c0_3, %c0_4] : memref<1x18x18x128xbf16, #tpu.memory_space<vmem>>, vector<1x16x16x128xbf16>
    %3 = vector.shape_cast %2 : vector<1x16x16x128xbf16> to vector<16x16x128xbf16>
    %4 = vector.shape_cast %3 : vector<16x16x128xbf16> to vector<256x128xbf16>
    %c0_5 = arith.constant 0 : index
    %c0_6 = arith.constant 0 : index
    %5 = vector.load %arg6[%c0_5, %c0_6] : memref<256x128xf32, #tpu.memory_space<vmem>>, vector<256x128xf32>
    %c0_7 = arith.constant 0 : index
    %c0_8 = arith.constant 0 : index
    %c0_9 = arith.constant 0 : index
    %c0_10 = arith.constant 0 : index
    %6 = vector.load %arg3[%c0_7, %c0_8, %c0_9, %c0_10] : memref<3x3x128x128xbf16, #tpu.memory_space<vmem>>, vector<1x1x128x128xbf16>
    %7 = vector.shape_cast %6 : vector<1x1x128x128xbf16> to vector<128x128xbf16>
    %cst_11 = arith.constant dense<0.000000e+00> : vector<256x128xf32>
    %8 = tpu.matmul %4, %7, %cst_11 {dimension_numbers = #tpu.dot_dimension_numbers<[1], [0], [0], [1], [0, 0, 1, 1], [], []>} : vector<256x128xbf16>, vector<128x128xbf16>, vector<256x128xf32> -> vector<256x128xf32>
    %9 = arith.addf %5, %8 : vector<256x128xf32>
    %c0_12 = arith.constant 0 : index
    %c0_13 = arith.constant 0 : index
    %10 = vector.load %arg6[%c0_12, %c0_13] : memref<256x128xf32, #tpu.memory_space<vmem>>, vector<256x128xf32>
    tpu.vector_store %arg6[%c0_12, %c0_13], %9 {strides = array<i32>} : memref<256x128xf32, #tpu.memory_space<vmem>>, vector<256x128xf32>,
    %c0_14 = arith.constant 0 : index
    %c0_15 = arith.constant 0 : index
    %c1 = arith.constant 1 : index
    %c0_16 = arith.constant 0 : index
    %11 = vector.load %arg2[%c0_14, %c0_15, %c1, %c0_16] : memref<1x18x18x128xbf16, #tpu.memory_space<vmem>>, vector<1x16x16x128xbf16>
    %12 = vector.shape_cast %11 : vector<1x16x16x128xbf16> to vector<16x16x128xbf16>
    %13 = vector.shape_cast %12 : vector<16x16x128xbf16> to vector<256x128xbf16>
    %c0_17 = arith.constant 0 : index
    %c0_18 = arith.constant 0 : index
    %14 = vector.load %arg6[%c0_17, %c0_18] : memref<256x128xf32, #tpu.memory_space<vmem>>, vector<256x128xf32>
    %c0_19 = arith.constant 0 : index
    %c1_20 = arith.constant 1 : index
    %c0_21 = arith.constant 0 : index
    %c0_22 = arith.constant 0 : index
    %15 = vector.load %arg3[%c0_19, %c1_20, %c0_21, %c0_22] : memref<3x3x128x128xbf16, #tpu.memory_space<vmem>>, vector<1x1x128x128xbf16>
    %16 = vector.shape_cast %15 : vector<1x1x128x128xbf16> to vector<128x128xbf16>
    %cst_23 = arith.constant dense<0.000000e+00> : vector<256x128xf32>
    %17 = tpu.matmul %13, %16, %cst_23 {dimension_numbers = #tpu.dot_dimension_numbers<[1], [0], [0], [1], [0, 0, 1, 1], [], []>} : vector<256x128xbf16>, vector<128x128xbf16>, vector<256x128xf32> -> vector<256x128xf32>
    %18 = arith.addf %14, %17 : vector<256x128xf32>
    %c0_24 = arith.constant 0 : index
    %c0_25 = arith.constant 0 : index
    %19 = vector.load %arg6[%c0_24, %c0_25] : memref<256x128xf32, #tpu.memory_space<vmem>>, vector<256x128xf32>
    tpu.vector_store %arg6[%c0_24, %c0_25], %18 {strides = array<i32>} : memref<256x128xf32, #tpu.memory_space<vmem>>, vector<256x128xf32>,
    %c0_26 = arith.constant 0 : index
    %c0_27 = arith.constant 0 : index
    %c2 = arith.constant 2 : index
    %c0_28 = arith.constant 0 : index
    %20 = vector.load %arg2[%c0_26, %c0_27, %c2, %c0_28] : memref<1x18x18x128xbf16, #tpu.memory_space<vmem>>, vector<1x16x16x128xbf16>
    %21 = vector.shape_cast %20 : vector<1x16x16x128xbf16> to vector<16x16x128xbf16>
    %22 = vector.shape_cast %21 : vector<16x16x128xbf16> to vector<256x128xbf16>
    %c0_29 = arith.constant 0 : index
    %c0_30 = arith.constant 0 : index
    %23 = vector.load %arg6[%c0_29, %c0_30] : memref<256x128xf32, #tpu.memory_space<vmem>>, vector<256x128xf32>
    %c0_31 = arith.constant 0 : index
    %c2_32 = arith.constant 2 : index
    %c0_33 = arith.constant 0 : index
    %c0_34 = arith.constant 0 : index
    %24 = vector.load %arg3[%c0_31, %c2_32, %c0_33, %c0_34] : memref<3x3x128x128xbf16, #tpu.memory_space<vmem>>, vector<1x1x128x128xbf16>
    %25 = vector.shape_cast %24 : vector<1x1x128x128xbf16> to vector<128x128xbf16>
    %cst_35 = arith.constant dense<0.000000e+00> : vector<256x128xf32>
    %26 = tpu.matmul %22, %25, %cst_35 {dimension_numbers = #tpu.dot_dimension_numbers<[1], [0], [0], [1], [0, 0, 1, 1], [], []>} : vector<256x128xbf16>, vector<128x128xbf16>, vector<256x128xf32> -> vector<256x128xf32>
    %27 = arith.addf %23, %26 : vector<256x128xf32>
    %c0_36 = arith.constant 0 : index
    %c0_37 = arith.constant 0 : index
    %28 = vector.load %arg6[%c0_36, %c0_37] : memref<256x128xf32, #tpu.memory_space<vmem>>, vector<256x128xf32>
    tpu.vector_store %arg6[%c0_36, %c0_37], %27 {strides = array<i32>} : memref<256x128xf32, #tpu.memory_space<vmem>>, vector<256x128xf32>,
    %c0_38 = arith.constant 0 : index
    %c1_39 = arith.constant 1 : index
    %c0_40 = arith.constant 0 : index
    %c0_41 = arith.constant 0 : index
    %29 = vector.load %arg2[%c0_38, %c1_39, %c0_40, %c0_41] : memref<1x18x18x128xbf16, #tpu.memory_space<vmem>>, vector<1x16x16x128xbf16>
    %30 = vector.shape_cast %29 : vector<1x16x16x128xbf16> to vector<16x16x128xbf16>
    %31 = vector.shape_cast %30 : vector<16x16x128xbf16> to vector<256x128xbf16>
    %c0_42 = arith.constant 0 : index
    %c0_43 = arith.constant 0 : index
    %32 = vector.load %arg6[%c0_42, %c0_43] : memref<256x128xf32, #tpu.memory_space<vmem>>, vector<256x128xf32>
    %c1_44 = arith.constant 1 : index
    %c0_45 = arith.constant 0 : index
    %c0_46 = arith.constant 0 : index
    %c0_47 = arith.constant 0 : index
    %33 = vector.load %arg3[%c1_44, %c0_45, %c0_46, %c0_47] : memref<3x3x128x128xbf16, #tpu.memory_space<vmem>>, vector<1x1x128x128xbf16>
    %34 = vector.shape_cast %33 : vector<1x1x128x128xbf16> to vector<128x128xbf16>
    %cst_48 = arith.constant dense<0.000000e+00> : vector<256x128xf32>
    %35 = tpu.matmul %31, %34, %cst_48 {dimension_numbers = #tpu.dot_dimension_numbers<[1], [0], [0], [1], [0, 0, 1, 1], [], []>} : vector<256x128xbf16>, vector<128x128xbf16>, vector<256x128xf32> -> vector<256x128xf32>
    %36 = arith.addf %32, %35 : vector<256x128xf32>
    %c0_49 = arith.constant 0 : index
    %c0_50 = arith.constant 0 : index
    %37 = vector.load %arg6[%c0_49, %c0_50] : memref<256x128xf32, #tpu.memory_space<vmem>>, vector<256x128xf32>
    tpu.vector_store %arg6[%c0_49, %c0_50], %36 {strides = array<i32>} : memref<256x128xf32, #tpu.memory_space<vmem>>, vector<256x128xf32>,
    %c0_51 = arith.constant 0 : index
    %c1_52 = arith.constant 1 : index
    %c1_53 = arith.constant 1 : index
    %c0_54 = arith.constant 0 : index
    %38 = vector.load %arg2[%c0_51, %c1_52, %c1_53, %c0_54] : memref<1x18x18x128xbf16, #tpu.memory_space<vmem>>, vector<1x16x16x128xbf16>
    %39 = vector.shape_cast %38 : vector<1x16x16x128xbf16> to vector<16x16x128xbf16>
    %40 = vector.shape_cast %39 : vector<16x16x128xbf16> to vector<256x128xbf16>
    %c0_55 = arith.constant 0 : index
    %c0_56 = arith.constant 0 : index
    %41 = vector.load %arg6[%c0_55, %c0_56] : memref<256x128xf32, #tpu.memory_space<vmem>>, vector<256x128xf32>
    %c1_57 = arith.constant 1 : index
    %c1_58 = arith.constant 1 : index
    %c0_59 = arith.constant 0 : index
    %c0_60 = arith.constant 0 : index
    %42 = vector.load %arg3[%c1_57, %c1_58, %c0_59, %c0_60] : memref<3x3x128x128xbf16, #tpu.memory_space<vmem>>, vector<1x1x128x128xbf16>
    %43 = vector.shape_cast %42 : vector<1x1x128x128xbf16> to vector<128x128xbf16>
    %cst_61 = arith.constant dense<0.000000e+00> : vector<256x128xf32>
    %44 = tpu.matmul %40, %43, %cst_61 {dimension_numbers = #tpu.dot_dimension_numbers<[1], [0], [0], [1], [0, 0, 1, 1], [], []>} : vector<256x128xbf16>, vector<128x128xbf16>, vector<256x128xf32> -> vector<256x128xf32>
    %45 = arith.addf %41, %44 : vector<256x128xf32>
    %c0_62 = arith.constant 0 : index
    %c0_63 = arith.constant 0 : index
    %46 = vector.load %arg6[%c0_62, %c0_63] : memref<256x128xf32, #tpu.memory_space<vmem>>, vector<256x128xf32>
    tpu.vector_store %arg6[%c0_62, %c0_63], %45 {strides = array<i32>} : memref<256x128xf32, #tpu.memory_space<vmem>>, vector<256x128xf32>,
    %c0_64 = arith.constant 0 : index
    %c1_65 = arith.constant 1 : index
    %c2_66 = arith.constant 2 : index
    %c0_67 = arith.constant 0 : index
    %47 = vector.load %arg2[%c0_64, %c1_65, %c2_66, %c0_67] : memref<1x18x18x128xbf16, #tpu.memory_space<vmem>>, vector<1x16x16x128xbf16>
    %48 = vector.shape_cast %47 : vector<1x16x16x128xbf16> to vector<16x16x128xbf16>
    %49 = vector.shape_cast %48 : vector<16x16x128xbf16> to vector<256x128xbf16>
    %c0_68 = arith.constant 0 : index
    %c0_69 = arith.constant 0 : index
    %50 = vector.load %arg6[%c0_68, %c0_69] : memref<256x128xf32, #tpu.memory_space<vmem>>, vector<256x128xf32>
    %c1_70 = arith.constant 1 : index
    %c2_71 = arith.constant 2 : index
    %c0_72 = arith.constant 0 : index
    %c0_73 = arith.constant 0 : index
    %51 = vector.load %arg3[%c1_70, %c2_71, %c0_72, %c0_73] : memref<3x3x128x128xbf16, #tpu.memory_space<vmem>>, vector<1x1x128x128xbf16>
    %52 = vector.shape_cast %51 : vector<1x1x128x128xbf16> to vector<128x128xbf16>
    %cst_74 = arith.constant dense<0.000000e+00> : vector<256x128xf32>
    %53 = tpu.matmul %49, %52, %cst_74 {dimension_numbers = #tpu.dot_dimension_numbers<[1], [0], [0], [1], [0, 0, 1, 1], [], []>} : vector<256x128xbf16>, vector<128x128xbf16>, vector<256x128xf32> -> vector<256x128xf32>
    %54 = arith.addf %50, %53 : vector<256x128xf32>
    %c0_75 = arith.constant 0 : index
    %c0_76 = arith.constant 0 : index
    %55 = vector.load %arg6[%c0_75, %c0_76] : memref<256x128xf32, #tpu.memory_space<vmem>>, vector<256x128xf32>
    tpu.vector_store %arg6[%c0_75, %c0_76], %54 {strides = array<i32>} : memref<256x128xf32, #tpu.memory_space<vmem>>, vector<256x128xf32>,
    %c0_77 = arith.constant 0 : index
    %c2_78 = arith.constant 2 : index
    %c0_79 = arith.constant 0 : index
    %c0_80 = arith.constant 0 : index
    %56 = vector.load %arg2[%c0_77, %c2_78, %c0_79, %c0_80] : memref<1x18x18x128xbf16, #tpu.memory_space<vmem>>, vector<1x16x16x128xbf16>
    %57 = vector.shape_cast %56 : vector<1x16x16x128xbf16> to vector<16x16x128xbf16>
    %58 = vector.shape_cast %57 : vector<16x16x128xbf16> to vector<256x128xbf16>
    %c0_81 = arith.constant 0 : index
    %c0_82 = arith.constant 0 : index
    %59 = vector.load %arg6[%c0_81, %c0_82] : memref<256x128xf32, #tpu.memory_space<vmem>>, vector<256x128xf32>
    %c2_83 = arith.constant 2 : index
    %c0_84 = arith.constant 0 : index
    %c0_85 = arith.constant 0 : index
    %c0_86 = arith.constant 0 : index
    %60 = vector.load %arg3[%c2_83, %c0_84, %c0_85, %c0_86] : memref<3x3x128x128xbf16, #tpu.memory_space<vmem>>, vector<1x1x128x128xbf16>
    %61 = vector.shape_cast %60 : vector<1x1x128x128xbf16> to vector<128x128xbf16>
    %cst_87 = arith.constant dense<0.000000e+00> : vector<256x128xf32>
    %62 = tpu.matmul %58, %61, %cst_87 {dimension_numbers = #tpu.dot_dimension_numbers<[1], [0], [0], [1], [0, 0, 1, 1], [], []>} : vector<256x128xbf16>, vector<128x128xbf16>, vector<256x128xf32> -> vector<256x128xf32>
    %63 = arith.addf %59, %62 : vector<256x128xf32>
    %c0_88 = arith.constant 0 : index
    %c0_89 = arith.constant 0 : index
    %64 = vector.load %arg6[%c0_88, %c0_89] : memref<256x128xf32, #tpu.memory_space<vmem>>, vector<256x128xf32>
    tpu.vector_store %arg6[%c0_88, %c0_89], %63 {strides = array<i32>} : memref<256x128xf32, #tpu.memory_space<vmem>>, vector<256x128xf32>,
    %c0_90 = arith.constant 0 : index
    %c2_91 = arith.constant 2 : index
    %c1_92 = arith.constant 1 : index
    %c0_93 = arith.constant 0 : index
    %65 = vector.load %arg2[%c0_90, %c2_91, %c1_92, %c0_93] : memref<1x18x18x128xbf16, #tpu.memory_space<vmem>>, vector<1x16x16x128xbf16>
    %66 = vector.shape_cast %65 : vector<1x16x16x128xbf16> to vector<16x16x128xbf16>
    %67 = vector.shape_cast %66 : vector<16x16x128xbf16> to vector<256x128xbf16>
    %c0_94 = arith.constant 0 : index
    %c0_95 = arith.constant 0 : index
    %68 = vector.load %arg6[%c0_94, %c0_95] : memref<256x128xf32, #tpu.memory_space<vmem>>, vector<256x128xf32>
    %c2_96 = arith.constant 2 : index
    %c1_97 = arith.constant 1 : index
    %c0_98 = arith.constant 0 : index
    %c0_99 = arith.constant 0 : index
    %69 = vector.load %arg3[%c2_96, %c1_97, %c0_98, %c0_99] : memref<3x3x128x128xbf16, #tpu.memory_space<vmem>>, vector<1x1x128x128xbf16>
    %70 = vector.shape_cast %69 : vector<1x1x128x128xbf16> to vector<128x128xbf16>
    %cst_100 = arith.constant dense<0.000000e+00> : vector<256x128xf32>
    %71 = tpu.matmul %67, %70, %cst_100 {dimension_numbers = #tpu.dot_dimension_numbers<[1], [0], [0], [1], [0, 0, 1, 1], [], []>} : vector<256x128xbf16>, vector<128x128xbf16>, vector<256x128xf32> -> vector<256x128xf32>
    %72 = arith.addf %68, %71 : vector<256x128xf32>
    %c0_101 = arith.constant 0 : index
    %c0_102 = arith.constant 0 : index
    %73 = vector.load %arg6[%c0_101, %c0_102] : memref<256x128xf32, #tpu.memory_space<vmem>>, vector<256x128xf32>
    tpu.vector_store %arg6[%c0_101, %c0_102], %72 {strides = array<i32>} : memref<256x128xf32, #tpu.memory_space<vmem>>, vector<256x128xf32>,
    %c0_103 = arith.constant 0 : index
    %c2_104 = arith.constant 2 : index
    %c2_105 = arith.constant 2 : index
    %c0_106 = arith.constant 0 : index
    %74 = vector.load %arg2[%c0_103, %c2_104, %c2_105, %c0_106] : memref<1x18x18x128xbf16, #tpu.memory_space<vmem>>, vector<1x16x16x128xbf16>
    %75 = vector.shape_cast %74 : vector<1x16x16x128xbf16> to vector<16x16x128xbf16>
    %76 = vector.shape_cast %75 : vector<16x16x128xbf16> to vector<256x128xbf16>
    %c0_107 = arith.constant 0 : index
    %c0_108 = arith.constant 0 : index
    %77 = vector.load %arg6[%c0_107, %c0_108] : memref<256x128xf32, #tpu.memory_space<vmem>>, vector<256x128xf32>
    %c2_109 = arith.constant 2 : index
    %c2_110 = arith.constant 2 : index
    %c0_111 = arith.constant 0 : index
    %c0_112 = arith.constant 0 : index
    %78 = vector.load %arg3[%c2_109, %c2_110, %c0_111, %c0_112] : memref<3x3x128x128xbf16, #tpu.memory_space<vmem>>, vector<1x1x128x128xbf16>
    %79 = vector.shape_cast %78 : vector<1x1x128x128xbf16> to vector<128x128xbf16>
    %cst_113 = arith.constant dense<0.000000e+00> : vector<256x128xf32>
    %80 = tpu.matmul %76, %79, %cst_113 {dimension_numbers = #tpu.dot_dimension_numbers<[1], [0], [0], [1], [0, 0, 1, 1], [], []>} : vector<256x128xbf16>, vector<128x128xbf16>, vector<256x128xf32> -> vector<256x128xf32>
    %81 = arith.addf %77, %80 : vector<256x128xf32>
    %c0_114 = arith.constant 0 : index
    %c0_115 = arith.constant 0 : index
    %82 = vector.load %arg6[%c0_114, %c0_115] : memref<256x128xf32, #tpu.memory_space<vmem>>, vector<256x128xf32>
    tpu.vector_store %arg6[%c0_114, %c0_115], %81 {strides = array<i32>} : memref<256x128xf32, #tpu.memory_space<vmem>>, vector<256x128xf32>,
    %c0_116 = arith.constant 0 : index
    %c0_117 = arith.constant 0 : index
    %83 = vector.load %arg6[%c0_116, %c0_117] : memref<256x128xf32, #tpu.memory_space<vmem>>, vector<256x128xf32>
    %c0_118 = arith.constant 0 : index
    %c0_119 = arith.constant 0 : index
    %84 = vector.load %arg4[%c0_118, %c0_119] : memref<1x128xf32, #tpu.memory_space<vmem>>, vector<1x128xf32>
    %85 = vector.broadcast %84 : vector<1x128xf32> to vector<256x128xf32>
    %86 = arith.addf %83, %85 : vector<256x128xf32>
    %cst_120 = arith.constant 0.000000e+00 : f32
    %87 = vector.broadcast %cst_120 : f32 to vector<256x128xf32>
    %88 = arith.maximumf %86, %87 : vector<256x128xf32>
    %89 = vector.shape_cast %88 : vector<256x128xf32> to vector<1x256x128xf32>
    %90 = arith.truncf %89 : vector<1x256x128xf32> to vector<1x256x128xbf16>
    %c0_121 = arith.constant 0 : index
    %c0_122 = arith.constant 0 : index
    %c0_123 = arith.constant 0 : index
    %91 = vector.load %arg5[%c0_121, %c0_122, %c0_123] : memref<1x256x128xbf16, #tpu.memory_space<vmem>>, vector<1x256x128xbf16>
    tpu.vector_store %arg5[%c0_121, %c0_122, %c0_123], %90 {strides = array<i32>} : memref<1x256x128xbf16, #tpu.memory_space<vmem>>, vector<1x256x128xbf16>,
    return
  }
  func.func @transform_0(%arg0: i32, %arg1: i32) -> (i32, i32, i32, i32) {
    %c0_i32 = arith.constant 0 : i32
    %c0_i32_0 = arith.constant 0 : i32
    %c0_i32_1 = arith.constant 0 : i32
    %c0_i32_2 = arith.constant 0 : i32
    return %arg0, %c0_i32, %c0_i32_0, %c0_i32_1 : i32, i32, i32, i32
  }
  func.func @transform_1(%arg0: i32, %arg1: i32) -> (i32, i32, i32, i32) {
    %c0_i32 = arith.constant 0 : i32
    %c0_i32_0 = arith.constant 0 : i32
    %c0_i32_1 = arith.constant 0 : i32
    %c0_i32_2 = arith.constant 0 : i32
    return %c0_i32, %c0_i32_0, %c0_i32_1, %arg1 : i32, i32, i32, i32
  }
  func.func @transform_2(%arg0: i32, %arg1: i32) -> (i32, i32) {
    %c0_i32 = arith.constant 0 : i32
    %c0_i32_0 = arith.constant 0 : i32
    return %c0_i32, %arg1 : i32, i32
  }
  func.func @transform_3(%arg0: i32, %arg1: i32) -> (i32, i32, i32) {
    %c0_i32 = arith.constant 0 : i32
    %c0_i32_0 = arith.constant 0 : i32
    return %arg0, %c0_i32, %arg1 : i32, i32, i32
  }
}

module attributes {stable_mosaic.version = 11 : i64} {
  func.func @_maxpool_kernel(%arg0: i32, %arg1: memref<16x2x8x2x128xbf16, #tpu.memory_space<vmem>>, %arg2: memref<16x8x128xbf16, #tpu.memory_space<vmem>>) attributes {dimension_semantics = [#tpu.dimension_semantics<parallel>], iteration_bounds = array<i64: 1>, scalar_prefetch = 0 : i64, scratch_operands = 0 : i64, tpu.core_type = #tpu.core_type<tc>, window_params = [{transform_indices = @transform_0, window_bounds = array<i64: 16, 2, 8, 2, 128>}, {transform_indices = @transform_1, window_bounds = array<i64: 16, 8, 128>}]} {
    %c0 = arith.constant 0 : index
    %c0_0 = arith.constant 0 : index
    %c0_1 = arith.constant 0 : index
    %c0_2 = arith.constant 0 : index
    %c0_3 = arith.constant 0 : index
    %0 = vector.load %arg1[%c0, %c0_0, %c0_1, %c0_2, %c0_3] : memref<16x2x8x2x128xbf16, #tpu.memory_space<vmem>>, vector<16x2x8x2x128xbf16>
    %1 = vector.extract_strided_slice %0 {offsets = [0, 0, 0, 0, 0], sizes = [16, 1, 8, 2, 128], strides = [1, 1, 1, 1, 1]} : vector<16x2x8x2x128xbf16> to vector<16x1x8x2x128xbf16>
    %2 = vector.shape_cast %1 : vector<16x1x8x2x128xbf16> to vector<16x8x2x128xbf16>
    %3 = vector.extract_strided_slice %0 {offsets = [0, 1, 0, 0, 0], sizes = [16, 1, 8, 2, 128], strides = [1, 1, 1, 1, 1]} : vector<16x2x8x2x128xbf16> to vector<16x1x8x2x128xbf16>
    %4 = vector.shape_cast %3 : vector<16x1x8x2x128xbf16> to vector<16x8x2x128xbf16>
    %5 = arith.maximumf %2, %4 : vector<16x8x2x128xbf16>
    %6 = vector.extract_strided_slice %5 {offsets = [0, 0, 0, 0], sizes = [16, 8, 1, 128], strides = [1, 1, 1, 1]} : vector<16x8x2x128xbf16> to vector<16x8x1x128xbf16>
    %7 = vector.shape_cast %6 : vector<16x8x1x128xbf16> to vector<16x8x128xbf16>
    %8 = vector.extract_strided_slice %5 {offsets = [0, 0, 1, 0], sizes = [16, 8, 1, 128], strides = [1, 1, 1, 1]} : vector<16x8x2x128xbf16> to vector<16x8x1x128xbf16>
    %9 = vector.shape_cast %8 : vector<16x8x1x128xbf16> to vector<16x8x128xbf16>
    %10 = arith.maximumf %7, %9 : vector<16x8x128xbf16>
    %c0_4 = arith.constant 0 : index
    %c0_5 = arith.constant 0 : index
    %c0_6 = arith.constant 0 : index
    %11 = vector.load %arg2[%c0_4, %c0_5, %c0_6] : memref<16x8x128xbf16, #tpu.memory_space<vmem>>, vector<16x8x128xbf16>
    tpu.vector_store %arg2[%c0_4, %c0_5, %c0_6], %10 {strides = array<i32>} : memref<16x8x128xbf16, #tpu.memory_space<vmem>>, vector<16x8x128xbf16>,
    return
  }
  func.func @transform_0(%arg0: i32) -> (i32, i32, i32, i32, i32) {
    %c0_i32 = arith.constant 0 : i32
    %c0_i32_0 = arith.constant 0 : i32
    %c0_i32_1 = arith.constant 0 : i32
    %c0_i32_2 = arith.constant 0 : i32
    %c0_i32_3 = arith.constant 0 : i32
    return %arg0, %c0_i32, %c0_i32_0, %c0_i32_1, %c0_i32_2 : i32, i32, i32, i32, i32
  }
  func.func @transform_1(%arg0: i32) -> (i32, i32, i32) {
    %c0_i32 = arith.constant 0 : i32
    %c0_i32_0 = arith.constant 0 : i32
    %c0_i32_1 = arith.constant 0 : i32
    return %arg0, %c0_i32, %c0_i32_0 : i32, i32, i32
  }
}

module attributes {stable_mosaic.version = 11 : i64} {
  func.func @_maxpool_kernel(%arg0: i32, %arg1: memref<8x2x4x2x128xbf16, #tpu.memory_space<vmem>>, %arg2: memref<8x4x128xbf16, #tpu.memory_space<vmem>>) attributes {dimension_semantics = [#tpu.dimension_semantics<parallel>], iteration_bounds = array<i64: 1>, scalar_prefetch = 0 : i64, scratch_operands = 0 : i64, tpu.core_type = #tpu.core_type<tc>, window_params = [{transform_indices = @transform_0, window_bounds = array<i64: 8, 2, 4, 2, 128>}, {transform_indices = @transform_1, window_bounds = array<i64: 8, 4, 128>}]} {
    %c0 = arith.constant 0 : index
    %c0_0 = arith.constant 0 : index
    %c0_1 = arith.constant 0 : index
    %c0_2 = arith.constant 0 : index
    %c0_3 = arith.constant 0 : index
    %0 = vector.load %arg1[%c0, %c0_0, %c0_1, %c0_2, %c0_3] : memref<8x2x4x2x128xbf16, #tpu.memory_space<vmem>>, vector<8x2x4x2x128xbf16>
    %1 = vector.extract_strided_slice %0 {offsets = [0, 0, 0, 0, 0], sizes = [8, 1, 4, 2, 128], strides = [1, 1, 1, 1, 1]} : vector<8x2x4x2x128xbf16> to vector<8x1x4x2x128xbf16>
    %2 = vector.shape_cast %1 : vector<8x1x4x2x128xbf16> to vector<8x4x2x128xbf16>
    %3 = vector.extract_strided_slice %0 {offsets = [0, 1, 0, 0, 0], sizes = [8, 1, 4, 2, 128], strides = [1, 1, 1, 1, 1]} : vector<8x2x4x2x128xbf16> to vector<8x1x4x2x128xbf16>
    %4 = vector.shape_cast %3 : vector<8x1x4x2x128xbf16> to vector<8x4x2x128xbf16>
    %5 = arith.maximumf %2, %4 : vector<8x4x2x128xbf16>
    %6 = vector.extract_strided_slice %5 {offsets = [0, 0, 0, 0], sizes = [8, 4, 1, 128], strides = [1, 1, 1, 1]} : vector<8x4x2x128xbf16> to vector<8x4x1x128xbf16>
    %7 = vector.shape_cast %6 : vector<8x4x1x128xbf16> to vector<8x4x128xbf16>
    %8 = vector.extract_strided_slice %5 {offsets = [0, 0, 1, 0], sizes = [8, 4, 1, 128], strides = [1, 1, 1, 1]} : vector<8x4x2x128xbf16> to vector<8x4x1x128xbf16>
    %9 = vector.shape_cast %8 : vector<8x4x1x128xbf16> to vector<8x4x128xbf16>
    %10 = arith.maximumf %7, %9 : vector<8x4x128xbf16>
    %c0_4 = arith.constant 0 : index
    %c0_5 = arith.constant 0 : index
    %c0_6 = arith.constant 0 : index
    %11 = vector.load %arg2[%c0_4, %c0_5, %c0_6] : memref<8x4x128xbf16, #tpu.memory_space<vmem>>, vector<8x4x128xbf16>
    tpu.vector_store %arg2[%c0_4, %c0_5, %c0_6], %10 {strides = array<i32>} : memref<8x4x128xbf16, #tpu.memory_space<vmem>>, vector<8x4x128xbf16>,
    return
  }
  func.func @transform_0(%arg0: i32) -> (i32, i32, i32, i32, i32) {
    %c0_i32 = arith.constant 0 : i32
    %c0_i32_0 = arith.constant 0 : i32
    %c0_i32_1 = arith.constant 0 : i32
    %c0_i32_2 = arith.constant 0 : i32
    %c0_i32_3 = arith.constant 0 : i32
    return %arg0, %c0_i32, %c0_i32_0, %c0_i32_1, %c0_i32_2 : i32, i32, i32, i32, i32
  }
  func.func @transform_1(%arg0: i32) -> (i32, i32, i32) {
    %c0_i32 = arith.constant 0 : i32
    %c0_i32_0 = arith.constant 0 : i32
    %c0_i32_1 = arith.constant 0 : i32
    return %arg0, %c0_i32, %c0_i32_0 : i32, i32, i32
  }
}

module attributes {stable_mosaic.version = 11 : i64} {
  func.func @_conv3x3_kernel(%arg0: i32, %arg1: i32, %arg2: memref<1x10x10x128xbf16, #tpu.memory_space<vmem>>, %arg3: memref<3x3x128x128xbf16, #tpu.memory_space<vmem>>, %arg4: memref<1x128xf32, #tpu.memory_space<vmem>>, %arg5: memref<1x64x128xbf16, #tpu.memory_space<vmem>>, %arg6: memref<64x128xf32, #tpu.memory_space<vmem>>) attributes {dimension_semantics = [#tpu.dimension_semantics<parallel>, #tpu.dimension_semantics<parallel>], iteration_bounds = array<i64: 2, 1>, scalar_prefetch = 0 : i64, scratch_operands = 1 : i64, tpu.core_type = #tpu.core_type<tc>, window_params = [{transform_indices = @transform_0, window_bounds = array<i64: 1, 10, 10, 128>}, {transform_indices = @transform_1, window_bounds = array<i64: 3, 3, 128, 128>}, {transform_indices = @transform_2, window_bounds = array<i64: 1, 128>}, {transform_indices = @transform_3, window_bounds = array<i64: 1, 64, 128>}]} {
    %cst = arith.constant 0.000000e+00 : f32
    %0 = vector.broadcast %cst : f32 to vector<64x128xf32>
    %c0 = arith.constant 0 : index
    %c0_0 = arith.constant 0 : index
    %1 = vector.load %arg6[%c0, %c0_0] : memref<64x128xf32, #tpu.memory_space<vmem>>, vector<64x128xf32>
    tpu.vector_store %arg6[%c0, %c0_0], %0 {strides = array<i32>} : memref<64x128xf32, #tpu.memory_space<vmem>>, vector<64x128xf32>,
    %c0_1 = arith.constant 0 : index
    %c0_2 = arith.constant 0 : index
    %c0_3 = arith.constant 0 : index
    %c0_4 = arith.constant 0 : index
    %2 = vector.load %arg2[%c0_1, %c0_2, %c0_3, %c0_4] : memref<1x10x10x128xbf16, #tpu.memory_space<vmem>>, vector<1x8x8x128xbf16>
    %3 = vector.shape_cast %2 : vector<1x8x8x128xbf16> to vector<8x8x128xbf16>
    %4 = vector.shape_cast %3 : vector<8x8x128xbf16> to vector<64x128xbf16>
    %c0_5 = arith.constant 0 : index
    %c0_6 = arith.constant 0 : index
    %5 = vector.load %arg6[%c0_5, %c0_6] : memref<64x128xf32, #tpu.memory_space<vmem>>, vector<64x128xf32>
    %c0_7 = arith.constant 0 : index
    %c0_8 = arith.constant 0 : index
    %c0_9 = arith.constant 0 : index
    %c0_10 = arith.constant 0 : index
    %6 = vector.load %arg3[%c0_7, %c0_8, %c0_9, %c0_10] : memref<3x3x128x128xbf16, #tpu.memory_space<vmem>>, vector<1x1x128x128xbf16>
    %7 = vector.shape_cast %6 : vector<1x1x128x128xbf16> to vector<128x128xbf16>
    %cst_11 = arith.constant dense<0.000000e+00> : vector<64x128xf32>
    %8 = tpu.matmul %4, %7, %cst_11 {dimension_numbers = #tpu.dot_dimension_numbers<[1], [0], [0], [1], [0, 0, 1, 1], [], []>} : vector<64x128xbf16>, vector<128x128xbf16>, vector<64x128xf32> -> vector<64x128xf32>
    %9 = arith.addf %5, %8 : vector<64x128xf32>
    %c0_12 = arith.constant 0 : index
    %c0_13 = arith.constant 0 : index
    %10 = vector.load %arg6[%c0_12, %c0_13] : memref<64x128xf32, #tpu.memory_space<vmem>>, vector<64x128xf32>
    tpu.vector_store %arg6[%c0_12, %c0_13], %9 {strides = array<i32>} : memref<64x128xf32, #tpu.memory_space<vmem>>, vector<64x128xf32>,
    %c0_14 = arith.constant 0 : index
    %c0_15 = arith.constant 0 : index
    %c1 = arith.constant 1 : index
    %c0_16 = arith.constant 0 : index
    %11 = vector.load %arg2[%c0_14, %c0_15, %c1, %c0_16] : memref<1x10x10x128xbf16, #tpu.memory_space<vmem>>, vector<1x8x8x128xbf16>
    %12 = vector.shape_cast %11 : vector<1x8x8x128xbf16> to vector<8x8x128xbf16>
    %13 = vector.shape_cast %12 : vector<8x8x128xbf16> to vector<64x128xbf16>
    %c0_17 = arith.constant 0 : index
    %c0_18 = arith.constant 0 : index
    %14 = vector.load %arg6[%c0_17, %c0_18] : memref<64x128xf32, #tpu.memory_space<vmem>>, vector<64x128xf32>
    %c0_19 = arith.constant 0 : index
    %c1_20 = arith.constant 1 : index
    %c0_21 = arith.constant 0 : index
    %c0_22 = arith.constant 0 : index
    %15 = vector.load %arg3[%c0_19, %c1_20, %c0_21, %c0_22] : memref<3x3x128x128xbf16, #tpu.memory_space<vmem>>, vector<1x1x128x128xbf16>
    %16 = vector.shape_cast %15 : vector<1x1x128x128xbf16> to vector<128x128xbf16>
    %cst_23 = arith.constant dense<0.000000e+00> : vector<64x128xf32>
    %17 = tpu.matmul %13, %16, %cst_23 {dimension_numbers = #tpu.dot_dimension_numbers<[1], [0], [0], [1], [0, 0, 1, 1], [], []>} : vector<64x128xbf16>, vector<128x128xbf16>, vector<64x128xf32> -> vector<64x128xf32>
    %18 = arith.addf %14, %17 : vector<64x128xf32>
    %c0_24 = arith.constant 0 : index
    %c0_25 = arith.constant 0 : index
    %19 = vector.load %arg6[%c0_24, %c0_25] : memref<64x128xf32, #tpu.memory_space<vmem>>, vector<64x128xf32>
    tpu.vector_store %arg6[%c0_24, %c0_25], %18 {strides = array<i32>} : memref<64x128xf32, #tpu.memory_space<vmem>>, vector<64x128xf32>,
    %c0_26 = arith.constant 0 : index
    %c0_27 = arith.constant 0 : index
    %c2 = arith.constant 2 : index
    %c0_28 = arith.constant 0 : index
    %20 = vector.load %arg2[%c0_26, %c0_27, %c2, %c0_28] : memref<1x10x10x128xbf16, #tpu.memory_space<vmem>>, vector<1x8x8x128xbf16>
    %21 = vector.shape_cast %20 : vector<1x8x8x128xbf16> to vector<8x8x128xbf16>
    %22 = vector.shape_cast %21 : vector<8x8x128xbf16> to vector<64x128xbf16>
    %c0_29 = arith.constant 0 : index
    %c0_30 = arith.constant 0 : index
    %23 = vector.load %arg6[%c0_29, %c0_30] : memref<64x128xf32, #tpu.memory_space<vmem>>, vector<64x128xf32>
    %c0_31 = arith.constant 0 : index
    %c2_32 = arith.constant 2 : index
    %c0_33 = arith.constant 0 : index
    %c0_34 = arith.constant 0 : index
    %24 = vector.load %arg3[%c0_31, %c2_32, %c0_33, %c0_34] : memref<3x3x128x128xbf16, #tpu.memory_space<vmem>>, vector<1x1x128x128xbf16>
    %25 = vector.shape_cast %24 : vector<1x1x128x128xbf16> to vector<128x128xbf16>
    %cst_35 = arith.constant dense<0.000000e+00> : vector<64x128xf32>
    %26 = tpu.matmul %22, %25, %cst_35 {dimension_numbers = #tpu.dot_dimension_numbers<[1], [0], [0], [1], [0, 0, 1, 1], [], []>} : vector<64x128xbf16>, vector<128x128xbf16>, vector<64x128xf32> -> vector<64x128xf32>
    %27 = arith.addf %23, %26 : vector<64x128xf32>
    %c0_36 = arith.constant 0 : index
    %c0_37 = arith.constant 0 : index
    %28 = vector.load %arg6[%c0_36, %c0_37] : memref<64x128xf32, #tpu.memory_space<vmem>>, vector<64x128xf32>
    tpu.vector_store %arg6[%c0_36, %c0_37], %27 {strides = array<i32>} : memref<64x128xf32, #tpu.memory_space<vmem>>, vector<64x128xf32>,
    %c0_38 = arith.constant 0 : index
    %c1_39 = arith.constant 1 : index
    %c0_40 = arith.constant 0 : index
    %c0_41 = arith.constant 0 : index
    %29 = vector.load %arg2[%c0_38, %c1_39, %c0_40, %c0_41] : memref<1x10x10x128xbf16, #tpu.memory_space<vmem>>, vector<1x8x8x128xbf16>
    %30 = vector.shape_cast %29 : vector<1x8x8x128xbf16> to vector<8x8x128xbf16>
    %31 = vector.shape_cast %30 : vector<8x8x128xbf16> to vector<64x128xbf16>
    %c0_42 = arith.constant 0 : index
    %c0_43 = arith.constant 0 : index
    %32 = vector.load %arg6[%c0_42, %c0_43] : memref<64x128xf32, #tpu.memory_space<vmem>>, vector<64x128xf32>
    %c1_44 = arith.constant 1 : index
    %c0_45 = arith.constant 0 : index
    %c0_46 = arith.constant 0 : index
    %c0_47 = arith.constant 0 : index
    %33 = vector.load %arg3[%c1_44, %c0_45, %c0_46, %c0_47] : memref<3x3x128x128xbf16, #tpu.memory_space<vmem>>, vector<1x1x128x128xbf16>
    %34 = vector.shape_cast %33 : vector<1x1x128x128xbf16> to vector<128x128xbf16>
    %cst_48 = arith.constant dense<0.000000e+00> : vector<64x128xf32>
    %35 = tpu.matmul %31, %34, %cst_48 {dimension_numbers = #tpu.dot_dimension_numbers<[1], [0], [0], [1], [0, 0, 1, 1], [], []>} : vector<64x128xbf16>, vector<128x128xbf16>, vector<64x128xf32> -> vector<64x128xf32>
    %36 = arith.addf %32, %35 : vector<64x128xf32>
    %c0_49 = arith.constant 0 : index
    %c0_50 = arith.constant 0 : index
    %37 = vector.load %arg6[%c0_49, %c0_50] : memref<64x128xf32, #tpu.memory_space<vmem>>, vector<64x128xf32>
    tpu.vector_store %arg6[%c0_49, %c0_50], %36 {strides = array<i32>} : memref<64x128xf32, #tpu.memory_space<vmem>>, vector<64x128xf32>,
    %c0_51 = arith.constant 0 : index
    %c1_52 = arith.constant 1 : index
    %c1_53 = arith.constant 1 : index
    %c0_54 = arith.constant 0 : index
    %38 = vector.load %arg2[%c0_51, %c1_52, %c1_53, %c0_54] : memref<1x10x10x128xbf16, #tpu.memory_space<vmem>>, vector<1x8x8x128xbf16>
    %39 = vector.shape_cast %38 : vector<1x8x8x128xbf16> to vector<8x8x128xbf16>
    %40 = vector.shape_cast %39 : vector<8x8x128xbf16> to vector<64x128xbf16>
    %c0_55 = arith.constant 0 : index
    %c0_56 = arith.constant 0 : index
    %41 = vector.load %arg6[%c0_55, %c0_56] : memref<64x128xf32, #tpu.memory_space<vmem>>, vector<64x128xf32>
    %c1_57 = arith.constant 1 : index
    %c1_58 = arith.constant 1 : index
    %c0_59 = arith.constant 0 : index
    %c0_60 = arith.constant 0 : index
    %42 = vector.load %arg3[%c1_57, %c1_58, %c0_59, %c0_60] : memref<3x3x128x128xbf16, #tpu.memory_space<vmem>>, vector<1x1x128x128xbf16>
    %43 = vector.shape_cast %42 : vector<1x1x128x128xbf16> to vector<128x128xbf16>
    %cst_61 = arith.constant dense<0.000000e+00> : vector<64x128xf32>
    %44 = tpu.matmul %40, %43, %cst_61 {dimension_numbers = #tpu.dot_dimension_numbers<[1], [0], [0], [1], [0, 0, 1, 1], [], []>} : vector<64x128xbf16>, vector<128x128xbf16>, vector<64x128xf32> -> vector<64x128xf32>
    %45 = arith.addf %41, %44 : vector<64x128xf32>
    %c0_62 = arith.constant 0 : index
    %c0_63 = arith.constant 0 : index
    %46 = vector.load %arg6[%c0_62, %c0_63] : memref<64x128xf32, #tpu.memory_space<vmem>>, vector<64x128xf32>
    tpu.vector_store %arg6[%c0_62, %c0_63], %45 {strides = array<i32>} : memref<64x128xf32, #tpu.memory_space<vmem>>, vector<64x128xf32>,
    %c0_64 = arith.constant 0 : index
    %c1_65 = arith.constant 1 : index
    %c2_66 = arith.constant 2 : index
    %c0_67 = arith.constant 0 : index
    %47 = vector.load %arg2[%c0_64, %c1_65, %c2_66, %c0_67] : memref<1x10x10x128xbf16, #tpu.memory_space<vmem>>, vector<1x8x8x128xbf16>
    %48 = vector.shape_cast %47 : vector<1x8x8x128xbf16> to vector<8x8x128xbf16>
    %49 = vector.shape_cast %48 : vector<8x8x128xbf16> to vector<64x128xbf16>
    %c0_68 = arith.constant 0 : index
    %c0_69 = arith.constant 0 : index
    %50 = vector.load %arg6[%c0_68, %c0_69] : memref<64x128xf32, #tpu.memory_space<vmem>>, vector<64x128xf32>
    %c1_70 = arith.constant 1 : index
    %c2_71 = arith.constant 2 : index
    %c0_72 = arith.constant 0 : index
    %c0_73 = arith.constant 0 : index
    %51 = vector.load %arg3[%c1_70, %c2_71, %c0_72, %c0_73] : memref<3x3x128x128xbf16, #tpu.memory_space<vmem>>, vector<1x1x128x128xbf16>
    %52 = vector.shape_cast %51 : vector<1x1x128x128xbf16> to vector<128x128xbf16>
    %cst_74 = arith.constant dense<0.000000e+00> : vector<64x128xf32>
    %53 = tpu.matmul %49, %52, %cst_74 {dimension_numbers = #tpu.dot_dimension_numbers<[1], [0], [0], [1], [0, 0, 1, 1], [], []>} : vector<64x128xbf16>, vector<128x128xbf16>, vector<64x128xf32> -> vector<64x128xf32>
    %54 = arith.addf %50, %53 : vector<64x128xf32>
    %c0_75 = arith.constant 0 : index
    %c0_76 = arith.constant 0 : index
    %55 = vector.load %arg6[%c0_75, %c0_76] : memref<64x128xf32, #tpu.memory_space<vmem>>, vector<64x128xf32>
    tpu.vector_store %arg6[%c0_75, %c0_76], %54 {strides = array<i32>} : memref<64x128xf32, #tpu.memory_space<vmem>>, vector<64x128xf32>,
    %c0_77 = arith.constant 0 : index
    %c2_78 = arith.constant 2 : index
    %c0_79 = arith.constant 0 : index
    %c0_80 = arith.constant 0 : index
    %56 = vector.load %arg2[%c0_77, %c2_78, %c0_79, %c0_80] : memref<1x10x10x128xbf16, #tpu.memory_space<vmem>>, vector<1x8x8x128xbf16>
    %57 = vector.shape_cast %56 : vector<1x8x8x128xbf16> to vector<8x8x128xbf16>
    %58 = vector.shape_cast %57 : vector<8x8x128xbf16> to vector<64x128xbf16>
    %c0_81 = arith.constant 0 : index
    %c0_82 = arith.constant 0 : index
    %59 = vector.load %arg6[%c0_81, %c0_82] : memref<64x128xf32, #tpu.memory_space<vmem>>, vector<64x128xf32>
    %c2_83 = arith.constant 2 : index
    %c0_84 = arith.constant 0 : index
    %c0_85 = arith.constant 0 : index
    %c0_86 = arith.constant 0 : index
    %60 = vector.load %arg3[%c2_83, %c0_84, %c0_85, %c0_86] : memref<3x3x128x128xbf16, #tpu.memory_space<vmem>>, vector<1x1x128x128xbf16>
    %61 = vector.shape_cast %60 : vector<1x1x128x128xbf16> to vector<128x128xbf16>
    %cst_87 = arith.constant dense<0.000000e+00> : vector<64x128xf32>
    %62 = tpu.matmul %58, %61, %cst_87 {dimension_numbers = #tpu.dot_dimension_numbers<[1], [0], [0], [1], [0, 0, 1, 1], [], []>} : vector<64x128xbf16>, vector<128x128xbf16>, vector<64x128xf32> -> vector<64x128xf32>
    %63 = arith.addf %59, %62 : vector<64x128xf32>
    %c0_88 = arith.constant 0 : index
    %c0_89 = arith.constant 0 : index
    %64 = vector.load %arg6[%c0_88, %c0_89] : memref<64x128xf32, #tpu.memory_space<vmem>>, vector<64x128xf32>
    tpu.vector_store %arg6[%c0_88, %c0_89], %63 {strides = array<i32>} : memref<64x128xf32, #tpu.memory_space<vmem>>, vector<64x128xf32>,
    %c0_90 = arith.constant 0 : index
    %c2_91 = arith.constant 2 : index
    %c1_92 = arith.constant 1 : index
    %c0_93 = arith.constant 0 : index
    %65 = vector.load %arg2[%c0_90, %c2_91, %c1_92, %c0_93] : memref<1x10x10x128xbf16, #tpu.memory_space<vmem>>, vector<1x8x8x128xbf16>
    %66 = vector.shape_cast %65 : vector<1x8x8x128xbf16> to vector<8x8x128xbf16>
    %67 = vector.shape_cast %66 : vector<8x8x128xbf16> to vector<64x128xbf16>
    %c0_94 = arith.constant 0 : index
    %c0_95 = arith.constant 0 : index
    %68 = vector.load %arg6[%c0_94, %c0_95] : memref<64x128xf32, #tpu.memory_space<vmem>>, vector<64x128xf32>
    %c2_96 = arith.constant 2 : index
    %c1_97 = arith.constant 1 : index
    %c0_98 = arith.constant 0 : index
    %c0_99 = arith.constant 0 : index
    %69 = vector.load %arg3[%c2_96, %c1_97, %c0_98, %c0_99] : memref<3x3x128x128xbf16, #tpu.memory_space<vmem>>, vector<1x1x128x128xbf16>
    %70 = vector.shape_cast %69 : vector<1x1x128x128xbf16> to vector<128x128xbf16>
    %cst_100 = arith.constant dense<0.000000e+00> : vector<64x128xf32>
    %71 = tpu.matmul %67, %70, %cst_100 {dimension_numbers = #tpu.dot_dimension_numbers<[1], [0], [0], [1], [0, 0, 1, 1], [], []>} : vector<64x128xbf16>, vector<128x128xbf16>, vector<64x128xf32> -> vector<64x128xf32>
    %72 = arith.addf %68, %71 : vector<64x128xf32>
    %c0_101 = arith.constant 0 : index
    %c0_102 = arith.constant 0 : index
    %73 = vector.load %arg6[%c0_101, %c0_102] : memref<64x128xf32, #tpu.memory_space<vmem>>, vector<64x128xf32>
    tpu.vector_store %arg6[%c0_101, %c0_102], %72 {strides = array<i32>} : memref<64x128xf32, #tpu.memory_space<vmem>>, vector<64x128xf32>,
    %c0_103 = arith.constant 0 : index
    %c2_104 = arith.constant 2 : index
    %c2_105 = arith.constant 2 : index
    %c0_106 = arith.constant 0 : index
    %74 = vector.load %arg2[%c0_103, %c2_104, %c2_105, %c0_106] : memref<1x10x10x128xbf16, #tpu.memory_space<vmem>>, vector<1x8x8x128xbf16>
    %75 = vector.shape_cast %74 : vector<1x8x8x128xbf16> to vector<8x8x128xbf16>
    %76 = vector.shape_cast %75 : vector<8x8x128xbf16> to vector<64x128xbf16>
    %c0_107 = arith.constant 0 : index
    %c0_108 = arith.constant 0 : index
    %77 = vector.load %arg6[%c0_107, %c0_108] : memref<64x128xf32, #tpu.memory_space<vmem>>, vector<64x128xf32>
    %c2_109 = arith.constant 2 : index
    %c2_110 = arith.constant 2 : index
    %c0_111 = arith.constant 0 : index
    %c0_112 = arith.constant 0 : index
    %78 = vector.load %arg3[%c2_109, %c2_110, %c0_111, %c0_112] : memref<3x3x128x128xbf16, #tpu.memory_space<vmem>>, vector<1x1x128x128xbf16>
    %79 = vector.shape_cast %78 : vector<1x1x128x128xbf16> to vector<128x128xbf16>
    %cst_113 = arith.constant dense<0.000000e+00> : vector<64x128xf32>
    %80 = tpu.matmul %76, %79, %cst_113 {dimension_numbers = #tpu.dot_dimension_numbers<[1], [0], [0], [1], [0, 0, 1, 1], [], []>} : vector<64x128xbf16>, vector<128x128xbf16>, vector<64x128xf32> -> vector<64x128xf32>
    %81 = arith.addf %77, %80 : vector<64x128xf32>
    %c0_114 = arith.constant 0 : index
    %c0_115 = arith.constant 0 : index
    %82 = vector.load %arg6[%c0_114, %c0_115] : memref<64x128xf32, #tpu.memory_space<vmem>>, vector<64x128xf32>
    tpu.vector_store %arg6[%c0_114, %c0_115], %81 {strides = array<i32>} : memref<64x128xf32, #tpu.memory_space<vmem>>, vector<64x128xf32>,
    %c0_116 = arith.constant 0 : index
    %c0_117 = arith.constant 0 : index
    %83 = vector.load %arg6[%c0_116, %c0_117] : memref<64x128xf32, #tpu.memory_space<vmem>>, vector<64x128xf32>
    %c0_118 = arith.constant 0 : index
    %c0_119 = arith.constant 0 : index
    %84 = vector.load %arg4[%c0_118, %c0_119] : memref<1x128xf32, #tpu.memory_space<vmem>>, vector<1x128xf32>
    %85 = vector.broadcast %84 : vector<1x128xf32> to vector<64x128xf32>
    %86 = arith.addf %83, %85 : vector<64x128xf32>
    %cst_120 = arith.constant 0.000000e+00 : f32
    %87 = vector.broadcast %cst_120 : f32 to vector<64x128xf32>
    %88 = arith.maximumf %86, %87 : vector<64x128xf32>
    %89 = vector.shape_cast %88 : vector<64x128xf32> to vector<1x64x128xf32>
    %90 = arith.truncf %89 : vector<1x64x128xf32> to vector<1x64x128xbf16>
    %c0_121 = arith.constant 0 : index
    %c0_122 = arith.constant 0 : index
    %c0_123 = arith.constant 0 : index
    %91 = vector.load %arg5[%c0_121, %c0_122, %c0_123] : memref<1x64x128xbf16, #tpu.memory_space<vmem>>, vector<1x64x128xbf16>
    tpu.vector_store %arg5[%c0_121, %c0_122, %c0_123], %90 {strides = array<i32>} : memref<1x64x128xbf16, #tpu.memory_space<vmem>>, vector<1x64x128xbf16>,
    return
  }
  func.func @transform_0(%arg0: i32, %arg1: i32) -> (i32, i32, i32, i32) {
    %c0_i32 = arith.constant 0 : i32
    %c0_i32_0 = arith.constant 0 : i32
    %c0_i32_1 = arith.constant 0 : i32
    %c0_i32_2 = arith.constant 0 : i32
    return %arg0, %c0_i32, %c0_i32_0, %c0_i32_1 : i32, i32, i32, i32
  }
  func.func @transform_1(%arg0: i32, %arg1: i32) -> (i32, i32, i32, i32) {
    %c0_i32 = arith.constant 0 : i32
    %c0_i32_0 = arith.constant 0 : i32
    %c0_i32_1 = arith.constant 0 : i32
    %c0_i32_2 = arith.constant 0 : i32
    return %c0_i32, %c0_i32_0, %c0_i32_1, %arg1 : i32, i32, i32, i32
  }
  func.func @transform_2(%arg0: i32, %arg1: i32) -> (i32, i32) {
    %c0_i32 = arith.constant 0 : i32
    %c0_i32_0 = arith.constant 0 : i32
    return %c0_i32, %arg1 : i32, i32
  }
  func.func @transform_3(%arg0: i32, %arg1: i32) -> (i32, i32, i32) {
    %c0_i32 = arith.constant 0 : i32
    %c0_i32_0 = arith.constant 0 : i32
    return %arg0, %c0_i32, %arg1 : i32, i32, i32
  }
}

module attributes {stable_mosaic.version = 11 : i64} {
  func.func @_matmul_bias_kernel(%arg0: i32, %arg1: i32, %arg2: i32, %arg3: memref<8x128xbf16, #tpu.memory_space<vmem>>, %arg4: memref<128x128xbf16, #tpu.memory_space<vmem>>, %arg5: memref<1x128xf32, #tpu.memory_space<vmem>>, %arg6: memref<8x128xf32, #tpu.memory_space<vmem>>, %arg7: memref<8x128xf32, #tpu.memory_space<vmem>>) attributes {dimension_semantics = [#tpu.dimension_semantics<parallel>, #tpu.dimension_semantics<parallel>, #tpu.dimension_semantics<arbitrary>], iteration_bounds = array<i64: 1, 1, 1>, scalar_prefetch = 0 : i64, scratch_operands = 1 : i64, tpu.core_type = #tpu.core_type<tc>, window_params = [{transform_indices = @transform_0, window_bounds = array<i64: 8, 128>}, {transform_indices = @transform_1, window_bounds = array<i64: 128, 128>}, {transform_indices = @transform_2, window_bounds = array<i64: 1, 128>}, {transform_indices = @transform_3, window_bounds = array<i64: 8, 128>}]} {
    %c0_i32 = arith.constant 0 : i32
    %0 = arith.cmpi eq, %arg2, %c0_i32 : i32
    %1 = arith.extui %0 : i1 to i32
    %c0_i32_0 = arith.constant 0 : i32
    %2 = arith.cmpi ne, %1, %c0_i32_0 : i32
    scf.if %2 {
      %cst_10 = arith.constant 0.000000e+00 : f32
      %12 = vector.broadcast %cst_10 : f32 to vector<8x128xf32>
      %c0_11 = arith.constant 0 : index
      %c0_12 = arith.constant 0 : index
      %13 = vector.load %arg7[%c0_11, %c0_12] : memref<8x128xf32, #tpu.memory_space<vmem>>, vector<8x128xf32>
      tpu.vector_store %arg7[%c0_11, %c0_12], %12 {strides = array<i32>} : memref<8x128xf32, #tpu.memory_space<vmem>>, vector<8x128xf32>,
    } else {
    }
    %c0 = arith.constant 0 : index
    %c0_1 = arith.constant 0 : index
    %3 = vector.load %arg7[%c0, %c0_1] : memref<8x128xf32, #tpu.memory_space<vmem>>, vector<8x128xf32>
    %c0_2 = arith.constant 0 : index
    %c0_3 = arith.constant 0 : index
    %4 = vector.load %arg3[%c0_2, %c0_3] : memref<8x128xbf16, #tpu.memory_space<vmem>>, vector<8x128xbf16>
    %c0_4 = arith.constant 0 : index
    %c0_5 = arith.constant 0 : index
    %5 = vector.load %arg4[%c0_4, %c0_5] : memref<128x128xbf16, #tpu.memory_space<vmem>>, vector<128x128xbf16>
    %cst = arith.constant dense<0.000000e+00> : vector<8x128xf32>
    %6 = tpu.matmul %4, %5, %cst {dimension_numbers = #tpu.dot_dimension_numbers<[1], [0], [0], [1], [0, 0, 1, 1], [], []>} : vector<8x128xbf16>, vector<128x128xbf16>, vector<8x128xf32> -> vector<8x128xf32>
    %7 = arith.addf %3, %6 : vector<8x128xf32>
    %c0_6 = arith.constant 0 : index
    %c0_7 = arith.constant 0 : index
    %8 = vector.load %arg7[%c0_6, %c0_7] : memref<8x128xf32, #tpu.memory_space<vmem>>, vector<8x128xf32>
    tpu.vector_store %arg7[%c0_6, %c0_7], %7 {strides = array<i32>} : memref<8x128xf32, #tpu.memory_space<vmem>>, vector<8x128xf32>,
    %c0_i32_8 = arith.constant 0 : i32
    %9 = arith.cmpi eq, %arg2, %c0_i32_8 : i32
    %10 = arith.extui %9 : i1 to i32
    %c0_i32_9 = arith.constant 0 : i32
    %11 = arith.cmpi ne, %10, %c0_i32_9 : i32
    scf.if %11 {
      %c0_10 = arith.constant 0 : index
      %c0_11 = arith.constant 0 : index
      %12 = vector.load %arg7[%c0_10, %c0_11] : memref<8x128xf32, #tpu.memory_space<vmem>>, vector<8x128xf32>
      %c0_12 = arith.constant 0 : index
      %c0_13 = arith.constant 0 : index
      %13 = vector.load %arg5[%c0_12, %c0_13] : memref<1x128xf32, #tpu.memory_space<vmem>>, vector<1x128xf32>
      %14 = vector.broadcast %13 : vector<1x128xf32> to vector<8x128xf32>
      %15 = arith.addf %12, %14 : vector<8x128xf32>
      %c0_14 = arith.constant 0 : index
      %c0_15 = arith.constant 0 : index
      %16 = vector.load %arg6[%c0_14, %c0_15] : memref<8x128xf32, #tpu.memory_space<vmem>>, vector<8x128xf32>
      tpu.vector_store %arg6[%c0_14, %c0_15], %15 {strides = array<i32>} : memref<8x128xf32, #tpu.memory_space<vmem>>, vector<8x128xf32>,
    } else {
    }
    return
  }
  func.func @transform_0(%arg0: i32, %arg1: i32, %arg2: i32) -> (i32, i32) {
    %c0_i32 = arith.constant 0 : i32
    return %arg0, %arg2 : i32, i32
  }
  func.func @transform_1(%arg0: i32, %arg1: i32, %arg2: i32) -> (i32, i32) {
    %c0_i32 = arith.constant 0 : i32
    return %arg2, %arg1 : i32, i32
  }
  func.func @transform_2(%arg0: i32, %arg1: i32, %arg2: i32) -> (i32, i32) {
    %c0_i32 = arith.constant 0 : i32
    %c0_i32_0 = arith.constant 0 : i32
    return %c0_i32, %arg1 : i32, i32
  }
  func.func @transform_3(%arg0: i32, %arg1: i32, %arg2: i32) -> (i32, i32) {
    %c0_i32 = arith.constant 0 : i32
    return %arg0, %arg1 : i32, i32
  }
}

module attributes {stable_mosaic.version = 11 : i64} {
  func.func @_relu_kernel(%arg0: i32, %arg1: memref<2x32xf32, #tpu.memory_space<vmem>>, %arg2: memref<2x32xf32, #tpu.memory_space<vmem>>) attributes {dimension_semantics = [#tpu.dimension_semantics<parallel>], iteration_bounds = array<i64: 1>, scalar_prefetch = 0 : i64, scratch_operands = 0 : i64, tpu.core_type = #tpu.core_type<tc>, window_params = [{transform_indices = @transform_0, window_bounds = array<i64: 2, 32>}, {transform_indices = @transform_1, window_bounds = array<i64: 2, 32>}]} {
    %c0 = arith.constant 0 : index
    %c0_0 = arith.constant 0 : index
    %0 = vector.load %arg1[%c0, %c0_0] : memref<2x32xf32, #tpu.memory_space<vmem>>, vector<2x32xf32>
    %cst = arith.constant 0.000000e+00 : f32
    %1 = vector.broadcast %cst : f32 to vector<2x32xf32>
    %2 = arith.maximumf %0, %1 : vector<2x32xf32>
    %c0_1 = arith.constant 0 : index
    %c0_2 = arith.constant 0 : index
    %3 = vector.load %arg2[%c0_1, %c0_2] : memref<2x32xf32, #tpu.memory_space<vmem>>, vector<2x32xf32>
    tpu.vector_store %arg2[%c0_1, %c0_2], %2 {strides = array<i32>} : memref<2x32xf32, #tpu.memory_space<vmem>>, vector<2x32xf32>,
    return
  }
  func.func @transform_0(%arg0: i32) -> (i32, i32) {
    %c0_i32 = arith.constant 0 : i32
    %c0_i32_0 = arith.constant 0 : i32
    return %arg0, %c0_i32 : i32, i32
  }
  func.func @transform_1(%arg0: i32) -> (i32, i32) {
    %c0_i32 = arith.constant 0 : i32
    %c0_i32_0 = arith.constant 0 : i32
    return %arg0, %c0_i32 : i32, i32
  }
}

</mosaic_0001>

<bundles_post_ra>
// kernel: _device_forward.10
= control target key start
LH: loop header
LB: loop body
LE: loop exit
PB: predicated region body
PF: predicated region fallthrough
CT: control target
= control target key end

     0   :  { %v363_v0 = vlaneseq  ;;  %v1017_v4 = vmov 1935823168   ;;  %v1018_v6 = vmov 1983009808   ;;  %vm841_vm0 = vcmask 1041409   ;;  %s1337_s0 = inlined_call_operand.vmem [shape: bf16[8,2,4,2,128], index: 0, kind: input, shape index: {}]   ;;  %s1338_s1 = inlined_call_operand.vmem [shape: bf16[8,4,128], index: 1, kind: output, shape index: {}]  }
   0x1   :  { %v8_v1 = vld [vmem:[%s1337_s0] sm:$0x1]  ;;  %v9_v2 = vld [vmem:[%s1337_s0 + $0x1] sm:$0x1]  ;;  %v10_v3 = vld [vmem:[%s1337_s0 + $0x2] sm:$0x1]  ;;  %v361_v5 = vunpack.c.l.s4 %v1017_v4  ;;  %v585_v7 = vunpack.c.l.s4 %v1018_v6 }
   0x2   :  { %v11_v8 = vld [vmem:[%s1337_s0 + $0x3] sm:$0x1]  ;;  %v12_v9 = vld [vmem:[%s1337_s0 + $0x4] sm:$0x1]  ;;  %v13_v10 = vld [vmem:[%s1337_s0 + $0x5] sm:$0x1] }
   0x3   :  { %v14_v11 = vld [vmem:[%s1337_s0 + $0x6] sm:$0x1]  ;;  %v15_v12 = vld [vmem:[%s1337_s0 + $0x7] sm:$0x1]  ;;  %v72_v13 = vmax.bf16 %v12_v9, %v8_v1  ;;  %v73_v14 = vmax.bf16 %v13_v10, %v9_v2  ;;  %v362_v15 = vunpack.c.0.s8 %v361_v5  ;;  %v364_v16 = vshrl.u32 %v363_v0, 7 }
   0x4   :  { %v74_v17 = vmax.bf16 %v14_v11, %v10_v3  ;;  %v75_v18 = vmax.bf16 %v15_v12, %v11_v8  ;;  %v586_v19 = vunpack.c.0.s8 %v585_v7  ;;  %v16_v20 = vld [vmem:[%s1337_s0 + $0x8] sm:$0x1]  ;;  %v17_v24 = vld [vmem:[%s1337_s0 + $0x9] sm:$0x1]  ;;  %v18_v25 = vld [vmem:[%s1337_s0 + $0xa] sm:$0x1] }
   0x5   :  { %v105_v21 = vshrl.u32 %v72_v13, 16  ;;  %v110_v22 = vshrl.u32 %v73_v14, 16  ;;  %v1056_v23 = vsub.s32 %v362_v15, %v364_v16  ;;  %v19_v28 = vld [vmem:[%s1337_s0 + $0xb] sm:$0x1]  ;;  %v20_v29 = vld [vmem:[%s1337_s0 + $0xc] sm:$0x1] }
   0x6   :  { %v115_v26 = vshrl.u32 %v74_v17, 16  ;;  %v120_v27 = vshrl.u32 %v75_v18, 16  ;;  %v1070_v32 = vsub.s32 %v586_v19, %v364_v16  ;;  %vm844_vm1 = vcmask 1042434   ;;  %v21_v33 = vld [vmem:[%s1337_s0 + $0xd] sm:$0x1] }
   0x7   :  { %v296_v30 = vmax.bf16 %v105_v21, %v72_v13  ;;  %v297_v31 = vmax.bf16 %v110_v22, %v73_v14  ;;  %v22_v34 = vld [vmem:[%s1337_s0 + $0xe] sm:$0x1]  ;;  %v23_v35 = vld [vmem:[%s1337_s0 + $0xf] sm:$0x1]  ;;  %v76_v36 = vmax.bf16 %v20_v29, %v16_v20  ;;  %vm847_vm2 = vcmask 1043459  }
   0x8   :  { %v298_v37 = vmax.bf16 %v115_v26, %v74_v17  ;;  %v299_v38 = vmax.bf16 %v120_v27, %v75_v18  ;;  %v77_v39 = vmax.bf16 %v21_v33, %v17_v24  ;;  %v78_v40 = vmax.bf16 %v22_v34, %v18_v25  ;;  %v24_v57 = vld [vmem:[%s1337_s0 + $0x10] sm:$0x1]  ;;  %v28_v58 = vld [vmem:[%s1337_s0 + $0x14] sm:$0x1]  ;;  %v25_v3 = vld [vmem:[%s1337_s0 + $0x11] sm:$0x1] }
   0x9   :  { %v366_v41 = vrot.slane %v296_v30, %v1056_v23  ;;  %v373_v42 = vrot.slane %v297_v31, %v1056_v23  ;;  %v79_v43 = vmax.bf16 %v23_v35, %v19_v28  ;;  %v125_v44 = vshrl.u32 %v76_v36, 16  ;;  %v29_v4 = vld [vmem:[%s1337_s0 + $0x15] sm:$0x1]  ;;  %v26_v8 = vld [vmem:[%s1337_s0 + $0x12] sm:$0x1] }
   0xa   :  { %v380_v45 = vrot.slane %v298_v37, %v1056_v23  ;;  %v387_v46 = vrot.slane %v299_v38, %v1056_v23  ;;  %v130_v47 = vshrl.u32 %v77_v39, 16  ;;  %v135_v48 = vshrl.u32 %v78_v40, 16  ;;  %v30_v9 = vld [vmem:[%s1337_s0 + $0x16] sm:$0x1]  ;;  %v27_v15 = vld [vmem:[%s1337_s0 + $0x13] sm:$0x1] }
   0xb   :  { %v590_v49 = vrot.slane %v366_v41, %v1070_v32  ;;  %v597_v50 = vrot.slane %v373_v42, %v1070_v32  ;;  %v140_v51 = vshrl.u32 %v79_v43, 16  ;;  %v300_v52 = vmax.bf16 %v125_v44, %v76_v36  ;;  %v31_v16 = vld [vmem:[%s1337_s0 + $0x17] sm:$0x1]  ;;  %v32_v26 = vld [vmem:[%s1337_s0 + $0x18] sm:$0x1] }
   0xc   :  { %v604_v53 = vrot.slane %v380_v45, %v1070_v32  ;;  %v611_v54 = vrot.slane %v387_v46, %v1070_v32  ;;  %v301_v55 = vmax.bf16 %v130_v47, %v77_v39  ;;  %v302_v56 = vmax.bf16 %v135_v48, %v78_v40  ;;  %v33_v27 = vld [vmem:[%s1337_s0 + $0x19] sm:$0x1]  ;;  %v34_v33 = vld [vmem:[%s1337_s0 + $0x1a] sm:$0x1]  ;;  %v35_v34 = vld [vmem:[%s1337_s0 + $0x1b] sm:$0x1] }
   0xd   :  { %v808_v59 = vunpack.c.l.b16 %v590_v49  ;;  %v809_v60 = vunpack.c.l.b16 %v597_v50  ;;  %v303_v61 = vmax.bf16 %v140_v51, %v79_v43  ;;  %v394_v62 = vrot.slane %v300_v52, %v1056_v23  ;;  %v36_v35 = vld [vmem:[%s1337_s0 + $0x1c] sm:$0x1]  ;;  %v37_v36 = vld [vmem:[%s1337_s0 + $0x1d] sm:$0x1]  ;;  %v38_v41 = vld [vmem:[%s1337_s0 + $0x1e] sm:$0x1] }
   0xe   :  { %v810_v63 = vunpack.c.l.b16 %v604_v53  ;;  %v811_v0 = vunpack.c.l.b16 %v611_v54  ;;  %v401_v1 = vrot.slane %v301_v55, %v1056_v23  ;;  %v408_v2 = vrot.slane %v302_v56, %v1056_v23  ;;  %v39_v46 = vld [vmem:[%s1337_s0 + $0x1f] sm:$0x1] }
   0xf   :  { %v840_v5 = vrot.slane %v809_v60, 7  ;;  %v415_v6 = vrot.slane %v303_v61, %v1056_v23  ;;  %v618_v7 = vrot.slane %v394_v62, %v1070_v32  ;;  %v80_v10 = vmax.bf16 %v28_v58, %v24_v57 }
  0x10   :  { %v843_v11 = vrot.slane %v810_v63, 6  ;;  %v846_v12 = vrot.slane %v811_v0, 5  ;;  %v625_v13 = vrot.slane %v401_v1, %v1070_v32  ;;  %v632_v14 = vrot.slane %v408_v2, %v1070_v32  ;;  %v40_v63 = vld [vmem:[%s1337_s0 + $0x20] sm:$0x1] }
  0x11   :  { %v842_v17 = vsel %vm841_vm0, %v840_v5, %v808_v59  ;;  %v639_v18 = vrot.slane %v415_v6, %v1070_v32  ;;  %v812_v19 = vunpack.c.l.b16 %v618_v7  ;;  %v81_v20 = vmax.bf16 %v29_v4, %v25_v3  ;;  %v44_v4 = vld [vmem:[%s1337_s0 + $0x24] sm:$0x1] }
  0x12   :  { %v845_v21 = vsel %vm844_vm1, %v843_v11, %v842_v17  ;;  %v813_v22 = vunpack.c.l.b16 %v625_v13  ;;  %v814_v24 = vunpack.c.l.b16 %v632_v14  ;;  %v82_v25 = vmax.bf16 %v30_v9, %v26_v8  ;;  %v41_v13 = vld [vmem:[%s1337_s0 + $0x21] sm:$0x1]  ;;  %v45_v14 = vld [vmem:[%s1337_s0 + $0x25] sm:$0x1] }
  0x13   :  { %v848_v28 = vsel %vm847_vm2, %v846_v12, %v845_v21  ;;  %v815_v29 = vunpack.c.l.b16 %v639_v18  ;;  %v83_v30 = vmax.bf16 %v31_v16, %v27_v15  ;;  %v145_v31 = vshrl.u32 %v80_v10, 16  ;;  %v42_v18 = vld [vmem:[%s1337_s0 + $0x22] sm:$0x1] }
  0x14   :  { %v891_v37 = vpack.c.b16 %v848_v28, %v848_v28  ;;  %v849_v38 = vrot.slane %v813_v22, 7  ;;  %v851_v39 = vrot.slane %v814_v24, 6  ;;  %v150_v40 = vshrl.u32 %v81_v20, 16 }
  0x15   :  { %v853_v42 = vrot.slane %v815_v29, 5  ;;  %v155_v43 = vshrl.u32 %v82_v25, 16  ;;  %v160_v44 = vshrl.u32 %v83_v30, 16  ;;  %v304_v45 = vmax.bf16 %v145_v31, %v80_v10 }
  0x16   :  { %1007 = vst.sshfl [vmem:[%s1338_s1] sm:$0x3 pattern:$0x76325410] %v891_v37  ;;  %v850_v47 = vsel %vm841_vm0, %v849_v38, %v812_v19  ;;  %v305_v48 = vmax.bf16 %v150_v40, %v81_v20  ;;  %v84_v49 = vmax.bf16 %v36_v35, %v32_v26  ;;  %v85_v50 = vmax.bf16 %v37_v36, %v33_v27  ;;  %v43_v19 = vld [vmem:[%s1337_s0 + $0x23] sm:$0x1] }
  0x17   :  { %v852_v51 = vsel %vm844_vm1, %v851_v39, %v850_v47  ;;  %v306_v52 = vmax.bf16 %v155_v43, %v82_v25  ;;  %v307_v53 = vmax.bf16 %v160_v44, %v83_v30  ;;  %v422_v54 = vrot.slane %v304_v45, %v1056_v23  ;;  %v46_v26 = vld [vmem:[%s1337_s0 + $0x26] sm:$0x1]  ;;  %v47_v27 = vld [vmem:[%s1337_s0 + $0x27] sm:$0x1]  ;;  %v48_v45 = vld [vmem:[%s1337_s0 + $0x28] sm:$0x1] }
  0x18   :  { %v854_v55 = vsel %vm847_vm2, %v853_v42, %v852_v51  ;;  %v429_v56 = vrot.slane %v305_v48, %v1056_v23  ;;  %v86_v57 = vmax.bf16 %v38_v41, %v34_v33  ;;  %v87_v58 = vmax.bf16 %v39_v46, %v35_v34  ;;  %v49_v46 = vld [vmem:[%s1337_s0 + $0x29] sm:$0x1]  ;;  %v52_v47 = vld [vmem:[%s1337_s0 + $0x2c] sm:$0x1] }
  0x19   :  { %v892_v59 = vpack.c.b16 %v854_v55, %v854_v55  ;;  %v436_v60 = vrot.slane %v306_v52, %v1056_v23  ;;  %v443_v61 = vrot.slane %v307_v53, %v1056_v23  ;;  %v646_v62 = vrot.slane %v422_v54, %v1070_v32  ;;  %v50_v52 = vld [vmem:[%s1337_s0 + $0x2a] sm:$0x1]  ;;  %v53_v53 = vld [vmem:[%s1337_s0 + $0x2d] sm:$0x1] }
  0x1a   :  { %v653_v0 = vrot.slane %v429_v56, %v1070_v32  ;;  %v165_v1 = vshrl.u32 %v84_v49, 16  ;;  %v170_v2 = vshrl.u32 %v85_v50, 16  ;;  %v175_v3 = vshrl.u32 %v86_v57, 16 }
  0x1b   :  { %1008 = vst.sshfl [vmem:[%s1338_s1 + $0x2] sm:$0x3 pattern:$0x76325410] %v892_v59  ;;  %v660_v5 = vrot.slane %v436_v60, %v1070_v32  ;;  %v667_v6 = vrot.slane %v443_v61, %v1070_v32  ;;  %v816_v7 = vunpack.c.l.b16 %v646_v62  ;;  %v180_v8 = vshrl.u32 %v87_v58, 16 }
  0x1c   :  { %v817_v9 = vunpack.c.l.b16 %v653_v0  ;;  %v308_v10 = vmax.bf16 %v165_v1, %v84_v49  ;;  %v309_v11 = vmax.bf16 %v170_v2, %v85_v50  ;;  %v310_v12 = vmax.bf16 %v175_v3, %v86_v57  ;;  %v51_v62 = vld [vmem:[%s1337_s0 + $0x2b] sm:$0x1] }
  0x1d   :  { %v818_v15 = vunpack.c.l.b16 %v660_v5  ;;  %v819_v16 = vunpack.c.l.b16 %v667_v6  ;;  %v311_v17 = vmax.bf16 %v180_v8, %v87_v58  ;;  %v88_v20 = vmax.bf16 %v44_v4, %v40_v63  ;;  %v54_v58 = vld [vmem:[%s1337_s0 + $0x2e] sm:$0x1]  ;;  %v55_v63 = vld [vmem:[%s1337_s0 + $0x2f] sm:$0x1] }
  0x1e   :  { %v855_v21 = vrot.slane %v817_v9, 7  ;;  %v450_v22 = vrot.slane %v308_v10, %v1056_v23  ;;  %v457_v24 = vrot.slane %v309_v11, %v1056_v23  ;;  %v464_v25 = vrot.slane %v310_v12, %v1056_v23 }
  0x1f   :  { %v857_v28 = vrot.slane %v818_v15, 6  ;;  %v859_v29 = vrot.slane %v819_v16, 5  ;;  %v471_v30 = vrot.slane %v311_v17, %v1056_v23  ;;  %v89_v31 = vmax.bf16 %v45_v14, %v41_v13 }
  0x20   :  { %v856_v33 = vsel %vm841_vm0, %v855_v21, %v816_v7  ;;  %v674_v34 = vrot.slane %v450_v22, %v1070_v32  ;;  %v681_v35 = vrot.slane %v457_v24, %v1070_v32  ;;  %v688_v36 = vrot.slane %v464_v25, %v1070_v32  ;;  %v56_v21 = vld [vmem:[%s1337_s0 + $0x30] sm:$0x1]  ;;  %v60_v22 = vld [vmem:[%s1337_s0 + $0x34] sm:$0x1] }
  0x21   :  { %v858_v37 = vsel %vm844_vm1, %v857_v28, %v856_v33  ;;  %v695_v38 = vrot.slane %v471_v30, %v1070_v32  ;;  %v90_v39 = vmax.bf16 %v46_v26, %v42_v18  ;;  %v91_v40 = vmax.bf16 %v47_v27, %v43_v19  ;;  %v57_v33 = vld [vmem:[%s1337_s0 + $0x31] sm:$0x1] }
  0x22   :  { %v860_v41 = vsel %vm847_vm2, %v859_v29, %v858_v37  ;;  %v820_v42 = vunpack.c.l.b16 %v674_v34  ;;  %v821_v43 = vunpack.c.l.b16 %v681_v35  ;;  %v822_v44 = vunpack.c.l.b16 %v688_v36  ;;  %v61_v34 = vld [vmem:[%s1337_s0 + $0x35] sm:$0x1] }
  0x23   :  { %v893_v48 = vpack.c.b16 %v860_v41, %v860_v41  ;;  %v823_v49 = vunpack.c.l.b16 %v695_v38  ;;  %v185_v50 = vshrl.u32 %v88_v20, 16  ;;  %v190_v51 = vshrl.u32 %v89_v31, 16  ;;  %v58_v38 = vld [vmem:[%s1337_s0 + $0x32] sm:$0x1] }
  0x24   :  { %v861_v54 = vrot.slane %v821_v43, 7  ;;  %v863_v55 = vrot.slane %v822_v44, 6  ;;  %v195_v56 = vshrl.u32 %v90_v39, 16  ;;  %v200_v57 = vshrl.u32 %v91_v40, 16 }
  0x25   :  { %1009 = vst.sshfl [vmem:[%s1338_s1 + $0x4] sm:$0x3 pattern:$0x76325410] %v893_v48  ;;  %v865_v59 = vrot.slane %v823_v49, 5  ;;  %v312_v60 = vmax.bf16 %v185_v50, %v88_v20  ;;  %v313_v61 = vmax.bf16 %v190_v51, %v89_v31  ;;  %v92_v0 = vmax.bf16 %v52_v47, %v48_v45 }
  0x26   :  { %v862_v1 = vsel %vm841_vm0, %v861_v54, %v820_v42  ;;  %v314_v2 = vmax.bf16 %v195_v56, %v90_v39  ;;  %v315_v3 = vmax.bf16 %v200_v57, %v91_v40  ;;  %v93_v4 = vmax.bf16 %v53_v53, %v49_v46  ;;  %v62_v39 = vld [vmem:[%s1337_s0 + $0x36] sm:$0x1]  ;;  %v59_v45 = vld [vmem:[%s1337_s0 + $0x33] sm:$0x1]  ;;  %v63_v46 = vld [vmem:[%s1337_s0 + $0x37] sm:$0x1] }
  0x27   :  { %v864_v5 = vsel %vm844_vm1, %v863_v55, %v862_v1  ;;  %v478_v6 = vrot.slane %v312_v60, %v1056_v23  ;;  %v485_v7 = vrot.slane %v313_v61, %v1056_v23  ;;  %v94_v8 = vmax.bf16 %v54_v58, %v50_v52  ;;  %v65_v60 = vld [vmem:[%s1337_s0 + $0x39] sm:$0x1]  ;;  %v68_v61 = vld [vmem:[%s1337_s0 + $0x3c] sm:$0x1] }
  0x28   :  { %v866_v9 = vsel %vm847_vm2, %v865_v59, %v864_v5  ;;  %v492_v10 = vrot.slane %v314_v2, %v1056_v23  ;;  %v499_v11 = vrot.slane %v315_v3, %v1056_v23  ;;  %v95_v12 = vmax.bf16 %v55_v63, %v51_v62  ;;  %v64_v59 = vld [vmem:[%s1337_s0 + $0x38] sm:$0x1]  ;;  %v66_v2 = vld [vmem:[%s1337_s0 + $0x3a] sm:$0x1]  ;;  %v69_v3 = vld [vmem:[%s1337_s0 + $0x3d] sm:$0x1] }
  0x29   :  { %v894_v13 = vpack.c.b16 %v866_v9, %v866_v9  ;;  %v702_v14 = vrot.slane %v478_v6, %v1070_v32  ;;  %v709_v15 = vrot.slane %v485_v7, %v1070_v32  ;;  %v205_v16 = vshrl.u32 %v92_v0, 16 }
  0x2a   :  { %v716_v17 = vrot.slane %v492_v10, %v1070_v32  ;;  %v723_v18 = vrot.slane %v499_v11, %v1070_v32  ;;  %v210_v19 = vshrl.u32 %v93_v4, 16  ;;  %v215_v20 = vshrl.u32 %v94_v8, 16 }
  0x2b   :  { %1010 = vst.sshfl [vmem:[%s1338_s1 + $0x6] sm:$0x3 pattern:$0x76325410] %v894_v13  ;;  %v824_v24 = vunpack.c.l.b16 %v702_v14  ;;  %v825_v25 = vunpack.c.l.b16 %v709_v15  ;;  %v220_v26 = vshrl.u32 %v95_v12, 16  ;;  %v316_v27 = vmax.bf16 %v205_v16, %v92_v0 }
  0x2c   :  { %v826_v28 = vunpack.c.l.b16 %v716_v17  ;;  %v827_v29 = vunpack.c.l.b16 %v723_v18  ;;  %v317_v30 = vmax.bf16 %v210_v19, %v93_v4  ;;  %v318_v31 = vmax.bf16 %v215_v20, %v94_v8  ;;  %v70_v8 = vld [vmem:[%s1337_s0 + $0x3e] sm:$0x1]  ;;  %v67_v17 = vld [vmem:[%s1337_s0 + $0x3b] sm:$0x1]  ;;  %v71_v18 = vld [vmem:[%s1337_s0 + $0x3f] sm:$0x1] }
  0x2d   :  { %v867_v35 = vrot.slane %v825_v25, 7  ;;  %v319_v36 = vmax.bf16 %v220_v26, %v95_v12  ;;  %v506_v37 = vrot.slane %v316_v27, %v1056_v23  ;;  %v96_v40 = vmax.bf16 %v60_v22, %v56_v21 }
  0x2e   :  { %v869_v41 = vrot.slane %v826_v28, 6  ;;  %v871_v42 = vrot.slane %v827_v29, 5  ;;  %v513_v43 = vrot.slane %v317_v30, %v1056_v23  ;;  %v520_v44 = vrot.slane %v318_v31, %v1056_v23 }
  0x2f   :  { %v868_v47 = vsel %vm841_vm0, %v867_v35, %v824_v24  ;;  %v527_v48 = vrot.slane %v319_v36, %v1056_v23  ;;  %v730_v49 = vrot.slane %v506_v37, %v1070_v32  ;;  %v97_v50 = vmax.bf16 %v61_v34, %v57_v33 }
  0x30   :  { %v870_v51 = vsel %vm844_vm1, %v869_v41, %v868_v47  ;;  %v737_v52 = vrot.slane %v513_v43, %v1070_v32  ;;  %v744_v53 = vrot.slane %v520_v44, %v1070_v32  ;;  %v98_v54 = vmax.bf16 %v62_v39, %v58_v38 }
  0x31   :  { %v872_v55 = vsel %vm847_vm2, %v871_v42, %v870_v51  ;;  %v751_v56 = vrot.slane %v527_v48, %v1070_v32  ;;  %v828_v57 = vunpack.c.l.b16 %v730_v49  ;;  %v99_v58 = vmax.bf16 %v63_v46, %v59_v45 }
  0x32   :  { %v895_v62 = vpack.c.b16 %v872_v55, %v872_v55  ;;  %v829_v63 = vunpack.c.l.b16 %v737_v52  ;;  %v830_v0 = vunpack.c.l.b16 %v744_v53  ;;  %v225_v1 = vshrl.u32 %v96_v40, 16 }
  0x33   :  { %v831_v4 = vunpack.c.l.b16 %v751_v56  ;;  %v230_v5 = vshrl.u32 %v97_v50, 16  ;;  %v235_v6 = vshrl.u32 %v98_v54, 16  ;;  %v240_v7 = vshrl.u32 %v99_v58, 16 }
  0x34   :  { %1011 = vst.sshfl [vmem:[%s1338_s1 + $0x8] sm:$0x3 pattern:$0x76325410] %v895_v62  ;;  %v873_v9 = vrot.slane %v829_v63, 7  ;;  %v875_v10 = vrot.slane %v830_v0, 6  ;;  %v320_v11 = vmax.bf16 %v225_v1, %v96_v40  ;;  %v100_v12 = vmax.bf16 %v68_v61, %v64_v59 }
  0x35   :  { %v877_v13 = vrot.slane %v831_v4, 5  ;;  %v321_v14 = vmax.bf16 %v230_v5, %v97_v50  ;;  %v322_v15 = vmax.bf16 %v235_v6, %v98_v54  ;;  %v323_v16 = vmax.bf16 %v240_v7, %v99_v58 }
  0x36   :  { %v874_v19 = vsel %vm841_vm0, %v873_v9, %v828_v57  ;;  %v534_v20 = vrot.slane %v320_v11, %v1056_v23  ;;  %v101_v21 = vmax.bf16 %v69_v3, %v65_v60  ;;  %v102_v22 = vmax.bf16 %v70_v8, %v66_v2 }
  0x37   :  { %v876_v24 = vsel %vm844_vm1, %v875_v10, %v874_v19  ;;  %v541_v25 = vrot.slane %v321_v14, %v1056_v23  ;;  %v548_v26 = vrot.slane %v322_v15, %v1056_v23  ;;  %v555_v27 = vrot.slane %v323_v16, %v1056_v23 }
  0x38   :  { %v878_v28 = vsel %vm847_vm2, %v877_v13, %v876_v24  ;;  %v758_v29 = vrot.slane %v534_v20, %v1070_v32  ;;  %v103_v30 = vmax.bf16 %v71_v18, %v67_v17  ;;  %v245_v31 = vshrl.u32 %v100_v12, 16 }
  0x39   :  { %v896_v33 = vpack.c.b16 %v878_v28, %v878_v28  ;;  %v765_v34 = vrot.slane %v541_v25, %v1070_v32  ;;  %v772_v35 = vrot.slane %v548_v26, %v1070_v32  ;;  %v779_v36 = vrot.slane %v555_v27, %v1070_v32 }
  0x3a   :  { %v832_v37 = vunpack.c.l.b16 %v758_v29  ;;  %v250_v38 = vshrl.u32 %v101_v21, 16  ;;  %v255_v39 = vshrl.u32 %v102_v22, 16  ;;  %v260_v40 = vshrl.u32 %v103_v30, 16 }
  0x3b   :  { %1012 = vst.sshfl [vmem:[%s1338_s1 + $0xa] sm:$0x3 pattern:$0x76325410] %v896_v33  ;;  %v833_v41 = vunpack.c.l.b16 %v765_v34  ;;  %v834_v42 = vunpack.c.l.b16 %v772_v35  ;;  %v835_v43 = vunpack.c.l.b16 %v779_v36  ;;  %v324_v44 = vmax.bf16 %v245_v31, %v100_v12 }
  0x3c   :  { %v325_v45 = vmax.bf16 %v250_v38, %v101_v21  ;;  %v326_v46 = vmax.bf16 %v255_v39, %v102_v22  ;;  %v327_v47 = vmax.bf16 %v260_v40, %v103_v30 }
  0x3d   :  { %v879_v48 = vrot.slane %v833_v41, 7  ;;  %v881_v49 = vrot.slane %v834_v42, 6  ;;  %v883_v50 = vrot.slane %v835_v43, 5  ;;  %v562_v51 = vrot.slane %v324_v44, %v1056_v23 }
  0x3e   :  { %v569_v52 = vrot.slane %v325_v45, %v1056_v23  ;;  %v576_v53 = vrot.slane %v326_v46, %v1056_v23  ;;  %v583_v54 = vrot.slane %v327_v47, %v1056_v23 }
  0x3f   :  { %v880_v55 = vsel %vm841_vm0, %v879_v48, %v832_v37  ;;  %v786_v56 = vrot.slane %v562_v51, %v1070_v32 }
  0x40   :  { %v882_v57 = vsel %vm844_vm1, %v881_v49, %v880_v55  ;;  %v793_v58 = vrot.slane %v569_v52, %v1070_v32  ;;  %v800_v59 = vrot.slane %v576_v53, %v1070_v32  ;;  %v807_v60 = vrot.slane %v583_v54, %v1070_v32 }
  0x41   :  { %v884_v61 = vsel %vm847_vm2, %v883_v50, %v882_v57  ;;  %v836_v62 = vunpack.c.l.b16 %v786_v56 }
  0x42   :  { %v897_v63 = vpack.c.b16 %v884_v61, %v884_v61  ;;  %v837_v0 = vunpack.c.l.b16 %v793_v58  ;;  %v838_v1 = vunpack.c.l.b16 %v800_v59  ;;  %v839_v2 = vunpack.c.l.b16 %v807_v60 }
  0x44   :  { %1013 = vst.sshfl [vmem:[%s1338_s1 + $0xc] sm:$0x3 pattern:$0x76325410] %v897_v63  ;;  %v885_v23 = vrot.slane %v837_v0, 7  ;;  %v887_v3 = vrot.slane %v838_v1, 6 }
  0x45   :  { %v889_v4 = vrot.slane %v839_v2, 5 }
  0x46   :  { %v886_v5 = vsel %vm841_vm0, %v885_v23, %v836_v62 }
  0x47   :  { %v888_v6 = vsel %vm844_vm1, %v887_v3, %v886_v5 }
  0x48   :  { %v890_v32 = vsel %vm847_vm2, %v889_v4, %v888_v6 }
  0x49   :  { %v898_v7 = vpack.c.b16 %v890_v32, %v890_v32 }
  0x4b   :  { %1014 = vst.sshfl [vmem:[%s1338_s1 + $0xe] sm:$0x3 pattern:$0x76325410] %v898_v7 }

// kernel: _device_forward.8
= control target key start
LH: loop header
LB: loop body
LE: loop exit
PB: predicated region body
PF: predicated region fallthrough
CT: control target
= control target key end

     0   :  { %vm3337_vm0 = vcmask 1041409   ;;  %vm3340_vm1 = vcmask 1042434   ;;  %vm3343_vm2 = vcmask 1043459   ;;  %vm3346_vm3 = vcmask 1044484   ;;  %s7263_s0 = inlined_call_operand.vmem [shape: bf16[16,2,8,2,128], index: 0, kind: input, shape index: {}]   ;;  %s7264_s1 = inlined_call_operand.vmem [shape: bf16[16,8,128], index: 1, kind: output, shape index: {}]  }
   0x1   :  { %v8_v0 = vld [vmem:[%s7263_s0] sm:$0x1]  ;;  %v9_v1 = vld [vmem:[%s7263_s0 + $0x1] sm:$0x1]  ;;  %v16_v2 = vld [vmem:[%s7263_s0 + $0x8] sm:$0x1] }
   0x2   :  { %v17_v3 = vld [vmem:[%s7263_s0 + $0x9] sm:$0x1]  ;;  %v10_v4 = vld [vmem:[%s7263_s0 + $0x2] sm:$0x1]  ;;  %v11_v5 = vld [vmem:[%s7263_s0 + $0x3] sm:$0x1]  ;;  %v3899_v44 = vmax.bf16 %v16_v2, %v8_v0 }
   0x3   :  { %v12_v6 = vld [vmem:[%s7263_s0 + $0x4] sm:$0x1]  ;;  %v13_v7 = vld [vmem:[%s7263_s0 + $0x5] sm:$0x1]  ;;  %v18_v8 = vld [vmem:[%s7263_s0 + $0xa] sm:$0x1]  ;;  %v3901_v45 = vmax.bf16 %v17_v3, %v9_v1 }
   0x4   :  { %v19_v9 = vld [vmem:[%s7263_s0 + $0xb] sm:$0x1]  ;;  %v20_v10 = vld [vmem:[%s7263_s0 + $0xc] sm:$0x1]  ;;  %v21_v11 = vld [vmem:[%s7263_s0 + $0xd] sm:$0x1]  ;;  %v3939_v54 = vmax.bf16 %v18_v8, %v10_v4 }
   0x5   :  { %v14_v12 = vld [vmem:[%s7263_s0 + $0x6] sm:$0x1]  ;;  %v15_v13 = vld [vmem:[%s7263_s0 + $0x7] sm:$0x1]  ;;  %v22_v14 = vld [vmem:[%s7263_s0 + $0xe] sm:$0x1]  ;;  %v3941_v55 = vmax.bf16 %v19_v9, %v11_v5  ;;  %v3943_v56 = vmax.bf16 %v20_v10, %v12_v6  ;;  %v3945_v57 = vmax.bf16 %v21_v11, %v13_v7 }
   0x6   :  { %v23_v15 = vld [vmem:[%s7263_s0 + $0xf] sm:$0x1]  ;;  %v24_v16 = vld [vmem:[%s7263_s0 + $0x10] sm:$0x1]  ;;  %v25_v17 = vld [vmem:[%s7263_s0 + $0x11] sm:$0x1]  ;;  %v3979_v2 = vmax.bf16 %v22_v14, %v14_v12 }
   0x7   :  { %v32_v18 = vld [vmem:[%s7263_s0 + $0x18] sm:$0x1]  ;;  %v33_v19 = vld [vmem:[%s7263_s0 + $0x19] sm:$0x1]  ;;  %v26_v20 = vld [vmem:[%s7263_s0 + $0x12] sm:$0x1]  ;;  %v3981_v3 = vmax.bf16 %v23_v15, %v15_v13 }
   0x8   :  { %v27_v21 = vld [vmem:[%s7263_s0 + $0x13] sm:$0x1]  ;;  %v28_v22 = vld [vmem:[%s7263_s0 + $0x14] sm:$0x1]  ;;  %v29_v23 = vld [vmem:[%s7263_s0 + $0x15] sm:$0x1]  ;;  %v3983_v4 = vmax.bf16 %v32_v18, %v24_v16  ;;  %v3985_v5 = vmax.bf16 %v33_v19, %v25_v17 }
   0x9   :  { %v34_v24 = vld [vmem:[%s7263_s0 + $0x1a] sm:$0x1]  ;;  %v35_v25 = vld [vmem:[%s7263_s0 + $0x1b] sm:$0x1]  ;;  %v36_v26 = vld [vmem:[%s7263_s0 + $0x1c] sm:$0x1] }
   0xa   :  { %v37_v27 = vld [vmem:[%s7263_s0 + $0x1d] sm:$0x1]  ;;  %v30_v28 = vld [vmem:[%s7263_s0 + $0x16] sm:$0x1]  ;;  %v31_v29 = vld [vmem:[%s7263_s0 + $0x17] sm:$0x1]  ;;  %v4017_v12 = vmax.bf16 %v34_v24, %v26_v20  ;;  %v4019_v13 = vmax.bf16 %v35_v25, %v27_v21  ;;  %v4021_v14 = vmax.bf16 %v36_v26, %v28_v22 }
   0xb   :  { %v38_v30 = vld [vmem:[%s7263_s0 + $0x1e] sm:$0x1]  ;;  %v39_v31 = vld [vmem:[%s7263_s0 + $0x1f] sm:$0x1]  ;;  %v40_v32 = vld [vmem:[%s7263_s0 + $0x20] sm:$0x1]  ;;  %v4023_v15 = vmax.bf16 %v37_v27, %v29_v23 }
   0xc   :  { %v41_v33 = vld [vmem:[%s7263_s0 + $0x21] sm:$0x1]  ;;  %v48_v34 = vld [vmem:[%s7263_s0 + $0x28] sm:$0x1]  ;;  %v49_v35 = vld [vmem:[%s7263_s0 + $0x29] sm:$0x1]  ;;  %v4065_v24 = vmax.bf16 %v38_v30, %v30_v28  ;;  %v4067_v25 = vmax.bf16 %v39_v31, %v31_v29 }
   0xd   :  { %v3870_v36 = vld [vmem:[%s7263_s0 + $0x22] sm:$0x1]  ;;  %v3875_v37 = vld [vmem:[%s7263_s0 + $0x23] sm:$0x1]  ;;  %v3880_v38 = vld [vmem:[%s7263_s0 + $0x24] sm:$0x1]  ;;  %v4069_v26 = vmax.bf16 %v48_v34, %v40_v32  ;;  %v4071_v27 = vmax.bf16 %v49_v35, %v41_v33 }
   0xe   :  { %v3885_v39 = vld [vmem:[%s7263_s0 + $0x25] sm:$0x1]  ;;  %v50_v40 = vld [vmem:[%s7263_s0 + $0x2a] sm:$0x1]  ;;  %v51_v41 = vld [vmem:[%s7263_s0 + $0x2b] sm:$0x1] }
   0xf   :  { %v52_v42 = vld [vmem:[%s7263_s0 + $0x2c] sm:$0x1]  ;;  %v53_v43 = vld [vmem:[%s7263_s0 + $0x2d] sm:$0x1]  ;;  %v3906_v46 = vld [vmem:[%s7263_s0 + $0x26] sm:$0x1]  ;;  %v4114_v34 = vmax.bf16 %v50_v40, %v3870_v36  ;;  %v4117_v35 = vmax.bf16 %v51_v41, %v3875_v37 }
  0x10   :  { %v3911_v47 = vld [vmem:[%s7263_s0 + $0x27] sm:$0x1]  ;;  %v3916_v48 = vld [vmem:[%s7263_s0 + $0x2e] sm:$0x1]  ;;  %v3921_v49 = vld [vmem:[%s7263_s0 + $0x2f] sm:$0x1] }
  0x11   :  { %v3926_v50 = vld [vmem:[%s7263_s0 + $0x30] sm:$0x1]  ;;  %v3931_v51 = vld [vmem:[%s7263_s0 + $0x31] sm:$0x1]  ;;  %v64_v52 = vld [vmem:[%s7263_s0 + $0x38] sm:$0x1] }
  0x12   :  { %v65_v53 = vld [vmem:[%s7263_s0 + $0x39] sm:$0x1]  ;;  %v3950_v58 = vld [vmem:[%s7263_s0 + $0x32] sm:$0x1]  ;;  %v3955_v59 = vld [vmem:[%s7263_s0 + $0x33] sm:$0x1] }
  0x13   :  { %v3960_v60 = vld [vmem:[%s7263_s0 + $0x34] sm:$0x1]  ;;  %v3965_v61 = vld [vmem:[%s7263_s0 + $0x35] sm:$0x1]  ;;  %v66_v62 = vld [vmem:[%s7263_s0 + $0x3a] sm:$0x1] }
  0x14   :  { %v67_v63 = vld [vmem:[%s7263_s0 + $0x3b] sm:$0x1]  ;;  %v68_v0 = vld [vmem:[%s7263_s0 + $0x3c] sm:$0x1]  ;;  %v69_v1 = vld [vmem:[%s7263_s0 + $0x3d] sm:$0x1] }
  0x15   :  { %v3990_v6 = vld [vmem:[%s7263_s0 + $0x36] sm:$0x1]  ;;  %v3995_v7 = vld [vmem:[%s7263_s0 + $0x37] sm:$0x1]  ;;  %v4000_v8 = vld [vmem:[%s7263_s0 + $0x3e] sm:$0x1] }
  0x16   :  { %v4005_v9 = vld [vmem:[%s7263_s0 + $0x3f] sm:$0x1]  ;;  %v4010_v10 = vld [vmem:[%s7263_s0 + $0x40] sm:$0x1]  ;;  %v4015_v11 = vld [vmem:[%s7263_s0 + $0x48] sm:$0x1] }
  0x17   :  { %7465 = vst [vmem:[#allocation2_spill] sm:$0xff] %v4019_v13  ;;  %7466 = vst [vmem:[#allocation3_spill] sm:$0xff] %v4021_v14  ;;  %v4028_v16 = vld [vmem:[%s7263_s0 + $0x41] sm:$0x1]  ;;  %v4033_v17 = vld [vmem:[%s7263_s0 + $0x42] sm:$0x1] }
  0x18   :  { %7467 = vst [vmem:[#allocation4_spill] sm:$0xff] %v4023_v15  ;;  %v4038_v18 = vld [vmem:[%s7263_s0 + $0x43] sm:$0x1]  ;;  %v4043_v19 = vld [vmem:[%s7263_s0 + $0x44] sm:$0x1]  ;;  %7468 = vst [vmem:[#allocation5_spill] sm:$0xff] %v4065_v24 }
  0x19   :  { %v4048_v20 = vld [vmem:[%s7263_s0 + $0x49] sm:$0x1]  ;;  %v4053_v21 = vld [vmem:[%s7263_s0 + $0x4a] sm:$0x1]  ;;  %v4058_v22 = vld [vmem:[%s7263_s0 + $0x4b] sm:$0x1] }
  0x1a   :  { %v4063_v23 = vld [vmem:[%s7263_s0 + $0x4c] sm:$0x1]  ;;  %7469 = vst [vmem:[#allocation6_spill] sm:$0xff] %v4067_v25  ;;  %7470 = vst [vmem:[#allocation7_spill] sm:$0xff] %v4069_v26  ;;  %v4076_v15 = vld [vmem:[%s7263_s0 + $0x45] sm:$0x1]  ;;  %v4123_v26 = vmax.bf16 %v53_v43, %v3885_v39  ;;  %v4171_v43 = vmax.bf16 %v3921_v49, %v3911_v47 }
  0x1b   :  { %7471 = vst [vmem:[#allocation8_spill] sm:$0xff] %v4071_v27  ;;  %v4081_v14 = vld [vmem:[%s7263_s0 + $0x46] sm:$0x1]  ;;  %v4086_v28 = vld [vmem:[%s7263_s0 + $0x47] sm:$0x1]  ;;  %7472 = vst [vmem:[#allocation9_spill] sm:$0xff] %v4114_v34  ;;  %v4120_v27 = vmax.bf16 %v52_v42, %v3880_v38  ;;  %v4167_v42 = vmax.bf16 %v3916_v48, %v3906_v46 }
  0x1c   :  { %v4091_v29 = vld [vmem:[%s7263_s0 + $0x4d] sm:$0x1]  ;;  %v4096_v30 = vld [vmem:[%s7263_s0 + $0x4e] sm:$0x1]  ;;  %v4101_v31 = vld [vmem:[%s7263_s0 + $0x4f] sm:$0x1] }
  0x1d   :  { %v4106_v32 = vld [vmem:[%s7263_s0 + $0x50] sm:$0x1]  ;;  %v4111_v33 = vld [vmem:[%s7263_s0 + $0x58] sm:$0x1]  ;;  %7473 = vst [vmem:[#allocation10_spill] sm:$0xff] %v4117_v35  ;;  %7474 = vst [vmem:[#allocation11_spill] sm:$0xff] %v4120_v27  ;;  %v4177_v27 = vmax.bf16 %v65_v53, %v3931_v51  ;;  %v4220_v53 = vmax.bf16 %v66_v62, %v3950_v58 }
  0x1e   :  { %7475 = vst [vmem:[#allocation12_spill] sm:$0xff] %v4123_v26  ;;  %v4128_v25 = vld [vmem:[%s7263_s0 + $0x51] sm:$0x1]  ;;  %v4133_v24 = vld [vmem:[%s7263_s0 + $0x52] sm:$0x1]  ;;  %7476 = vst [vmem:[#allocation13_spill] sm:$0xff] %v4167_v42  ;;  %v4174_v26 = vmax.bf16 %v64_v52, %v3926_v50 }
  0x1f   :  { %v4138_v36 = vld [vmem:[%s7263_s0 + $0x53] sm:$0x1]  ;;  %v4143_v37 = vld [vmem:[%s7263_s0 + $0x54] sm:$0x1]  ;;  %v4148_v38 = vld [vmem:[%s7263_s0 + $0x59] sm:$0x1] }
  0x20   :  { %v4153_v39 = vld [vmem:[%s7263_s0 + $0x5a] sm:$0x1]  ;;  %v4158_v40 = vld [vmem:[%s7263_s0 + $0x5b] sm:$0x1]  ;;  %v4163_v41 = vld [vmem:[%s7263_s0 + $0x5c] sm:$0x1] }
  0x21   :  { %7477 = vst [vmem:[#allocation14_spill] sm:$0xff] %v4171_v43  ;;  %7478 = vst [vmem:[#allocation15_spill] sm:$0xff] %v4174_v26  ;;  %v4182_v35 = vld [vmem:[%s7263_s0 + $0x55] sm:$0x1]  ;;  %v4187_v46 = vld [vmem:[%s7263_s0 + $0x56] sm:$0x1]  ;;  %v4226_v26 = vmax.bf16 %v68_v0, %v3960_v60  ;;  %v4229_v43 = vmax.bf16 %v69_v1, %v3965_v61  ;;  %v4273_v0 = vmax.bf16 %v4000_v8, %v3990_v6 }
  0x22   :  { %7479 = vst [vmem:[#allocation16_spill] sm:$0xff] %v4177_v27  ;;  %v4192_v47 = vld [vmem:[%s7263_s0 + $0x57] sm:$0x1]  ;;  %v4197_v48 = vld [vmem:[%s7263_s0 + $0x5d] sm:$0x1]  ;;  %7480 = vst [vmem:[#allocation17_spill] sm:$0xff] %v4220_v53  ;;  %v4223_v27 = vmax.bf16 %v67_v63, %v3955_v59  ;;  %v4277_v1 = vmax.bf16 %v4005_v9, %v3995_v7 }
  0x23   :  { %v4202_v49 = vld [vmem:[%s7263_s0 + $0x5e] sm:$0x1]  ;;  %v4207_v50 = vld [vmem:[%s7263_s0 + $0x5f] sm:$0x1]  ;;  %v4212_v51 = vld [vmem:[%s7263_s0 + $0x60] sm:$0x1] }
  0x24   :  { %v4217_v52 = vld [vmem:[%s7263_s0 + $0x68] sm:$0x1]  ;;  %7481 = vst [vmem:[#allocation18_spill] sm:$0xff] %v4223_v27  ;;  %7482 = vst [vmem:[#allocation19_spill] sm:$0xff] %v4226_v26  ;;  %v4234_v42 = vld [vmem:[%s7263_s0 + $0x61] sm:$0x1]  ;;  %v4325_v26 = vmax.bf16 %v4048_v20, %v4028_v16 }
  0x25   :  { %7483 = vst [vmem:[#allocation20_spill] sm:$0xff] %v4229_v43  ;;  %v4239_v34 = vld [vmem:[%s7263_s0 + $0x62] sm:$0x1]  ;;  %v4244_v58 = vld [vmem:[%s7263_s0 + $0x63] sm:$0x1]  ;;  %7484 = vst [vmem:[#allocation21_spill] sm:$0xff] %v4273_v0  ;;  %v4281_v43 = vmax.bf16 %v4015_v11, %v4010_v10  ;;  %v4337_v0 = vmax.bf16 %v4063_v23, %v4043_v19  ;;  %v4381_v23 = vmax.bf16 %v4091_v29, %v4076_v15 }
  0x26   :  { %v4249_v59 = vld [vmem:[%s7263_s0 + $0x64] sm:$0x1]  ;;  %v4254_v60 = vld [vmem:[%s7263_s0 + $0x69] sm:$0x1]  ;;  %v4259_v61 = vld [vmem:[%s7263_s0 + $0x6a] sm:$0x1] }
  0x27   :  { %v4264_v62 = vld [vmem:[%s7263_s0 + $0x6b] sm:$0x1]  ;;  %v4269_v63 = vld [vmem:[%s7263_s0 + $0x6c] sm:$0x1]  ;;  %7485 = vst [vmem:[#allocation22_spill] sm:$0xff] %v4277_v1  ;;  %7486 = vst [vmem:[#allocation23_spill] sm:$0xff] %v4281_v43  ;;  %v4329_v43 = vmax.bf16 %v4053_v21, %v4033_v17  ;;  %v4333_v1 = vmax.bf16 %v4058_v22, %v4038_v18 }
  0x28   :  { %v4286_v27 = vld [vmem:[%s7263_s0 + $0x65] sm:$0x1]  ;;  %v4291_v53 = vld [vmem:[%s7263_s0 + $0x66] sm:$0x1]  ;;  %v4296_v6 = vld [vmem:[%s7263_s0 + $0x67] sm:$0x1] }
  0x29   :  { %v4301_v7 = vld [vmem:[%s7263_s0 + $0x6d] sm:$0x1]  ;;  %v4306_v8 = vld [vmem:[%s7263_s0 + $0x6e] sm:$0x1]  ;;  %v4311_v9 = vld [vmem:[%s7263_s0 + $0x6f] sm:$0x1] }
  0x2a   :  { %v4316_v10 = vld [vmem:[%s7263_s0 + $0x70] sm:$0x1]  ;;  %v4321_v11 = vld [vmem:[%s7263_s0 + $0x78] sm:$0x1]  ;;  %7487 = vst [vmem:[#allocation24_spill] sm:$0xff] %v4325_v26  ;;  %7488 = vst [vmem:[#allocation25_spill] sm:$0xff] %v4329_v43  ;;  %v4393_v43 = vmax.bf16 %v4111_v33, %v4106_v32  ;;  %v4437_v33 = vmax.bf16 %v4148_v38, %v4128_v25 }
  0x2b   :  { %7489 = vst [vmem:[#allocation26_spill] sm:$0xff] %v4333_v1  ;;  %7490 = vst [vmem:[#allocation27_spill] sm:$0xff] %v4337_v0  ;;  %v4342_v13 = vld [vmem:[%s7263_s0 + $0x71] sm:$0x1]  ;;  %v4347_v16 = vld [vmem:[%s7263_s0 + $0x72] sm:$0x1]  ;;  %v4385_v0 = vmax.bf16 %v4096_v30, %v4081_v14  ;;  %v4389_v1 = vmax.bf16 %v4101_v31, %v4086_v28 }
  0x2c   :  { %v4352_v17 = vld [vmem:[%s7263_s0 + $0x73] sm:$0x1]  ;;  %v4357_v18 = vld [vmem:[%s7263_s0 + $0x74] sm:$0x1]  ;;  %v4362_v19 = vld [vmem:[%s7263_s0 + $0x79] sm:$0x1] }
  0x2d   :  { %v4367_v20 = vld [vmem:[%s7263_s0 + $0x7a] sm:$0x1]  ;;  %v4372_v21 = vld [vmem:[%s7263_s0 + $0x7b] sm:$0x1]  ;;  %v4377_v22 = vld [vmem:[%s7263_s0 + $0x7c] sm:$0x1] }
  0x2e   :  { %7491 = vst [vmem:[#allocation28_spill] sm:$0xff] %v4381_v23  ;;  %7492 = vst [vmem:[#allocation29_spill] sm:$0xff] %v4385_v0  ;;  %v4398_v26 = vld [vmem:[%s7263_s0 + $0x75] sm:$0x1]  ;;  %v4403_v15 = vld [vmem:[%s7263_s0 + $0x76] sm:$0x1]  ;;  %v4449_v0 = vmax.bf16 %v4163_v41, %v4143_v37  ;;  %v4493_v41 = vmax.bf16 %v4197_v48, %v4182_v35 }
  0x2f   :  { %7493 = vst [vmem:[#allocation30_spill] sm:$0xff] %v4389_v1  ;;  %7494 = vst [vmem:[#allocation31_spill] sm:$0xff] %v4393_v43  ;;  %v4408_v14 = vld [vmem:[%s7263_s0 + $0x77] sm:$0x1]  ;;  %v4413_v28 = vld [vmem:[%s7263_s0 + $0x7d] sm:$0x1]  ;;  %v4441_v43 = vmax.bf16 %v4153_v39, %v4133_v24  ;;  %v4445_v1 = vmax.bf16 %v4158_v40, %v4138_v36 }
  0x30   :  { %v4418_v29 = vld [vmem:[%s7263_s0 + $0x7e] sm:$0x1]  ;;  %v4423_v30 = vld [vmem:[%s7263_s0 + $0x7f] sm:$0x1]  ;;  %v4428_v31 = vld [vmem:[%s7263_s0 + $0x80] sm:$0x1] }
  0x31   :  { %v4433_v32 = vld [vmem:[%s7263_s0 + $0x88] sm:$0x1]  ;;  %7495 = vst [vmem:[#allocation32_spill] sm:$0xff] %v4437_v33  ;;  %7496 = vst [vmem:[#allocation33_spill] sm:$0xff] %v4441_v43  ;;  %v4454_v23 = vld [vmem:[%s7263_s0 + $0x81] sm:$0x1]  ;;  %v4505_v43 = vmax.bf16 %v4217_v52, %v4212_v51  ;;  %v4549_v52 = vmax.bf16 %v4254_v60, %v4234_v42 }
  0x32   :  { %7497 = vst [vmem:[#allocation34_spill] sm:$0xff] %v4445_v1  ;;  %7498 = vst [vmem:[#allocation35_spill] sm:$0xff] %v4449_v0  ;;  %v4459_v25 = vld [vmem:[%s7263_s0 + $0x82] sm:$0x1]  ;;  %v4464_v24 = vld [vmem:[%s7263_s0 + $0x83] sm:$0x1]  ;;  %v4497_v0 = vmax.bf16 %v4202_v49, %v4187_v46  ;;  %v4501_v1 = vmax.bf16 %v4207_v50, %v4192_v47 }
  0x33   :  { %v4469_v36 = vld [vmem:[%s7263_s0 + $0x84] sm:$0x1]  ;;  %v4474_v37 = vld [vmem:[%s7263_s0 + $0x89] sm:$0x1]  ;;  %v4479_v38 = vld [vmem:[%s7263_s0 + $0x8a] sm:$0x1] }
  0x34   :  { %v4484_v39 = vld [vmem:[%s7263_s0 + $0x8b] sm:$0x1]  ;;  %v4489_v40 = vld [vmem:[%s7263_s0 + $0x8c] sm:$0x1]  ;;  %7499 = vst [vmem:[#allocation36_spill] sm:$0xff] %v4493_v41  ;;  %7500 = vst [vmem:[#allocation37_spill] sm:$0xff] %v4497_v0  ;;  %v4561_v0 = vmax.bf16 %v4269_v63, %v4249_v59  ;;  %v4605_v63 = vmax.bf16 %v4301_v7, %v4286_v27 }
  0x35   :  { %7501 = vst [vmem:[#allocation38_spill] sm:$0xff] %v4501_v1  ;;  %7502 = vst [vmem:[#allocation39_spill] sm:$0xff] %v4505_v43  ;;  %v4510_v33 = vld [vmem:[%s7263_s0 + $0x85] sm:$0x1]  ;;  %v4515_v35 = vld [vmem:[%s7263_s0 + $0x86] sm:$0x1]  ;;  %v4553_v43 = vmax.bf16 %v4259_v61, %v4239_v34  ;;  %v4557_v1 = vmax.bf16 %v4264_v62, %v4244_v58 }
  0x36   :  { %v4520_v46 = vld [vmem:[%s7263_s0 + $0x87] sm:$0x1]  ;;  %v4525_v47 = vld [vmem:[%s7263_s0 + $0x8d] sm:$0x1]  ;;  %v4530_v48 = vld [vmem:[%s7263_s0 + $0x8e] sm:$0x1] }
  0x37   :  { %v4535_v49 = vld [vmem:[%s7263_s0 + $0x8f] sm:$0x1]  ;;  %v4540_v50 = vld [vmem:[%s7263_s0 + $0x90] sm:$0x1]  ;;  %v4545_v51 = vld [vmem:[%s7263_s0 + $0x98] sm:$0x1] }
  0x38   :  { %7503 = vst [vmem:[#allocation40_spill] sm:$0xff] %v4549_v52  ;;  %7504 = vst [vmem:[#allocation41_spill] sm:$0xff] %v4553_v43  ;;  %v4566_v41 = vld [vmem:[%s7263_s0 + $0x91] sm:$0x1]  ;;  %v4571_v42 = vld [vmem:[%s7263_s0 + $0x92] sm:$0x1]  ;;  %v4617_v43 = vmax.bf16 %v4321_v11, %v4316_v10  ;;  %v4661_v11 = vmax.bf16 %v4362_v19, %v4342_v13 }
  0x39   :  { %7505 = vst [vmem:[#allocation42_spill] sm:$0xff] %v4557_v1  ;;  %7506 = vst [vmem:[#allocation43_spill] sm:$0xff] %v4561_v0  ;;  %v4576_v34 = vld [vmem:[%s7263_s0 + $0x93] sm:$0x1]  ;;  %v4581_v58 = vld [vmem:[%s7263_s0 + $0x94] sm:$0x1]  ;;  %v4609_v0 = vmax.bf16 %v4306_v8, %v4291_v53  ;;  %v4613_v1 = vmax.bf16 %v4311_v9, %v4296_v6 }
  0x3a   :  { %v4586_v59 = vld [vmem:[%s7263_s0 + $0x99] sm:$0x1]  ;;  %v4591_v60 = vld [vmem:[%s7263_s0 + $0x9a] sm:$0x1]  ;;  %v4596_v61 = vld [vmem:[%s7263_s0 + $0x9b] sm:$0x1] }
  0x3b   :  { %v4601_v62 = vld [vmem:[%s7263_s0 + $0x9c] sm:$0x1]  ;;  %7507 = vst [vmem:[#allocation44_spill] sm:$0xff] %v4605_v63  ;;  %7508 = vst [vmem:[#allocation45_spill] sm:$0xff] %v4609_v0  ;;  %v4622_v52 = vld [vmem:[%s7263_s0 + $0x95] sm:$0x1]  ;;  %v4673_v0 = vmax.bf16 %v4377_v22, %v4357_v18  ;;  %v4717_v22 = vmax.bf16 %v4413_v28, %v4398_v26 }
  0x3c   :  { %7509 = vst [vmem:[#allocation46_spill] sm:$0xff] %v4613_v1  ;;  %7510 = vst [vmem:[#allocation47_spill] sm:$0xff] %v4617_v43  ;;  %v4627_v27 = vld [vmem:[%s7263_s0 + $0x96] sm:$0x1]  ;;  %v4632_v53 = vld [vmem:[%s7263_s0 + $0x97] sm:$0x1]  ;;  %v4665_v43 = vmax.bf16 %v4367_v20, %v4347_v16  ;;  %v4669_v1 = vmax.bf16 %v4372_v21, %v4352_v17 }
  0x3d   :  { %v4637_v6 = vld [vmem:[%s7263_s0 + $0x9d] sm:$0x1]  ;;  %v4642_v7 = vld [vmem:[%s7263_s0 + $0x9e] sm:$0x1]  ;;  %v4647_v8 = vld [vmem:[%s7263_s0 + $0x9f] sm:$0x1] }
  0x3e   :  { %v4652_v9 = vld [vmem:[%s7263_s0 + $0xa0] sm:$0x1]  ;;  %v4657_v10 = vld [vmem:[%s7263_s0 + $0xa8] sm:$0x1]  ;;  %7511 = vst [vmem:[#allocation48_spill] sm:$0xff] %v4661_v11  ;;  %7512 = vst [vmem:[#allocation49_spill] sm:$0xff] %v4665_v43  ;;  %v4729_v43 = vmax.bf16 %v4433_v32, %v4428_v31  ;;  %v4773_v32 = vmax.bf16 %v4474_v37, %v4454_v23 }
  0x3f   :  { %7513 = vst [vmem:[#allocation50_spill] sm:$0xff] %v4669_v1  ;;  %7514 = vst [vmem:[#allocation51_spill] sm:$0xff] %v4673_v0  ;;  %v4678_v63 = vld [vmem:[%s7263_s0 + $0xa1] sm:$0x1]  ;;  %v4683_v13 = vld [vmem:[%s7263_s0 + $0xa2] sm:$0x1]  ;;  %v4721_v0 = vmax.bf16 %v4418_v29, %v4403_v15  ;;  %v4725_v1 = vmax.bf16 %v4423_v30, %v4408_v14 }
  0x40   :  { %v4688_v16 = vld [vmem:[%s7263_s0 + $0xa3] sm:$0x1]  ;;  %v4693_v17 = vld [vmem:[%s7263_s0 + $0xa4] sm:$0x1]  ;;  %v4698_v18 = vld [vmem:[%s7263_s0 + $0xa9] sm:$0x1] }
  0x41   :  { %v4703_v19 = vld [vmem:[%s7263_s0 + $0xaa] sm:$0x1]  ;;  %v4708_v20 = vld [vmem:[%s7263_s0 + $0xab] sm:$0x1]  ;;  %v4713_v21 = vld [vmem:[%s7263_s0 + $0xac] sm:$0x1] }
  0x42   :  { %7515 = vst [vmem:[#allocation52_spill] sm:$0xff] %v4717_v22  ;;  %7516 = vst [vmem:[#allocation53_spill] sm:$0xff] %v4721_v0  ;;  %v4734_v11 = vld [vmem:[%s7263_s0 + $0xa5] sm:$0x1]  ;;  %v4739_v26 = vld [vmem:[%s7263_s0 + $0xa6] sm:$0x1]  ;;  %v4785_v0 = vmax.bf16 %v4489_v40, %v4469_v36  ;;  %v4829_v40 = vmax.bf16 %v4525_v47, %v4510_v33 }
  0x43   :  { %7517 = vst [vmem:[#allocation54_spill] sm:$0xff] %v4725_v1  ;;  %7518 = vst [vmem:[#allocation55_spill] sm:$0xff] %v4729_v43  ;;  %v4744_v15 = vld [vmem:[%s7263_s0 + $0xa7] sm:$0x1]  ;;  %v4749_v14 = vld [vmem:[%s7263_s0 + $0xad] sm:$0x1]  ;;  %v4777_v43 = vmax.bf16 %v4479_v38, %v4459_v25  ;;  %v4781_v1 = vmax.bf16 %v4484_v39, %v4464_v24 }
  0x44   :  { %v4754_v28 = vld [vmem:[%s7263_s0 + $0xae] sm:$0x1]  ;;  %v4759_v29 = vld [vmem:[%s7263_s0 + $0xaf] sm:$0x1]  ;;  %v4764_v30 = vld [vmem:[%s7263_s0 + $0xb0] sm:$0x1] }
  0x45   :  { %v4769_v31 = vld [vmem:[%s7263_s0 + $0xb8] sm:$0x1]  ;;  %7519 = vst [vmem:[#allocation56_spill] sm:$0xff] %v4773_v32  ;;  %7520 = vst [vmem:[#allocation57_spill] sm:$0xff] %v4777_v43  ;;  %v4790_v22 = vld [vmem:[%s7263_s0 + $0xb1] sm:$0x1]  ;;  %v4841_v43 = vmax.bf16 %v4545_v51, %v4540_v50  ;;  %v4885_v51 = vmax.bf16 %v4586_v59, %v4566_v41 }
  0x46   :  { %7521 = vst [vmem:[#allocation58_spill] sm:$0xff] %v4781_v1  ;;  %7522 = vst [vmem:[#allocation59_spill] sm:$0xff] %v4785_v0  ;;  %v4795_v23 = vld [vmem:[%s7263_s0 + $0xb2] sm:$0x1]  ;;  %v4800_v25 = vld [vmem:[%s7263_s0 + $0xb3] sm:$0x1]  ;;  %v4833_v0 = vmax.bf16 %v4530_v48, %v4515_v35  ;;  %v4837_v1 = vmax.bf16 %v4535_v49, %v4520_v46 }
  0x47   :  { %v4805_v24 = vld [vmem:[%s7263_s0 + $0xb4] sm:$0x1]  ;;  %v4810_v36 = vld [vmem:[%s7263_s0 + $0xb9] sm:$0x1]  ;;  %v4815_v37 = vld [vmem:[%s7263_s0 + $0xba] sm:$0x1] }
  0x48   :  { %v4820_v38 = vld [vmem:[%s7263_s0 + $0xbb] sm:$0x1]  ;;  %v4825_v39 = vld [vmem:[%s7263_s0 + $0xbc] sm:$0x1]  ;;  %7523 = vst [vmem:[#allocation60_spill] sm:$0xff] %v4829_v40  ;;  %7524 = vst [vmem:[#allocation61_spill] sm:$0xff] %v4833_v0  ;;  %v4897_v0 = vmax.bf16 %v4601_v62, %v4581_v58  ;;  %v4941_v62 = vmax.bf16 %v4637_v6, %v4622_v52 }
  0x49   :  { %7525 = vst [vmem:[#allocation62_spill] sm:$0xff] %v4837_v1  ;;  %7526 = vst [vmem:[#allocation63_spill] sm:$0xff] %v4841_v43  ;;  %v4846_v32 = vld [vmem:[%s7263_s0 + $0xb5] sm:$0x1]  ;;  %v4851_v33 = vld [vmem:[%s7263_s0 + $0xb6] sm:$0x1]  ;;  %v4889_v43 = vmax.bf16 %v4591_v60, %v4571_v42  ;;  %v4893_v1 = vmax.bf16 %v4596_v61, %v4576_v34 }
  0x4a   :  { %v4856_v35 = vld [vmem:[%s7263_s0 + $0xb7] sm:$0x1]  ;;  %v4861_v46 = vld [vmem:[%s7263_s0 + $0xbd] sm:$0x1]  ;;  %v4866_v47 = vld [vmem:[%s7263_s0 + $0xbe] sm:$0x1] }
  0x4b   :  { %v4871_v48 = vld [vmem:[%s7263_s0 + $0xbf] sm:$0x1]  ;;  %v4876_v49 = vld [vmem:[%s7263_s0 + $0xc0] sm:$0x1]  ;;  %v4881_v50 = vld [vmem:[%s7263_s0 + $0xc8] sm:$0x1] }
  0x4c   :  { %7527 = vst [vmem:[#allocation64_spill] sm:$0xff] %v4885_v51  ;;  %7528 = vst [vmem:[#allocation65_spill] sm:$0xff] %v4889_v43  ;;  %v4902_v40 = vld [vmem:[%s7263_s0 + $0xc1] sm:$0x1]  ;;  %v4907_v41 = vld [vmem:[%s7263_s0 + $0xc2] sm:$0x1]  ;;  %v4953_v43 = vmax.bf16 %v4657_v10, %v4652_v9  ;;  %v4987_v10 = vmax.bf16 %v4698_v18, %v4678_v63 }
  0x4d   :  { %7529 = vst [vmem:[#allocation66_spill] sm:$0xff] %v4893_v1  ;;  %7530 = vst [vmem:[#allocation67_spill] sm:$0xff] %v4897_v0  ;;  %v4912_v42 = vld [vmem:[%s7263_s0 + $0xc3] sm:$0x1]  ;;  %v4917_v34 = vld [vmem:[%s7263_s0 + $0xc4] sm:$0x1]  ;;  %v4945_v0 = vmax.bf16 %v4642_v7, %v4627_v27  ;;  %v4949_v1 = vmax.bf16 %v4647_v8, %v4632_v53 }
  0x4e   :  { %v4922_v58 = vld [vmem:[%s7263_s0 + $0xc9] sm:$0x1]  ;;  %v4927_v59 = vld [vmem:[%s7263_s0 + $0xca] sm:$0x1]  ;;  %v4932_v60 = vld [vmem:[%s7263_s0 + $0xcb] sm:$0x1] }
  0x4f   :  { %v4937_v61 = vld [vmem:[%s7263_s0 + $0xcc] sm:$0x1]  ;;  %7531 = vst [vmem:[#allocation68_spill] sm:$0xff] %v4941_v62  ;;  %7532 = vst [vmem:[#allocation69_spill] sm:$0xff] %v4945_v0  ;;  %v4958_v51 = vld [vmem:[%s7263_s0 + $0xc5] sm:$0x1]  ;;  %v4999_v0 = vmax.bf16 %v4713_v21, %v4693_v17  ;;  %v5027_v21 = vmax.bf16 %v4749_v14, %v4734_v11 }
  0x50   :  { %7533 = vst [vmem:[#allocation70_spill] sm:$0xff] %v4949_v1  ;;  %7534 = vst [vmem:[#allocation71_spill] sm:$0xff] %v4953_v43  ;;  %v4963_v52 = vld [vmem:[%s7263_s0 + $0xc6] sm:$0x1]  ;;  %v4968_v27 = vld [vmem:[%s7263_s0 + $0xc7] sm:$0x1]  ;;  %v4991_v43 = vmax.bf16 %v4703_v19, %v4683_v13  ;;  %v4995_v1 = vmax.bf16 %v4708_v20, %v4688_v16 }
  0x51   :  { %v213_v53 = vld [vmem:[%s7263_s0 + $0xcd] sm:$0x1]  ;;  %v214_v6 = vld [vmem:[%s7263_s0 + $0xce] sm:$0x1]  ;;  %v215_v7 = vld [vmem:[%s7263_s0 + $0xcf] sm:$0x1] }
  0x52   :  { %v216_v8 = vld [vmem:[%s7263_s0 + $0xd0] sm:$0x1]  ;;  %v224_v9 = vld [vmem:[%s7263_s0 + $0xd8] sm:$0x1]  ;;  %7535 = vst [vmem:[#allocation72_spill] sm:$0xff] %v4987_v10  ;;  %7536 = vst [vmem:[#allocation73_spill] sm:$0xff] %v4991_v43  ;;  %v5039_v43 = vmax.bf16 %v4769_v31, %v4764_v30  ;;  %v5067_v31 = vmax.bf16 %v4810_v36, %v4790_v22 }
  0x53   :  { %7537 = vst [vmem:[#allocation74_spill] sm:$0xff] %v4995_v1  ;;  %7538 = vst [vmem:[#allocation75_spill] sm:$0xff] %v4999_v0  ;;  %v217_v62 = vld [vmem:[%s7263_s0 + $0xd1] sm:$0x1]  ;;  %v218_v63 = vld [vmem:[%s7263_s0 + $0xd2] sm:$0x1]  ;;  %v5031_v0 = vmax.bf16 %v4754_v28, %v4739_v26  ;;  %v5035_v1 = vmax.bf16 %v4759_v29, %v4744_v15 }
  0x54   :  { %v219_v13 = vld [vmem:[%s7263_s0 + $0xd3] sm:$0x1]  ;;  %v220_v16 = vld [vmem:[%s7263_s0 + $0xd4] sm:$0x1]  ;;  %v225_v17 = vld [vmem:[%s7263_s0 + $0xd9] sm:$0x1] }
  0x55   :  { %v226_v18 = vld [vmem:[%s7263_s0 + $0xda] sm:$0x1]  ;;  %v227_v19 = vld [vmem:[%s7263_s0 + $0xdb] sm:$0x1]  ;;  %v228_v20 = vld [vmem:[%s7263_s0 + $0xdc] sm:$0x1] }
  0x56   :  { %7539 = vst [vmem:[#allocation76_spill] sm:$0xff] %v5027_v21  ;;  %7540 = vst [vmem:[#allocation77_spill] sm:$0xff] %v5031_v0  ;;  %v221_v10 = vld [vmem:[%s7263_s0 + $0xd5] sm:$0x1]  ;;  %v222_v11 = vld [vmem:[%s7263_s0 + $0xd6] sm:$0x1]  ;;  %v5079_v0 = vmax.bf16 %v4825_v39, %v4805_v24  ;;  %v5107_v39 = vmax.bf16 %v4861_v46, %v4846_v32 }
  0x57   :  { %7541 = vst [vmem:[#allocation78_spill] sm:$0xff] %v5035_v1  ;;  %7542 = vst [vmem:[#allocation79_spill] sm:$0xff] %v5039_v43  ;;  %v223_v26 = vld [vmem:[%s7263_s0 + $0xd7] sm:$0x1]  ;;  %v229_v15 = vld [vmem:[%s7263_s0 + $0xdd] sm:$0x1]  ;;  %v5071_v43 = vmax.bf16 %v4815_v37, %v4795_v23  ;;  %v5075_v1 = vmax.bf16 %v4820_v38, %v4800_v25 }
  0x58   :  { %v230_v14 = vld [vmem:[%s7263_s0 + $0xde] sm:$0x1]  ;;  %v231_v28 = vld [vmem:[%s7263_s0 + $0xdf] sm:$0x1]  ;;  %v232_v29 = vld [vmem:[%s7263_s0 + $0xe0] sm:$0x1] }
  0x59   :  { %v240_v30 = vld [vmem:[%s7263_s0 + $0xe8] sm:$0x1]  ;;  %7543 = vst [vmem:[#allocation80_spill] sm:$0xff] %v5067_v31  ;;  %7544 = vst [vmem:[#allocation81_spill] sm:$0xff] %v5071_v43  ;;  %v233_v21 = vld [vmem:[%s7263_s0 + $0xe1] sm:$0x1]  ;;  %v5119_v43 = vmax.bf16 %v4881_v50, %v4876_v49  ;;  %v5144_v49 = vmax.bf16 %v4922_v58, %v4902_v40  ;;  %v5148_v50 = vmax.bf16 %v4927_v59, %v4907_v41 }
  0x5a   :  { %7545 = vst [vmem:[#allocation82_spill] sm:$0xff] %v5075_v1  ;;  %7546 = vst [vmem:[#allocation83_spill] sm:$0xff] %v5079_v0  ;;  %v234_v22 = vld [vmem:[%s7263_s0 + $0xe2] sm:$0x1]  ;;  %v235_v23 = vld [vmem:[%s7263_s0 + $0xe3] sm:$0x1]  ;;  %v5111_v0 = vmax.bf16 %v4866_v47, %v4851_v33  ;;  %v5115_v1 = vmax.bf16 %v4871_v48, %v4856_v35  ;;  %v5171_v58 = vmax.bf16 %v213_v53, %v4958_v51 }
  0x5b   :  { %v236_v25 = vld [vmem:[%s7263_s0 + $0xe4] sm:$0x1]  ;;  %v241_v24 = vld [vmem:[%s7263_s0 + $0xe9] sm:$0x1]  ;;  %v242_v36 = vld [vmem:[%s7263_s0 + $0xea] sm:$0x1]  ;;  %v5177_v59 = vmax.bf16 %v215_v7, %v4968_v27  ;;  %v5196_v53 = vmax.bf16 %v225_v17, %v217_v62  ;;  %v5200_v7 = vmax.bf16 %v227_v19, %v219_v13  ;;  %v5213_v62 = vmax.bf16 %v229_v15, %v221_v10 }
  0x5c   :  { %v243_v37 = vld [vmem:[%s7263_s0 + $0xeb] sm:$0x1]  ;;  %v244_v38 = vld [vmem:[%s7263_s0 + $0xec] sm:$0x1]  ;;  %7547 = vst [vmem:[#allocation84_spill] sm:$0xff] %v5107_v39  ;;  %7548 = vst [vmem:[#allocation85_spill] sm:$0xff] %v5111_v0  ;;  %v5217_v13 = vmax.bf16 %v231_v28, %v223_v26  ;;  %v5230_v10 = vmax.bf16 %v241_v24, %v233_v21 }
  0x5d   :  { %7549 = vst [vmem:[#allocation86_spill] sm:$0xff] %v5115_v1  ;;  %7550 = vst [vmem:[#allocation87_spill] sm:$0xff] %v5119_v43  ;;  %v237_v31 = vld [vmem:[%s7263_s0 + $0xe5] sm:$0x1]  ;;  %v238_v32 = vld [vmem:[%s7263_s0 + $0xe6] sm:$0x1]  ;;  %v5152_v43 = vmax.bf16 %v4932_v60, %v4912_v42  ;;  %v5156_v1 = vmax.bf16 %v4937_v61, %v4917_v34  ;;  %v5174_v34 = vmax.bf16 %v214_v6, %v4963_v52 }
  0x5e   :  { %v239_v33 = vld [vmem:[%s7263_s0 + $0xe7] sm:$0x1]  ;;  %v245_v35 = vld [vmem:[%s7263_s0 + $0xed] sm:$0x1]  ;;  %v246_v46 = vld [vmem:[%s7263_s0 + $0xee] sm:$0x1]  ;;  %v5179_v60 = vmax.bf16 %v224_v9, %v216_v8  ;;  %v5198_v6 = vmax.bf16 %v226_v18, %v218_v63  ;;  %v5202_v8 = vmax.bf16 %v228_v20, %v220_v16  ;;  %v5215_v63 = vmax.bf16 %v230_v14, %v222_v11 }
  0x5f   :  { %v247_v47 = vld [vmem:[%s7263_s0 + $0xef] sm:$0x1]  ;;  %v248_v48 = vld [vmem:[%s7263_s0 + $0xf0] sm:$0x1]  ;;  %7551 = vst [vmem:[#allocation88_spill] sm:$0xff] %v5156_v1  ;;  %7552 = vst [vmem:[#allocation89_spill] sm:$0xff] %v5171_v58  ;;  %v5219_v16 = vmax.bf16 %v240_v30, %v232_v29  ;;  %v5232_v20 = vmax.bf16 %v242_v36, %v234_v22  ;;  %v5234_v11 = vmax.bf16 %v243_v37, %v235_v23 }
  0x60   :  { %v249_v0 = vld [vmem:[%s7263_s0 + $0xf1] sm:$0x1]  ;;  %v250_v40 = vld [vmem:[%s7263_s0 + $0xf2] sm:$0x1]  ;;  %v251_v41 = vld [vmem:[%s7263_s0 + $0xf3] sm:$0x1]  ;;  %v5236_v26 = vmax.bf16 %v244_v38, %v236_v25  ;;  %v5238_v15 = vmax.bf16 %v245_v35, %v237_v31  ;;  %v5240_v14 = vmax.bf16 %v246_v46, %v238_v32  ;;  %v5242_v28 = vmax.bf16 %v247_v47, %v239_v33 }
  0x61   :  { %v252_v42 = vld [vmem:[%s7263_s0 + $0xf4] sm:$0x1]  ;;  %7553 = vst [vmem:[#allocation90_spill] sm:$0xff] %v5177_v59  ;;  %7554 = vst [vmem:[#allocation91_spill] sm:$0xff] %v5179_v60  ;;  %v253_v61 = vld [vmem:[%s7263_s0 + $0xf5] sm:$0x1] }
  0x62   :  { %v254_v1 = vld [vmem:[%s7263_s0 + $0xf6] sm:$0x1]  ;;  %v255_v51 = vld [vmem:[%s7263_s0 + $0xf7] sm:$0x1]  ;;  %v256_v52 = vld [vmem:[%s7263_s0 + $0xf8] sm:$0x1] }
  0x63   :  { %v257_v27 = vld [vmem:[%s7263_s0 + $0xf9] sm:$0x1]  ;;  %v258_v9 = vld [vmem:[%s7263_s0 + $0xfa] sm:$0x1]  ;;  %v259_v60 = vld [vmem:[%s7263_s0 + $0xfb] sm:$0x1]  ;;  %v5244_v29 = vmax.bf16 %v256_v52, %v248_v48 }
  0x64   :  { %v260_v59 = vld [vmem:[%s7263_s0 + $0xfc] sm:$0x1]  ;;  %7555 = vst [vmem:[#allocation92_spill] sm:$0xff] %v5219_v16  ;;  %v261_v17 = vld [vmem:[%s7263_s0 + $0xfd] sm:$0x1]  ;;  %v5246_v30 = vmax.bf16 %v257_v27, %v249_v0  ;;  %v5248_v16 = vmax.bf16 %v258_v9, %v250_v40  ;;  %v5250_v21 = vmax.bf16 %v259_v60, %v251_v41  ;;  %v7556_v48 = vld [vmem:[#allocation2_spill] sm:$0xff] }
  0x65   :  { %v262_v18 = vld [vmem:[%s7263_s0 + $0xfe] sm:$0x1]  ;;  %v263_v19 = vld [vmem:[%s7263_s0 + $0xff] sm:$0x1]  ;;  %v5252_v22 = vmax.bf16 %v260_v59, %v252_v42  ;;  %v5254_v23 = vmax.bf16 %v261_v17, %v253_v61  ;;  %v7557_v41 = vld [vmem:[#allocation3_spill] sm:$0xff]  ;;  %v7646_v40 = vshrl.u32 %v3901_v45, 16 }
  0x66   :  { %v5256_v25 = vmax.bf16 %v262_v18, %v254_v1  ;;  %v5258_v31 = vmax.bf16 %v263_v19, %v255_v51  ;;  %v7558_v59 = vld [vmem:[#allocation4_spill] sm:$0xff]  ;;  %v7559_v61 = vld [vmem:[#allocation5_spill] sm:$0xff]  ;;  %v7632_v38 = vld [vmem:[#allocation78_spill] sm:$0xff]  ;;  %v7645_v1 = vshrl.u32 %v3899_v44, 16  ;;  %v7647_v60 = vshrl.u32 %v3939_v54, 16 }
  0x67   :  { %v7627_v9 = vld [vmem:[#allocation73_spill] sm:$0xff]  ;;  %v7633_v0 = vld [vmem:[#allocation79_spill] sm:$0xff]  ;;  %v7636_v24 = vld [vmem:[#allocation82_spill] sm:$0xff]  ;;  %v5396_v47 = vmax.bf16 %v7646_v40, %v3901_v45  ;;  %v7648_v17 = vshrl.u32 %v3941_v55, 16  ;;  %v7649_v19 = vshrl.u32 %v3943_v56, 16  ;;  %v7651_v40 = vshrl.u32 %v3979_v2, 16 }
  0x68   :  { %v7631_v32 = vld [vmem:[#allocation77_spill] sm:$0xff]  ;;  %v7639_v35 = vld [vmem:[#allocation86_spill] sm:$0xff]  ;;  %v7640_v33 = vld [vmem:[#allocation87_spill] sm:$0xff]  ;;  %v5391_v46 = vmax.bf16 %v7645_v1, %v3899_v44  ;;  %v5401_v51 = vmax.bf16 %v7647_v60, %v3939_v54  ;;  %v7650_v1 = vshrl.u32 %v3945_v57, 16  ;;  %v7652_v60 = vshrl.u32 %v3981_v3, 16 }
  0x69   :  { %v7635_v36 = vld [vmem:[#allocation81_spill] sm:$0xff]  ;;  %v7641_v37 = vld [vmem:[#allocation88_spill] sm:$0xff]  ;;  %v7642_v52 = vld [vmem:[#allocation90_spill] sm:$0xff]  ;;  %v5406_v27 = vmax.bf16 %v7648_v17, %v3941_v55  ;;  %v5411_v44 = vmax.bf16 %v7649_v19, %v3943_v56  ;;  %v5421_v54 = vmax.bf16 %v7651_v40, %v3979_v2  ;;  %v7653_v17 = vshrl.u32 %v3983_v4, 16 }
  0x6a   :  { %v7638_v18 = vld [vmem:[#allocation85_spill] sm:$0xff]  ;;  %v7643_v39 = vld [vmem:[#allocation91_spill] sm:$0xff]  ;;  %v5416_v45 = vmax.bf16 %v7650_v1, %v3945_v57  ;;  %v5426_v55 = vmax.bf16 %v7652_v60, %v3981_v3  ;;  %v7654_v19 = vshrl.u32 %v3985_v5, 16  ;;  %v7655_v1 = vshrl.u32 %v4017_v12, 16 }
  0x6b   :  { %v7644_v58 = vld [vmem:[#allocation92_spill] sm:$0xff]  ;;  %v5431_v56 = vmax.bf16 %v7653_v17, %v3983_v4  ;;  %v7656_v40 = vshrl.u32 %v7556_v48, 16  ;;  %v7658_v60 = vshrl.u32 %v7557_v41, 16  ;;  %v7660_v17 = vshrl.u32 %v7558_v59, 16 }
  0x6c   :  { %v5436_v57 = vmax.bf16 %v7654_v19, %v3985_v5  ;;  %v5441_v2 = vmax.bf16 %v7655_v1, %v4017_v12  ;;  %v7662_v19 = vshrl.u32 %v7559_v61, 16  ;;  %v7664_v1 = vld [vmem:[#allocation6_spill] sm:$0xff]  ;;  %vm3349_vm4 = vcmask 1045509  }
  0x6d   :  { %v5446_v3 = vmax.bf16 %v7656_v40, %v7556_v48  ;;  %v5451_v4 = vmax.bf16 %v7658_v60, %v7557_v41  ;;  %v5456_v5 = vmax.bf16 %v7660_v17, %v7558_v59  ;;  %v7665_v42 = vshrl.u32 %v7664_v1, 16  ;;  %v7667_v40 = vld [vmem:[#allocation7_spill] sm:$0xff]  ;;  %v7670_v60 = vld [vmem:[#allocation8_spill] sm:$0xff]  ;;  %v7673_v17 = vld [vmem:[#allocation9_spill] sm:$0xff] }
  0x6e   :  { %v5461_v12 = vmax.bf16 %v7662_v19, %v7559_v61  ;;  %v7676_v19 = vld [vmem:[#allocation10_spill] sm:$0xff]  ;;  %vm3352_vm5 = vcmask 1046534   ;;  %vm3355_vm6 = vcmask 1047559  }
  0x6f   :  { %7657 = vst [vmem:[#allocation2_spill] sm:$0xff] %v5446_v3  ;;  %7659 = vst [vmem:[#allocation3_spill] sm:$0xff] %v5451_v4  ;;  %v5466_v48 = vmax.bf16 %v7665_v42, %v7664_v1  ;;  %v7668_v3 = vshrl.u32 %v7667_v40, 16  ;;  %v7671_v4 = vshrl.u32 %v7670_v60, 16  ;;  %v7679_v1 = vld [vmem:[#allocation11_spill] sm:$0xff] }
  0x70   :  { %7661 = vst [vmem:[#allocation4_spill] sm:$0xff] %v5456_v5  ;;  %7663 = vst [vmem:[#allocation5_spill] sm:$0xff] %v5461_v12  ;;  %v7674_v5 = vshrl.u32 %v7673_v17, 16  ;;  %v7677_v12 = vshrl.u32 %v7676_v19, 16 }
  0x71   :  { %7666 = vst [vmem:[#allocation73_spill] sm:$0xff] %v5466_v48  ;;  %v5471_v41 = vmax.bf16 %v7668_v3, %v7667_v40  ;;  %v5476_v59 = vmax.bf16 %v7671_v4, %v7670_v60  ;;  %v7680_v48 = vshrl.u32 %v7679_v1, 16  ;;  %v7682_v40 = vld [vmem:[#allocation12_spill] sm:$0xff]  ;;  %v7685_v60 = vld [vmem:[#allocation13_spill] sm:$0xff] }
  0x72   :  { %v5481_v61 = vmax.bf16 %v7674_v5, %v7673_v17  ;;  %v5486_v42 = vmax.bf16 %v7677_v12, %v7676_v19  ;;  %v7688_v17 = vld [vmem:[#allocation14_spill] sm:$0xff]  ;;  %v7691_v19 = vld [vmem:[#allocation15_spill] sm:$0xff] }
  0x73   :  { %7669 = vst [vmem:[#allocation77_spill] sm:$0xff] %v5471_v41  ;;  %7672 = vst [vmem:[#allocation78_spill] sm:$0xff] %v5476_v59  ;;  %v5491_v3 = vmax.bf16 %v7680_v48, %v7679_v1  ;;  %v7683_v41 = vshrl.u32 %v7682_v40, 16  ;;  %v7686_v59 = vshrl.u32 %v7685_v60, 16  ;;  %v7694_v1 = vld [vmem:[#allocation16_spill] sm:$0xff] }
  0x74   :  { %7675 = vst [vmem:[#allocation79_spill] sm:$0xff] %v5481_v61  ;;  %7678 = vst [vmem:[#allocation81_spill] sm:$0xff] %v5486_v42  ;;  %v7689_v61 = vshrl.u32 %v7688_v17, 16  ;;  %v7692_v42 = vshrl.u32 %v7691_v19, 16 }
  0x75   :  { %7681 = vst [vmem:[#allocation82_spill] sm:$0xff] %v5491_v3  ;;  %v5496_v4 = vmax.bf16 %v7683_v41, %v7682_v40  ;;  %v5501_v5 = vmax.bf16 %v7686_v59, %v7685_v60  ;;  %v7695_v3 = vshrl.u32 %v7694_v1, 16  ;;  %v7697_v40 = vld [vmem:[#allocation17_spill] sm:$0xff]  ;;  %v7700_v60 = vld [vmem:[#allocation18_spill] sm:$0xff] }
  0x76   :  { %v5506_v12 = vmax.bf16 %v7689_v61, %v7688_v17  ;;  %v5511_v48 = vmax.bf16 %v7692_v42, %v7691_v19  ;;  %v7703_v17 = vld [vmem:[#allocation19_spill] sm:$0xff]  ;;  %v7706_v19 = vld [vmem:[#allocation20_spill] sm:$0xff] }
  0x77   :  { %7684 = vst [vmem:[#allocation85_spill] sm:$0xff] %v5496_v4  ;;  %7687 = vst [vmem:[#allocation86_spill] sm:$0xff] %v5501_v5  ;;  %v5516_v41 = vmax.bf16 %v7695_v3, %v7694_v1  ;;  %v7698_v4 = vshrl.u32 %v7697_v40, 16  ;;  %v7701_v5 = vshrl.u32 %v7700_v60, 16  ;;  %v7709_v1 = vld [vmem:[#allocation21_spill] sm:$0xff] }
  0x78   :  { %7690 = vst [vmem:[#allocation87_spill] sm:$0xff] %v5506_v12  ;;  %7693 = vst [vmem:[#allocation88_spill] sm:$0xff] %v5511_v48  ;;  %v7704_v12 = vshrl.u32 %v7703_v17, 16  ;;  %v7707_v48 = vshrl.u32 %v7706_v19, 16 }
  0x79   :  { %7696 = vst [vmem:[#allocation90_spill] sm:$0xff] %v5516_v41  ;;  %v5521_v59 = vmax.bf16 %v7698_v4, %v7697_v40  ;;  %v5526_v61 = vmax.bf16 %v7701_v5, %v7700_v60  ;;  %v7710_v41 = vshrl.u32 %v7709_v1, 16  ;;  %v7712_v40 = vld [vmem:[#allocation22_spill] sm:$0xff]  ;;  %v7715_v60 = vld [vmem:[#allocation23_spill] sm:$0xff] }
  0x7a   :  { %v5531_v42 = vmax.bf16 %v7704_v12, %v7703_v17  ;;  %v5536_v3 = vmax.bf16 %v7707_v48, %v7706_v19  ;;  %v7718_v17 = vld [vmem:[#allocation24_spill] sm:$0xff]  ;;  %v7721_v19 = vld [vmem:[#allocation25_spill] sm:$0xff] }
  0x7b   :  { %7699 = vst [vmem:[#allocation91_spill] sm:$0xff] %v5521_v59  ;;  %7702 = vst [vmem:[#allocation92_spill] sm:$0xff] %v5526_v61  ;;  %v5541_v4 = vmax.bf16 %v7710_v41, %v7709_v1  ;;  %v7713_v59 = vshrl.u32 %v7712_v40, 16  ;;  %v7716_v61 = vshrl.u32 %v7715_v60, 16  ;;  %v7724_v1 = vld [vmem:[#allocation26_spill] sm:$0xff] }
  0x7c   :  { %7705 = vst [vmem:[#allocation6_spill] sm:$0xff] %v5531_v42  ;;  %7708 = vst [vmem:[#allocation7_spill] sm:$0xff] %v5536_v3  ;;  %v7719_v42 = vshrl.u32 %v7718_v17, 16  ;;  %v7722_v3 = vshrl.u32 %v7721_v19, 16 }
  0x7d   :  { %7711 = vst [vmem:[#allocation8_spill] sm:$0xff] %v5541_v4  ;;  %v5546_v5 = vmax.bf16 %v7713_v59, %v7712_v40  ;;  %v5551_v12 = vmax.bf16 %v7716_v61, %v7715_v60  ;;  %v7725_v4 = vshrl.u32 %v7724_v1, 16  ;;  %v7727_v40 = vld [vmem:[#allocation27_spill] sm:$0xff]  ;;  %v7730_v60 = vld [vmem:[#allocation28_spill] sm:$0xff] }
  0x7e   :  { %v5556_v48 = vmax.bf16 %v7719_v42, %v7718_v17  ;;  %v5561_v41 = vmax.bf16 %v7722_v3, %v7721_v19  ;;  %v7733_v17 = vld [vmem:[#allocation29_spill] sm:$0xff]  ;;  %v7736_v19 = vld [vmem:[#allocation30_spill] sm:$0xff] }
  0x7f   :  { %7714 = vst [vmem:[#allocation9_spill] sm:$0xff] %v5546_v5  ;;  %7717 = vst [vmem:[#allocation10_spill] sm:$0xff] %v5551_v12  ;;  %v5566_v59 = vmax.bf16 %v7725_v4, %v7724_v1  ;;  %v7728_v5 = vshrl.u32 %v7727_v40, 16  ;;  %v7731_v12 = vshrl.u32 %v7730_v60, 16  ;;  %v7739_v1 = vld [vmem:[#allocation31_spill] sm:$0xff] }
  0x80   :  { %7720 = vst [vmem:[#allocation11_spill] sm:$0xff] %v5556_v48  ;;  %7723 = vst [vmem:[#allocation12_spill] sm:$0xff] %v5561_v41  ;;  %v7734_v48 = vshrl.u32 %v7733_v17, 16  ;;  %v7737_v41 = vshrl.u32 %v7736_v19, 16 }
  0x81   :  { %7726 = vst [vmem:[#allocation13_spill] sm:$0xff] %v5566_v59  ;;  %v5571_v61 = vmax.bf16 %v7728_v5, %v7727_v40  ;;  %v5576_v42 = vmax.bf16 %v7731_v12, %v7730_v60  ;;  %v7740_v59 = vshrl.u32 %v7739_v1, 16  ;;  %v7742_v40 = vld [vmem:[#allocation32_spill] sm:$0xff]  ;;  %v7745_v60 = vld [vmem:[#allocation33_spill] sm:$0xff] }
  0x82   :  { %v5581_v3 = vmax.bf16 %v7734_v48, %v7733_v17  ;;  %v5586_v4 = vmax.bf16 %v7737_v41, %v7736_v19  ;;  %v7748_v17 = vld [vmem:[#allocation34_spill] sm:$0xff]  ;;  %v7751_v19 = vld [vmem:[#allocation35_spill] sm:$0xff] }
  0x83   :  { %7729 = vst [vmem:[#allocation14_spill] sm:$0xff] %v5571_v61  ;;  %7732 = vst [vmem:[#allocation15_spill] sm:$0xff] %v5576_v42  ;;  %v5591_v5 = vmax.bf16 %v7740_v59, %v7739_v1  ;;  %v7743_v61 = vshrl.u32 %v7742_v40, 16  ;;  %v7746_v42 = vshrl.u32 %v7745_v60, 16  ;;  %v7754_v1 = vld [vmem:[#allocation36_spill] sm:$0xff] }
  0x84   :  { %7735 = vst [vmem:[#allocation16_spill] sm:$0xff] %v5581_v3  ;;  %7738 = vst [vmem:[#allocation17_spill] sm:$0xff] %v5586_v4  ;;  %v7749_v3 = vshrl.u32 %v7748_v17, 16  ;;  %v7752_v4 = vshrl.u32 %v7751_v19, 16 }
  0x85   :  { %7741 = vst [vmem:[#allocation18_spill] sm:$0xff] %v5591_v5  ;;  %v5596_v12 = vmax.bf16 %v7743_v61, %v7742_v40  ;;  %v5601_v48 = vmax.bf16 %v7746_v42, %v7745_v60  ;;  %v7755_v5 = vshrl.u32 %v7754_v1, 16  ;;  %v7757_v40 = vld [vmem:[#allocation37_spill] sm:$0xff]  ;;  %v7760_v60 = vld [vmem:[#allocation38_spill] sm:$0xff] }
  0x86   :  { %v5606_v41 = vmax.bf16 %v7749_v3, %v7748_v17  ;;  %v5611_v59 = vmax.bf16 %v7752_v4, %v7751_v19  ;;  %v7763_v17 = vld [vmem:[#allocation39_spill] sm:$0xff]  ;;  %v7766_v19 = vld [vmem:[#allocation40_spill] sm:$0xff] }
  0x87   :  { %7744 = vst [vmem:[#allocation19_spill] sm:$0xff] %v5596_v12  ;;  %7747 = vst [vmem:[#allocation20_spill] sm:$0xff] %v5601_v48  ;;  %v5616_v61 = vmax.bf16 %v7755_v5, %v7754_v1  ;;  %v7758_v12 = vshrl.u32 %v7757_v40, 16  ;;  %v7761_v48 = vshrl.u32 %v7760_v60, 16  ;;  %v7769_v1 = vld [vmem:[#allocation41_spill] sm:$0xff] }
  0x88   :  { %7750 = vst [vmem:[#allocation21_spill] sm:$0xff] %v5606_v41  ;;  %7753 = vst [vmem:[#allocation22_spill] sm:$0xff] %v5611_v59  ;;  %v7764_v41 = vshrl.u32 %v7763_v17, 16  ;;  %v7767_v59 = vshrl.u32 %v7766_v19, 16 }
  0x89   :  { %7756 = vst [vmem:[#allocation23_spill] sm:$0xff] %v5616_v61  ;;  %v5621_v42 = vmax.bf16 %v7758_v12, %v7757_v40  ;;  %v5626_v3 = vmax.bf16 %v7761_v48, %v7760_v60  ;;  %v7770_v61 = vshrl.u32 %v7769_v1, 16  ;;  %v7772_v40 = vld [vmem:[#allocation42_spill] sm:$0xff]  ;;  %v7775_v60 = vld [vmem:[#allocation43_spill] sm:$0xff] }
  0x8a   :  { %v5631_v4 = vmax.bf16 %v7764_v41, %v7763_v17  ;;  %v5636_v5 = vmax.bf16 %v7767_v59, %v7766_v19  ;;  %v7778_v17 = vld [vmem:[#allocation44_spill] sm:$0xff]  ;;  %v7781_v19 = vld [vmem:[#allocation45_spill] sm:$0xff] }
  0x8b   :  { %7759 = vst [vmem:[#allocation24_spill] sm:$0xff] %v5621_v42  ;;  %7762 = vst [vmem:[#allocation25_spill] sm:$0xff] %v5626_v3  ;;  %v5641_v12 = vmax.bf16 %v7770_v61, %v7769_v1  ;;  %v7773_v42 = vshrl.u32 %v7772_v40, 16  ;;  %v7776_v3 = vshrl.u32 %v7775_v60, 16  ;;  %v7784_v1 = vld [vmem:[#allocation46_spill] sm:$0xff] }
  0x8c   :  { %7765 = vst [vmem:[#allocation26_spill] sm:$0xff] %v5631_v4  ;;  %7768 = vst [vmem:[#allocation27_spill] sm:$0xff] %v5636_v5  ;;  %v7779_v4 = vshrl.u32 %v7778_v17, 16  ;;  %v7782_v5 = vshrl.u32 %v7781_v19, 16 }
  0x8d   :  { %7771 = vst [vmem:[#allocation28_spill] sm:$0xff] %v5641_v12  ;;  %v5646_v48 = vmax.bf16 %v7773_v42, %v7772_v40  ;;  %v5651_v41 = vmax.bf16 %v7776_v3, %v7775_v60  ;;  %v7785_v12 = vshrl.u32 %v7784_v1, 16  ;;  %v7787_v40 = vld [vmem:[#allocation47_spill] sm:$0xff]  ;;  %v7790_v60 = vld [vmem:[#allocation48_spill] sm:$0xff] }
  0x8e   :  { %v5656_v59 = vmax.bf16 %v7779_v4, %v7778_v17  ;;  %v5661_v61 = vmax.bf16 %v7782_v5, %v7781_v19  ;;  %v7793_v17 = vld [vmem:[#allocation49_spill] sm:$0xff]  ;;  %v7796_v19 = vld [vmem:[#allocation50_spill] sm:$0xff] }
  0x8f   :  { %7774 = vst [vmem:[#allocation29_spill] sm:$0xff] %v5646_v48  ;;  %7777 = vst [vmem:[#allocation30_spill] sm:$0xff] %v5651_v41  ;;  %v5666_v42 = vmax.bf16 %v7785_v12, %v7784_v1  ;;  %v7788_v48 = vshrl.u32 %v7787_v40, 16  ;;  %v7791_v41 = vshrl.u32 %v7790_v60, 16  ;;  %v7799_v1 = vld [vmem:[#allocation51_spill] sm:$0xff] }
  0x90   :  { %7780 = vst [vmem:[#allocation31_spill] sm:$0xff] %v5656_v59  ;;  %7783 = vst [vmem:[#allocation32_spill] sm:$0xff] %v5661_v61  ;;  %v7794_v59 = vshrl.u32 %v7793_v17, 16  ;;  %v7797_v61 = vshrl.u32 %v7796_v19, 16 }
  0x91   :  { %7786 = vst [vmem:[#allocation33_spill] sm:$0xff] %v5666_v42  ;;  %v5671_v3 = vmax.bf16 %v7788_v48, %v7787_v40  ;;  %v5676_v4 = vmax.bf16 %v7791_v41, %v7790_v60  ;;  %v7800_v42 = vshrl.u32 %v7799_v1, 16  ;;  %v7802_v40 = vld [vmem:[#allocation52_spill] sm:$0xff]  ;;  %v7805_v60 = vld [vmem:[#allocation53_spill] sm:$0xff] }
  0x92   :  { %v5681_v5 = vmax.bf16 %v7794_v59, %v7793_v17  ;;  %v5686_v12 = vmax.bf16 %v7797_v61, %v7796_v19  ;;  %v7808_v17 = vld [vmem:[#allocation54_spill] sm:$0xff]  ;;  %v7811_v19 = vld [vmem:[#allocation55_spill] sm:$0xff] }
  0x93   :  { %7789 = vst [vmem:[#allocation34_spill] sm:$0xff] %v5671_v3  ;;  %7792 = vst [vmem:[#allocation35_spill] sm:$0xff] %v5676_v4  ;;  %v5691_v48 = vmax.bf16 %v7800_v42, %v7799_v1  ;;  %v7803_v3 = vshrl.u32 %v7802_v40, 16  ;;  %v7806_v4 = vshrl.u32 %v7805_v60, 16  ;;  %v7814_v1 = vld [vmem:[#allocation56_spill] sm:$0xff] }
  0x94   :  { %7795 = vst [vmem:[#allocation36_spill] sm:$0xff] %v5681_v5  ;;  %7798 = vst [vmem:[#allocation37_spill] sm:$0xff] %v5686_v12  ;;  %v7809_v5 = vshrl.u32 %v7808_v17, 16  ;;  %v7812_v12 = vshrl.u32 %v7811_v19, 16 }
  0x95   :  { %7801 = vst [vmem:[#allocation38_spill] sm:$0xff] %v5691_v48  ;;  %v5696_v41 = vmax.bf16 %v7803_v3, %v7802_v40  ;;  %v5701_v59 = vmax.bf16 %v7806_v4, %v7805_v60  ;;  %v7815_v48 = vshrl.u32 %v7814_v1, 16  ;;  %v7817_v40 = vld [vmem:[#allocation57_spill] sm:$0xff]  ;;  %v7820_v60 = vld [vmem:[#allocation58_spill] sm:$0xff] }
  0x96   :  { %v5706_v61 = vmax.bf16 %v7809_v5, %v7808_v17  ;;  %v5711_v42 = vmax.bf16 %v7812_v12, %v7811_v19  ;;  %v7823_v17 = vld [vmem:[#allocation59_spill] sm:$0xff]  ;;  %v7826_v19 = vld [vmem:[#allocation60_spill] sm:$0xff] }
  0x97   :  { %7804 = vst [vmem:[#allocation39_spill] sm:$0xff] %v5696_v41  ;;  %7807 = vst [vmem:[#allocation40_spill] sm:$0xff] %v5701_v59  ;;  %v5716_v3 = vmax.bf16 %v7815_v48, %v7814_v1  ;;  %v7818_v41 = vshrl.u32 %v7817_v40, 16  ;;  %v7821_v59 = vshrl.u32 %v7820_v60, 16  ;;  %v7829_v1 = vld [vmem:[#allocation61_spill] sm:$0xff] }
  0x98   :  { %7810 = vst [vmem:[#allocation41_spill] sm:$0xff] %v5706_v61  ;;  %7813 = vst [vmem:[#allocation42_spill] sm:$0xff] %v5711_v42  ;;  %v7824_v61 = vshrl.u32 %v7823_v17, 16  ;;  %v7827_v42 = vshrl.u32 %v7826_v19, 16 }
  0x99   :  { %7816 = vst [vmem:[#allocation43_spill] sm:$0xff] %v5716_v3  ;;  %v5721_v4 = vmax.bf16 %v7818_v41, %v7817_v40  ;;  %v5726_v5 = vmax.bf16 %v7821_v59, %v7820_v60  ;;  %v7830_v3 = vshrl.u32 %v7829_v1, 16  ;;  %v7832_v40 = vld [vmem:[#allocation62_spill] sm:$0xff]  ;;  %v7835_v60 = vld [vmem:[#allocation63_spill] sm:$0xff] }
  0x9a   :  { %v5731_v12 = vmax.bf16 %v7824_v61, %v7823_v17  ;;  %v5736_v48 = vmax.bf16 %v7827_v42, %v7826_v19  ;;  %v7838_v17 = vld [vmem:[#allocation64_spill] sm:$0xff]  ;;  %v7841_v19 = vld [vmem:[#allocation65_spill] sm:$0xff] }
  0x9b   :  { %7819 = vst [vmem:[#allocation44_spill] sm:$0xff] %v5721_v4  ;;  %7822 = vst [vmem:[#allocation45_spill] sm:$0xff] %v5726_v5  ;;  %v5741_v41 = vmax.bf16 %v7830_v3, %v7829_v1  ;;  %v7833_v4 = vshrl.u32 %v7832_v40, 16  ;;  %v7836_v5 = vshrl.u32 %v7835_v60, 16  ;;  %v7844_v1 = vld [vmem:[#allocation66_spill] sm:$0xff] }
  0x9c   :  { %7825 = vst [vmem:[#allocation46_spill] sm:$0xff] %v5731_v12  ;;  %7828 = vst [vmem:[#allocation47_spill] sm:$0xff] %v5736_v48  ;;  %v7839_v12 = vshrl.u32 %v7838_v17, 16  ;;  %v7842_v48 = vshrl.u32 %v7841_v19, 16 }
  0x9d   :  { %7831 = vst [vmem:[#allocation48_spill] sm:$0xff] %v5741_v41  ;;  %v5746_v59 = vmax.bf16 %v7833_v4, %v7832_v40  ;;  %v5751_v61 = vmax.bf16 %v7836_v5, %v7835_v60  ;;  %v7845_v41 = vshrl.u32 %v7844_v1, 16  ;;  %v7847_v40 = vld [vmem:[#allocation67_spill] sm:$0xff]  ;;  %v7850_v60 = vld [vmem:[#allocation68_spill] sm:$0xff] }
  0x9e   :  { %v5756_v42 = vmax.bf16 %v7839_v12, %v7838_v17  ;;  %v5761_v3 = vmax.bf16 %v7842_v48, %v7841_v19  ;;  %v7852_v17 = vld [vmem:[#allocation69_spill] sm:$0xff]  ;;  %v7855_v19 = vld [vmem:[#allocation70_spill] sm:$0xff] }
  0x9f   :  { %7834 = vst [vmem:[#allocation49_spill] sm:$0xff] %v5746_v59  ;;  %7837 = vst [vmem:[#allocation50_spill] sm:$0xff] %v5751_v61  ;;  %v5766_v4 = vmax.bf16 %v7845_v41, %v7844_v1  ;;  %v7848_v59 = vshrl.u32 %v7847_v40, 16  ;;  %v7851_v61 = vshrl.u32 %v7850_v60, 16  ;;  %v7858_v1 = vld [vmem:[#allocation71_spill] sm:$0xff] }
  0xa0   :  { %7840 = vst [vmem:[#allocation51_spill] sm:$0xff] %v5756_v42  ;;  %7843 = vst [vmem:[#allocation52_spill] sm:$0xff] %v5761_v3  ;;  %v7853_v42 = vshrl.u32 %v7852_v17, 16  ;;  %v7856_v3 = vshrl.u32 %v7855_v19, 16 }
  0xa1   :  { %7846 = vst [vmem:[#allocation53_spill] sm:$0xff] %v5766_v4  ;;  %v5771_v5 = vmax.bf16 %v7848_v59, %v7847_v40  ;;  %v5776_v12 = vmax.bf16 %v7851_v61, %v7850_v60  ;;  %v7859_v4 = vshrl.u32 %v7858_v1, 16  ;;  %v7861_v40 = vld [vmem:[#allocation72_spill] sm:$0xff]  ;;  %v7863_v60 = vshrl.u32 %v7627_v9, 16 }
  0xa2   :  { %v5781_v48 = vmax.bf16 %v7853_v42, %v7852_v17  ;;  %v5786_v41 = vmax.bf16 %v7856_v3, %v7855_v19  ;;  %v7864_v17 = vld [vmem:[#allocation74_spill] sm:$0xff]  ;;  %v7866_v19 = vld [vmem:[#allocation75_spill] sm:$0xff] }
  0xa3   :  { %7849 = vst [vmem:[#allocation54_spill] sm:$0xff] %v5771_v5  ;;  %v5791_v59 = vmax.bf16 %v7859_v4, %v7858_v1  ;;  %v7862_v5 = vshrl.u32 %v7861_v40, 16  ;;  %v5801_v42 = vmax.bf16 %v7863_v60, %v7627_v9  ;;  %v7869_v1 = vld [vmem:[#allocation76_spill] sm:$0xff]  ;;  %v7872_v60 = vshrl.u32 %v7632_v38, 16 }
  0xa4   :  { %7854 = vst [vmem:[#allocation55_spill] sm:$0xff] %v5781_v48  ;;  %7857 = vst [vmem:[#allocation56_spill] sm:$0xff] %v5786_v41  ;;  %v7865_v48 = vshrl.u32 %v7864_v17, 16  ;;  %v7867_v41 = vshrl.u32 %v7866_v19, 16 }
  0xa5   :  { %7860 = vst [vmem:[#allocation57_spill] sm:$0xff] %v5791_v59  ;;  %v5796_v61 = vmax.bf16 %v7862_v5, %v7861_v40  ;;  %v7870_v59 = vshrl.u32 %v7869_v1, 16  ;;  %v7871_v40 = vshrl.u32 %v7631_v32, 16 }
  0xa6   :  { %v5806_v3 = vmax.bf16 %v7865_v48, %v7864_v17  ;;  %v5811_v4 = vmax.bf16 %v7867_v41, %v7866_v19  ;;  %v5826_v48 = vmax.bf16 %v7872_v60, %v7632_v38  ;;  %v7874_v17 = vshrl.u32 %v7633_v0, 16  ;;  %v7876_v19 = vld [vmem:[#allocation80_spill] sm:$0xff]  ;;  %v7880_v60 = vld [vmem:[#allocation83_spill] sm:$0xff] }
  0xa7   :  { %v5816_v5 = vmax.bf16 %v7870_v59, %v7869_v1  ;;  %v5821_v9 = vmax.bf16 %v7871_v40, %v7631_v32  ;;  %v7878_v1 = vshrl.u32 %v7635_v36, 16  ;;  %v7879_v40 = vshrl.u32 %v7636_v24, 16 }
  0xa8   :  { %7868 = vst [vmem:[#allocation58_spill] sm:$0xff] %v5811_v4  ;;  %7873 = vst [vmem:[#allocation59_spill] sm:$0xff] %v5826_v48  ;;  %v5831_v41 = vmax.bf16 %v7874_v17, %v7633_v0  ;;  %v7877_v4 = vshrl.u32 %v7876_v19, 16  ;;  %v7881_v48 = vshrl.u32 %v7880_v60, 16  ;;  %v7882_v17 = vld [vmem:[#allocation84_spill] sm:$0xff] }
  0xa9   :  { %v5841_v32 = vmax.bf16 %v7878_v1, %v7635_v36  ;;  %v5846_v38 = vmax.bf16 %v7879_v40, %v7636_v24  ;;  %v7885_v1 = vshrl.u32 %v7639_v35, 16  ;;  %v7886_v40 = vshrl.u32 %v7640_v33, 16 }
  0xaa   :  { %7875 = vst [vmem:[#allocation60_spill] sm:$0xff] %v5831_v41  ;;  %v5836_v59 = vmax.bf16 %v7877_v4, %v7876_v19  ;;  %v5851_v0 = vmax.bf16 %v7881_v48, %v7880_v60  ;;  %v7883_v41 = vshrl.u32 %v7882_v17, 16  ;;  %v7884_v19 = vshrl.u32 %v7638_v18, 16 }
  0xab   :  { %v5866_v24 = vmax.bf16 %v7885_v1, %v7639_v35  ;;  %v5871_v48 = vmax.bf16 %v7886_v40, %v7640_v33  ;;  %v7888_v60 = vshrl.u32 %v5144_v49, 16  ;;  %v7891_v1 = vshrl.u32 %v7641_v37, 16  ;;  %v7892_v40 = vld [vmem:[#allocation89_spill] sm:$0xff] }
  0xac   :  { %v5856_v4 = vmax.bf16 %v7883_v41, %v7882_v17  ;;  %v5861_v36 = vmax.bf16 %v7884_v19, %v7638_v18  ;;  %v7889_v17 = vshrl.u32 %v5148_v50, 16  ;;  %v7890_v19 = vshrl.u32 %v5152_v43, 16 }
  0xad   :  { %7887 = vst [vmem:[#allocation61_spill] sm:$0xff] %v5871_v48  ;;  %v5876_v41 = vmax.bf16 %v7888_v60, %v5144_v49  ;;  %v5891_v33 = vmax.bf16 %v7891_v1, %v7641_v37  ;;  %v7893_v48 = vshrl.u32 %v7892_v40, 16  ;;  %v7894_v60 = vshrl.u32 %v5174_v34, 16 }
  0xae   :  { %v5881_v18 = vmax.bf16 %v7889_v17, %v5148_v50  ;;  %v5886_v35 = vmax.bf16 %v7890_v19, %v5152_v43  ;;  %v7895_v17 = vshrl.u32 %v7642_v52, 16  ;;  %v7896_v19 = vshrl.u32 %v7643_v39, 16 }
  0xaf   :  { %v5896_v49 = vmax.bf16 %v7893_v48, %v7892_v40  ;;  %v5901_v50 = vmax.bf16 %v7894_v60, %v5174_v34  ;;  %v7898_v1 = vshrl.u32 %v5196_v53, 16  ;;  %v7900_v40 = vshrl.u32 %v5198_v6, 16 }
  0xb0   :  { %v5906_v43 = vmax.bf16 %v7895_v17, %v7642_v52  ;;  %v5911_v37 = vmax.bf16 %v7896_v19, %v7643_v39  ;;  %v7902_v60 = vshrl.u32 %v5200_v7, 16  ;;  %v7903_v17 = vshrl.u32 %v5202_v8, 16 }
  0xb1   :  { %v5916_v48 = vmax.bf16 %v7898_v1, %v5196_v53  ;;  %v5921_v34 = vmax.bf16 %v7900_v40, %v5198_v6  ;;  %v7904_v19 = vshrl.u32 %v5213_v62, 16  ;;  %v3748_v1 = vmov 1935823168  }
  0xb2   :  { %7897 = vst [vmem:[#allocation62_spill] sm:$0xff] %v5911_v37  ;;  %v5926_v52 = vmax.bf16 %v7902_v60, %v5200_v7  ;;  %v5931_v39 = vmax.bf16 %v7903_v17, %v5202_v8  ;;  %v7905_v37 = vlaneseq  ;;  %v7906_v40 = vshrl.u32 %v5215_v63, 16 }
  0xb3   :  { %7899 = vst [vmem:[#allocation63_spill] sm:$0xff] %v5916_v48  ;;  %7901 = vst [vmem:[#allocation64_spill] sm:$0xff] %v5921_v34  ;;  %v5936_v53 = vmax.bf16 %v7904_v19, %v5213_v62  ;;  %v1417_v48 = vunpack.c.l.s4 %v3748_v1  ;;  %v7907_v7 = vshrl.u32 %v5217_v13, 16  ;;  %v7908_v8 = vshrl.u32 %v7644_v58, 16 }
  0xb4   :  { %v1420_v6 = vshrl.u32 %v7905_v37, 7  ;;  %v5942_v34 = vmax.bf16 %v7906_v40, %v5215_v63  ;;  %v7909_v62 = vshrl.u32 %v5230_v10, 16  ;;  %v7910_v37 = vshrl.u32 %v5232_v20, 16 }
  0xb5   :  { %v5947_v60 = vmax.bf16 %v7907_v7, %v5217_v13  ;;  %v5952_v17 = vmax.bf16 %v7908_v8, %v7644_v58  ;;  %v7911_v1 = vshrl.u32 %v5234_v11, 16  ;;  %v7912_v40 = vshrl.u32 %v5236_v26, 16 }
  0xb6   :  { %v5957_v19 = vmax.bf16 %v7909_v62, %v5230_v10  ;;  %v5962_v63 = vmax.bf16 %v7910_v37, %v5232_v20  ;;  %v1418_v7 = vunpack.c.0.s8 %v1417_v48  ;;  %v7913_v10 = vshrl.u32 %v5238_v15, 16 }
  0xb7   :  { %v5967_v13 = vmax.bf16 %v7911_v1, %v5234_v11  ;;  %v5972_v58 = vmax.bf16 %v7912_v40, %v5236_v26  ;;  %v7914_v20 = vshrl.u32 %v5240_v14, 16  ;;  %v7915_v11 = vshrl.u32 %v5242_v28, 16 }
  0xb8   :  { %v5977_v8 = vmax.bf16 %v7913_v10, %v5238_v15  ;;  %v7916_v26 = vshrl.u32 %v5244_v29, 16  ;;  %v7917_v48 = vshrl.u32 %v5246_v30, 16  ;;  %v7918_v40 = vshrl.u32 %v5248_v16, 16 }
  0xb9   :  { %v5982_v62 = vmax.bf16 %v7914_v20, %v5240_v14  ;;  %v5987_v37 = vmax.bf16 %v7915_v11, %v5242_v28  ;;  %v7919_v10 = vshrl.u32 %v5250_v21, 16  ;;  %v6009_v20 = vsub.s32 %v1418_v7, %v1420_v6 }
  0xba   :  { %v5992_v1 = vmax.bf16 %v7916_v26, %v5244_v29  ;;  %v5997_v15 = vmax.bf16 %v7917_v48, %v5246_v30  ;;  %v6002_v14 = vmax.bf16 %v7918_v40, %v5248_v16  ;;  %v7920_v29 = vshrl.u32 %v5252_v22, 16 }
  0xbb   :  { %v6007_v28 = vmax.bf16 %v7919_v10, %v5250_v21  ;;  %v7921_v30 = vshrl.u32 %v5254_v23, 16  ;;  %v7922_v16 = vshrl.u32 %v5256_v25, 16  ;;  %v7923_v21 = vshrl.u32 %v5258_v31, 16 }
  0xbc   :  { %v6014_v11 = vmax.bf16 %v7920_v29, %v5252_v22  ;;  %v1422_v7 = vrot.slane %v5391_v46, %v6009_v20  ;;  %v1436_v22 = vrot.slane %v5396_v47, %v6009_v20  ;;  %v1464_v40 = vrot.slane %v5406_v27, %v6009_v20 }
  0xbd   :  { %v6019_v26 = vmax.bf16 %v7921_v30, %v5254_v23  ;;  %v6024_v48 = vmax.bf16 %v7922_v16, %v5256_v25  ;;  %v6029_v6 = vmax.bf16 %v7923_v21, %v5258_v31  ;;  %v1450_v23 = vrot.slane %v5401_v51, %v6009_v20 }
  0xbe   :  { %v1478_v25 = vrot.slane %v5411_v44, %v6009_v20  ;;  %v1492_v10 = vrot.slane %v5416_v45, %v6009_v20  ;;  %v1506_v31 = vrot.slane %v5421_v54, %v6009_v20  ;;  %v1520_v46 = vrot.slane %v5426_v55, %v6009_v20 }
  0xbf   :  { %v6048_v47 = vrot.slane %v1422_v7, %v6009_v20  ;;  %v6051_v51 = vrot.slane %v1436_v22, %v6009_v20  ;;  %v6054_v27 = vrot.slane %v1450_v23, %v6009_v20  ;;  %v6057_v44 = vrot.slane %v1464_v40, %v6009_v20  ;;  %v7932_v7 = vld [vmem:[#allocation2_spill] sm:$0xff]  ;;  %v7933_v23 = vld [vmem:[#allocation3_spill] sm:$0xff] }
  0xc0   :  { %v6060_v45 = vrot.slane %v1478_v25, %v6009_v20  ;;  %v6063_v54 = vrot.slane %v1492_v10, %v6009_v20  ;;  %v6066_v55 = vrot.slane %v1506_v31, %v6009_v20  ;;  %v6069_v29 = vrot.slane %v1520_v46, %v6009_v20  ;;  %v7934_v25 = vld [vmem:[#allocation4_spill] sm:$0xff]  ;;  %v7935_v31 = vld [vmem:[#allocation5_spill] sm:$0xff] }
  0xc1   :  { %7924 = vst [vmem:[#allocation65_spill] sm:$0xff] %v6048_v47  ;;  %7925 = vst [vmem:[#allocation66_spill] sm:$0xff] %v6051_v51  ;;  %v1534_v30 = vrot.slane %v5431_v56, %v6009_v20  ;;  %v1548_v16 = vrot.slane %v5436_v57, %v6009_v20  ;;  %v1562_v21 = vrot.slane %v5441_v2, %v6009_v20  ;;  %v7936_v56 = vld [vmem:[#allocation73_spill] sm:$0xff] }
  0xc2   :  { %7926 = vst [vmem:[#allocation67_spill] sm:$0xff] %v6054_v27  ;;  %7927 = vst [vmem:[#allocation68_spill] sm:$0xff] %v6057_v44  ;;  %v1576_v22 = vrot.slane %v7932_v7, %v6009_v20  ;;  %v1590_v40 = vrot.slane %v7933_v23, %v6009_v20  ;;  %v1604_v10 = vrot.slane %v7934_v25, %v6009_v20 }
  0xc3   :  { %7928 = vst [vmem:[#allocation69_spill] sm:$0xff] %v6060_v45  ;;  %7929 = vst [vmem:[#allocation70_spill] sm:$0xff] %v6063_v54  ;;  %v1618_v46 = vrot.slane %v7935_v31, %v6009_v20  ;;  %v6088_v57 = vrot.slane %v1534_v30, %v6009_v20  ;;  %v6091_v2 = vrot.slane %v1548_v16, %v6009_v20  ;;  %v7945_v16 = vld [vmem:[#allocation77_spill] sm:$0xff] }
  0xc4   :  { %7930 = vst [vmem:[#allocation71_spill] sm:$0xff] %v6066_v55  ;;  %7931 = vst [vmem:[#allocation72_spill] sm:$0xff] %v6069_v29  ;;  %v1632_v29 = vrot.slane %v7936_v56, %v6009_v20  ;;  %v6094_v7 = vrot.slane %v1562_v21, %v6009_v20  ;;  %v6097_v23 = vrot.slane %v1576_v22, %v6009_v20  ;;  %v7946_v21 = vld [vmem:[#allocation78_spill] sm:$0xff]  ;;  %v7947_v22 = vld [vmem:[#allocation79_spill] sm:$0xff] }
  0xc5   :  { %7937 = vst [vmem:[#allocation74_spill] sm:$0xff] %v6088_v57  ;;  %7938 = vst [vmem:[#allocation75_spill] sm:$0xff] %v6091_v2  ;;  %v6100_v25 = vrot.slane %v1590_v40, %v6009_v20  ;;  %v6103_v31 = vrot.slane %v1604_v10, %v6009_v20  ;;  %v6106_v56 = vrot.slane %v1618_v46, %v6009_v20  ;;  %v7948_v40 = vld [vmem:[#allocation81_spill] sm:$0xff]  ;;  %v7949_v10 = vld [vmem:[#allocation82_spill] sm:$0xff] }
  0xc6   :  { %7939 = vst [vmem:[#allocation76_spill] sm:$0xff] %v6094_v7  ;;  %7940 = vst [vmem:[#allocation80_spill] sm:$0xff] %v6097_v23  ;;  %v6109_v30 = vrot.slane %v1632_v29, %v6009_v20  ;;  %v1646_v2 = vrot.slane %v7945_v16, %v6009_v20  ;;  %v1660_v7 = vrot.slane %v7946_v21, %v6009_v20  ;;  %v7950_v46 = vld [vmem:[#allocation85_spill] sm:$0xff]  ;;  %v7951_v29 = vld [vmem:[#allocation86_spill] sm:$0xff] }
  0xc7   :  { %7941 = vst [vmem:[#allocation83_spill] sm:$0xff] %v6100_v25  ;;  %7942 = vst [vmem:[#allocation84_spill] sm:$0xff] %v6103_v31  ;;  %v1674_v23 = vrot.slane %v7947_v22, %v6009_v20  ;;  %v1688_v25 = vrot.slane %v7948_v40, %v6009_v20  ;;  %v1702_v31 = vrot.slane %v7949_v10, %v6009_v20  ;;  %v7952_v16 = vld [vmem:[#allocation87_spill] sm:$0xff] }
  0xc8   :  { %7943 = vst [vmem:[#allocation89_spill] sm:$0xff] %v6106_v56  ;;  %7944 = vst [vmem:[#allocation2_spill] sm:$0xff] %v6109_v30  ;;  %v1716_v56 = vrot.slane %v7950_v46, %v6009_v20  ;;  %v1730_v30 = vrot.slane %v7951_v29, %v6009_v20  ;;  %v1744_v57 = vrot.slane %v7952_v16, %v6009_v20 }
  0xc9   :  { %v6128_v21 = vrot.slane %v1646_v2, %v6009_v20  ;;  %v6131_v22 = vrot.slane %v1660_v7, %v6009_v20  ;;  %v6134_v40 = vrot.slane %v1674_v23, %v6009_v20  ;;  %v6137_v10 = vrot.slane %v1688_v25, %v6009_v20  ;;  %v7961_v7 = vld [vmem:[#allocation88_spill] sm:$0xff]  ;;  %v7962_v23 = vld [vmem:[#allocation90_spill] sm:$0xff]  ;;  %v7963_v25 = vld [vmem:[#allocation91_spill] sm:$0xff] }
  0xca   :  { %v6140_v46 = vrot.slane %v1702_v31, %v6009_v20  ;;  %v6143_v29 = vrot.slane %v1716_v56, %v6009_v20  ;;  %v6146_v16 = vrot.slane %v1730_v30, %v6009_v20  ;;  %v6149_v2 = vrot.slane %v1744_v57, %v6009_v20  ;;  %v7964_v31 = vld [vmem:[#allocation92_spill] sm:$0xff]  ;;  %v7965_v56 = vld [vmem:[#allocation6_spill] sm:$0xff]  ;;  %v7966_v30 = vld [vmem:[#allocation7_spill] sm:$0xff] }
  0xcb   :  { %7953 = vst [vmem:[#allocation3_spill] sm:$0xff] %v6128_v21  ;;  %7954 = vst [vmem:[#allocation4_spill] sm:$0xff] %v6131_v22  ;;  %v1758_v22 = vrot.slane %v7961_v7, %v6009_v20  ;;  %v7967_v57 = vld [vmem:[#allocation8_spill] sm:$0xff]  ;;  %v7968_v7 = vld [vmem:[#allocation9_spill] sm:$0xff] }
  0xcc   :  { %7955 = vst [vmem:[#allocation5_spill] sm:$0xff] %v6134_v40  ;;  %7956 = vst [vmem:[#allocation73_spill] sm:$0xff] %v6137_v10  ;;  %v1772_v40 = vrot.slane %v7962_v23, %v6009_v20  ;;  %v1786_v10 = vrot.slane %v7963_v25, %v6009_v20  ;;  %v1856_v21 = vrot.slane %v7968_v7, %v6009_v20 }
  0xcd   :  { %7957 = vst [vmem:[#allocation77_spill] sm:$0xff] %v6140_v46  ;;  %7958 = vst [vmem:[#allocation78_spill] sm:$0xff] %v6143_v29  ;;  %v1800_v46 = vrot.slane %v7964_v31, %v6009_v20  ;;  %v1814_v29 = vrot.slane %v7965_v56, %v6009_v20  ;;  %v6168_v23 = vrot.slane %v1758_v22, %v6009_v20 }
  0xce   :  { %7959 = vst [vmem:[#allocation79_spill] sm:$0xff] %v6146_v16  ;;  %7960 = vst [vmem:[#allocation81_spill] sm:$0xff] %v6149_v2  ;;  %v1828_v16 = vrot.slane %v7966_v30, %v6009_v20  ;;  %v1842_v2 = vrot.slane %v7967_v57, %v6009_v20  ;;  %v6171_v25 = vrot.slane %v1772_v40, %v6009_v20  ;;  %v7977_v40 = vld [vmem:[#allocation10_spill] sm:$0xff] }
  0xcf   :  { %7969 = vst [vmem:[#allocation82_spill] sm:$0xff] %v6168_v23  ;;  %v6174_v31 = vrot.slane %v1786_v10, %v6009_v20  ;;  %v6177_v56 = vrot.slane %v1800_v46, %v6009_v20  ;;  %v6180_v30 = vrot.slane %v1814_v29, %v6009_v20  ;;  %v6189_v22 = vrot.slane %v1856_v21, %v6009_v20  ;;  %v7978_v10 = vld [vmem:[#allocation11_spill] sm:$0xff]  ;;  %v7979_v46 = vld [vmem:[#allocation12_spill] sm:$0xff]  ;;  %v7980_v29 = vld [vmem:[#allocation13_spill] sm:$0xff] }
  0xd0   :  { %7970 = vst [vmem:[#allocation85_spill] sm:$0xff] %v6171_v25  ;;  %v6183_v57 = vrot.slane %v1828_v16, %v6009_v20  ;;  %v6186_v7 = vrot.slane %v1842_v2, %v6009_v20  ;;  %v1870_v25 = vrot.slane %v7977_v40, %v6009_v20  ;;  %v7981_v16 = vld [vmem:[#allocation14_spill] sm:$0xff]  ;;  %v7982_v2 = vld [vmem:[#allocation15_spill] sm:$0xff]  ;;  %v7983_v21 = vld [vmem:[#allocation16_spill] sm:$0xff] }
  0xd1   :  { %7971 = vst [vmem:[#allocation86_spill] sm:$0xff] %v6174_v31  ;;  %7972 = vst [vmem:[#allocation87_spill] sm:$0xff] %v6177_v56  ;;  %v1884_v31 = vrot.slane %v7978_v10, %v6009_v20  ;;  %v1898_v56 = vrot.slane %v7979_v46, %v6009_v20  ;;  %v7984_v40 = vld [vmem:[#allocation17_spill] sm:$0xff] }
  0xd2   :  { %7973 = vst [vmem:[#allocation88_spill] sm:$0xff] %v6180_v30  ;;  %7974 = vst [vmem:[#allocation90_spill] sm:$0xff] %v6183_v57  ;;  %v1912_v30 = vrot.slane %v7980_v29, %v6009_v20  ;;  %v1926_v57 = vrot.slane %v7981_v16, %v6009_v20  ;;  %v1968_v23 = vrot.slane %v7984_v40, %v6009_v20 }
  0xd3   :  { %7975 = vst [vmem:[#allocation91_spill] sm:$0xff] %v6186_v7  ;;  %7976 = vst [vmem:[#allocation92_spill] sm:$0xff] %v6189_v22  ;;  %v1940_v7 = vrot.slane %v7982_v2, %v6009_v20  ;;  %v1954_v22 = vrot.slane %v7983_v21, %v6009_v20  ;;  %v6208_v10 = vrot.slane %v1870_v25, %v6009_v20 }
  0xd4   :  { %v6211_v46 = vrot.slane %v1884_v31, %v6009_v20  ;;  %v6214_v29 = vrot.slane %v1898_v56, %v6009_v20  ;;  %v6217_v16 = vrot.slane %v1912_v30, %v6009_v20  ;;  %v6220_v2 = vrot.slane %v1926_v57, %v6009_v20  ;;  %v7993_v31 = vld [vmem:[#allocation18_spill] sm:$0xff]  ;;  %v7994_v56 = vld [vmem:[#allocation19_spill] sm:$0xff]  ;;  %v7995_v30 = vld [vmem:[#allocation20_spill] sm:$0xff] }
  0xd5   :  { %7985 = vst [vmem:[#allocation6_spill] sm:$0xff] %v6208_v10  ;;  %v6223_v21 = vrot.slane %v1940_v7, %v6009_v20  ;;  %v6226_v40 = vrot.slane %v1954_v22, %v6009_v20  ;;  %v6229_v25 = vrot.slane %v1968_v23, %v6009_v20  ;;  %v7996_v57 = vld [vmem:[#allocation21_spill] sm:$0xff]  ;;  %v7997_v7 = vld [vmem:[#allocation22_spill] sm:$0xff]  ;;  %v7998_v22 = vld [vmem:[#allocation23_spill] sm:$0xff] }
  0xd6   :  { %7986 = vst [vmem:[#allocation7_spill] sm:$0xff] %v6211_v46  ;;  %7987 = vst [vmem:[#allocation8_spill] sm:$0xff] %v6214_v29  ;;  %v1982_v46 = vrot.slane %v7993_v31, %v6009_v20  ;;  %v1996_v29 = vrot.slane %v7994_v56, %v6009_v20  ;;  %v7999_v23 = vld [vmem:[#allocation24_spill] sm:$0xff]  ;;  %v8000_v31 = vld [vmem:[#allocation25_spill] sm:$0xff] }
  0xd7   :  { %7988 = vst [vmem:[#allocation9_spill] sm:$0xff] %v6217_v16  ;;  %7989 = vst [vmem:[#allocation10_spill] sm:$0xff] %v6220_v2  ;;  %v2010_v16 = vrot.slane %v7995_v30, %v6009_v20  ;;  %v2024_v2 = vrot.slane %v7996_v57, %v6009_v20  ;;  %v2080_v10 = vrot.slane %v8000_v31, %v6009_v20 }
  0xd8   :  { %7990 = vst [vmem:[#allocation11_spill] sm:$0xff] %v6223_v21  ;;  %7991 = vst [vmem:[#allocation12_spill] sm:$0xff] %v6226_v40  ;;  %v2038_v21 = vrot.slane %v7997_v7, %v6009_v20  ;;  %v2052_v40 = vrot.slane %v7998_v22, %v6009_v20  ;;  %v6248_v56 = vrot.slane %v1982_v46, %v6009_v20 }
  0xd9   :  { %7992 = vst [vmem:[#allocation13_spill] sm:$0xff] %v6229_v25  ;;  %v2066_v25 = vrot.slane %v7999_v23, %v6009_v20  ;;  %v6251_v30 = vrot.slane %v1996_v29, %v6009_v20  ;;  %v6254_v57 = vrot.slane %v2010_v16, %v6009_v20  ;;  %v6257_v7 = vrot.slane %v2024_v2, %v6009_v20  ;;  %v8009_v29 = vld [vmem:[#allocation26_spill] sm:$0xff]  ;;  %v8010_v16 = vld [vmem:[#allocation27_spill] sm:$0xff]  ;;  %v8011_v2 = vld [vmem:[#allocation28_spill] sm:$0xff] }
  0xda   :  { %8001 = vst [vmem:[#allocation14_spill] sm:$0xff] %v6248_v56  ;;  %v6260_v22 = vrot.slane %v2038_v21, %v6009_v20  ;;  %v6263_v23 = vrot.slane %v2052_v40, %v6009_v20  ;;  %v6269_v46 = vrot.slane %v2080_v10, %v6009_v20  ;;  %v8012_v21 = vld [vmem:[#allocation29_spill] sm:$0xff]  ;;  %v8013_v40 = vld [vmem:[#allocation30_spill] sm:$0xff]  ;;  %v8015_v10 = vld [vmem:[#allocation32_spill] sm:$0xff] }
  0xdb   :  { %8002 = vst [vmem:[#allocation15_spill] sm:$0xff] %v6251_v30  ;;  %8003 = vst [vmem:[#allocation16_spill] sm:$0xff] %v6254_v57  ;;  %v6266_v31 = vrot.slane %v2066_v25, %v6009_v20  ;;  %v2094_v30 = vrot.slane %v8009_v29, %v6009_v20  ;;  %v2108_v57 = vrot.slane %v8010_v16, %v6009_v20  ;;  %v8014_v25 = vld [vmem:[#allocation31_spill] sm:$0xff]  ;;  %v8016_v29 = vld [vmem:[#allocation33_spill] sm:$0xff] }
  0xdc   :  { %8004 = vst [vmem:[#allocation17_spill] sm:$0xff] %v6257_v7  ;;  %8005 = vst [vmem:[#allocation18_spill] sm:$0xff] %v6260_v22  ;;  %v2122_v7 = vrot.slane %v8011_v2, %v6009_v20  ;;  %v2136_v22 = vrot.slane %v8012_v21, %v6009_v20  ;;  %v2192_v56 = vrot.slane %v8016_v29, %v6009_v20 }
  0xdd   :  { %8006 = vst [vmem:[#allocation19_spill] sm:$0xff] %v6263_v23  ;;  %8007 = vst [vmem:[#allocation20_spill] sm:$0xff] %v6266_v31  ;;  %v2150_v23 = vrot.slane %v8013_v40, %v6009_v20  ;;  %v2164_v31 = vrot.slane %v8014_v25, %v6009_v20  ;;  %v6288_v16 = vrot.slane %v2094_v30, %v6009_v20 }
  0xde   :  { %8008 = vst [vmem:[#allocation21_spill] sm:$0xff] %v6269_v46  ;;  %v2178_v46 = vrot.slane %v8015_v10, %v6009_v20  ;;  %v6291_v2 = vrot.slane %v2108_v57, %v6009_v20  ;;  %v6294_v21 = vrot.slane %v2122_v7, %v6009_v20  ;;  %v6297_v40 = vrot.slane %v2136_v22, %v6009_v20  ;;  %v8025_v57 = vld [vmem:[#allocation34_spill] sm:$0xff]  ;;  %v8026_v7 = vld [vmem:[#allocation35_spill] sm:$0xff]  ;;  %v8027_v22 = vld [vmem:[#allocation36_spill] sm:$0xff] }
  0xdf   :  { %8017 = vst [vmem:[#allocation22_spill] sm:$0xff] %v6288_v16  ;;  %v6300_v25 = vrot.slane %v2150_v23, %v6009_v20  ;;  %v6303_v10 = vrot.slane %v2164_v31, %v6009_v20  ;;  %v6309_v30 = vrot.slane %v2192_v56, %v6009_v20  ;;  %v8028_v23 = vld [vmem:[#allocation37_spill] sm:$0xff]  ;;  %v8029_v31 = vld [vmem:[#allocation38_spill] sm:$0xff]  ;;  %v8031_v56 = vld [vmem:[#allocation40_spill] sm:$0xff] }
  0xe0   :  { %8018 = vst [vmem:[#allocation23_spill] sm:$0xff] %v6291_v2  ;;  %8019 = vst [vmem:[#allocation24_spill] sm:$0xff] %v6294_v21  ;;  %v6306_v29 = vrot.slane %v2178_v46, %v6009_v20  ;;  %v2206_v2 = vrot.slane %v8025_v57, %v6009_v20  ;;  %v2220_v21 = vrot.slane %v8026_v7, %v6009_v20  ;;  %v8030_v46 = vld [vmem:[#allocation39_spill] sm:$0xff]  ;;  %v8032_v57 = vld [vmem:[#allocation41_spill] sm:$0xff] }
  0xe1   :  { %8020 = vst [vmem:[#allocation25_spill] sm:$0xff] %v6297_v40  ;;  %8021 = vst [vmem:[#allocation26_spill] sm:$0xff] %v6300_v25  ;;  %v2234_v40 = vrot.slane %v8027_v22, %v6009_v20  ;;  %v2248_v25 = vrot.slane %v8028_v23, %v6009_v20  ;;  %v2304_v16 = vrot.slane %v8032_v57, %v6009_v20 }
  0xe2   :  { %8022 = vst [vmem:[#allocation27_spill] sm:$0xff] %v6303_v10  ;;  %8023 = vst [vmem:[#allocation28_spill] sm:$0xff] %v6306_v29  ;;  %v2262_v10 = vrot.slane %v8029_v31, %v6009_v20  ;;  %v2276_v29 = vrot.slane %v8030_v46, %v6009_v20  ;;  %v6328_v7 = vrot.slane %v2206_v2, %v6009_v20 }
  0xe3   :  { %8024 = vst [vmem:[#allocation29_spill] sm:$0xff] %v6309_v30  ;;  %v2290_v30 = vrot.slane %v8031_v56, %v6009_v20  ;;  %v6331_v22 = vrot.slane %v2220_v21, %v6009_v20  ;;  %v6334_v23 = vrot.slane %v2234_v40, %v6009_v20  ;;  %v6337_v31 = vrot.slane %v2248_v25, %v6009_v20  ;;  %v8041_v21 = vld [vmem:[#allocation42_spill] sm:$0xff]  ;;  %v8042_v40 = vld [vmem:[#allocation43_spill] sm:$0xff]  ;;  %v8043_v25 = vld [vmem:[#allocation44_spill] sm:$0xff] }
  0xe4   :  { %8033 = vst [vmem:[#allocation30_spill] sm:$0xff] %v6328_v7  ;;  %v6340_v46 = vrot.slane %v2262_v10, %v6009_v20  ;;  %v6343_v56 = vrot.slane %v2276_v29, %v6009_v20  ;;  %v6349_v2 = vrot.slane %v2304_v16, %v6009_v20  ;;  %v8044_v10 = vld [vmem:[#allocation45_spill] sm:$0xff]  ;;  %v8045_v29 = vld [vmem:[#allocation46_spill] sm:$0xff]  ;;  %v8047_v16 = vld [vmem:[#allocation48_spill] sm:$0xff] }
  0xe5   :  { %8034 = vst [vmem:[#allocation31_spill] sm:$0xff] %v6331_v22  ;;  %8035 = vst [vmem:[#allocation32_spill] sm:$0xff] %v6334_v23  ;;  %v6346_v57 = vrot.slane %v2290_v30, %v6009_v20  ;;  %v2318_v22 = vrot.slane %v8041_v21, %v6009_v20  ;;  %v2332_v23 = vrot.slane %v8042_v40, %v6009_v20  ;;  %v8046_v30 = vld [vmem:[#allocation47_spill] sm:$0xff]  ;;  %v8048_v21 = vld [vmem:[#allocation49_spill] sm:$0xff] }
  0xe6   :  { %8036 = vst [vmem:[#allocation33_spill] sm:$0xff] %v6337_v31  ;;  %8037 = vst [vmem:[#allocation34_spill] sm:$0xff] %v6340_v46  ;;  %v2346_v31 = vrot.slane %v8043_v25, %v6009_v20  ;;  %v2360_v46 = vrot.slane %v8044_v10, %v6009_v20  ;;  %v2416_v7 = vrot.slane %v8048_v21, %v6009_v20 }
  0xe7   :  { %8038 = vst [vmem:[#allocation35_spill] sm:$0xff] %v6343_v56  ;;  %8039 = vst [vmem:[#allocation36_spill] sm:$0xff] %v6346_v57  ;;  %v2374_v56 = vrot.slane %v8045_v29, %v6009_v20  ;;  %v2388_v57 = vrot.slane %v8046_v30, %v6009_v20  ;;  %v6368_v40 = vrot.slane %v2318_v22, %v6009_v20 }
  0xe8   :  { %8040 = vst [vmem:[#allocation37_spill] sm:$0xff] %v6349_v2  ;;  %v2402_v2 = vrot.slane %v8047_v16, %v6009_v20  ;;  %v6371_v25 = vrot.slane %v2332_v23, %v6009_v20  ;;  %v6374_v10 = vrot.slane %v2346_v31, %v6009_v20  ;;  %v6377_v29 = vrot.slane %v2360_v46, %v6009_v20  ;;  %v8057_v23 = vld [vmem:[#allocation50_spill] sm:$0xff]  ;;  %v8058_v31 = vld [vmem:[#allocation51_spill] sm:$0xff]  ;;  %v8059_v46 = vld [vmem:[#allocation52_spill] sm:$0xff] }
  0xe9   :  { %8049 = vst [vmem:[#allocation38_spill] sm:$0xff] %v6368_v40  ;;  %v6380_v30 = vrot.slane %v2374_v56, %v6009_v20  ;;  %v6383_v16 = vrot.slane %v2388_v57, %v6009_v20  ;;  %v6389_v22 = vrot.slane %v2416_v7, %v6009_v20  ;;  %v8060_v56 = vld [vmem:[#allocation53_spill] sm:$0xff]  ;;  %v8061_v57 = vld [vmem:[#allocation54_spill] sm:$0xff]  ;;  %v8062_v7 = vld [vmem:[#allocation55_spill] sm:$0xff] }
  0xea   :  { %8050 = vst [vmem:[#allocation39_spill] sm:$0xff] %v6371_v25  ;;  %8051 = vst [vmem:[#allocation40_spill] sm:$0xff] %v6374_v10  ;;  %v6386_v21 = vrot.slane %v2402_v2, %v6009_v20  ;;  %v2430_v25 = vrot.slane %v8057_v23, %v6009_v20  ;;  %v2444_v10 = vrot.slane %v8058_v31, %v6009_v20  ;;  %v8063_v23 = vld [vmem:[#allocation56_spill] sm:$0xff] }
  0xeb   :  { %8052 = vst [vmem:[#allocation41_spill] sm:$0xff] %v6377_v29  ;;  %8053 = vst [vmem:[#allocation42_spill] sm:$0xff] %v6380_v30  ;;  %v2458_v29 = vrot.slane %v8059_v46, %v6009_v20  ;;  %v2472_v30 = vrot.slane %v8060_v56, %v6009_v20  ;;  %v2500_v2 = vrot.slane %v5776_v12, %v6009_v20 }
  0xec   :  { %8054 = vst [vmem:[#allocation43_spill] sm:$0xff] %v6383_v16  ;;  %8055 = vst [vmem:[#allocation44_spill] sm:$0xff] %v6386_v21  ;;  %v2486_v16 = vrot.slane %v8061_v57, %v6009_v20  ;;  %v2528_v21 = vrot.slane %v8063_v23, %v6009_v20  ;;  %v6408_v31 = vrot.slane %v2430_v25, %v6009_v20 }
  0xed   :  { %8056 = vst [vmem:[#allocation45_spill] sm:$0xff] %v6389_v22  ;;  %v2514_v22 = vrot.slane %v8062_v7, %v6009_v20  ;;  %v6411_v46 = vrot.slane %v2444_v10, %v6009_v20  ;;  %v6414_v56 = vrot.slane %v2458_v29, %v6009_v20  ;;  %v6417_v57 = vrot.slane %v2472_v30, %v6009_v20  ;;  %v8068_v10 = vld [vmem:[#allocation57_spill] sm:$0xff] }
  0xee   :  { %v6420_v12 = vrot.slane %v2486_v16, %v6009_v20  ;;  %v6423_v7 = vrot.slane %v2500_v2, %v6009_v20  ;;  %v6429_v25 = vrot.slane %v2528_v21, %v6009_v20  ;;  %v2556_v29 = vrot.slane %v5796_v61, %v6009_v20  ;;  %v8069_v2 = vld [vmem:[#allocation58_spill] sm:$0xff]  ;;  %v8161_v55 = vld [vmem:[#allocation35_spill] sm:$0xff] }
  0xef   :  { %8064 = vst [vmem:[#allocation46_spill] sm:$0xff] %v6411_v46  ;;  %v6426_v23 = vrot.slane %v2514_v22, %v6009_v20  ;;  %v2542_v46 = vrot.slane %v8068_v10, %v6009_v20  ;;  %v2570_v30 = vrot.slane %v5801_v42, %v6009_v20  ;;  %v2584_v16 = vrot.slane %v5806_v3, %v6009_v20  ;;  %v8070_v10 = vld [vmem:[#allocation59_spill] sm:$0xff] }
  0xf0   :  { %8065 = vst [vmem:[#allocation47_spill] sm:$0xff] %v6423_v7  ;;  %8067 = vst [vmem:[#allocation49_spill] sm:$0xff] %v6429_v25  ;;  %v2598_v7 = vrot.slane %v8069_v2, %v6009_v20  ;;  %v2612_v22 = vrot.slane %v5816_v5, %v6009_v20  ;;  %v2626_v21 = vrot.slane %v5821_v9, %v6009_v20 }
  0xf1   :  { %8066 = vst [vmem:[#allocation48_spill] sm:$0xff] %v6426_v23  ;;  %v2640_v25 = vrot.slane %v8070_v10, %v6009_v20  ;;  %v6448_v61 = vrot.slane %v2542_v46, %v6009_v20  ;;  %v6451_v42 = vrot.slane %v2556_v29, %v6009_v20  ;;  %v6454_v3 = vrot.slane %v2570_v30, %v6009_v20  ;;  %v8073_v29 = vld [vmem:[#allocation60_spill] sm:$0xff] }
  0xf2   :  { %v6457_v2 = vrot.slane %v2584_v16, %v6009_v20  ;;  %v6460_v5 = vrot.slane %v2598_v7, %v6009_v20  ;;  %v6463_v9 = vrot.slane %v2612_v22, %v6009_v20  ;;  %v6466_v10 = vrot.slane %v2626_v21, %v6009_v20  ;;  %v8165_v47 = vld [vmem:[#allocation40_spill] sm:$0xff]  ;;  %v8166_v51 = vld [vmem:[#allocation41_spill] sm:$0xff] }
  0xf3   :  { %8071 = vst [vmem:[#allocation50_spill] sm:$0xff] %v6451_v42  ;;  %v6469_v46 = vrot.slane %v2640_v25, %v6009_v20  ;;  %v2654_v42 = vrot.slane %v8073_v29, %v6009_v20  ;;  %v2668_v30 = vrot.slane %v5836_v59, %v6009_v20  ;;  %v2682_v16 = vrot.slane %v5841_v32, %v6009_v20  ;;  %v8168_v44 = vld [vmem:[#allocation43_spill] sm:$0xff] }
  0xf4   :  { %v2696_v7 = vrot.slane %v5846_v38, %v6009_v20  ;;  %v2710_v22 = vrot.slane %v5851_v0, %v6009_v20  ;;  %v2724_v21 = vrot.slane %v5856_v4, %v6009_v20  ;;  %v2738_v25 = vrot.slane %v5861_v36, %v6009_v20  ;;  %v8170_v54 = vld [vmem:[#allocation45_spill] sm:$0xff] }
  0xf5   :  { %8072 = vst [vmem:[#allocation51_spill] sm:$0xff] %v6469_v46  ;;  %v2752_v29 = vrot.slane %v5866_v24, %v6009_v20  ;;  %v6488_v59 = vrot.slane %v2654_v42, %v6009_v20  ;;  %v6491_v32 = vrot.slane %v2668_v30, %v6009_v20  ;;  %v6494_v38 = vrot.slane %v2682_v16, %v6009_v20  ;;  %v8076_v30 = vld [vmem:[#allocation61_spill] sm:$0xff] }
  0xf6   :  { %v6497_v0 = vrot.slane %v2696_v7, %v6009_v20  ;;  %v6500_v4 = vrot.slane %v2710_v22, %v6009_v20  ;;  %v6503_v36 = vrot.slane %v2724_v21, %v6009_v20  ;;  %v6506_v24 = vrot.slane %v2738_v25, %v6009_v20 }
  0xf7   :  { %8074 = vst [vmem:[#allocation52_spill] sm:$0xff] %v6488_v59  ;;  %8075 = vst [vmem:[#allocation53_spill] sm:$0xff] %v6491_v32  ;;  %v6509_v42 = vrot.slane %v2752_v29, %v6009_v20  ;;  %v2766_v32 = vrot.slane %v8076_v30, %v6009_v20  ;;  %v2780_v16 = vrot.slane %v5876_v41, %v6009_v20  ;;  %v8172_v40 = vld [vmem:[#allocation47_spill] sm:$0xff]  ;;  %v8173_v27 = vld [vmem:[#allocation49_spill] sm:$0xff] }
  0xf8   :  { %v2794_v7 = vrot.slane %v5881_v18, %v6009_v20  ;;  %v2808_v22 = vrot.slane %v5886_v35, %v6009_v20  ;;  %v2822_v21 = vrot.slane %v5891_v33, %v6009_v20  ;;  %v2836_v25 = vrot.slane %v5896_v49, %v6009_v20  ;;  %v8197_v59 = vld [vmem:[#allocation72_spill] sm:$0xff] }
  0xf9   :  { %v2850_v29 = vrot.slane %v5901_v50, %v6009_v20  ;;  %v2864_v30 = vrot.slane %v5906_v43, %v6009_v20  ;;  %v6528_v41 = vrot.slane %v2766_v32, %v6009_v20  ;;  %v6531_v18 = vrot.slane %v2780_v16, %v6009_v20  ;;  %v8080_v16 = vld [vmem:[#allocation62_spill] sm:$0xff] }
  0xfa   :  { %v6534_v35 = vrot.slane %v2794_v7, %v6009_v20  ;;  %v6537_v33 = vrot.slane %v2808_v22, %v6009_v20  ;;  %v6540_v49 = vrot.slane %v2822_v21, %v6009_v20  ;;  %v6543_v50 = vrot.slane %v2836_v25, %v6009_v20  ;;  %v8081_v7 = vld [vmem:[#allocation63_spill] sm:$0xff]  ;;  %v8082_v22 = vld [vmem:[#allocation64_spill] sm:$0xff]  ;;  %v8174_v45 = vld [vmem:[#allocation50_spill] sm:$0xff] }
  0xfb   :  { %8077 = vst [vmem:[#allocation54_spill] sm:$0xff] %v6531_v18  ;;  %v6546_v43 = vrot.slane %v2850_v29, %v6009_v20  ;;  %v6549_v32 = vrot.slane %v2864_v30, %v6009_v20  ;;  %v2878_v18 = vrot.slane %v8080_v16, %v6009_v20  ;;  %v2920_v21 = vrot.slane %v5926_v52, %v6009_v20 }
  0xfc   :  { %8078 = vst [vmem:[#allocation55_spill] sm:$0xff] %v6534_v35  ;;  %8079 = vst [vmem:[#allocation56_spill] sm:$0xff] %v6537_v33  ;;  %v2892_v35 = vrot.slane %v8081_v7, %v6009_v20  ;;  %v2906_v33 = vrot.slane %v8082_v22, %v6009_v20  ;;  %v2934_v25 = vrot.slane %v5931_v39, %v6009_v20 }
  0xfd   :  { %v2948_v29 = vrot.slane %v5936_v53, %v6009_v20  ;;  %v2962_v30 = vrot.slane %v5942_v34, %v6009_v20  ;;  %v2976_v16 = vrot.slane %v5947_v60, %v6009_v20  ;;  %v6568_v7 = vrot.slane %v2878_v18, %v6009_v20 }
  0xfe   :  { %v6571_v22 = vrot.slane %v2892_v35, %v6009_v20  ;;  %v6574_v52 = vrot.slane %v2906_v33, %v6009_v20  ;;  %v6577_v39 = vrot.slane %v2920_v21, %v6009_v20  ;;  %v6580_v53 = vrot.slane %v2934_v25, %v6009_v20 }
  0xff   :  { %8083 = vst [vmem:[#allocation57_spill] sm:$0xff] %v6568_v7  ;;  %v6583_v34 = vrot.slane %v2948_v29, %v6009_v20  ;;  %v6586_v60 = vrot.slane %v2962_v30, %v6009_v20  ;;  %v6589_v18 = vrot.slane %v2976_v16, %v6009_v20  ;;  %v2990_v35 = vrot.slane %v5952_v17, %v6009_v20 }
 0x100   :  { %8084 = vst [vmem:[#allocation58_spill] sm:$0xff] %v6571_v22  ;;  %8085 = vst [vmem:[#allocation59_spill] sm:$0xff] %v6574_v52  ;;  %v3004_v33 = vrot.slane %v5957_v19, %v6009_v20  ;;  %v3018_v21 = vrot.slane %v5962_v63, %v6009_v20  ;;  %v3032_v25 = vrot.slane %v5967_v13, %v6009_v20  ;;  %v8213_v52 = vld [vmem:[#allocation89_spill] sm:$0xff] }
 0x101   :  { %8086 = vst [vmem:[#allocation60_spill] sm:$0xff] %v6577_v39  ;;  %8087 = vst [vmem:[#allocation61_spill] sm:$0xff] %v6580_v53  ;;  %v3046_v29 = vrot.slane %v5972_v58, %v6009_v20  ;;  %v3060_v30 = vrot.slane %v5977_v8, %v6009_v20  ;;  %v3074_v16 = vrot.slane %v5982_v62, %v6009_v20 }
 0x102   :  { %8088 = vst [vmem:[#allocation62_spill] sm:$0xff] %v6583_v34  ;;  %8089 = vst [vmem:[#allocation63_spill] sm:$0xff] %v6586_v60  ;;  %v3088_v17 = vrot.slane %v5987_v37, %v6009_v20  ;;  %v6608_v19 = vrot.slane %v2990_v35, %v6009_v20  ;;  %v6611_v63 = vrot.slane %v3004_v33, %v6009_v20 }
 0x103   :  { %8090 = vst [vmem:[#allocation64_spill] sm:$0xff] %v6589_v18  ;;  %v6614_v13 = vrot.slane %v3018_v21, %v6009_v20  ;;  %v6617_v58 = vrot.slane %v3032_v25, %v6009_v20  ;;  %v6620_v8 = vrot.slane %v3046_v29, %v6009_v20  ;;  %v6623_v62 = vrot.slane %v3060_v30, %v6009_v20 }
 0x104   :  { %8091 = vst [vmem:[#allocation93_spill] sm:$0xff] %v6608_v19  ;;  %8092 = vst [vmem:[#allocation94_spill] sm:$0xff] %v6611_v63  ;;  %v6626_v37 = vrot.slane %v3074_v16, %v6009_v20  ;;  %v6629_v35 = vrot.slane %v3088_v17, %v6009_v20  ;;  %v3102_v33 = vrot.slane %v5992_v1, %v6009_v20  ;;  %v8193_v19 = vld [vmem:[#allocation70_spill] sm:$0xff]  ;;  %v8195_v63 = vld [vmem:[#allocation71_spill] sm:$0xff] }
 0x105   :  { %8093 = vst [vmem:[#allocation95_spill] sm:$0xff] %v6614_v13  ;;  %8094 = vst [vmem:[#allocation96_spill] sm:$0xff] %v6617_v58  ;;  %v3116_v21 = vrot.slane %v5997_v15, %v6009_v20  ;;  %v3130_v25 = vrot.slane %v6002_v14, %v6009_v20  ;;  %v3144_v29 = vrot.slane %v6007_v28, %v6009_v20  ;;  %v8194_v46 = vunpack.c.l.b16 %v8193_v19 }
 0x106   :  { %8095 = vst [vmem:[#allocation97_spill] sm:$0xff] %v6620_v8  ;;  %8096 = vst [vmem:[#allocation98_spill] sm:$0xff] %v6623_v62  ;;  %v3158_v30 = vrot.slane %v6014_v11, %v6009_v20  ;;  %v3172_v16 = vrot.slane %v6019_v26, %v6009_v20  ;;  %v3186_v17 = vrot.slane %v6024_v48, %v6009_v20  ;;  %v8196_v58 = vunpack.c.l.b16 %v8195_v63 }
 0x107   :  { %8097 = vst [vmem:[#allocation99_spill] sm:$0xff] %v6626_v37  ;;  %8098 = vst [vmem:[#allocation100_spill] sm:$0xff] %v6629_v35  ;;  %v3200_v1 = vrot.slane %v6029_v6, %v6009_v20  ;;  %v6648_v15 = vrot.slane %v3102_v33, %v6009_v20  ;;  %v6651_v14 = vrot.slane %v3116_v21, %v6009_v20  ;;  %v8187_v35 = vld [vmem:[#allocation67_spill] sm:$0xff]  ;;  %v3348_v13 = vrot.slane %v8194_v46, 3 }
 0x108   :  { %v6654_v28 = vrot.slane %v3130_v25, %v6009_v20  ;;  %v6657_v11 = vrot.slane %v3144_v29, %v6009_v20  ;;  %v6660_v26 = vrot.slane %v3158_v30, %v6009_v20  ;;  %v6663_v48 = vrot.slane %v3172_v16, %v6009_v20  ;;  %v8185_v25 = vld [vmem:[#allocation66_spill] sm:$0xff]  ;;  %v8207_v46 = vld [vmem:[#allocation83_spill] sm:$0xff] }
 0x109   :  { %8099 = vst [vmem:[#allocation101_spill] sm:$0xff] %v6648_v15  ;;  %8100 = vst [vmem:[#allocation102_spill] sm:$0xff] %v6651_v14  ;;  %v6666_v6 = vrot.slane %v3186_v17, %v6009_v20  ;;  %v6669_v33 = vrot.slane %v3200_v1, %v6009_v20  ;;  %v8153_v20 = vld [vmem:[#allocation27_spill] sm:$0xff]  ;;  %v8176_v17 = vld [vmem:[#allocation54_spill] sm:$0xff]  ;;  %v8186_v37 = vunpack.c.l.b16 %v8185_v25  ;;  %v8188_v18 = vunpack.c.l.b16 %v8187_v35 }
 0x10a   :  { %8101 = vst [vmem:[#allocation103_spill] sm:$0xff] %v6654_v28  ;;  %8102 = vst [vmem:[#allocation104_spill] sm:$0xff] %v6657_v11  ;;  %v8177_v11 = vld [vmem:[#allocation55_spill] sm:$0xff]  ;;  %v8178_v1 = vld [vmem:[#allocation56_spill] sm:$0xff]  ;;  %v3351_v8 = vrot.slane %v8196_v58, 2  ;;  %v8198_v62 = vunpack.c.l.b16 %v8197_v59  ;;  %v8208_v7 = vunpack.c.l.b16 %v8207_v46 }
 0x10b   :  { %8103 = vst [vmem:[#allocation105_spill] sm:$0xff] %v6660_v26  ;;  %8104 = vst [vmem:[#allocation106_spill] sm:$0xff] %v6663_v48  ;;  %v8171_v48 = vld [vmem:[#allocation46_spill] sm:$0xff]  ;;  %v3336_v28 = vrot.slane %v8186_v37, 7  ;;  %v3339_v29 = vrot.slane %v8188_v18, 6  ;;  %v8189_v15 = vld [vmem:[#allocation68_spill] sm:$0xff] }
 0x10c   :  { %8105 = vst [vmem:[#allocation107_spill] sm:$0xff] %v6666_v6  ;;  %8106 = vst [vmem:[#allocation108_spill] sm:$0xff] %v6669_v33  ;;  %v8163_v6 = vld [vmem:[#allocation37_spill] sm:$0xff]  ;;  %v8164_v33 = vld [vmem:[#allocation39_spill] sm:$0xff]  ;;  %v8190_v30 = vunpack.c.l.b16 %v8189_v15  ;;  %v3354_v23 = vrot.slane %v8198_v62, 1  ;;  %v3363_v63 = vrot.slane %v8208_v7, 4 }
 0x10d   :  { %v8191_v26 = vld [vmem:[#allocation69_spill] sm:$0xff]  ;;  %v8199_v25 = vld [vmem:[#allocation75_spill] sm:$0xff]  ;;  %v8209_v59 = vld [vmem:[#allocation74_spill] sm:$0xff] }
 0x10e   :  { %v3342_v14 = vrot.slane %v8190_v30, 5  ;;  %v8192_v21 = vunpack.c.l.b16 %v8191_v26  ;;  %v8200_v37 = vunpack.c.l.b16 %v8199_v25  ;;  %v8201_v35 = vld [vmem:[#allocation65_spill] sm:$0xff]  ;;  %v8203_v30 = vld [vmem:[#allocation76_spill] sm:$0xff]  ;;  %v8210_v62 = vunpack.c.l.b16 %v8209_v59 }
 0x10f   :  { %v8202_v18 = vunpack.c.l.b16 %v8201_v35  ;;  %v8204_v34 = vunpack.c.l.b16 %v8203_v30  ;;  %v8217_v7 = vld [vmem:[#allocation4_spill] sm:$0xff]  ;;  %v8219_v59 = vld [vmem:[#allocation5_spill] sm:$0xff] }
 0x110   :  { %v3345_v16 = vrot.slane %v8192_v21, 4  ;;  %v3357_v60 = vrot.slane %v8200_v37, 7  ;;  %v8205_v21 = vld [vmem:[#allocation80_spill] sm:$0xff]  ;;  %v8218_v22 = vunpack.c.l.b16 %v8217_v7 }
 0x111   :  { %v3338_v15 = vsel %vm3337_vm0, %v3336_v28, %v8202_v18  ;;  %v3359_v26 = vrot.slane %v8204_v34, 6  ;;  %v8206_v53 = vunpack.c.l.b16 %v8205_v21  ;;  %v8211_v37 = vld [vmem:[#allocation84_spill] sm:$0xff]  ;;  %v8214_v28 = vunpack.c.l.b16 %v8213_v52 }
 0x112   :  { %v3341_v58 = vsel %vm3340_vm1, %v3339_v29, %v3338_v15  ;;  %v3358_v25 = vsel %vm3337_vm0, %v3357_v60, %v8210_v62  ;;  %v8212_v39 = vunpack.c.l.b16 %v8211_v37  ;;  %v3371_v29 = vrot.slane %v8218_v22, 7  ;;  %v8221_v37 = vld [vmem:[#allocation73_spill] sm:$0xff] }
 0x113   :  { %v3361_v19 = vrot.slane %v8206_v53, 5  ;;  %v3367_v18 = vrot.slane %v8214_v28, 2  ;;  %v3344_v34 = vsel %vm3343_vm2, %v3342_v14, %v3341_v58  ;;  %v3360_v30 = vsel %vm3340_vm1, %v3359_v26, %v3358_v25  ;;  %v8215_v53 = vld [vmem:[#allocation2_spill] sm:$0xff]  ;;  %v8223_v58 = vld [vmem:[#allocation3_spill] sm:$0xff] }
 0x114   :  { %v3365_v35 = vrot.slane %v8212_v39, 3  ;;  %v8216_v21 = vunpack.c.l.b16 %v8215_v53  ;;  %v3347_v15 = vsel %vm3346_vm3, %v3345_v16, %v3344_v34  ;;  %v8220_v62 = vunpack.c.l.b16 %v8219_v59 }
 0x115   :  { %v3362_v60 = vsel %vm3343_vm2, %v3361_v19, %v3360_v30  ;;  %v8222_v52 = vunpack.c.l.b16 %v8221_v37  ;;  %v3350_v14 = vsel %vm3349_vm4, %v3348_v13, %v3347_v15  ;;  %v8224_v25 = vunpack.c.l.b16 %v8223_v58  ;;  %v8227_v30 = vld [vmem:[#allocation78_spill] sm:$0xff] }
 0x116   :  { %v3369_v46 = vrot.slane %v8216_v21, 1  ;;  %v3373_v39 = vrot.slane %v8220_v62, 6  ;;  %v3364_v26 = vsel %vm3346_vm3, %v3363_v63, %v3362_v60  ;;  %v8225_v21 = vld [vmem:[#allocation77_spill] sm:$0xff]  ;;  %v3353_v16 = vsel %vm3352_vm5, %v3351_v8, %v3350_v14 }
 0x117   :  { %v3375_v28 = vrot.slane %v8222_v52, 5  ;;  %v3372_v53 = vsel %vm3337_vm0, %v3371_v29, %v8224_v25  ;;  %v8226_v22 = vunpack.c.l.b16 %v8225_v21  ;;  %v3366_v19 = vsel %vm3349_vm4, %v3365_v35, %v3364_v26  ;;  %v8229_v29 = vld [vmem:[#allocation79_spill] sm:$0xff]  ;;  %v8231_v35 = vld [vmem:[#allocation81_spill] sm:$0xff] }
 0x118   :  { %v3374_v34 = vsel %vm3340_vm1, %v3373_v39, %v3372_v53  ;;  %v8228_v59 = vunpack.c.l.b16 %v8227_v30  ;;  %v6857_v13 = vsel %vm3355_vm6, %v3354_v23, %v3353_v16  ;;  %v3368_v63 = vsel %vm3352_vm5, %v3367_v18, %v3366_v19  ;;  %v8233_v26 = vld [vmem:[#allocation85_spill] sm:$0xff]  ;;  %v8235_v53 = vld [vmem:[#allocation86_spill] sm:$0xff]  ;;  %v8239_v19 = vld [vmem:[#allocation88_spill] sm:$0xff] }
 0x119   :  { %v3377_v7 = vrot.slane %v8226_v22, 4  ;;  %v3376_v15 = vsel %vm3343_vm2, %v3375_v28, %v3374_v34  ;;  %v8230_v60 = vunpack.c.l.b16 %v8229_v29  ;;  %v6864_v52 = vsel %vm3355_vm6, %v3369_v46, %v3368_v63  ;;  %v8237_v28 = vld [vmem:[#allocation87_spill] sm:$0xff] }
 0x11a   :  { %v3379_v62 = vrot.slane %v8228_v59, 3  ;;  %v8232_v39 = vunpack.c.l.b16 %v8231_v35  ;;  %v8234_v58 = vunpack.c.l.b16 %v8233_v26  ;;  %v8236_v18 = vunpack.c.l.b16 %v8235_v53  ;;  %v8245_v35 = vld [vmem:[#allocation91_spill] sm:$0xff] }
 0x11b   :  { %v3381_v37 = vrot.slane %v8230_v60, 2  ;;  %v3378_v8 = vsel %vm3346_vm3, %v3377_v7, %v3376_v15  ;;  %v8238_v22 = vunpack.c.l.b16 %v8237_v28  ;;  %v8240_v34 = vunpack.c.l.b16 %v8239_v19  ;;  %v8241_v7 = vld [vmem:[#allocation82_spill] sm:$0xff]  ;;  %v8250_v28 = vld [vmem:[#allocation7_spill] sm:$0xff] }
 0x11c   :  { %v3383_v14 = vrot.slane %v8232_v39, 1  ;;  %v3385_v25 = vrot.slane %v8234_v58, 7  ;;  %v3380_v23 = vsel %vm3349_vm4, %v3379_v62, %v3378_v8  ;;  %v3387_v21 = vrot.slane %v8236_v18, 6  ;;  %v8243_v15 = vld [vmem:[#allocation90_spill] sm:$0xff]  ;;  %v8248_v58 = vld [vmem:[#allocation92_spill] sm:$0xff] }
 0x11d   :  { %v3389_v16 = vrot.slane %v8238_v22, 5  ;;  %v3391_v46 = vrot.slane %v8240_v34, 4  ;;  %v3382_v30 = vsel %vm3352_vm5, %v3381_v37, %v3380_v23  ;;  %v8242_v59 = vunpack.c.l.b16 %v8241_v7  ;;  %v8254_v7 = vld [vmem:[#allocation9_spill] sm:$0xff] }
 0x11e   :  { %v8244_v29 = vunpack.c.l.b16 %v8243_v15  ;;  %v8246_v62 = vunpack.c.l.b16 %v8245_v35  ;;  %v6887_v39 = vsel %vm3355_vm6, %v3383_v14, %v3382_v30  ;;  %v8249_v53 = vunpack.c.l.b16 %v8248_v58  ;;  %v8260_v58 = vld [vmem:[#allocation11_spill] sm:$0xff] }
 0x11f   :  { %v3386_v63 = vsel %vm3337_vm0, %v3385_v25, %v8242_v59  ;;  %8247 = vst [vmem:[#allocation27_spill] sm:$0xff] %v6887_v39  ;;  %v8251_v37 = vunpack.c.l.b16 %v8250_v28  ;;  %v8252_v25 = vld [vmem:[#allocation8_spill] sm:$0xff]  ;;  %v8255_v59 = vunpack.c.l.b16 %v8254_v7  ;;  %v8264_v7 = vld [vmem:[#allocation13_spill] sm:$0xff] }
 0x120   :  { %v3393_v60 = vrot.slane %v8244_v29, 3  ;;  %v3395_v8 = vrot.slane %v8246_v62, 2  ;;  %v3388_v26 = vsel %vm3340_vm1, %v3387_v21, %v3386_v63  ;;  %v3397_v18 = vrot.slane %v8249_v53, 1  ;;  %v8256_v29 = vld [vmem:[#allocation10_spill] sm:$0xff] }
 0x121   :  { %v3399_v23 = vrot.slane %v8251_v37, 7  ;;  %v3390_v22 = vsel %vm3343_vm2, %v3389_v16, %v3388_v26  ;;  %v8253_v19 = vunpack.c.l.b16 %v8252_v25  ;;  %v3403_v15 = vrot.slane %v8255_v59, 5  ;;  %v8258_v21 = vld [vmem:[#allocation6_spill] sm:$0xff]  ;;  %v8262_v37 = vld [vmem:[#allocation12_spill] sm:$0xff] }
 0x122   :  { %v8257_v35 = vunpack.c.l.b16 %v8256_v29  ;;  %v3392_v30 = vsel %vm3346_vm3, %v3391_v46, %v3390_v22  ;;  %v8259_v63 = vunpack.c.l.b16 %v8258_v21  ;;  %v8261_v53 = vunpack.c.l.b16 %v8260_v58  ;;  %v8268_v21 = vld [vmem:[#allocation16_spill] sm:$0xff] }
 0x123   :  { %v3401_v34 = vrot.slane %v8253_v19, 6  ;;  %v8263_v16 = vunpack.c.l.b16 %v8262_v37  ;;  %v3394_v25 = vsel %vm3349_vm4, %v3393_v60, %v3392_v30  ;;  %v8265_v59 = vunpack.c.l.b16 %v8264_v7  ;;  %v8272_v30 = vld [vmem:[#allocation14_spill] sm:$0xff] }
 0x124   :  { %v3405_v14 = vrot.slane %v8257_v35, 4  ;;  %v3400_v62 = vsel %vm3337_vm0, %v3399_v23, %v8259_v63  ;;  %v3407_v28 = vrot.slane %v8261_v53, 3  ;;  %v8266_v35 = vld [vmem:[#allocation15_spill] sm:$0xff]  ;;  %v3396_v22 = vsel %vm3352_vm5, %v3395_v8, %v3394_v25  ;;  %v8270_v53 = vld [vmem:[#allocation17_spill] sm:$0xff] }
 0x125   :  { %v3409_v26 = vrot.slane %v8263_v16, 2  ;;  %v3402_v19 = vsel %vm3340_vm1, %v3401_v34, %v3400_v62  ;;  %v3411_v29 = vrot.slane %v8265_v59, 1  ;;  %v8267_v39 = vunpack.c.l.b16 %v8266_v35 }
 0x126   :  { %v3404_v23 = vsel %vm3343_vm2, %v3403_v15, %v3402_v19  ;;  %v8269_v63 = vunpack.c.l.b16 %v8268_v21  ;;  %v8271_v37 = vunpack.c.l.b16 %v8270_v53  ;;  %v6922_v60 = vsel %vm3355_vm6, %v3397_v18, %v3396_v22  ;;  %v8276_v19 = vld [vmem:[#allocation19_spill] sm:$0xff] }
 0x127   :  { %v3413_v46 = vrot.slane %v8267_v39, 7  ;;  %v3406_v34 = vsel %vm3346_vm3, %v3405_v14, %v3404_v23  ;;  %v8273_v62 = vunpack.c.l.b16 %v8272_v30  ;;  %v8274_v39 = vld [vmem:[#allocation18_spill] sm:$0xff]  ;;  %v8277_v35 = vunpack.c.l.b16 %v8276_v19  ;;  %v8280_v23 = vld [vmem:[#allocation21_spill] sm:$0xff]  ;;  %v8282_v30 = vld [vmem:[#allocation23_spill] sm:$0xff] }
 0x128   :  { %v3415_v58 = vrot.slane %v8269_v63, 6  ;;  %v3417_v16 = vrot.slane %v8271_v37, 5  ;;  %v8275_v59 = vunpack.c.l.b16 %v8274_v39  ;;  %v3408_v15 = vsel %vm3349_vm4, %v3407_v28, %v3406_v34  ;;  %v8278_v63 = vld [vmem:[#allocation20_spill] sm:$0xff]  ;;  %v8286_v19 = vld [vmem:[#allocation25_spill] sm:$0xff] }
 0x129   :  { %v3414_v7 = vsel %vm3337_vm0, %v3413_v46, %v8273_v62  ;;  %v3421_v21 = vrot.slane %v8277_v35, 3  ;;  %v8279_v53 = vunpack.c.l.b16 %v8278_v63  ;;  %v3410_v22 = vsel %vm3352_vm5, %v3409_v26, %v3408_v15  ;;  %v8284_v34 = vld [vmem:[#allocation24_spill] sm:$0xff] }
 0x12a   :  { %v3419_v8 = vrot.slane %v8275_v59, 4  ;;  %v3416_v25 = vsel %vm3340_vm1, %v3415_v58, %v3414_v7  ;;  %v8281_v37 = vunpack.c.l.b16 %v8280_v23  ;;  %v8283_v62 = vunpack.c.l.b16 %v8282_v30  ;;  %v8293_v30 = vld [vmem:[#allocation28_spill] sm:$0xff] }
 0x12b   :  { %v3423_v18 = vrot.slane %v8279_v53, 2  ;;  %v3418_v14 = vsel %vm3343_vm2, %v3417_v16, %v3416_v25  ;;  %v6943_v28 = vsel %vm3355_vm6, %v3411_v29, %v3410_v22  ;;  %v8285_v7 = vunpack.c.l.b16 %v8284_v34  ;;  %v8288_v16 = vld [vmem:[#allocation22_spill] sm:$0xff] }
 0x12c   :  { %v3425_v46 = vrot.slane %v8281_v37, 1  ;;  %v3427_v39 = vrot.slane %v8283_v62, 7  ;;  %v3420_v58 = vsel %vm3346_vm3, %v3419_v8, %v3418_v14  ;;  %v8287_v35 = vunpack.c.l.b16 %v8286_v19  ;;  %v8290_v53 = vld [vmem:[#allocation26_spill] sm:$0xff] }
 0x12d   :  { %v3429_v59 = vrot.slane %v8285_v7, 6  ;;  %v3422_v26 = vsel %vm3349_vm4, %v3421_v21, %v3420_v58  ;;  %v8289_v15 = vunpack.c.l.b16 %v8288_v16  ;;  %v8291_v23 = vunpack.c.l.b16 %v8290_v53  ;;  %v8295_v7 = vld [vmem:[#allocation29_spill] sm:$0xff] }
 0x12e   :  { %v3431_v63 = vrot.slane %v8287_v35, 5  ;;  %v8292_v29 = vunpack.c.l.b16 %v8153_v20  ;;  %v3424_v8 = vsel %vm3352_vm5, %v3423_v18, %v3422_v26  ;;  %v8294_v62 = vunpack.c.l.b16 %v8293_v30  ;;  %v8297_v35 = vld [vmem:[#allocation31_spill] sm:$0xff]  ;;  %v8299_v20 = vld [vmem:[#allocation32_spill] sm:$0xff] }
 0x12f   :  { %v3428_v25 = vsel %vm3337_vm0, %v3427_v39, %v8289_v15  ;;  %v3433_v37 = vrot.slane %v8291_v23, 4  ;;  %v8296_v19 = vunpack.c.l.b16 %v8295_v7  ;;  %v6965_v58 = vsel %vm3355_vm6, %v3425_v46, %v3424_v8 }
 0x130   :  { %v3435_v22 = vrot.slane %v8292_v29, 3  ;;  %v3430_v14 = vsel %vm3340_vm1, %v3429_v59, %v3428_v25  ;;  %v3437_v34 = vrot.slane %v8294_v62, 2  ;;  %v8298_v16 = vunpack.c.l.b16 %v8297_v35  ;;  %v8301_v59 = vld [vmem:[#allocation33_spill] sm:$0xff]  ;;  %v8303_v29 = vld [vmem:[#allocation34_spill] sm:$0xff]  ;;  %v8308_v35 = vld [vmem:[#allocation36_spill] sm:$0xff] }
 0x131   :  { %v3439_v21 = vrot.slane %v8296_v19, 1  ;;  %v3432_v39 = vsel %vm3343_vm2, %v3431_v63, %v3430_v14  ;;  %v8300_v53 = vunpack.c.l.b16 %v8299_v20  ;;  %v8302_v26 = vunpack.c.l.b16 %v8301_v59  ;;  %v8306_v63 = vld [vmem:[#allocation30_spill] sm:$0xff] }
 0x132   :  { %v3441_v15 = vrot.slane %v8298_v16, 7  ;;  %v3434_v18 = vsel %vm3346_vm3, %v3433_v37, %v3432_v39  ;;  %v8304_v30 = vunpack.c.l.b16 %v8303_v29  ;;  %v8305_v7 = vunpack.c.l.b16 %v8161_v55 }
 0x133   :  { %v3443_v23 = vrot.slane %v8300_v53, 6  ;;  %v3445_v25 = vrot.slane %v8302_v26, 5  ;;  %v3436_v8 = vsel %vm3349_vm4, %v3435_v22, %v3434_v18  ;;  %v8307_v14 = vunpack.c.l.b16 %v8306_v63 }
 0x134   :  { %v3447_v62 = vrot.slane %v8304_v30, 4  ;;  %v3449_v46 = vrot.slane %v8305_v7, 3  ;;  %v8309_v16 = vunpack.c.l.b16 %v8308_v35  ;;  %v8310_v37 = vunpack.c.l.b16 %v8163_v6  ;;  %v8314_v6 = vld [vmem:[#allocation42_spill] sm:$0xff]  ;;  %v8319_v35 = vld [vmem:[#allocation44_spill] sm:$0xff] }
 0x135   :  { %v3442_v19 = vsel %vm3337_vm0, %v3441_v15, %v8307_v14  ;;  %v3438_v53 = vsel %vm3352_vm5, %v3437_v34, %v3436_v8  ;;  %v8311_v26 = vunpack.c.l.b16 %v8164_v33  ;;  %v8312_v29 = vunpack.c.l.b16 %v8165_v47 }
 0x136   :  { %v3451_v20 = vrot.slane %v8309_v16, 2  ;;  %v3453_v39 = vrot.slane %v8310_v37, 1  ;;  %v3444_v59 = vsel %vm3340_vm1, %v3443_v23, %v3442_v19  ;;  %v6994_v18 = vsel %vm3355_vm6, %v3439_v21, %v3438_v53  ;;  %v8316_v23 = vld [vmem:[#allocation38_spill] sm:$0xff] }
 0x137   :  { %v3455_v55 = vrot.slane %v8311_v26, 7  ;;  %v3457_v22 = vrot.slane %v8312_v29, 6  ;;  %v3446_v15 = vsel %vm3343_vm2, %v3445_v25, %v3444_v59  ;;  %v8313_v30 = vunpack.c.l.b16 %v8166_v51 }
 0x138   :  { %v8315_v63 = vunpack.c.l.b16 %v8314_v6  ;;  %v3448_v34 = vsel %vm3346_vm3, %v3447_v62, %v3446_v15  ;;  %v8317_v8 = vunpack.c.l.b16 %v8316_v23  ;;  %v8318_v47 = vunpack.c.l.b16 %v8168_v44 }
 0x139   :  { %v3459_v7 = vrot.slane %v8313_v30, 5  ;;  %v8320_v21 = vunpack.c.l.b16 %v8319_v35  ;;  %v3450_v25 = vsel %vm3349_vm4, %v3449_v46, %v3448_v34  ;;  %v8321_v37 = vunpack.c.l.b16 %v8170_v54  ;;  %v8328_v34 = vld [vmem:[#allocation48_spill] sm:$0xff] }
 0x13a   :  { %v3461_v14 = vrot.slane %v8315_v63, 4  ;;  %v3456_v33 = vsel %vm3337_vm0, %v3455_v55, %v8317_v8  ;;  %v3463_v19 = vrot.slane %v8318_v47, 3  ;;  %v8322_v59 = vunpack.c.l.b16 %v8171_v48 }
 0x13b   :  { %v3465_v16 = vrot.slane %v8320_v21, 2  ;;  %v3458_v51 = vsel %vm3340_vm1, %v3457_v22, %v3456_v33  ;;  %v3467_v53 = vrot.slane %v8321_v37, 1  ;;  %v3452_v26 = vsel %vm3352_vm5, %v3451_v20, %v3450_v25 }
 0x13c   :  { %v3469_v62 = vrot.slane %v8322_v59, 7  ;;  %v3460_v55 = vsel %vm3343_vm2, %v3459_v7, %v3458_v51  ;;  %v8323_v44 = vunpack.c.l.b16 %v6414_v56  ;;  %v8324_v15 = vunpack.c.l.b16 %v6417_v57 }
 0x13d   :  { %v7022_v46 = vsel %vm3355_vm6, %v3453_v39, %v3452_v26  ;;  %v3462_v22 = vsel %vm3346_vm3, %v3461_v14, %v3460_v55  ;;  %v8325_v54 = vunpack.c.l.b16 %v6408_v31  ;;  %v8326_v6 = vunpack.c.l.b16 %v6420_v12 }
 0x13e   :  { %v3471_v29 = vrot.slane %v8323_v44, 6  ;;  %v3473_v30 = vrot.slane %v8324_v15, 5  ;;  %v3464_v7 = vsel %vm3349_vm4, %v3463_v19, %v3462_v22  ;;  %v8327_v63 = vunpack.c.l.b16 %v8172_v40  ;;  %v8338_v44 = vld [vmem:[#allocation51_spill] sm:$0xff] }
 0x13f   :  { %v3470_v48 = vsel %vm3337_vm0, %v3469_v62, %v8325_v54  ;;  %v3475_v20 = vrot.slane %v8326_v6, 4  ;;  %v8329_v23 = vunpack.c.l.b16 %v8328_v34  ;;  %v3466_v8 = vsel %vm3352_vm5, %v3465_v16, %v3464_v7 }
 0x140   :  { %v3472_v56 = vsel %vm3340_vm1, %v3471_v29, %v3470_v48  ;;  %v3477_v57 = vrot.slane %v8327_v63, 3  ;;  %v8330_v31 = vunpack.c.l.b16 %v8173_v27  ;;  %v8331_v12 = vunpack.c.l.b16 %v8174_v45 }
 0x141   :  { %v3479_v39 = vrot.slane %v8329_v23, 2  ;;  %v3474_v14 = vsel %vm3343_vm2, %v3473_v30, %v3472_v56  ;;  %v7043_v19 = vsel %vm3355_vm6, %v3467_v53, %v3466_v8  ;;  %v8332_v40 = vunpack.c.l.b16 %v6454_v3  ;;  %v8346_v23 = vld [vmem:[#allocation52_spill] sm:$0xff] }
 0x142   :  { %v3481_v33 = vrot.slane %v8330_v31, 1  ;;  %v3483_v47 = vrot.slane %v8331_v12, 7  ;;  %v3476_v35 = vsel %vm3346_vm3, %v3475_v20, %v3474_v14  ;;  %v8333_v25 = vunpack.c.l.b16 %v6457_v2 }
 0x143   :  { %v3485_v21 = vrot.slane %v8332_v40, 6  ;;  %v3478_v16 = vsel %vm3349_vm4, %v3477_v57, %v3476_v35  ;;  %v8334_v37 = vunpack.c.l.b16 %v6448_v61  ;;  %v8335_v45 = vunpack.c.l.b16 %v6460_v5  ;;  %v8340_v5 = vld [vmem:[#allocation53_spill] sm:$0xff] }
 0x144   :  { %v3487_v51 = vrot.slane %v8333_v25, 5  ;;  %v8336_v53 = vunpack.c.l.b16 %v6463_v9  ;;  %v3480_v26 = vsel %vm3352_vm5, %v3479_v39, %v3478_v16  ;;  %v8337_v55 = vunpack.c.l.b16 %v6466_v10 }
 0x145   :  { %v3484_v27 = vsel %vm3337_vm0, %v3483_v47, %v8334_v37  ;;  %v3489_v59 = vrot.slane %v8335_v45, 4  ;;  %v8339_v29 = vunpack.c.l.b16 %v8338_v44  ;;  %v7065_v61 = vsel %vm3355_vm6, %v3481_v33, %v3480_v26  ;;  %v8358_v26 = vld [vmem:[#allocation58_spill] sm:$0xff]  ;;  %v8360_v44 = vld [vmem:[#allocation59_spill] sm:$0xff] }
 0x146   :  { %v3491_v62 = vrot.slane %v8336_v53, 3  ;;  %v3486_v3 = vsel %vm3340_vm1, %v3485_v21, %v3484_v27  ;;  %v3493_v2 = vrot.slane %v8337_v55, 2  ;;  %v8341_v22 = vunpack.c.l.b16 %v8340_v5 }
 0x147   :  { %v3495_v15 = vrot.slane %v8339_v29, 1  ;;  %v3488_v30 = vsel %vm3343_vm2, %v3487_v51, %v3486_v3  ;;  %v8342_v9 = vunpack.c.l.b16 %v6494_v38  ;;  %v8343_v20 = vunpack.c.l.b16 %v6497_v0 }
 0x148   :  { %v3497_v54 = vrot.slane %v8341_v22, 7  ;;  %v3490_v6 = vsel %vm3346_vm3, %v3489_v59, %v3488_v30  ;;  %v8344_v7 = vunpack.c.l.b16 %v6500_v4  ;;  %v8345_v63 = vunpack.c.l.b16 %v6503_v36 }
 0x149   :  { %v3499_v48 = vrot.slane %v8342_v9, 6  ;;  %v3501_v10 = vrot.slane %v8343_v20, 5  ;;  %v3492_v34 = vsel %vm3349_vm4, %v3491_v62, %v3490_v6  ;;  %v8347_v39 = vunpack.c.l.b16 %v8346_v23 }
 0x14a   :  { %v3503_v56 = vrot.slane %v8344_v7, 4  ;;  %v3505_v57 = vrot.slane %v8345_v63, 3  ;;  %v8348_v38 = vunpack.c.l.b16 %v6506_v24  ;;  %v8349_v31 = vunpack.c.l.b16 %v6509_v42 }
 0x14b   :  { %v3498_v8 = vsel %vm3337_vm0, %v3497_v54, %v8347_v39  ;;  %v3494_v0 = vsel %vm3352_vm5, %v3493_v2, %v3492_v34  ;;  %v8350_v12 = vunpack.c.l.b16 %v8176_v17  ;;  %v8351_v47 = vunpack.c.l.b16 %v8177_v11  ;;  %v8370_v34 = vld [vmem:[#allocation63_spill] sm:$0xff] }
 0x14c   :  { %v3507_v14 = vrot.slane %v8348_v38, 2  ;;  %v3509_v33 = vrot.slane %v8349_v31, 1  ;;  %v3500_v4 = vsel %vm3340_vm1, %v3499_v48, %v3498_v8  ;;  %v7094_v40 = vsel %vm3355_vm6, %v3495_v15, %v3494_v0  ;;  %v8362_v15 = vld [vmem:[#allocation60_spill] sm:$0xff]  ;;  %v8366_v48 = vld [vmem:[#allocation61_spill] sm:$0xff]  ;;  %v8374_v0 = vld [vmem:[#allocation94_spill] sm:$0xff] }
 0x14d   :  { %v3511_v36 = vrot.slane %v8350_v12, 7  ;;  %v3513_v35 = vrot.slane %v8351_v47, 6  ;;  %v3502_v21 = vsel %vm3343_vm2, %v3501_v10, %v3500_v4  ;;  %v8352_v24 = vunpack.c.l.b16 %v8178_v1 }
 0x14e   :  { %v8353_v42 = vunpack.c.l.b16 %v6540_v49  ;;  %v3504_v16 = vsel %vm3346_vm3, %v3503_v56, %v3502_v21  ;;  %v8354_v37 = vunpack.c.l.b16 %v6528_v41  ;;  %v8355_v11 = vunpack.c.l.b16 %v6543_v50  ;;  %v8368_v56 = vld [vmem:[#allocation62_spill] sm:$0xff] }
 0x14f   :  { %v3515_v25 = vrot.slane %v8352_v24, 5  ;;  %v8356_v45 = vunpack.c.l.b16 %v6546_v43  ;;  %v3506_v53 = vsel %vm3349_vm4, %v3505_v57, %v3504_v16  ;;  %v8357_v62 = vunpack.c.l.b16 %v6549_v32  ;;  %v8364_v32 = vld [vmem:[#allocation57_spill] sm:$0xff] }
 0x150   :  { %v3517_v51 = vrot.slane %v8353_v42, 4  ;;  %v3512_v17 = vsel %vm3337_vm0, %v3511_v36, %v8354_v37  ;;  %v3519_v27 = vrot.slane %v8355_v11, 3  ;;  %v8359_v3 = vunpack.c.l.b16 %v8358_v26  ;;  %v8380_v37 = vld [vmem:[#allocation93_spill] sm:$0xff] }
 0x151   :  { %v3521_v59 = vrot.slane %v8356_v45, 2  ;;  %v3514_v1 = vsel %vm3340_vm1, %v3513_v35, %v3512_v17  ;;  %v3523_v49 = vrot.slane %v8357_v62, 1  ;;  %v3508_v41 = vsel %vm3352_vm5, %v3507_v14, %v3506_v53  ;;  %v8372_v14 = vld [vmem:[#allocation64_spill] sm:$0xff]  ;;  %v8376_v35 = vld [vmem:[#allocation95_spill] sm:$0xff]  ;;  %v8384_v53 = vld [vmem:[#allocation98_spill] sm:$0xff] }
 0x152   :  { %v3525_v55 = vrot.slane %v8359_v3, 7  ;;  %v3516_v2 = vsel %vm3343_vm2, %v3515_v25, %v3514_v1  ;;  %v8361_v50 = vunpack.c.l.b16 %v8360_v44  ;;  %v8363_v43 = vunpack.c.l.b16 %v8362_v15  ;;  %v8378_v25 = vld [vmem:[#allocation96_spill] sm:$0xff]  ;;  %v8386_v3 = vld [vmem:[#allocation99_spill] sm:$0xff] }
 0x153   :  { %v7122_v5 = vsel %vm3355_vm6, %v3509_v33, %v3508_v41  ;;  %v3518_v22 = vsel %vm3346_vm3, %v3517_v51, %v3516_v2  ;;  %v8365_v54 = vunpack.c.l.b16 %v8364_v32  ;;  %v8367_v6 = vunpack.c.l.b16 %v8366_v48  ;;  %v8388_v2 = vld [vmem:[#allocation100_spill] sm:$0xff]  ;;  %v8392_v32 = vld [vmem:[#allocation103_spill] sm:$0xff] }
 0x154   :  { %v3527_v29 = vrot.slane %v8361_v50, 6  ;;  %v3529_v30 = vrot.slane %v8363_v43, 5  ;;  %v3520_v10 = vsel %vm3349_vm4, %v3519_v27, %v3518_v22  ;;  %v8369_v63 = vunpack.c.l.b16 %v8368_v56  ;;  %v8382_v27 = vld [vmem:[#allocation97_spill] sm:$0xff]  ;;  %v8390_v43 = vld [vmem:[#allocation102_spill] sm:$0xff] }
 0x155   :  { %v3526_v9 = vsel %vm3337_vm0, %v3525_v55, %v8365_v54  ;;  %v3531_v20 = vrot.slane %v8367_v6, 4  ;;  %v8371_v23 = vunpack.c.l.b16 %v8370_v34  ;;  %v3522_v8 = vsel %vm3352_vm5, %v3521_v59, %v3520_v10  ;;  %v8394_v6 = vld [vmem:[#allocation104_spill] sm:$0xff] }
 0x156   :  { %v3528_v7 = vsel %vm3340_vm1, %v3527_v29, %v3526_v9  ;;  %v3533_v57 = vrot.slane %v8369_v63, 3  ;;  %v8373_v31 = vunpack.c.l.b16 %v8372_v14  ;;  %v8375_v4 = vunpack.c.l.b16 %v8374_v0 }
 0x157   :  { %v3535_v39 = vrot.slane %v8371_v23, 2  ;;  %v3530_v38 = vsel %vm3343_vm2, %v3529_v30, %v3528_v7  ;;  %v3524_v36 = vsel %vm3355_vm6, %v3523_v49, %v3522_v8  ;;  %v8377_v21 = vunpack.c.l.b16 %v8376_v35  ;;  %v8396_v7 = vld [vmem:[#allocation105_spill] sm:$0xff] }
 0x158   :  { %v3537_v33 = vrot.slane %v8373_v31, 1  ;;  %v3539_v12 = vrot.slane %v8375_v4, 7  ;;  %v3532_v47 = vsel %vm3346_vm3, %v3531_v20, %v3530_v38  ;;  %v8379_v42 = vunpack.c.l.b16 %v8378_v25  ;;  %v8400_v8 = vld [vmem:[#allocation101_spill] sm:$0xff]  ;;  %v8402_v31 = vld [vmem:[#allocation107_spill] sm:$0xff]  ;;  %v8404_v4 = vld [vmem:[#allocation108_spill] sm:$0xff] }
 0x159   :  { %v3541_v24 = vrot.slane %v8377_v21, 6  ;;  %v3534_v16 = vsel %vm3349_vm4, %v3533_v57, %v3532_v47  ;;  %v8381_v17 = vunpack.c.l.b16 %v8380_v37  ;;  %v8383_v45 = vunpack.c.l.b16 %v8382_v27  ;;  %v8398_v57 = vld [vmem:[#allocation106_spill] sm:$0xff] }
 0x15a   :  { %v3543_v51 = vrot.slane %v8379_v42, 5  ;;  %v8385_v1 = vunpack.c.l.b16 %v8384_v53  ;;  %v3536_v49 = vsel %vm3352_vm5, %v3535_v39, %v3534_v16  ;;  %v8387_v55 = vunpack.c.l.b16 %v8386_v3  ;;  %v8406_v16 = vld [vmem:[#allocation27_spill] sm:$0xff] }
 0x15b   :  { %v3540_v11 = vsel %vm3337_vm0, %v3539_v12, %v8381_v17  ;;  %v3545_v59 = vrot.slane %v8383_v45, 4  ;;  %v8389_v44 = vunpack.c.l.b16 %v8388_v2  ;;  %v3538_v29 = vsel %vm3355_vm6, %v3537_v33, %v3536_v49 }
 0x15c   :  { %v3547_v62 = vrot.slane %v8385_v1, 3  ;;  %v3542_v26 = vsel %vm3340_vm1, %v3541_v24, %v3540_v11  ;;  %v3549_v41 = vrot.slane %v8387_v55, 2  ;;  %v8391_v30 = vunpack.c.l.b16 %v8390_v43 }
 0x15d   :  { %v3551_v50 = vrot.slane %v8389_v44, 1  ;;  %v3544_v15 = vsel %vm3343_vm2, %v3543_v51, %v3542_v26  ;;  %v8393_v54 = vunpack.c.l.b16 %v8392_v32  ;;  %v8395_v20 = vunpack.c.l.b16 %v8394_v6 }
 0x15e   :  { %v3553_v22 = vrot.slane %v8391_v30, 7  ;;  %v3546_v48 = vsel %vm3346_vm3, %v3545_v59, %v3544_v15  ;;  %v8397_v56 = vunpack.c.l.b16 %v8396_v7  ;;  %v8399_v34 = vunpack.c.l.b16 %v8398_v57 }
 0x15f   :  { %v3555_v9 = vrot.slane %v8393_v54, 6  ;;  %v3557_v10 = vrot.slane %v8395_v20, 5  ;;  %v3548_v39 = vsel %vm3349_vm4, %v3547_v62, %v3546_v48  ;;  %v8401_v38 = vunpack.c.l.b16 %v8400_v8 }
 0x160   :  { %v3559_v63 = vrot.slane %v8397_v56, 4  ;;  %v3561_v23 = vrot.slane %v8399_v34, 3  ;;  %v8403_v33 = vunpack.c.l.b16 %v8402_v31  ;;  %v8405_v12 = vunpack.c.l.b16 %v8404_v4 }
 0x161   :  { %v3554_v14 = vsel %vm3337_vm0, %v3553_v22, %v8401_v38  ;;  %v3550_v35 = vsel %vm3352_vm5, %v3549_v41, %v3548_v39  ;;  %v3567_v24 = vpack.c.b16 %v6857_v13, %v6857_v13  ;;  %v3568_v25 = vpack.c.b16 %v6864_v52, %v6864_v52 }
 0x162   :  { %v3563_v0 = vrot.slane %v8403_v33, 2  ;;  %v3565_v47 = vrot.slane %v8405_v12, 1  ;;  %v3556_v21 = vsel %vm3340_vm1, %v3555_v9, %v3554_v14  ;;  %v3552_v42 = vsel %vm3355_vm6, %v3551_v50, %v3550_v35 }
 0x163   :  { %v3558_v51 = vsel %vm3343_vm2, %v3557_v10, %v3556_v21  ;;  %v3569_v37 = vpack.c.b16 %v8406_v16, %v8406_v16  ;;  %v3570_v17 = vpack.c.b16 %v6922_v60, %v6922_v60  ;;  %v3571_v27 = vpack.c.b16 %v6943_v28, %v6943_v28  ;;  %3599 = vst [vmem:[%s7264_s1] sm:$0xf] %v3567_v24 }
 0x164   :  { %v3560_v11 = vsel %vm3346_vm3, %v3559_v63, %v3558_v51  ;;  %v3572_v13 = vpack.c.b16 %v6965_v58, %v6965_v58  ;;  %v3573_v52 = vpack.c.b16 %v6994_v18, %v6994_v18  ;;  %3600 = vst [vmem:[%s7264_s1 + $0x4] sm:$0xf] %v3568_v25  ;;  %v3574_v45 = vpack.c.b16 %v7022_v46, %v7022_v46 }
 0x165   :  { %v3562_v60 = vsel %vm3349_vm4, %v3561_v23, %v3560_v11  ;;  %v3575_v28 = vpack.c.b16 %v7043_v19, %v7043_v19  ;;  %v3576_v58 = vpack.c.b16 %v7065_v61, %v7065_v61  ;;  %3601 = vst [vmem:[%s7264_s1 + $0x8] sm:$0xf] %v3569_v37  ;;  %3602 = vst [vmem:[%s7264_s1 + $0xc] sm:$0xf] %v3570_v17 }
 0x166   :  { %v3564_v18 = vsel %vm3352_vm5, %v3563_v0, %v3562_v60  ;;  %v3577_v59 = vpack.c.b16 %v7094_v40, %v7094_v40  ;;  %v3578_v46 = vpack.c.b16 %v7122_v5, %v7122_v5  ;;  %v3579_v19 = vpack.c.b16 %v3524_v36, %v3524_v36  ;;  %3603 = vst [vmem:[%s7264_s1 + $0x10] sm:$0xf] %v3571_v27 }
 0x167   :  { %3604 = vst [vmem:[%s7264_s1 + $0x14] sm:$0xf] %v3572_v13  ;;  %3605 = vst [vmem:[%s7264_s1 + $0x18] sm:$0xf] %v3573_v52  ;;  %v3566_v61 = vsel %vm3355_vm6, %v3565_v47, %v3564_v18  ;;  %v3580_v53 = vpack.c.b16 %v3538_v29, %v3538_v29  ;;  %v3581_v40 = vpack.c.b16 %v3552_v42, %v3552_v42 }
 0x168   :  { %3606 = vst [vmem:[%s7264_s1 + $0x1c] sm:$0xf] %v3574_v45  ;;  %3607 = vst [vmem:[%s7264_s1 + $0x20] sm:$0xf] %v3575_v28  ;;  %v3582_v5 = vpack.c.b16 %v3566_v61, %v3566_v61 }
 0x169   :  { %3608 = vst [vmem:[%s7264_s1 + $0x24] sm:$0xf] %v3576_v58  ;;  %3609 = vst [vmem:[%s7264_s1 + $0x28] sm:$0xf] %v3577_v59 }
 0x16a   :  { %3610 = vst [vmem:[%s7264_s1 + $0x2c] sm:$0xf] %v3578_v46  ;;  %3611 = vst [vmem:[%s7264_s1 + $0x30] sm:$0xf] %v3579_v19 }
 0x16b   :  { %3612 = vst [vmem:[%s7264_s1 + $0x34] sm:$0xf] %v3580_v53  ;;  %3613 = vst [vmem:[%s7264_s1 + $0x38] sm:$0xf] %v3581_v40 }
 0x16c   :  { %3614 = vst [vmem:[%s7264_s1 + $0x3c] sm:$0xf] %v3582_v5 }

// kernel: _device_forward.9
= control target key start
LH: loop header
LB: loop body
LE: loop exit
PB: predicated region body
PF: predicated region fallthrough
CT: control target
= control target key end

     0   :  { %s3518_s12 = smov 0   ;;  %s3520_s13 = smov 0   ;;  %s3992_s0 = inlined_call_operand.vmem [shape: bf16[2,10,10,128], index: 0, kind: input, shape index: {}]   ;;  %s3993_s1 = inlined_call_operand.vmem [shape: bf16[3,3,128,128], index: 1, kind: input, shape index: {}]   ;;  %s3994_s2 = inlined_call_operand.vmem [shape: f32[1,128], index: 2, kind: input, shape index: {}]   ;;  %s3995_s3 = inlined_call_operand.vmem [shape: bf16[2,64,128], index: 3, kind: output, shape index: {}]  }
   0x1   :  { %s3522_s14 = smov 0  }
   0x2 LB: > { %s25_s15 = sadd.s32 1, %s3492_s13  ;;  %p2574_p0 = scmp.ge.s32.totalorder %s3496_s14, 1  ;;  %s3496_s14 = sphi %s3522_s14, %s13_s14   ;;  %s3492_s13 = sphi %s3520_s13, %s4001_s13   ;;  %s3488_s12 = sphi %s3518_s12, %s4000_s12  }
   0x3   : > { %p27_p1 = scmp.ge.s32.totalorder %s25_s15, 2  ;;  %p168_p2 = scmp.lt.s32.totalorder %s3496_s14, 3 }
   0x5   : > { %s4003_s15 = smov (%p27_p1, %s25_s15), 0  ;;  %p169_p3 = pnand %p2574_p0, %p168_p2 }
   0x6   : > { %v3390_v0 = vld [vmem:[%s3993_s1] sm:$0xff] (!%p169_p3)   ;;  %v3392_v2 = vld [vmem:[%s3993_s1 + $0x8] sm:$0xff] (!%p169_p3)   ;;  %p202_p4 = scmp.lt.s32.totalorder (!%p169_p3), %s3488_s12, 1  ;;  %v3394_v4 = vld [vmem:[%s3993_s1 + $0x10] sm:$0xff] (!%p169_p3)   ;;  %vm432_vm0 = vsmask.f32 (!%p169_p3), 3328 }
   0x7   : > { %172 = sbr.rel (%p169_p3) target bundleno = 392 (0x188), region = 32  ;;  %v3391_v1 = vld [vmem:[%s3993_s1 + $0x100] sm:$0xff] (!%p169_p3)   ;;  %3069 = vmatprep.subr.bf16.mxu1 (!%p169_p3), %v3390_v0  ;;  %v3393_v3 = vld [vmem:[%s3993_s1 + $0x108] sm:$0xff] (!%p169_p3)   ;;  %v3395_v5 = vld [vmem:[%s3993_s1 + $0x110] sm:$0xff] (!%p169_p3)   ;;  %vm433_vm1 = vsmask.f32 (!%p169_p3), 7440 }
   0x8   : > { %3165 = vmatprep.subr.bf16.mxu0 (!%p169_p3), %v3391_v1  ;;  %3070 = vmatpush3.bf16.msra.mxu1 (!%p169_p3), %v3390_v0  ;;  %v3396_v6 = vld [vmem:[%s3993_s1 + $0x18] sm:$0xff] (!%p169_p3)   ;;  %v3398_v8 = vld [vmem:[%s3993_s1 + $0x20] sm:$0xff] (!%p169_p3)   ;;  %v3400_v10 = vld [vmem:[%s3993_s1 + $0x28] sm:$0xff] (!%p169_p3)   ;;  %vm749_vm3 = vcmask (!%p169_p3), 1042432   ;;  %vm750_vm4 = vcmask (!%p169_p3), 1046532  }
   0x9   : > { %3166 = vmatpush3.bf16.msra.mxu0 (!%p169_p3), %v3391_v1  ;;  %3071 = vmatprep.subr.bf16.mxu1 (!%p169_p3), %v3392_v2  ;;  %v3397_v7 = vld [vmem:[%s3993_s1 + $0x118] sm:$0xff] (!%p169_p3)   ;;  %v3399_v9 = vld [vmem:[%s3993_s1 + $0x120] sm:$0xff] (!%p169_p3)   ;;  %v3401_v12 = vld [vmem:[%s3993_s1 + $0x128] sm:$0xff] (!%p169_p3)  }
   0xa   : > { %3167 = vmatprep.subr.bf16.mxu0 (!%p169_p3), %v3393_v3  ;;  %v3402_v18 = vld [vmem:[%s3993_s1 + $0x30] sm:$0xff] (!%p169_p3)   ;;  %v3404_v27 = vld [vmem:[%s3993_s1 + $0x38] sm:$0xff] (!%p169_p3)   ;;  %vm3599_vm2 = vmor (!%p169_p3), %vm432_vm0, %vm433_vm1 }
   0xb   : > { %v3403_v23 = vld [vmem:[%s3993_s1 + $0x130] sm:$0xff] (!%p169_p3)   ;;  %v3405_v30 = vld [vmem:[%s3993_s1 + $0x138] sm:$0xff] (!%p169_p3)   ;;  %v3407_v46 = vld [vmem:[%s3993_s1 + $0x40] sm:$0xff] (!%p169_p3)  }
   0xc   : > { %3072 = vmatpush3.bf16.msra.mxu1 (!%p169_p3), %v3392_v2  ;;  %v3408_v52 = vld [vmem:[%s3993_s1 + $0x140] sm:$0xff] (!%p169_p3)   ;;  %v3410_v63 = vld [vmem:[%s3993_s1 + $0x48] sm:$0xff] (!%p169_p3)   ;;  %vm3686_vm5 = vmor (!%p169_p3), %vm749_vm3, %vm750_vm4 }
   0xd   : > { %3168 = vmatpush3.bf16.msra.mxu0 (!%p169_p3), %v3393_v3  ;;  %3073 = vmatprep.subr.bf16.mxu1 (!%p169_p3), %v3394_v4  ;;  %v3411_v3 = vld [vmem:[%s3993_s1 + $0x148] sm:$0xff] (!%p169_p3)  }
   0xe   : > { %s4005_s12 = smov (!%p202_p4, %s3488_s12), 1  ;;  %3169 = vmatprep.subr.bf16.mxu0 %v3395_v5 }
   0xf   : > { %s3365_s5 = smul.u32 80, %s4005_s12 }
  0x10   : > { %3074 = vmatpush3.bf16.msra.mxu1 %v3394_v4 }
  0x11   : > { %3170 = vmatpush3.bf16.msra.mxu0 %v3395_v5  ;;  %3075 = vmatprep.subr.bf16.mxu1 %v3396_v6  ;;  %s3575_s18 = scalar_lea.vmem %s3992_s0, %s3365_s5  ;;  %v3412_v5 = vld [vmem:[%s3993_s1 + $0x50] sm:$0xff]   ;;  %s2929_s5 = sshll.u32 %s4005_s12, 5 }
  0x12   : > { %3171 = vmatprep.subr.bf16.mxu0 %v3397_v7  ;;  %v3406_v11 = vld [vmem:[%s3575_s18] ss:$8 sps:$4 sm:$0xff]   ;;  %v2691_v14 = vld [vmem:[%s3575_s18 + $0xc] sm:$0x1]  ;;  %v2692_v15 = vld [vmem:[%s3575_s18 + $0x10] sm:$0xf]  ;;  %s221_s8 = scalar_lea.vmem %s3995_s3, %s2929_s5 }
  0x13   : > { %3085 = vmatprep.mubr.bf16.mxu1 %v3406_v11  ;;  %v2690_v13 = vld [vmem:[%s3575_s18 + $0x8] sm:$0xf]  ;;  %v2693_v19 = vld [vmem:[%s3575_s18 + $0x14] sm:$0x1]  ;;  %v1167_v20 = vshll.u32 %v2691_v14, 16  ;;  %v1172_v21 = vshrl.u32 %v2692_v15, 16 }
  0x14   : > { %3076 = vmatpush3.bf16.msra.mxu1 %v3396_v6  ;;  %v1158_v16 = vshrl.u32 %v2690_v13, 16  ;;  %v1161_v17 = vshll.u32 %v2690_v13, 16  ;;  %v1175_v22 = vshll.u32 %v2692_v15, 16  ;;  %v1181_v26 = vshll.u32 %v2693_v19, 16  ;;  %v2694_v36 = vld [vmem:[%s3575_s18 + $0x18] sm:$0xf] }
  0x15   : > { %3172 = vmatpush3.bf16.msra.mxu0 %v3397_v7  ;;  %3077 = vmatprep.subr.bf16.mxu1 %v3398_v8  ;;  %v1174_v28 = vrot.slane %v1172_v21, 4  ;;  %v1169_v32 = vrot.slane %v1167_v20, 5  ;;  %v2695_v37 = vld [vmem:[%s3575_s18 + $0x1c] sm:$0x1]  ;;  %v2696_v39 = vld [vmem:[%s3575_s18 + $0x20] sm:$0xf] }
  0x16   : > { %3173 = vmatprep.subr.bf16.mxu0 %v3399_v9  ;;  %v1160_v24 = vrot.slane %v1158_v16, 4  ;;  %v1163_v25 = vrot.slane %v1161_v17, 5  ;;  %v1177_v29 = vrot.slane %v1175_v22, 5  ;;  %v1183_v35 = vrot.slane %v1181_v26, 5  ;;  %v2697_v40 = vld [vmem:[%s3575_s18 + $0x24] sm:$0x1] }
  0x17   : > { %v1186_v41 = vshrl.u32 %v2694_v36, 16  ;;  %v1189_v43 = vshll.u32 %v2694_v36, 16  ;;  %v1195_v44 = vshll.u32 %v2695_v37, 16  ;;  %v1200_v45 = vshrl.u32 %v2696_v39, 16  ;;  %v3409_v53 = vld [vmem:[%s3575_s18 + $0x10] ss:$8 sps:$4 sm:$0xff]  }
  0x18   : > { %3078 = vmatpush3.bf16.msra.mxu1 %v3398_v8  ;;  %v1164_v31 = vor.u32 %v1163_v25, %v1160_v24  ;;  %v1178_v34 = vor.u32 %v1177_v29, %v1174_v28  ;;  %v1203_v49 = vshll.u32 %v2696_v39, 16  ;;  %v1209_v50 = vshll.u32 %v2697_v40, 16  ;;  %v3420_v6 = vld [vmem:[%s3575_s18 + $0x20] ss:$8 sps:$4 sm:$0xff]   ;;  %v3413_v7 = vld [vmem:[%s3993_s1 + $0x150] sm:$0xff]   ;;  %v3414_v8 = vld [vmem:[%s3993_s1 + $0x58] sm:$0xff]  }
  0x19   : > { %3174 = vmatpush3.bf16.msra.mxu0 %v3399_v9  ;;  %3079 = vmatprep.subr.bf16.mxu1 %v3400_v10  ;;  %v1188_v48 = vrot.slane %v1186_v41, 4  ;;  %v1191_v54 = vrot.slane %v1189_v43, 5  ;;  %v1197_v55 = vrot.slane %v1195_v44, 5  ;;  %v1202_v56 = vrot.slane %v1200_v45, 4  ;;  %v2698_v9 = vld [vmem:[%s3575_s18 + $0x28] sm:$0xf] }
  0x1a   : > { %3175 = vmatprep.subr.bf16.mxu0 %v3401_v12  ;;  %v1165_v38 = vrot.slane %v1164_v31, 4  ;;  %v1179_v42 = vrot.slane %v1178_v34, 4  ;;  %v1205_v58 = vrot.slane %v1203_v49, 5  ;;  %v1211_v59 = vrot.slane %v1209_v50, 5  ;;  %v2700_v11 = vld [vmem:[%s3575_s18 + $0x30] sm:$0xf] }
  0x1b   : > { %v1192_v60 = vor.u32 %v1191_v54, %v1188_v48  ;;  %v1214_v13 = vshrl.u32 %v2698_v9, 16  ;;  %v1217_v14 = vshll.u32 %v2698_v9, 16  ;;  %v1228_v16 = vshrl.u32 %v2700_v11, 16  ;;  %v3415_v19 = vld [vmem:[%s3993_s1 + $0x158] sm:$0xff]   ;;  %v3416_v20 = vld [vmem:[%s3993_s1 + $0x60] sm:$0xff]  }
  0x1c   : > { %3080 = vmatpush3.bf16.msra.mxu1 %v3400_v10  ;;  %v1170_v47 = vsel %vm3599_vm2, %v1165_v38, %v1169_v32  ;;  %v1184_v51 = vsel %vm3599_vm2, %v1179_v42, %v1183_v35  ;;  %v1206_v61 = vor.u32 %v1205_v58, %v1202_v56  ;;  %v2699_v10 = vld [vmem:[%s3575_s18 + $0x2c] sm:$0x1]  ;;  %v1231_v17 = vshll.u32 %v2700_v11, 16  ;;  %v2702_v29 = vld [vmem:[%s3575_s18 + $0x38] sm:$0xf]  ;;  %v3417_v38 = vld [vmem:[%s3993_s1 + $0x160] sm:$0xff]  }
  0x1d   : > { %3176 = vmatpush3.bf16.msra.mxu0 %v3401_v12  ;;  %3081 = vmatprep.subr.bf16.mxu1 %v3402_v18  ;;  %v2722_v57 = vcombine.low %v1170_v47, %v1184_v51  ;;  %v1193_v62 = vrot.slane %v1192_v60, 4  ;;  %v2701_v12 = vld [vmem:[%s3575_s18 + $0x34] sm:$0x1]  ;;  %v1223_v15 = vshll.u32 %v2699_v10, 16  ;;  %v1216_v21 = vrot.slane %v1214_v13, 4  ;;  %v3418_v47 = vld [vmem:[%s3993_s1 + $0x68] sm:$0xff]  }
  0x1e   : > { %3177 = vmatprep.subr.bf16.mxu0 %v3403_v23  ;;  %v1207_v0 = vrot.slane %v1206_v61, 4  ;;  %v1219_v22 = vrot.slane %v1217_v14, 5  ;;  %v1230_v24 = vrot.slane %v1228_v16, 4  ;;  %v1233_v25 = vrot.slane %v1231_v17, 5  ;;  %v2704_v31 = vld [vmem:[%s3575_s18 + $0x40] sm:$0xf] }
  0x1f   : > { %3181 = vmatprep.mubr.bf16.mxu0 %v2722_v57  ;;  %v1198_v1 = vsel %vm3599_vm2, %v1193_v62, %v1197_v55  ;;  %v2705_v34 = vld [vmem:[%s3575_s18 + $0x44] sm:$0x1]  ;;  %v1242_v35 = vshrl.u32 %v2702_v29, 16  ;;  %v1245_v36 = vshll.u32 %v2702_v29, 16  ;;  %v1256_v40 = vshrl.u32 %v2704_v31, 16  ;;  %v3419_v56 = vld [vmem:[%s3993_s1 + $0x168] sm:$0xff]  }
  0x20   : > { %3082 = vmatpush3.bf16.msra.mxu1 %v3402_v18  ;;  %v1212_v2 = vsel %vm3599_vm2, %v1207_v0, %v1211_v59  ;;  %v1237_v18 = vshll.u32 %v2701_v12, 16  ;;  %v1220_v28 = vor.u32 %v1219_v22, %v1216_v21  ;;  %v1234_v32 = vor.u32 %v1233_v25, %v1230_v24  ;;  %v416_v54 = vld [vmem:[%s3575_s18] sm:$0xf]  ;;  %v417_v55 = vld [vmem:[%s3575_s18 + $0x4] sm:$0x1]  ;;  %v3421_v57 = vld [vmem:[%s3993_s1 + $0x70] sm:$0xff]  }
  0x21   : > { %3178 = vmatpush3.bf16.msra.mxu0 %v3403_v23  ;;  %3083 = vmatprep.subr.bf16.mxu1 %v3404_v27  ;;  %v2723_v4 = vcombine.low %v1198_v1, %v1212_v2  ;;  %v1225_v23 = vrot.slane %v1223_v15, 5  ;;  %v1259_v41 = vshll.u32 %v2704_v31, 16  ;;  %v1265_v42 = vshll.u32 %v2705_v34, 16  ;;  %v418_v60 = vld [vmem:[%s3575_s18 + $0x8] sm:$0xf]  ;;  %v3422_v13 = vld [vmem:[%s3993_s1 + $0x170] sm:$0xff]  }
  0x22   : > { %3179 = vmatprep.subr.bf16.mxu0 %v3405_v30  ;;  %v1239_v26 = vrot.slane %v1237_v18, 5  ;;  %v1221_v39 = vrot.slane %v1220_v28, 4  ;;  %v1235_v43 = vrot.slane %v1234_v32, 4  ;;  %v1244_v44 = vrot.slane %v1242_v35, 4  ;;  %v419_v61 = vld [vmem:[%s3575_s18 + $0xc] sm:$0x1] }
  0x23   : > { %v1247_v45 = vrot.slane %v1245_v36, 5  ;;  %v1258_v49 = vrot.slane %v1256_v40, 4  ;;  %v1261_v50 = vrot.slane %v1259_v41, 5  ;;  %v1267_v51 = vrot.slane %v1265_v42, 5  ;;  %v2734_v12 = vld [vmem:[%s3575_s18 + $0x8] sm:$0xe] }
  0x24   : > { %3084 = vmatpush3.bf16.msra.mxu1 %v3404_v27  ;;  %v3423_v27 = vld [vmem:[%s3575_s18 + $0x30] ss:$8 sps:$4 sm:$0xff]   ;;  %v1226_v48 = vsel %vm3599_vm2, %v1221_v39, %v1225_v23  ;;  %v436_v62 = vshrl.u32 %v416_v54, 16  ;;  %v445_v1 = vshll.u32 %v417_v55, 16  ;;  %v450_v2 = vshrl.u32 %v418_v60, 16 }
  0x25   : > { %3180 = vmatpush3.bf16.msra.mxu0 %v3405_v30  ;;  %3093 = vmatprep.subr.bf16.mxu1 %v3407_v46  ;;  %v2703_v30 = vld [vmem:[%s3575_s18 + $0x3c] sm:$0x1]  ;;  %v1262_v59 = vor.u32 %v1261_v50, %v1258_v49  ;;  %v2750_v21 = vrot.slane %v2734_v12, 9  ;;  %v2737_v24 = vld [vmem:[%s3575_s18 + $0x14] sm:$0x1]  ;;  %v3426_v50 = vld [vmem:[%s3993_s1 + $0x80] sm:$0xff]  }
  0x26   : > { %3189 = vmatprep.subr.bf16.mxu0 %v3408_v52  ;;  %v1251_v37 = vshll.u32 %v2703_v30, 16  ;;  %v447_v9 = vrot.slane %v445_v1, 5  ;;  %v452_v10 = vrot.slane %v450_v2, 4  ;;  %v3424_v15 = vld [vmem:[%s3993_s1 + $0x78] sm:$0xff]   ;;  %v1477_v28 = vrot.slane %v2737_v24, 5  ;;  %v3430_v12 = vld [vmem:[%s3993_s1 + $0x90] sm:$0xff]  }
  0x27   : > { %3086 = vmatmul.mubr.bf16.vlgmr.msra.gmra.mrb[0].mxu1 %v3409_v53  ;;  %v1248_v53 = vor.u32 %v1247_v45, %v1244_v44  ;;  %v420_v29 = vld [vmem:[%s3575_s18 + $0x10] sm:$0xf]  ;;  %v421_v32 = vld [vmem:[%s3575_s18 + $0x14] sm:$0x1]  ;;  %v422_v34 = vld [vmem:[%s3575_s18 + $0x18] sm:$0xf] }
  0x28   : > { %3094 = vmatpush3.bf16.msra.mxu1 %v3407_v46  ;;  %3182 = vmatmul.mubr.bf16.vlgmr.msra.gmra.mrb[0].mxu0 %v2723_v4  ;;  %v1253_v46 = vrot.slane %v1251_v37, 5  ;;  %v1263_v4 = vrot.slane %v1262_v59, 4  ;;  %v464_v35 = vshrl.u32 %v420_v29, 16  ;;  %v3425_v36 = vld [vmem:[%s3993_s1 + $0x178] sm:$0xff]   ;;  %v467_v40 = vshll.u32 %v420_v29, 16 }
  0x29   : > { %3095 = vmatprep.subr.bf16.mxu1 %v3410_v63  ;;  %3190 = vmatpush3.bf16.msra.mxu0 %v3408_v52  ;;  %v1240_v52 = vsel %vm3599_vm2, %v1235_v43, %v1239_v26  ;;  %v1249_v0 = vrot.slane %v1248_v53, 4  ;;  %v423_v39 = vld [vmem:[%s3575_s18 + $0x1c] sm:$0x1]  ;;  %v473_v41 = vshll.u32 %v421_v32, 16  ;;  %v2738_v42 = vld [vmem:[%s3575_s18 + $0x18] sm:$0xe] }
  0x2a   : > { %3191 = vmatprep.subr.bf16.mxu0 %v3411_v3  ;;  %3089 = vmatprep.mubr.bf16.mxu1 %v3420_v6  ;;  %v2724_v58 = vcombine.low %v1226_v48, %v1240_v52  ;;  %v1268_v14 = vsel %vm3599_vm2, %v1263_v4, %v1267_v51  ;;  %v466_v45 = vrot.slane %v464_v35, 4  ;;  %v2740_v48 = vld [vmem:[%s3575_s18 + $0x20] sm:$0xe]  ;;  %v469_v51 = vrot.slane %v467_v40, 5  ;;  %v2742_v29 = vld [vmem:[%s3575_s18 + $0x28] sm:$0xe] }
  0x2b   : > { %v475_v52 = vrot.slane %v473_v41, 5  ;;  %v481_v53 = vshll.u32 %v422_v34, 16  ;;  %v2743_v32 = vld [vmem:[%s3575_s18 + $0x2c] sm:$0x1]  ;;  %v3432_v35 = vld [vmem:[%s3993_s1 + $0x98] sm:$0xff]  }
  0x2c   : > { %3096 = vmatpush3.bf16.msra.mxu1 %v3410_v63  ;;  %v439_v63 = vshll.u32 %v416_v54, 16  ;;  %3185 = vmatprep.mubr.bf16.mxu0 %v2724_v58  ;;  %v2741_v54 = vld [vmem:[%s3575_s18 + $0x24] sm:$0x1]  ;;  %v470_v59 = vor.u32 %v469_v51, %v466_v45  ;;  %v2877_v33 = vld [vmem:[%s3575_s18 + $0x3c] sm:$0x1] }
  0x2d   : > { %3097 = vmatprep.subr.bf16.mxu1 %v3412_v5  ;;  %3192 = vmatpush3.bf16.msra.mxu0 %v3411_v3  ;;  %v453_v3 = vshll.u32 %v418_v60, 16  ;;  %v483_v60 = vrot.slane %v481_v53, 5  ;;  %v3435_v45 = vld [vmem:[%s3993_s1 + $0x1a0] sm:$0xff]   ;;  %v431_v53 = vld [vmem:[%s3575_s18 + $0x3c] sm:$0x1] }
  0x2e   : > { %3193 = vmatprep.subr.bf16.mxu0 %v3413_v7  ;;  %v441_v6 = vrot.slane %v439_v63, 5  ;;  %v3427_v63 = vld [vmem:[%s3993_s1 + $0x180] sm:$0xff]   ;;  %v471_v1 = vrot.slane %v470_v59, 4  ;;  %v2746_v59 = vld [vmem:[%s3575_s18 + $0x38] sm:$0xe] }
  0x2f   : > { %3090 = vmatmul.mubr.bf16.gmra.mrb[4].mxu1 %v3423_v27  ;;  %v455_v11 = vrot.slane %v453_v3, 5 }
  0x30   : > { %3098 = vmatpush3.bf16.msra.mxu1 %v3412_v5  ;;  %v438_v5 = vrot.slane %v436_v62, 4  ;;  %v1485_v62 = vrot.slane %v2741_v54, 5 }
  0x31   : > { %3099 = vmatprep.subr.bf16.mxu1 %v3414_v8  ;;  %3194 = vmatpush3.bf16.msra.mxu0 %v3413_v7  ;;  %v459_v7 = vshll.u32 %v419_v61, 16  ;;  %v456_v23 = vor.u32 %v455_v11, %v452_v10  ;;  %v2753_v61 = vrot.slane %v2740_v48, 9  ;;  %v3428_v11 = vld [vmem:[%s3993_s1 + $0x88] sm:$0xff]   ;;  %v428_v48 = vld [vmem:[%s3575_s18 + $0x30] sm:$0xf] }
  0x32   : > { %3195 = vmatprep.subr.bf16.mxu0 %v3415_v19  ;;  %v442_v16 = vor.u32 %v441_v6, %v438_v5  ;;  %v476_v5 = vsel %vm3599_vm2, %v471_v1, %v475_v52  ;;  %v430_v52 = vld [vmem:[%s3575_s18 + $0x38] sm:$0xf]  ;;  %v520_v54 = vshrl.u32 %v428_v48, 16  ;;  %v2748_v1 = vld [vmem:[%s3575_s18 + $0x40] sm:$0xe] }
  0x33   : > { %v461_v17 = vrot.slane %v459_v7, 5  ;;  %v457_v30 = vrot.slane %v456_v23, 4  ;;  %v1486_v4 = vsel %vm3686_vm5, %v2753_v61, %v1485_v62 }
  0x34   : > { %3100 = vmatpush3.bf16.msra.mxu1 %v3414_v8  ;;  %v1254_v8 = vsel %vm3599_vm2, %v1249_v0, %v1253_v46  ;;  %v443_v27 = vrot.slane %v442_v16, 4  ;;  %v478_v46 = vshrl.u32 %v422_v34, 16  ;;  %v426_v16 = vld [vmem:[%s3575_s18 + $0x28] sm:$0xf]  ;;  %v2744_v34 = vld [vmem:[%s3575_s18 + $0x30] sm:$0xe] }
  0x35   : > { %3101 = vmatprep.subr.bf16.mxu1 %v3416_v20  ;;  %3196 = vmatpush3.bf16.msra.mxu0 %v3415_v19  ;;  %v2735_v19 = vld [vmem:[%s3575_s18 + $0xc] sm:$0x1]  ;;  %v2725_v22 = vcombine.low %v1254_v8, %v1268_v14  ;;  %v462_v43 = vsel %vm3599_vm2, %v457_v30, %v461_v17  ;;  %v424_v14 = vld [vmem:[%s3575_s18 + $0x20] sm:$0xf]  ;;  %v509_v23 = vshll.u32 %v426_v16, 16  ;;  %v2755_v40 = vrot.slane %v2744_v34, 9 }
  0x36   : > { %3197 = vmatprep.subr.bf16.mxu0 %v3417_v38  ;;  %v1473_v25 = vrot.slane %v2735_v19, 5  ;;  %v448_v37 = vsel %vm3599_vm2, %v443_v27, %v447_v9  ;;  %v480_v55 = vrot.slane %v478_v46, 4  ;;  %v3429_v9 = vld [vmem:[%s3993_s1 + $0x188] sm:$0xff]   ;;  %v492_v19 = vshrl.u32 %v424_v14, 16 }
  0x37   : > { %3186 = vmatmul.mubr.bf16.gmra.mrb[4].mxu0 %v2725_v22  ;;  %v2606_v49 = vcombine.low %v448_v37, %v462_v43  ;;  %v427_v17 = vld [vmem:[%s3575_s18 + $0x2c] sm:$0x1]  ;;  %v506_v22 = vshrl.u32 %v426_v16, 16  ;;  %v2745_v37 = vld [vmem:[%s3575_s18 + $0x34] sm:$0x1]  ;;  %v522_v62 = vrot.slane %v520_v54, 4 }
  0x38   : > { %3102 = vmatpush3.bf16.msra.mxu1 %v3416_v20  ;;  %v2736_v20 = vld [vmem:[%s3575_s18 + $0x10] sm:$0xe]  ;;  %v1474_v31 = vsel %vm3686_vm5, %v2750_v21, %v1473_v25  ;;  %v484_v2 = vor.u32 %v483_v60, %v480_v55  ;;  %v515_v24 = vshll.u32 %v427_v17, 16  ;;  %v3433_v25 = vld [vmem:[%s3993_s1 + $0x198] sm:$0xff]   ;;  %v1493_v43 = vrot.slane %v2745_v37, 5 }
  0x39   : > { %3103 = vmatprep.subr.bf16.mxu1 %v3418_v47  ;;  %3198 = vmatpush3.bf16.msra.mxu0 %v3417_v38  ;;  %v2751_v26 = vrot.slane %v2736_v20, 9  ;;  %v495_v20 = vshll.u32 %v424_v14, 16  ;;  %v2747_v60 = vld [vmem:[%s3575_s18 + $0x3c] sm:$0x1] }
  0x3a   : > { %3199 = vmatprep.subr.bf16.mxu0 %v3419_v56  ;;  %3109 = vmatprep.mubr.bf16.mxu1 %v2606_v49  ;;  %v485_v6 = vrot.slane %v484_v2, 4  ;;  %v429_v49 = vld [vmem:[%s3575_s18 + $0x34] sm:$0x1]  ;;  %v1494_v51 = vsel %vm3686_vm5, %v2755_v40, %v1493_v43  ;;  %v3437_v2 = vld [vmem:[%s3993_s1 + $0x1a8] sm:$0xff]   ;;  %v3441_v37 = vld [vmem:[%s3993_s1 + $0x1b8] sm:$0xff]  }
  0x3b   : > { %v1478_v38 = vsel %vm3686_vm5, %v2751_v26, %v1477_v28  ;;  %v494_v26 = vrot.slane %v492_v19, 4  ;;  %v497_v27 = vrot.slane %v495_v20, 5  ;;  %v508_v28 = vrot.slane %v506_v22, 4  ;;  %v717_v20 = vld [vmem:[%s3575_s18] sm:$0xe] }
  0x3c   : > { %3104 = vmatpush3.bf16.msra.mxu1 %v3418_v47  ;;  %v2774_v44 = vcombine.low %v1474_v31, %v1478_v38  ;;  %v2739_v47 = vld [vmem:[%s3575_s18 + $0x1c] sm:$0x1]  ;;  %v511_v31 = vrot.slane %v509_v23, 5  ;;  %v2754_v38 = vrot.slane %v2742_v29, 9  ;;  %v718_v23 = vld [vmem:[%s3575_s18 + $0x4] sm:$0x1] }
  0x3d   : > { %3105 = vmatprep.subr.bf16.mxu1 %v3421_v57  ;;  %3200 = vmatpush3.bf16.msra.mxu0 %v3419_v56  ;;  %v487_v56 = vshll.u32 %v423_v39, 16  ;;  %v1481_v58 = vrot.slane %v2739_v47, 5  ;;  %v1489_v39 = vrot.slane %v2743_v32, 5  ;;  %v720_v29 = vld [vmem:[%s3575_s18 + $0xc] sm:$0x1]  ;;  %v3438_v32 = vld [vmem:[%s3993_s1 + $0xb0] sm:$0xff]  }
  0x3e   : > { %3201 = vmatprep.subr.bf16.mxu0 %v3422_v13  ;;  %3205 = vmatprep.mubr.bf16.mxu0 %v2774_v44  ;;  %v512_v41 = vor.u32 %v511_v31, %v508_v28  ;;  %v3434_v44 = vld [vmem:[%s3993_s1 + $0xa0] sm:$0xff]   ;;  %v721_v43 = vld [vmem:[%s3575_s18 + $0x10] sm:$0xe] }
  0x3f   : > { %v489_v3 = vrot.slane %v487_v56, 5  ;;  %v1490_v47 = vsel %vm3686_vm5, %v2754_v38, %v1489_v39  ;;  %v3443_v39 = vld [vmem:[%s3575_s18 + $0x10] ss:$8 sps:$4 sm:$0xff]  }
  0x40   : > { %3106 = vmatpush3.bf16.msra.mxu1 %v3421_v57  ;;  %v2752_v57 = vrot.slane %v2738_v42, 9  ;;  %v517_v42 = vrot.slane %v515_v24, 5  ;;  %v2776_v56 = vcombine.low %v1490_v47, %v1494_v51  ;;  %v719_v24 = vld [vmem:[%s3575_s18 + $0x8] sm:$0xe]  ;;  %v724_v47 = vld [vmem:[%s3575_s18 + $0x1c] sm:$0x1] }
  0x41   : > { %3107 = vmatprep.subr.bf16.mxu1 %v3424_v15  ;;  %3202 = vmatpush3.bf16.msra.mxu0 %v3422_v13  ;;  %v490_v8 = vsel %vm3599_vm2, %v485_v6, %v489_v3  ;;  %v3431_v13 = vld [vmem:[%s3993_s1 + $0x190] sm:$0xff]   ;;  %v543_v6 = vshll.u32 %v431_v53, 16  ;;  %v2619_v31 = vrot.slane %v719_v24, 9  ;;  %v766_v51 = vrot.slane %v724_v47, 5  ;;  %v3442_v53 = vld [vmem:[%s3993_s1 + $0xc0] sm:$0xff]  }
  0x42   : > { %v1482_v0 = vsel %vm3686_vm5, %v2752_v57, %v1481_v58  ;;  %3203 = vmatprep.subr.bf16.mxu0 %v3425_v36  ;;  %v2607_v10 = vcombine.low %v476_v5, %v490_v8  ;;  %v523_v57 = vshll.u32 %v428_v48, 16  ;;  %v529_v58 = vshll.u32 %v429_v49, 16  ;;  %v2826_v47 = vld [vmem:[%s3575_s18 + $0x20] sm:$0xf] }
  0x43   : > { %v2775_v7 = vcombine.low %v1482_v0, %v1486_v4  ;;  %v537_v0 = vshll.u32 %v430_v52, 16  ;;  %v545_v14 = vrot.slane %v543_v6, 5  ;;  %v2620_v48 = vrot.slane %v721_v43, 9  ;;  %v3451_v6 = vld [vmem:[%s3993_s1 + $0x1d8] sm:$0xff]  }
  0x44   : > { %3108 = vmatpush3.bf16.msra.mxu1 %v3424_v15  ;;  %v425_v15 = vld [vmem:[%s3575_s18 + $0x24] sm:$0x1]  ;;  %v525_v4 = vrot.slane %v523_v57, 5  ;;  %v531_v5 = vrot.slane %v529_v58, 5  ;;  %v3447_v58 = vld [vmem:[%s3993_s1 + $0x1c8] sm:$0xff]  }
  0x45   : > { %3117 = vmatprep.subr.bf16.mxu1 %v3426_v50  ;;  %3204 = vmatpush3.bf16.msra.mxu0 %v3425_v36  ;;  %v501_v21 = vshll.u32 %v425_v15, 16  ;;  %v498_v36 = vor.u32 %v497_v27, %v494_v26  ;;  %v2757_v15 = vrot.slane %v2748_v1, 9  ;;  %v3439_v26 = vld [vmem:[%s3993_s1 + $0x1b0] sm:$0xff]   ;;  %v728_v1 = vld [vmem:[%s3575_s18 + $0x2c] sm:$0x1] }
  0x46   : > { %3213 = vmatprep.subr.bf16.mxu0 %v3427_v63 }
  0x47   : > { %3110 = vmatmul.mubr.bf16.vlgmr.msra.gmra.mrb[0].mxu1 %v2607_v10  ;;  %v503_v30 = vrot.slane %v501_v21, 5  ;;  %v499_v46 = vrot.slane %v498_v36, 4  ;;  %v2756_v10 = vrot.slane %v2746_v59, 9  ;;  %v3446_v59 = vld [vmem:[%s3993_s1 + $0xc8] sm:$0xff]  }
  0x48   : > { %3206 = vmatmul.mubr.bf16.vlgmr.msra.gmra.mrb[0].mxu0 %v2775_v7  ;;  %3118 = vmatpush3.bf16.msra.mxu1 %v3426_v50  ;;  %v513_v50 = vrot.slane %v512_v41, 4  ;;  %v2749_v7 = vld [vmem:[%s3575_s18 + $0x44] sm:$0x1]  ;;  %v3440_v41 = vld [vmem:[%s3993_s1 + $0xb8] sm:$0xff]  }
  0x49   : > { %3214 = vmatpush3.bf16.msra.mxu0 %v3427_v63  ;;  %3119 = vmatprep.subr.bf16.mxu1 %v3428_v11  ;;  %v504_v55 = vsel %vm3599_vm2, %v499_v46, %v503_v30  ;;  %v534_v63 = vshrl.u32 %v430_v52, 16  ;;  %v1501_v16 = vrot.slane %v2749_v7, 5  ;;  %v754_v30 = vrot.slane %v718_v23, 5  ;;  %v723_v46 = vld [vmem:[%s3575_s18 + $0x18] sm:$0xe]  ;;  %v3444_v52 = vld [vmem:[%s3993_s1 + $0x1c0] sm:$0xff]  }
  0x4a   : > { %3215 = vmatprep.subr.bf16.mxu0 %v3429_v9  ;;  %v518_v61 = vsel %vm3599_vm2, %v513_v50, %v517_v42  ;;  %3209 = vmatprep.mubr.bf16.mxu0 %v2776_v56  ;;  %v2621_v50 = vrot.slane %v723_v46, 9  ;;  %v3445_v56 = vld [vmem:[%s3575_s18 + $0x20] ss:$8 sps:$4 sm:$0xff]  }
  0x4b   : > { %v2608_v3 = vcombine.low %v504_v55, %v518_v61  ;;  %v536_v8 = vrot.slane %v534_v63, 4  ;;  %v1502_v22 = vsel %vm3686_vm5, %v2757_v15, %v1501_v16  ;;  %v3449_v61 = vld [vmem:[%s3993_s1 + $0x1d0] sm:$0xff]   ;;  %v726_v63 = vld [vmem:[%s3575_s18 + $0x24] sm:$0x1]  ;;  %v3458_v23 = vld [vmem:[%s3575_s18 + $0x40] ss:$8 sps:$4 sm:$0xff]  }
  0x4c   : > { %3120 = vmatpush3.bf16.msra.mxu1 %v3428_v11  ;;  %v1497_v11 = vrot.slane %v2747_v60, 5  ;;  %v767_v55 = vsel %vm3686_vm5, %v2621_v50, %v766_v51  ;;  %v3448_v60 = vld [vmem:[%s3993_s1 + $0xd0] sm:$0xff]   ;;  %v2827_v50 = vld [vmem:[%s3575_s18 + $0x24] sm:$0x1]  ;;  %v2828_v51 = vld [vmem:[%s3575_s18 + $0x28] sm:$0xf] }
  0x4d   : > { %3216 = vmatpush3.bf16.msra.mxu0 %v3429_v9  ;;  %3121 = vmatprep.subr.bf16.mxu1 %v3430_v12  ;;  %v539_v9 = vrot.slane %v537_v0, 5  ;;  %v727_v0 = vld [vmem:[%s3575_s18 + $0x28] sm:$0xe] }
  0x4e   : > { %3217 = vmatprep.subr.bf16.mxu0 %v3431_v13  ;;  %3113 = vmatprep.mubr.bf16.mxu1 %v2608_v3  ;;  %v1498_v19 = vsel %vm3686_vm5, %v2756_v10, %v1497_v11  ;;  %v770_v3 = vrot.slane %v726_v63, 5  ;;  %v730_v10 = vld [vmem:[%s3575_s18 + $0x34] sm:$0x1] }
  0x4f   : > { %v540_v17 = vor.u32 %v539_v9, %v536_v8  ;;  %v2777_v28 = vcombine.low %v1498_v19, %v1502_v22  ;;  %v3456_v8 = vld [vmem:[%s3575_s18 + $0x30] ss:$8 sps:$4 sm:$0xff]   ;;  %v778_v15 = vrot.slane %v730_v10, 5 }
  0x50   : > { %3122 = vmatpush3.bf16.msra.mxu1 %v3430_v12  ;;  %v3436_v12 = vld [vmem:[%s3993_s1 + $0xa8] sm:$0xff]   ;;  %v729_v9 = vld [vmem:[%s3575_s18 + $0x30] sm:$0xe] }
  0x51   : > { %3218 = vmatpush3.bf16.msra.mxu0 %v3431_v13  ;;  %3123 = vmatprep.subr.bf16.mxu1 %v3432_v35  ;;  %v526_v13 = vor.u32 %v525_v4, %v522_v62  ;;  %v541_v27 = vrot.slane %v540_v17, 4  ;;  %v725_v62 = vld [vmem:[%s3575_s18 + $0x20] sm:$0xe]  ;;  %v2623_v4 = vrot.slane %v727_v0, 9 }
  0x52   : > { %3219 = vmatprep.subr.bf16.mxu0 %v3433_v25  ;;  %3210 = vmatmul.mubr.bf16.gmra.mrb[4].mxu0 %v2777_v28  ;;  %v3462_v28 = vld [vmem:[%s3575_s18 + $0x8] ss:$8 sps:$4 sm:$0xff]  }
  0x53   : > { %v527_v21 = vrot.slane %v526_v13, 4  ;;  %v546_v36 = vsel %vm3599_vm2, %v541_v27, %v545_v14  ;;  %3229 = vmatprep.mubr.bf16.mxu0 %v3443_v39  ;;  %v732_v13 = vld [vmem:[%s3575_s18 + $0x3c] sm:$0x1]  ;;  %v2624_v14 = vrot.slane %v729_v9, 9  ;;  %v3455_v27 = vld [vmem:[%s3993_s1 + $0x1e8] sm:$0xff]  }
  0x54   : > { %3124 = vmatpush3.bf16.msra.mxu1 %v3432_v35  ;;  %v758_v35 = vrot.slane %v720_v29, 5  ;;  %v782_v19 = vrot.slane %v732_v13, 5  ;;  %v2822_v29 = vld [vmem:[%s3575_s18 + $0x10] sm:$0xf]  ;;  %v2831_v13 = vld [vmem:[%s3575_s18 + $0x34] sm:$0x1] }
  0x55   : > { %3220 = vmatpush3.bf16.msra.mxu0 %v3433_v25  ;;  %3125 = vmatprep.subr.bf16.mxu1 %v3434_v44  ;;  %v2618_v25 = vrot.slane %v717_v20, 9  ;;  %v532_v34 = vsel %vm3599_vm2, %v527_v21, %v531_v5  ;;  %v774_v5 = vrot.slane %v728_v1, 5  ;;  %v3450_v20 = vld [vmem:[%s3993_s1 + $0xd8] sm:$0xff]   ;;  %v779_v21 = vsel %vm3686_vm5, %v2624_v14, %v778_v15 }
  0x56   : > { %3221 = vmatprep.subr.bf16.mxu0 %v3435_v45  ;;  %v2609_v40 = vcombine.low %v532_v34, %v546_v36  ;;  %v759_v42 = vsel %vm3686_vm5, %v2619_v31, %v758_v35  ;;  %v2824_v31 = vld [vmem:[%s3575_s18 + $0x18] sm:$0xf]  ;;  %v1877_v34 = vshrl.u32 %v2822_v29, 16  ;;  %v1880_v35 = vshll.u32 %v2822_v29, 16 }
  0x57   : > { %v755_v38 = vsel %vm3686_vm5, %v2618_v25, %v754_v30  ;;  %v775_v11 = vsel %vm3686_vm5, %v2623_v4, %v774_v5  ;;  %v3453_v25 = vld [vmem:[%s3993_s1 + $0x1e0] sm:$0xff]   ;;  %v2823_v30 = vld [vmem:[%s3575_s18 + $0x14] sm:$0x1]  ;;  %v3460_v1 = vld [vmem:[%s3993_s1 + $0xf8] sm:$0xff]  }
  0x58   : > { %3126 = vmatpush3.bf16.msra.mxu1 %v3434_v44  ;;  %v2642_v44 = vcombine.low %v755_v38, %v759_v42  ;;  %v1886_v36 = vshll.u32 %v2823_v30, 16  ;;  %v1894_v38 = vshll.u32 %v2824_v31, 16  ;;  %v1882_v42 = vrot.slane %v1880_v35, 5  ;;  %v2832_v14 = vld [vmem:[%s3575_s18 + $0x38] sm:$0xf] }
  0x59   : > { %3222 = vmatpush3.bf16.msra.mxu0 %v3435_v45  ;;  %3127 = vmatprep.subr.bf16.mxu1 %v3436_v12  ;;  %v722_v45 = vld [vmem:[%s3575_s18 + $0x14] sm:$0x1]  ;;  %v3463_v30 = vld [vmem:[%s3575_s18 + $0x18] ss:$8 sps:$4 sm:$0xff]  }
  0x5a   : > { %3223 = vmatprep.subr.bf16.mxu0 %v3437_v2  ;;  %3114 = vmatmul.mubr.bf16.gmra.mrb[4].mxu1 %v2609_v40  ;;  %v762_v49 = vrot.slane %v722_v45, 5  ;;  %v3454_v40 = vld [vmem:[%s3993_s1 + $0xe8] sm:$0xff]   ;;  %v1888_v43 = vrot.slane %v1886_v36, 5  ;;  %v1896_v45 = vrot.slane %v1894_v38, 5  ;;  %v2834_v38 = vld [vmem:[%s3575_s18 + $0x40] sm:$0xf] }
  0x5b   : > { %3133 = vmatprep.mubr.bf16.mxu1 %v2642_v44 }
  0x5c   : > { %3128 = vmatpush3.bf16.msra.mxu1 %v3436_v12  ;;  %v763_v54 = vsel %vm3686_vm5, %v2620_v48, %v762_v49  ;;  %v731_v12 = vld [vmem:[%s3575_s18 + $0x38] sm:$0xe]  ;;  %v3457_v48 = vld [vmem:[%s3993_s1 + $0xf0] sm:$0xff]  }
  0x5d   : > { %3224 = vmatpush3.bf16.msra.mxu0 %v3437_v2  ;;  %3129 = vmatprep.subr.bf16.mxu1 %v3438_v32  ;;  %v2643_v57 = vcombine.low %v763_v54, %v767_v55  ;;  %v2622_v2 = vrot.slane %v725_v62, 9  ;;  %v2625_v17 = vrot.slane %v731_v12, 9  ;;  %v1905_v55 = vshrl.u32 %v2826_v47, 16  ;;  %v2830_v12 = vld [vmem:[%s3575_s18 + $0x30] sm:$0xf] }
  0x5e   : > { %3225 = vmatprep.subr.bf16.mxu0 %v3439_v26 }
  0x5f   : > { %v771_v7 = vsel %vm3686_vm5, %v2622_v2, %v770_v3  ;;  %v783_v22 = vsel %vm3686_vm5, %v2625_v17, %v782_v19  ;;  %v1907_v63 = vrot.slane %v1905_v55, 4  ;;  %v3461_v2 = vld [vmem:[%s3993_s1 + $0x1f8] sm:$0xff]   ;;  %v1933_v17 = vshrl.u32 %v2830_v12, 16 }
  0x60   : > { %3130 = vmatpush3.bf16.msra.mxu1 %v3438_v32  ;;  %v2644_v16 = vcombine.low %v771_v7, %v775_v11  ;;  %v2645_v24 = vcombine.low %v779_v21, %v783_v22  ;;  %v2825_v32 = vld [vmem:[%s3575_s18 + $0x1c] sm:$0x1]  ;;  %v1936_v19 = vshll.u32 %v2830_v12, 16  ;;  %v1947_v22 = vshrl.u32 %v2832_v14, 16 }
  0x61   : > { %3226 = vmatpush3.bf16.msra.mxu0 %v3439_v26  ;;  %3131 = vmatprep.subr.bf16.mxu1 %v3440_v41  ;;  %v3452_v26 = vld [vmem:[%s3993_s1 + $0xe0] sm:$0xff]   ;;  %v1900_v39 = vshll.u32 %v2825_v32, 16 }
  0x62   : > { %3227 = vmatprep.subr.bf16.mxu0 %v3441_v37  ;;  %v1949_v32 = vrot.slane %v1947_v22, 4 }
  0x63   : > { %v1902_v46 = vrot.slane %v1900_v39, 5  ;;  %v2835_v39 = vld [vmem:[%s3575_s18 + $0x44] sm:$0x1] }
  0x64   : > { %3132 = vmatpush3.bf16.msra.mxu1 %v3440_v41  ;;  %v1879_v41 = vrot.slane %v1877_v34, 4 }
  0x65   : > { %3228 = vmatpush3.bf16.msra.mxu0 %v3441_v37  ;;  %3141 = vmatprep.subr.bf16.mxu1 %v3442_v53  ;;  %v1891_v37 = vshrl.u32 %v2824_v31, 16 }
  0x66   : > { %3237 = vmatprep.subr.bf16.mxu0 %v3444_v52  ;;  %v1883_v49 = vor.u32 %v1882_v42, %v1879_v41  ;;  %v3465_v41 = vld [vmem:[%s3993_s1 + $0x208] sm:$0xff]  }
  0x67   : > { %3134 = vmatmul.mubr.bf16.vlgmr.msra.gmra.mrb[0].mxu1 %v2643_v57  ;;  %v1893_v44 = vrot.slane %v1891_v37, 4  ;;  %v1914_v57 = vshll.u32 %v2827_v50, 16  ;;  %v3466_v42 = vld [vmem:[%s3575_s18 + $0x28] ss:$8 sps:$4 sm:$0xff]  }
  0x68   : > { %3230 = vmatmul.mubr.bf16.vlgmr.msra.gmra.mrb[0].mxu0 %v3445_v56  ;;  %3142 = vmatpush3.bf16.msra.mxu1 %v3442_v53  ;;  %v3459_v53 = vld [vmem:[%s3993_s1 + $0x1f0] sm:$0xff]   ;;  %v1908_v56 = vshll.u32 %v2826_v47, 16  ;;  %v1970_v47 = vshll.u32 %v2835_v39, 16  ;;  %v2879_v39 = vld [vmem:[%s3575_s18 + $0x44] sm:$0x1] }
  0x69   : > { %3238 = vmatpush3.bf16.msra.mxu0 %v3444_v52  ;;  %3143 = vmatprep.subr.bf16.mxu1 %v3446_v59  ;;  %v2829_v52 = vld [vmem:[%s3575_s18 + $0x2c] sm:$0x1]  ;;  %v1897_v54 = vor.u32 %v1896_v45, %v1893_v44  ;;  %v1961_v45 = vshrl.u32 %v2834_v38, 16 }
  0x6a   : > { %3239 = vmatprep.subr.bf16.mxu0 %v3447_v58  ;;  %3233 = vmatprep.mubr.bf16.mxu0 %v3456_v8  ;;  %v1910_v0 = vrot.slane %v1908_v56, 5  ;;  %v1916_v8 = vrot.slane %v1914_v57, 5  ;;  %v2837_v44 = vld [vmem:[%s3575_s18 + $0x4c] sm:$0x1]  ;;  %v1972_v55 = vrot.slane %v1970_v47, 5  ;;  %v2216_v47 = vrot.slane %v2879_v39, 5 }
  0x6b   : > { %3137 = vmatprep.mubr.bf16.mxu1 %v2644_v16  ;;  %v1898_v62 = vrot.slane %v1897_v54, 4  ;;  %v2833_v16 = vld [vmem:[%s3575_s18 + $0x3c] sm:$0x1] }
  0x6c   : > { %3144 = vmatpush3.bf16.msra.mxu1 %v3446_v59  ;;  %v1919_v59 = vshrl.u32 %v2828_v51, 16  ;;  %v1911_v7 = vor.u32 %v1910_v0, %v1907_v63 }
  0x6d   : > { %3240 = vmatpush3.bf16.msra.mxu0 %v3447_v58  ;;  %3145 = vmatprep.subr.bf16.mxu1 %v3448_v60  ;;  %v1884_v58 = vrot.slane %v1883_v49, 4 }
  0x6e   : > { %3241 = vmatprep.subr.bf16.mxu0 %v3449_v61  ;;  %v1921_v4 = vrot.slane %v1919_v59, 4  ;;  %v1912_v15 = vrot.slane %v1911_v7, 4  ;;  %v2868_v7 = vld [vmem:[%s3575_s18 + $0x18] sm:$0xe] }
  0x6f   : > { %3138 = vmatmul.mubr.bf16.gmra.mrb[4].mxu1 %v2645_v24  ;;  %v1889_v3 = vsel %vm3599_vm2, %v1884_v58, %v1888_v43  ;;  %v1956_v24 = vshll.u32 %v2833_v16, 16 }
  0x70   : > { %3146 = vmatpush3.bf16.msra.mxu1 %v3448_v60  ;;  %3234 = vmatmul.mubr.bf16.gmra.mrb[4].mxu0 %v3458_v23  ;;  %v1922_v60 = vshll.u32 %v2828_v51, 16  ;;  %v1950_v23 = vshll.u32 %v2832_v14, 16  ;;  %v1984_v51 = vshll.u32 %v2837_v44, 16  ;;  %v2874_v14 = vld [vmem:[%s3575_s18 + $0x30] sm:$0xe] }
  0x71   : > { %3242 = vmatpush3.bf16.msra.mxu0 %v3449_v61  ;;  %3147 = vmatprep.subr.bf16.mxu1 %v3450_v20  ;;  %v1928_v61 = vshll.u32 %v2829_v52, 16  ;;  %v1958_v35 = vrot.slane %v1956_v24, 5 }
  0x72   : > { %3243 = vmatprep.subr.bf16.mxu0 %v3451_v6  ;;  %3157 = vmatprep.mubr.bf16.mxu1 %v3462_v28  ;;  %v1924_v5 = vrot.slane %v1922_v60, 5  ;;  %v1938_v28 = vrot.slane %v1936_v19, 5  ;;  %v1952_v34 = vrot.slane %v1950_v23, 5  ;;  %v1986_v59 = vrot.slane %v1984_v51, 5  ;;  %v3468_v60 = vld [vmem:[%s3993_s1 + $0x210] sm:$0xff]  }
  0x73   : > { %v1930_v9 = vrot.slane %v1928_v61, 5  ;;  %v2876_v19 = vld [vmem:[%s3575_s18 + $0x38] sm:$0xe] }
  0x74   : > { %3148 = vmatpush3.bf16.msra.mxu1 %v3450_v20  ;;  %v1925_v11 = vor.u32 %v1924_v5, %v1921_v4  ;;  %v1942_v20 = vshll.u32 %v2831_v13, 16  ;;  %v1953_v43 = vor.u32 %v1952_v34, %v1949_v32  ;;  %v2866_v4 = vld [vmem:[%s3575_s18 + $0x10] sm:$0xe]  ;;  %v2883_v13 = vrot.slane %v2868_v7, 9  ;;  %v2870_v34 = vld [vmem:[%s3575_s18 + $0x20] sm:$0xe] }
  0x75   : > { %3244 = vmatpush3.bf16.msra.mxu0 %v3451_v6  ;;  %3149 = vmatprep.subr.bf16.mxu1 %v3452_v26  ;;  %v1903_v6 = vsel %vm3599_vm2, %v1898_v62, %v1902_v46  ;;  %v1964_v46 = vshll.u32 %v2834_v38, 16  ;;  %v2887_v23 = vrot.slane %v2876_v19, 9  ;;  %v3472_v32 = vld [vmem:[%s3993_s1 + $0x230] sm:$0xff]   ;;  %v2878_v38 = vld [vmem:[%s3575_s18 + $0x40] sm:$0xe] }
  0x76   : > { %3245 = vmatprep.subr.bf16.mxu0 %v3453_v25  ;;  %v2854_v10 = vcombine.low %v1889_v3, %v1903_v6  ;;  %v1926_v21 = vrot.slane %v1925_v11, 4  ;;  %v1944_v29 = vrot.slane %v1942_v20, 5  ;;  %v1954_v52 = vrot.slane %v1953_v43, 4  ;;  %v2867_v6 = vld [vmem:[%s3575_s18 + $0x14] sm:$0x1] }
  0x77   : > { %v1966_v54 = vrot.slane %v1964_v46, 5  ;;  %v2882_v11 = vrot.slane %v2866_v4, 9  ;;  %v2192_v12 = vrot.slane %v2867_v6, 5  ;;  %v2886_v20 = vrot.slane %v2874_v14, 9 }
  0x78   : > { %3150 = vmatpush3.bf16.msra.mxu1 %v3452_v26  ;;  %3253 = vmatprep.mubr.bf16.mxu0 %v2854_v10  ;;  %v3464_v26 = vld [vmem:[%s3993_s1 + $0x200] sm:$0xff]   ;;  %v1931_v31 = vsel %vm3599_vm2, %v1926_v21, %v1930_v9  ;;  %v1959_v61 = vsel %vm3599_vm2, %v1954_v52, %v1958_v35  ;;  %v3469_v10 = vld [vmem:[%s3993_s1 + $0x218] sm:$0xff]   ;;  %v2888_v46 = vrot.slane %v2878_v38, 9 }
  0x79   : > { %3246 = vmatpush3.bf16.msra.mxu0 %v3453_v25  ;;  %3151 = vmatprep.subr.bf16.mxu1 %v3454_v40  ;;  %v1917_v25 = vsel %vm3599_vm2, %v1912_v15, %v1916_v8  ;;  %v2869_v8 = vld [vmem:[%s3575_s18 + $0x1c] sm:$0x1]  ;;  %v2193_v21 = vsel %vm3686_vm5, %v2882_v11, %v2192_v12  ;;  %v2871_v35 = vld [vmem:[%s3575_s18 + $0x24] sm:$0x1] }
  0x7a   : > { %3247 = vmatprep.subr.bf16.mxu0 %v3455_v27  ;;  %v2855_v36 = vcombine.low %v1917_v25, %v1931_v31  ;;  %v2196_v16 = vrot.slane %v2869_v8, 5  ;;  %v2212_v25 = vrot.slane %v2877_v33, 5  ;;  %v3471_v31 = vld [vmem:[%s3993_s1 + $0x228] sm:$0xff]   ;;  %v2200_v43 = vrot.slane %v2871_v35, 5 }
  0x7c   : > { %3152 = vmatpush3.bf16.msra.mxu1 %v3454_v40  ;;  %v2836_v40 = vld [vmem:[%s3575_s18 + $0x48] sm:$0xf]  ;;  %v2197_v24 = vsel %vm3686_vm5, %v2883_v13, %v2196_v16 }
  0x7d   : > { %3248 = vmatpush3.bf16.msra.mxu0 %v3455_v27  ;;  %3153 = vmatprep.subr.bf16.mxu1 %v3457_v48  ;;  %v1935_v27 = vrot.slane %v1933_v17, 4  ;;  %v1975_v49 = vshrl.u32 %v2836_v40, 16  ;;  %v1978_v50 = vshll.u32 %v2836_v40, 16  ;;  %v2875_v17 = vld [vmem:[%s3575_s18 + $0x34] sm:$0x1] }
  0x7e   : > { %3249 = vmatprep.subr.bf16.mxu0 %v3459_v53  ;;  %v2208_v22 = vrot.slane %v2875_v17, 5  ;;  %v2880_v40 = vld [vmem:[%s3575_s18 + $0x48] sm:$0xe] }
  0x7f   : > { %v1939_v37 = vor.u32 %v1938_v28, %v1935_v27  ;;  %v1977_v57 = vrot.slane %v1975_v49, 4  ;;  %v1980_v58 = vrot.slane %v1978_v50, 5  ;;  %v3470_v28 = vld [vmem:[%s3993_s1 + $0x220] sm:$0xff]   ;;  %v3473_v50 = vld [vmem:[%s3993_s1 + $0x238] sm:$0xff]  }
  0x80   : > { %3154 = vmatpush3.bf16.msra.mxu1 %v3457_v48  ;;  %v2209_v27 = vsel %vm3686_vm5, %v2886_v20, %v2208_v22 }
  0x81   : > { %3250 = vmatpush3.bf16.msra.mxu0 %v3459_v53  ;;  %3155 = vmatprep.subr.bf16.mxu1 %v3460_v1  ;;  %v1940_v48 = vrot.slane %v1939_v37, 4  ;;  %v1963_v53 = vrot.slane %v1961_v45, 4  ;;  %v1981_v0 = vor.u32 %v1980_v58, %v1977_v57  ;;  %v2873_v37 = vld [vmem:[%s3575_s18 + $0x2c] sm:$0x1] }
  0x82   : > { %3251 = vmatprep.subr.bf16.mxu0 %v3461_v2  ;;  %v2204_v45 = vrot.slane %v2873_v37, 5 }
  0x83   : > { %v1945_v56 = vsel %vm3599_vm2, %v1940_v48, %v1944_v29  ;;  %v1967_v62 = vor.u32 %v1966_v54, %v1963_v53  ;;  %v1982_v3 = vrot.slane %v1981_v0, 4  ;;  %v2213_v29 = vsel %vm3686_vm5, %v2887_v23, %v2212_v25 }
  0x84   : > { %3156 = vmatpush3.bf16.msra.mxu1 %v3460_v1  ;;  %v2856_v63 = vcombine.low %v1945_v56, %v1959_v61  ;;  %v3467_v1 = vld [vmem:[%s3575_s18 + $0x38] ss:$8 sps:$4 sm:$0xff]   ;;  %v2889_v48 = vrot.slane %v2880_v40, 9  ;;  %v2217_v53 = vsel %vm3686_vm5, %v2888_v46, %v2216_v47 }
  0x85   : > { %3252 = vmatpush3.bf16.msra.mxu0 %v3461_v2  ;;  %3285 = vmatprep.subr.bf16.mxu1 %v3464_v26  ;;  %v1968_v2 = vrot.slane %v1967_v62, 4  ;;  %v1987_v9 = vsel %vm3599_vm2, %v1982_v3, %v1986_v59 }
  0x86   : > { %3261 = vmatprep.subr.bf16.mxu0 %v3464_v26 }
  0x87   : > { %3158 = vmatmul.mubr.bf16.vlgmr.msra.gmra.mrb[0].mxu1 %v3463_v30  ;;  %v1973_v5 = vsel %vm3599_vm2, %v1968_v2, %v1972_v55  ;;  %v2908_v30 = vcombine.low %v2209_v27, %v2213_v29 }
  0x88   : > { %3254 = vmatmul.mubr.bf16.vlgmr.msra.gmra.mrb[0].mxu0 %v2855_v36  ;;  %3293 = vmatpush3.bf16.msra.mxu1 %v3464_v26  ;;  %v2857_v15 = vcombine.low %v1973_v5, %v1987_v9  ;;  %v2872_v36 = vld [vmem:[%s3575_s18 + $0x28] sm:$0xe]  ;;  %v2918_v9 = vld [vmem:[%s3994_s2] ss:$0 sm:$0xff] }
  0x89   : > { %3262 = vmatpush3.bf16.msra.mxu0 %v3464_v26  ;;  %3286 = vmatprep.subr.bf16.mxu1 %v3465_v41  ;;  %v2906_v26 = vcombine.low %v2193_v21, %v2197_v24  ;;  %v2885_v44 = vrot.slane %v2872_v36, 9 }
  0x8a   : > { %3263 = vmatprep.subr.bf16.mxu0 %v3465_v41  ;;  %3161 = vmatprep.mubr.bf16.mxu1 %v3466_v42  ;;  %v2884_v42 = vrot.slane %v2870_v34, 9 }
  0x8b   : > { %3257 = vmatprep.mubr.bf16.mxu0 %v2856_v63  ;;  %v2205_v52 = vsel %vm3686_vm5, %v2885_v44, %v2204_v45 }
  0x8c   : > { %3294 = vmatpush3.bf16.msra.mxu1 %v3465_v41  ;;  %v2201_v51 = vsel %vm3686_vm5, %v2884_v42, %v2200_v43 }
  0x8d   : > { %3264 = vmatpush3.bf16.msra.mxu0 %v3465_v41  ;;  %3287 = vmatprep.subr.bf16.mxu1 %v3468_v60  ;;  %v2881_v41 = vld [vmem:[%s3575_s18 + $0x4c] sm:$0x1]  ;;  %v2907_v55 = vcombine.low %v2201_v51, %v2205_v52 }
  0x8e   : > { %3265 = vmatprep.subr.bf16.mxu0 %v3468_v60  ;;  %v2220_v49 = vrot.slane %v2881_v41, 5 }
  0x8f   : > { %3162 = vmatmul.mubr.bf16.gmra.mrb[4].mxu1 %v3467_v1 }
  0x90   : > { %3258 = vmatmul.mubr.bf16.gmra.mrb[4].mxu0 %v2857_v15  ;;  %3295 = vmatpush3.bf16.msra.mxu1 %v3468_v60  ;;  %v2221_v54 = vsel %vm3686_vm5, %v2889_v48, %v2220_v49 }
  0x91   : > { %3266 = vmatpush3.bf16.msra.mxu0 %v3468_v60  ;;  %3288 = vmatprep.subr.bf16.mxu1 %v3469_v10  ;;  %v2909_v56 = vcombine.low %v2217_v53, %v2221_v54 }
  0x92   : > { %3267 = vmatprep.subr.bf16.mxu0 %v3469_v10  ;;  %3277 = vmatprep.mubr.bf16.mxu0 %v2906_v26 }
  0x93   : > { %3281 = vmatprep.mubr.bf16.mxu1 %v2908_v30 }
  0x94   : > { %3296 = vmatpush3.bf16.msra.mxu1 %v3469_v10 }
  0x95   : > { %3268 = vmatpush3.bf16.msra.mxu0 %v3469_v10  ;;  %3289 = vmatprep.subr.bf16.mxu1 %v3470_v28 }
  0x96   : > { %3269 = vmatprep.subr.bf16.mxu0 %v3470_v28 }
  0x98   : > { %3297 = vmatpush3.bf16.msra.mxu1 %v3470_v28 }
  0x99   : > { %3270 = vmatpush3.bf16.msra.mxu0 %v3470_v28  ;;  %3290 = vmatprep.subr.bf16.mxu1 %v3471_v31 }
  0x9a   : > { %3271 = vmatprep.subr.bf16.mxu0 %v3471_v31 }
  0x9c   : > { %3298 = vmatpush3.bf16.msra.mxu1 %v3471_v31 }
  0x9d   : > { %3272 = vmatpush3.bf16.msra.mxu0 %v3471_v31  ;;  %3291 = vmatprep.subr.bf16.mxu1 %v3472_v32 }
  0x9e   : > { %3273 = vmatprep.subr.bf16.mxu0 %v3472_v32 }
  0xa0   : > { %3299 = vmatpush3.bf16.msra.mxu1 %v3472_v32 }
  0xa1   : > { %3274 = vmatpush3.bf16.msra.mxu0 %v3472_v32  ;;  %3292 = vmatprep.subr.bf16.mxu1 %v3473_v50 }
  0xa2   : > { %3275 = vmatprep.subr.bf16.mxu0 %v3473_v50 }
  0xa4   : > { %3300 = vmatpush3.bf16.msra.mxu1 %v3473_v50 }
  0xa5   : > { %3276 = vmatpush3.bf16.msra.mxu0 %v3473_v50 }
  0xa7   : > { %3282 = vmatmul.mubr.bf16.vlgmr.msra.gmra.mrb[8].mxu1 %v2909_v56 }
  0xa8   : > { %3278 = vmatmul.mubr.bf16.vlgmr.msra.gmra.mrb[0].mxu0 %v2907_v55 }
 0x15a   : > { %v3159_v57 = vpop.f32.mrb[0].mxu1 }
 0x15b   : > { %v1094_v58 = vpop.f32.mrb[1].mxu1 }
 0x15c   : > { %v3160_v59 = vpop.f32.mrb[2].mxu1 }
 0x15d   : > { %v1097_v60 = vpop.f32.mrb[3].mxu1 }
 0x162   : > { %v3163_v61 = vpop.f32.mrb[4].mxu1 }
 0x163   : > { %v3259_v62 = vpop.f32.mrb[4].mxu0  ;;  %v1110_v0 = vpop.f32.mrb[5].mxu1 }
 0x164   : > { %v3305_v63 = vadd.f32 %v3259_v62, %v3163_v61  ;;  %v2127_v1 = vpop.f32.mrb[5].mxu0  ;;  %v3164_v18 = vpop.f32.mrb[6].mxu1 }
 0x165   : > { %v3307_v2 = vadd.f32 %v2127_v1, %v1110_v0  ;;  %v3260_v3 = vpop.f32.mrb[6].mxu0  ;;  %v1113_v5 = vpop.f32.mrb[7].mxu1 }
 0x166   : > { %v3309_v4 = vadd.f32 %v3260_v3, %v3164_v18  ;;  %v2130_v6 = vpop.f32.mrb[7].mxu0 }
 0x167   : > { %v3311_v7 = vadd.f32 %v2130_v6, %v1113_v5 }
 0x17a   : > { %v3283_v10 = vpop.f32.mrb[8].mxu1 }
 0x17b   : > { %v3279_v8 = vpop.f32.mrb[0].mxu0  ;;  %v3306_v12 = vadd.f32 %v3305_v63, %v3283_v10  ;;  %v2361_v14 = vpop.f32.mrb[9].mxu1 }
 0x17c   : > { %v3301_v11 = vadd.f32 %v3279_v8, %v3159_v57  ;;  %v2345_v13 = vpop.f32.mrb[1].mxu0  ;;  %v3308_v16 = vadd.f32 %v3307_v2, %v2361_v14  ;;  %v3284_v19 = vpop.f32.mrb[10].mxu1 }
 0x17d   : > { %v3302_v15 = vadd.f32 %v2345_v13, %v1094_v58  ;;  %v3280_v17 = vpop.f32.mrb[2].mxu0  ;;  %v2413_v21 = vadd.f32 %v3306_v12, %v2918_v9  ;;  %v3310_v22 = vadd.f32 %v3309_v4, %v3284_v19  ;;  %v2364_v24 = vpop.f32.mrb[11].mxu1 }
 0x17e   : > { %v2409_v20 = vadd.f32 %v3301_v11, %v2918_v9  ;;  %v3303_v33 = vadd.f32 %v3280_v17, %v3160_v59  ;;  %v2348_v23 = vpop.f32.mrb[3].mxu0  ;;  %v2411_v26 = vadd.f32 %v3308_v16, %v2918_v9  ;;  %v3312_v28 = vadd.f32 %v3311_v7, %v2364_v24 }
 0x17f   : > { %v2407_v25 = vadd.f32 %v3302_v15, %v2918_v9  ;;  %v3304_v27 = vadd.f32 %v2348_v23, %v1097_v60  ;;  %v2414_v30 = vadd.f32 %v3310_v22, %v2918_v9  ;;  %v2421_v35 = vmax.f32 %v2413_v21, 0.0 }
 0x180   : > { %v2410_v29 = vadd.f32 %v3303_v33, %v2918_v9  ;;  %v2412_v32 = vadd.f32 %v3312_v28, %v2918_v9  ;;  %v2417_v34 = vmax.f32 %v2409_v20, 0.0  ;;  %v2419_v39 = vmax.f32 %v2411_v26, 0.0 }
 0x181   : > { %v2408_v31 = vadd.f32 %v3304_v27, %v2918_v9  ;;  %v2422_v37 = vmax.f32 %v2414_v30, 0.0  ;;  %v2415_v38 = vmax.f32 %v2407_v25, 0.0 }
 0x182   : > { %v2418_v36 = vmax.f32 %v2410_v29, 0.0  ;;  %v2420_v41 = vmax.f32 %v2412_v32, 0.0 }
 0x183   : > { %v2416_v40 = vmax.f32 %v2408_v31, 0.0  ;;  %v2956_v43 = vpack.c.bf16 %v2422_v37, %v2421_v35 }
 0x184   : > { %v2946_v42 = vpack.c.bf16 %v2418_v36, %v2417_v34  ;;  %v2951_v45 = vpack.c.bf16 %v2420_v41, %v2419_v39 }
 0x185   : > { %v2941_v44 = vpack.c.bf16 %v2416_v40, %v2415_v38  ;;  %2960 = vst [vmem:[%s221_s8 + $0x18] sm:$0xff] %v2956_v43  }
 0x186   : > { %2958 = vst [vmem:[%s221_s8 + $0x8] sm:$0xff] %v2946_v42   ;;  %2959 = vst [vmem:[%s221_s8 + $0x10] sm:$0xff] %v2951_v45  }
 0x187   : > { %2942 = vst [vmem:[%s221_s8] sm:$0xff] %v2941_v44  }
 0x188 PF: > { %s13_s14 = sadd.s32 1, %s3496_s14   ;;  %s4000_s12 = smov %s3492_s13 }
 0x189   : > { %p10_p5 = scmp.ge.s32.totalorder %s13_s14, 4   ;;  %s4001_s13 = smov %s4003_s15 }
 0x18b   :  { %12 = sbr.rel (!%p10_p5) target bundleno = 2 (0x2), region = 78 }

// kernel: _device_forward.11
= control target key start
LH: loop header
LB: loop body
LE: loop exit
PB: predicated region body
PF: predicated region fallthrough
CT: control target
= control target key end

     0   :  { %v193_v0 = vmov 0.0   ;;  %vm194_vm0 = vmmov 0   ;;  %s248_s1 = inlined_call_operand.vmem [shape: bf16[128,128], index: 1, kind: input, shape index: {}]   ;;  %s249_s0 = inlined_call_operand.vmem [shape: bf16[8,128], index: 0, kind: input, shape index: {}]   ;;  %s250_s2 = inlined_call_operand.vmem [shape: f32[1,128], index: 2, kind: input, shape index: {}]   ;;  %s251_s3 = inlined_call_operand.vmem [shape: f32[8,128], index: 3, kind: output, shape index: {}]  }
   0x1   :  { %163 = vmatprep.subr.bf16.mxu0 %v193_v0  ;;  %v185_v1 = vld [vmem:[%s248_s1] sm:$0xff]   ;;  %179 = vmatprep.mubr.msk.bf16.mxu0 %vm194_vm0, %v193_v0  ;;  %v186_v2 = vld [vmem:[%s248_s1 + $0x8] sm:$0xff]   ;;  %v187_v3 = vld [vmem:[%s248_s1 + $0x10] sm:$0xff]  }
   0x2   :  { %164 = vmatpush3.bf16.msra.mxu0 %v185_v1  ;;  %v188_v4 = vld [vmem:[%s248_s1 + $0x18] sm:$0xff]   ;;  %v189_v5 = vld [vmem:[%s248_s1 + $0x20] sm:$0xff]   ;;  %v190_v6 = vld [vmem:[%s248_s1 + $0x28] sm:$0xff]  }
   0x3   :  { %165 = vmatprep.subr.bf16.mxu0 %v193_v0  ;;  %v191_v7 = vld [vmem:[%s248_s1 + $0x30] sm:$0xff]   ;;  %v192_v8 = vld [vmem:[%s248_s1 + $0x38] sm:$0xff]   ;;  %v21_v9 = vld [vmem:[%s249_s0] sm:$0xf] }
   0x4   :  { %v153_v10 = vld [vmem:[%s250_s2] ss:$0 sm:$0xff] }
   0x6   :  { %166 = vmatpush3.bf16.msra.mxu0 %v186_v2 }
   0x7   :  { %167 = vmatprep.subr.bf16.mxu0 %v193_v0 }
   0xa   :  { %168 = vmatpush3.bf16.msra.mxu0 %v187_v3 }
   0xb   :  { %169 = vmatprep.subr.bf16.mxu0 %v193_v0 }
   0xe   :  { %170 = vmatpush3.bf16.msra.mxu0 %v188_v4 }
   0xf   :  { %171 = vmatprep.subr.bf16.mxu0 %v193_v0 }
  0x12   :  { %172 = vmatpush3.bf16.msra.mxu0 %v189_v5 }
  0x13   :  { %173 = vmatprep.subr.bf16.mxu0 %v193_v0 }
  0x16   :  { %174 = vmatpush3.bf16.msra.mxu0 %v190_v6 }
  0x17   :  { %175 = vmatprep.subr.bf16.mxu0 %v193_v0 }
  0x1a   :  { %176 = vmatpush3.bf16.msra.mxu0 %v191_v7 }
  0x1b   :  { %177 = vmatprep.subr.bf16.mxu0 %v193_v0 }
  0x1e   :  { %178 = vmatpush3.bf16.msra.mxu0 %v192_v8 }
  0x21   :  { %180 = vmatmul.mubr.bf16.vlgmr.msra.gmra.mrb[0].mxu0 %v21_v9 }
  0xf4   :  { %v120_v11 = vpop.f32.mrb[0].mxu0 }
  0xf5   :  { %v139_v12 = vadd.f32 %v153_v10, %v120_v11  ;;  %v181_v13 = vpop.f32.mrb[1].mxu0 }
  0xf6   :  { %v123_v14 = vpop.f32.mrb[2].mxu0 }
  0xf7   :  { %140 = vst [vmem:[%s251_s3] sm:$0xff] %v139_v12  ;;  %v182_v15 = vpop.f32.mrb[3].mxu0 }

// kernel: _device_forward.12
= control target key start
LH: loop header
LB: loop body
LE: loop exit
PB: predicated region body
PF: predicated region fallthrough
CT: control target
= control target key end

     0   :  { %vm10_vm0 = vcmask 254976   ;;  %s32_s0 = inlined_call_operand.vmem [shape: f32[2,32], index: 0, kind: input, shape index: {}]   ;;  %s33_s1 = inlined_call_operand.vmem [shape: f32[2,32], index: 1, kind: output, shape index: {}]  }
   0x1   :  { %v8_v0 = vld [vmem:[%s32_s0] sm:$0x3] }
   0x2   :  { %v9_v1 = vmax.f32 %v8_v0, 0.0 }
   0x4   :  { %11 = vst.msk [vmem:[%s33_s1] sm:$0x3] %vm10_vm0, %v9_v1 }

// kernel: _device_forward.7
= control target key start
LH: loop header
LB: loop body
LE: loop exit
PB: predicated region body
PF: predicated region fallthrough
CT: control target
= control target key end

     0   :  { %s8154_s12 = smov 0   ;;  %s8156_s13 = smov 0   ;;  %s9333_s0 = inlined_call_operand.vmem [shape: bf16[2,18,18,128], index: 0, kind: input, shape index: {}]   ;;  %s9334_s1 = inlined_call_operand.vmem [shape: bf16[3,3,128,128], index: 1, kind: input, shape index: {}]   ;;  %s9335_s2 = inlined_call_operand.vmem [shape: f32[1,128], index: 2, kind: input, shape index: {}]   ;;  %s9336_s3 = inlined_call_operand.vmem [shape: bf16[2,256,128], index: 3, kind: output, shape index: {}]  }
   0x1   :  { %s8158_s14 = smov 0  }
   0x2 LB: > { %s25_s15 = sadd.s32 1, %s8128_s13  ;;  %p6222_p0 = scmp.ge.s32.totalorder %s8132_s14, 1  ;;  %s8132_s14 = sphi %s8158_s14, %s13_s14   ;;  %s8128_s13 = sphi %s8156_s13, %s9342_s13   ;;  %s8124_s12 = sphi %s8154_s12, %s9341_s12  }
   0x3   : > { %p27_p1 = scmp.ge.s32.totalorder %s25_s15, 2  ;;  %p168_p2 = scmp.lt.s32.totalorder %s8132_s14, 3 }
   0x5   : > { %s9344_s15 = smov (%p27_p1, %s25_s15), 0  ;;  %p169_p3 = pnand %p6222_p0, %p168_p2 }
   0x6   : > { %v7982_v0 = vld [vmem:[%s9334_s1] sm:$0xff] (!%p169_p3)   ;;  %v7984_v2 = vld [vmem:[%s9334_s1 + $0x8] sm:$0xff] (!%p169_p3)   ;;  %p202_p4 = scmp.lt.s32.totalorder (!%p169_p3), %s8124_s12, 1  ;;  %v7986_v4 = vld [vmem:[%s9334_s1 + $0x10] sm:$0xff] (!%p169_p3)   ;;  %vm752_vm0 = vsmask.f32 (!%p169_p3), 3328 }
   0x7   : > { %172 = sbr.rel (%p169_p3) target bundleno = 558 (0x22e), region = 32  ;;  %v7983_v1 = vld [vmem:[%s9334_s1 + $0x100] sm:$0xff] (!%p169_p3)   ;;  %7253 = vmatprep.subr.bf16.mxu1 (!%p169_p3), %v7982_v0  ;;  %v7985_v3 = vld [vmem:[%s9334_s1 + $0x108] sm:$0xff] (!%p169_p3)   ;;  %v7987_v5 = vld [vmem:[%s9334_s1 + $0x110] sm:$0xff] (!%p169_p3)   ;;  %vm753_vm1 = vsmask.f32 (!%p169_p3), 7440 }
   0x8   : > { %7445 = vmatprep.subr.bf16.mxu0 (!%p169_p3), %v7983_v1  ;;  %7254 = vmatpush3.bf16.msra.mxu1 (!%p169_p3), %v7982_v0  ;;  %v7988_v6 = vld [vmem:[%s9334_s1 + $0x18] sm:$0xff] (!%p169_p3)   ;;  %v7990_v8 = vld [vmem:[%s9334_s1 + $0x20] sm:$0xff] (!%p169_p3)   ;;  %v7992_v10 = vld [vmem:[%s9334_s1 + $0x28] sm:$0xff] (!%p169_p3)   ;;  %vm1621_vm3 = vcmask (!%p169_p3), 1042432   ;;  %vm1622_vm4 = vcmask (!%p169_p3), 1046532  }
   0x9   : > { %7446 = vmatpush3.bf16.msra.mxu0 (!%p169_p3), %v7983_v1  ;;  %7255 = vmatprep.subr.bf16.mxu1 (!%p169_p3), %v7984_v2  ;;  %v7989_v7 = vld [vmem:[%s9334_s1 + $0x118] sm:$0xff] (!%p169_p3)   ;;  %v7991_v9 = vld [vmem:[%s9334_s1 + $0x120] sm:$0xff] (!%p169_p3)   ;;  %v7993_v11 = vld [vmem:[%s9334_s1 + $0x128] sm:$0xff] (!%p169_p3)  }
   0xa   : > { %7447 = vmatprep.subr.bf16.mxu0 (!%p169_p3), %v7985_v3  ;;  %v7994_v18 = vld [vmem:[%s9334_s1 + $0x30] sm:$0xff] (!%p169_p3)   ;;  %v7996_v32 = vld [vmem:[%s9334_s1 + $0x38] sm:$0xff] (!%p169_p3)   ;;  %vm8234_vm2 = vmor (!%p169_p3), %vm752_vm0, %vm753_vm1 }
   0xb   : > { %v7995_v24 = vld [vmem:[%s9334_s1 + $0x130] sm:$0xff] (!%p169_p3)   ;;  %v7997_v38 = vld [vmem:[%s9334_s1 + $0x138] sm:$0xff] (!%p169_p3)   ;;  %v8000_v47 = vld [vmem:[%s9334_s1 + $0x40] sm:$0xff] (!%p169_p3)  }
   0xc   : > { %7256 = vmatpush3.bf16.msra.mxu1 (!%p169_p3), %v7984_v2  ;;  %v8001_v52 = vld [vmem:[%s9334_s1 + $0x140] sm:$0xff] (!%p169_p3)   ;;  %vm8334_vm5 = vmor (!%p169_p3), %vm1621_vm3, %vm1622_vm4 }
   0xd   : > { %7448 = vmatpush3.bf16.msra.mxu0 (!%p169_p3), %v7985_v3  ;;  %7257 = vmatprep.subr.bf16.mxu1 (!%p169_p3), %v7986_v4 }
   0xe   : > { %s9346_s12 = smov (!%p202_p4, %s8124_s12), 1  ;;  %7449 = vmatprep.subr.bf16.mxu0 %v7987_v5 }
   0xf   : > { %s7957_s5 = smul.u32 216, %s9346_s12  ;;  %s6909_s26 = sshll.u32 %s9346_s12, 7 }
  0x10   : > { %7258 = vmatpush3.bf16.msra.mxu1 %v7986_v4  ;;  %s9274_s29 = scalar_lea.vmem %s9336_s3, %s6909_s26 }
  0x11   : > { %7450 = vmatpush3.bf16.msra.mxu0 %v7987_v5  ;;  %7259 = vmatprep.subr.bf16.mxu1 %v7988_v6  ;;  %s8211_s18 = scalar_lea.vmem %s9333_s0, %s7957_s5 }
  0x12   : > { %7451 = vmatprep.subr.bf16.mxu0 %v7989_v7  ;;  %v7998_v12 = vld [vmem:[%s8211_s18] sm:$0xff]   ;;  %v6418_v13 = vld [vmem:[%s8211_s18 + $0xc] sm:$0xf]  ;;  %v6419_v14 = vld [vmem:[%s8211_s18 + $0x10] sm:$0xf] }
  0x13   : > { %7269 = vmatprep.mubr.bf16.mxu1 %v7998_v12  ;;  %v6420_v15 = vld [vmem:[%s8211_s18 + $0x14] sm:$0x1]  ;;  %v2622_v16 = vshrl.u32 %v6418_v13, 16  ;;  %v2625_v17 = vshll.u32 %v6418_v13, 16  ;;  %v2631_v19 = vshll.u32 %v6419_v14, 16  ;;  %v2635_v20 = vshrl.u32 %v6419_v14, 16 }
  0x14   : > { %7260 = vmatpush3.bf16.msra.mxu1 %v7988_v6  ;;  %v2641_v21 = vshll.u32 %v6420_v15, 16  ;;  %v6421_v29 = vld [vmem:[%s8211_s18 + $0x18] sm:$0xf]  ;;  %v6422_v30 = vld [vmem:[%s8211_s18 + $0x1c] sm:$0xf]  ;;  %v7999_v55 = vld [vmem:[%s8211_s18 + $0xc] sm:$0xff]  }
  0x15   : > { %7452 = vmatpush3.bf16.msra.mxu0 %v7989_v7  ;;  %7261 = vmatprep.subr.bf16.mxu1 %v7990_v8  ;;  %v2624_v22 = vrot.slane %v2622_v16, 4  ;;  %v2627_v23 = vrot.slane %v2625_v17, 5  ;;  %v2633_v25 = vrot.slane %v2631_v19, 5  ;;  %v2637_v26 = vrot.slane %v2635_v20, 4  ;;  %v6423_v31 = vld [vmem:[%s8211_s18 + $0x20] sm:$0x1] }
  0x16   : > { %7453 = vmatprep.subr.bf16.mxu0 %v7991_v9  ;;  %v2643_v27 = vrot.slane %v2641_v21, 5  ;;  %v2646_v35 = vshrl.u32 %v6421_v29, 16  ;;  %v2649_v36 = vshll.u32 %v6421_v29, 16  ;;  %v2655_v37 = vshll.u32 %v6422_v30, 16  ;;  %v6424_v53 = vld [vmem:[%s8211_s18 + $0x24] sm:$0xf] }
  0x17   : > { %v2628_v28 = vor.u32 %v2627_v23, %v2624_v22  ;;  %v2638_v34 = vor.u32 %v2637_v26, %v2633_v25  ;;  %v2659_v40 = vshrl.u32 %v6422_v30, 16  ;;  %v2665_v41 = vshll.u32 %v6423_v31, 16  ;;  %v6425_v57 = vld [vmem:[%s8211_s18 + $0x28] sm:$0xf]  ;;  %v6426_v58 = vld [vmem:[%s8211_s18 + $0x2c] sm:$0x1] }
  0x18   : > { %7262 = vmatpush3.bf16.msra.mxu1 %v7990_v8  ;;  %v2648_v43 = vrot.slane %v2646_v35, 4  ;;  %v2651_v44 = vrot.slane %v2649_v36, 5  ;;  %v2657_v45 = vrot.slane %v2655_v37, 5  ;;  %v2670_v59 = vshrl.u32 %v6424_v53, 16  ;;  %v8003_v2 = vld [vmem:[%s8211_s18 + $0x18] sm:$0xff]   ;;  %v8002_v6 = vld [vmem:[%s9334_s1 + $0x148] sm:$0xff]  }
  0x19   : > { %7454 = vmatpush3.bf16.msra.mxu0 %v7991_v9  ;;  %7263 = vmatprep.subr.bf16.mxu1 %v7992_v10  ;;  %v2629_v39 = vrot.slane %v2628_v28, 4  ;;  %v2639_v42 = vrot.slane %v2638_v34, 4  ;;  %v2661_v48 = vrot.slane %v2659_v40, 4  ;;  %v2667_v51 = vrot.slane %v2665_v41, 5  ;;  %v6427_v13 = vld [vmem:[%s8211_s18 + $0x30] sm:$0xf] }
  0x1a   : > { %7455 = vmatprep.subr.bf16.mxu0 %v7993_v11  ;;  %v2652_v50 = vor.u32 %v2651_v44, %v2648_v43  ;;  %v2673_v60 = vshll.u32 %v6424_v53, 16  ;;  %v2679_v62 = vshll.u32 %v6425_v57, 16  ;;  %v2683_v63 = vshrl.u32 %v6425_v57, 16  ;;  %v6428_v14 = vld [vmem:[%s8211_s18 + $0x34] sm:$0xf]  ;;  %v8004_v28 = vld [vmem:[%s8211_s18 + $0x24] sm:$0xff]  }
  0x1b   : > { %v2634_v46 = vsel %vm8234_vm2, %v2629_v39, %v2633_v25  ;;  %v2644_v49 = vsel %vm8234_vm2, %v2639_v42, %v2643_v27  ;;  %v2662_v56 = vor.u32 %v2661_v48, %v2657_v45  ;;  %v2689_v0 = vshll.u32 %v6426_v58, 16  ;;  %v6429_v17 = vld [vmem:[%s8211_s18 + $0x38] sm:$0x1]  ;;  %v8006_v31 = vld [vmem:[%s9334_s1 + $0x150] sm:$0xff]   ;;  %v6430_v39 = vld [vmem:[%s8211_s18 + $0x3c] sm:$0xf] }
  0x1c   : > { %7264 = vmatpush3.bf16.msra.mxu1 %v7992_v10  ;;  %v6482_v54 = vcombine.low %v2634_v46, %v2644_v49  ;;  %v2653_v61 = vrot.slane %v2652_v50, 4  ;;  %v2672_v3 = vrot.slane %v2670_v59, 4  ;;  %v2675_v4 = vrot.slane %v2673_v60, 5  ;;  %v8005_v10 = vld [vmem:[%s9334_s1 + $0x48] sm:$0xff]   ;;  %v8008_v36 = vld [vmem:[%s8211_s18 + $0x30] sm:$0xff]  }
  0x1d   : > { %7456 = vmatpush3.bf16.msra.mxu0 %v7993_v11  ;;  %7265 = vmatprep.subr.bf16.mxu1 %v7994_v18  ;;  %v2663_v1 = vrot.slane %v2662_v56, 4  ;;  %v2681_v7 = vrot.slane %v2679_v62, 5  ;;  %v2685_v8 = vrot.slane %v2683_v63, 4  ;;  %v2691_v9 = vrot.slane %v2689_v0, 5  ;;  %v6431_v40 = vld [vmem:[%s8211_s18 + $0x40] sm:$0xf] }
  0x1e   : > { %7457 = vmatprep.subr.bf16.mxu0 %v7995_v24  ;;  %7461 = vmatprep.mubr.bf16.mxu0 %v6482_v54  ;;  %v2658_v5 = vsel %vm8234_vm2, %v2653_v61, %v2657_v45  ;;  %v2676_v12 = vor.u32 %v2675_v4, %v2672_v3  ;;  %v2697_v19 = vshll.u32 %v6427_v13, 16  ;;  %v2703_v21 = vshll.u32 %v6428_v14, 16  ;;  %v6432_v41 = vld [vmem:[%s8211_s18 + $0x44] sm:$0x1]  ;;  %v8010_v54 = vld [vmem:[%s9334_s1 + $0x50] sm:$0xff]  }
  0x1f   : > { %v2668_v11 = vsel %vm8234_vm2, %v2663_v1, %v2667_v51  ;;  %v2686_v16 = vor.u32 %v2685_v8, %v2681_v7  ;;  %v2707_v22 = vshrl.u32 %v6428_v14, 16  ;;  %v2713_v23 = vshll.u32 %v6429_v17, 16  ;;  %v6433_v58 = vld [vmem:[%s8211_s18 + $0x48] sm:$0xf]  ;;  %v6434_v61 = vld [vmem:[%s8211_s18 + $0x4c] sm:$0xf] }
  0x20   : > { %7266 = vmatpush3.bf16.msra.mxu1 %v7994_v18  ;;  %v6483_v15 = vcombine.low %v2658_v5, %v2668_v11  ;;  %v2694_v18 = vshrl.u32 %v6427_v13, 16  ;;  %v2677_v20 = vrot.slane %v2676_v12, 4  ;;  %v2699_v26 = vrot.slane %v2697_v19, 5  ;;  %v6435_v62 = vld [vmem:[%s8211_s18 + $0x50] sm:$0x1]  ;;  %v8011_v8 = vld [vmem:[%s9334_s1 + $0x160] sm:$0xff]  }
  0x21   : > { %7458 = vmatpush3.bf16.msra.mxu0 %v7995_v24  ;;  %7267 = vmatprep.subr.bf16.mxu1 %v7996_v32  ;;  %v2687_v24 = vrot.slane %v2686_v16, 4  ;;  %v2705_v29 = vrot.slane %v2703_v21, 5  ;;  %v2709_v30 = vrot.slane %v2707_v22, 4  ;;  %v2715_v35 = vrot.slane %v2713_v23, 5  ;;  %v6436_v19 = vld [vmem:[%s8211_s18 + $0x54] sm:$0xf] }
  0x22   : > { %7459 = vmatprep.subr.bf16.mxu0 %v7997_v38  ;;  %v2696_v25 = vrot.slane %v2694_v18, 4  ;;  %v2682_v27 = vsel %vm8234_vm2, %v2677_v20, %v2681_v7  ;;  %v2718_v43 = vshrl.u32 %v6430_v39, 16  ;;  %v2721_v44 = vshll.u32 %v6430_v39, 16  ;;  %v8013_v18 = vld [vmem:[%s8211_s18 + $0x48] sm:$0xff]   ;;  %v6437_v20 = vld [vmem:[%s8211_s18 + $0x58] sm:$0xf] }
  0x23   : > { %v2727_v45 = vshll.u32 %v6431_v40, 16  ;;  %v2731_v48 = vshrl.u32 %v6431_v40, 16  ;;  %v2737_v49 = vshll.u32 %v6432_v41, 16  ;;  %v2742_v63 = vshrl.u32 %v6433_v58, 16  ;;  %v8012_v23 = vld [vmem:[%s9334_s1 + $0x168] sm:$0xff]   ;;  %v8014_v39 = vld [vmem:[%s8211_s18 + $0x54] sm:$0xff]  }
  0x24   : > { %7268 = vmatpush3.bf16.msra.mxu1 %v7996_v32  ;;  %v2692_v32 = vsel %vm8234_vm2, %v2687_v24, %v2691_v9  ;;  %v2700_v34 = vor.u32 %v2699_v26, %v2696_v25  ;;  %v2720_v51 = vrot.slane %v2718_v43, 4  ;;  %v2745_v0 = vshll.u32 %v6433_v58, 16  ;;  %v6438_v24 = vld [vmem:[%s8211_s18 + $0x5c] sm:$0x1]  ;;  %v6439_v43 = vld [vmem:[%s8211_s18 + $0x60] sm:$0xf] }
  0x25   : > { %7460 = vmatpush3.bf16.msra.mxu0 %v7997_v38  ;;  %7301 = vmatprep.subr.bf16.mxu1 %v8000_v47  ;;  %v6484_v37 = vcombine.low %v2682_v27, %v2692_v32  ;;  %v2710_v38 = vor.u32 %v2709_v30, %v2705_v29  ;;  %v2729_v53 = vrot.slane %v2727_v45, 5  ;;  %v2733_v56 = vrot.slane %v2731_v48, 4  ;;  %v8015_v40 = vld [vmem:[%s9334_s1 + $0x58] sm:$0xff]   ;;  %v6441_v45 = vld [vmem:[%s8211_s18 + $0x68] sm:$0x1] }
  0x26   : > { %7493 = vmatprep.subr.bf16.mxu0 %v8001_v52  ;;  %v2701_v42 = vrot.slane %v2700_v34, 4  ;;  %v2739_v57 = vrot.slane %v2737_v49, 5  ;;  %v2755_v3 = vshrl.u32 %v6434_v61, 16  ;;  %v2761_v4 = vshll.u32 %v6435_v62, 16 }
  0x27   : > { %7270 = vmatmul.mubr.bf16.vlgmr.msra.gmra.mrb[0].mxu1 %v7999_v55  ;;  %v2711_v46 = vrot.slane %v2710_v38, 4  ;;  %v2734_v1 = vor.u32 %v2733_v56, %v2729_v53  ;;  %v2747_v7 = vrot.slane %v2745_v0, 5  ;;  %v2766_v25 = vshrl.u32 %v6436_v19, 16  ;;  %v6506_v0 = vld [vmem:[%s8211_s18 + $0xc] sm:$0xe] }
  0x28   : > { %7462 = vmatmul.mubr.bf16.vlgmr.msra.gmra.mrb[0].mxu0 %v6483_v15  ;;  %7302 = vmatpush3.bf16.msra.mxu1 %v8000_v47  ;;  %v8007_v47 = vld [vmem:[%s9334_s1 + $0x158] sm:$0xff]   ;;  %v2706_v50 = vsel %vm8234_vm2, %v2701_v42, %v2705_v29  ;;  %v2757_v12 = vrot.slane %v2755_v3, 4  ;;  %v2763_v17 = vrot.slane %v2761_v4, 5  ;;  %v2769_v26 = vshll.u32 %v6436_v19, 16 }
  0x29   : > { %7494 = vmatpush3.bf16.msra.mxu0 %v8001_v52  ;;  %7273 = vmatprep.mubr.bf16.mxu1 %v8003_v2  ;;  %v2723_v52 = vrot.slane %v2721_v44, 5  ;;  %v2716_v55 = vsel %vm8234_vm2, %v2711_v46, %v2715_v35  ;;  %v2751_v2 = vshll.u32 %v6434_v61, 16  ;;  %v2735_v9 = vrot.slane %v2734_v1, 4  ;;  %v6440_v44 = vld [vmem:[%s8211_s18 + $0x64] sm:$0xf] }
  0x2a   : > { %7495 = vmatprep.subr.bf16.mxu0 %v8002_v6  ;;  %7303 = vmatprep.subr.bf16.mxu1 %v8005_v10  ;;  %v6485_v59 = vcombine.low %v2706_v50, %v2716_v55  ;;  %v2779_v29 = vshrl.u32 %v6437_v20, 16  ;;  %v2785_v30 = vshll.u32 %v6438_v24, 16  ;;  %v2768_v32 = vrot.slane %v2766_v25, 4  ;;  %v8016_v50 = vld [vmem:[%s9334_s1 + $0x170] sm:$0xff]  }
  0x2b   : > { %7465 = vmatprep.mubr.bf16.mxu0 %v6484_v37  ;;  %v2724_v60 = vor.u32 %v2723_v52, %v2720_v51  ;;  %v2753_v11 = vrot.slane %v2751_v2, 5  ;;  %v2740_v15 = vsel %vm8234_vm2, %v2735_v9, %v2739_v57  ;;  %v2771_v34 = vrot.slane %v2769_v26, 5 }
  0x2c   : > { %7304 = vmatpush3.bf16.msra.mxu1 %v8005_v10  ;;  %v8009_v10 = vld [vmem:[%s8211_s18 + $0x3c] sm:$0xff]   ;;  %v2781_v37 = vrot.slane %v2779_v29, 4  ;;  %v2787_v38 = vrot.slane %v2785_v30, 5  ;;  %v2793_v48 = vshll.u32 %v6439_v43, 16  ;;  %v2799_v49 = vshll.u32 %v6440_v44, 16 }
  0x2d   : > { %7496 = vmatpush3.bf16.msra.mxu0 %v8002_v6  ;;  %7305 = vmatprep.subr.bf16.mxu1 %v8010_v54  ;;  %v2725_v5 = vrot.slane %v2724_v60, 4  ;;  %v2744_v6 = vrot.slane %v2742_v63, 4  ;;  %v2758_v16 = vor.u32 %v2757_v12, %v2753_v11  ;;  %v2772_v42 = vor.u32 %v2771_v34, %v2768_v32  ;;  %v8017_v60 = vld [vmem:[%s9334_s1 + $0x178] sm:$0xff]   ;;  %v8018_v63 = vld [vmem:[%s8211_s18 + $0x60] sm:$0xff]   ;;  %v6514_v32 = vld [vmem:[%s8211_s18 + $0x2c] sm:$0x1] }
  0x2e   : > { %7497 = vmatprep.subr.bf16.mxu0 %v8006_v31  ;;  %v2803_v52 = vshrl.u32 %v6440_v44, 16  ;;  %v2795_v56 = vrot.slane %v2793_v48, 5  ;;  %v2801_v57 = vrot.slane %v2799_v49, 5  ;;  %v6512_v29 = vld [vmem:[%s8211_s18 + $0x24] sm:$0xe]  ;;  %v8025_v48 = vld [vmem:[%s9334_s1 + $0x188] sm:$0xff]  }
  0x2f   : > { %7274 = vmatmul.mubr.bf16.gmra.mrb[4].mxu1 %v8004_v28  ;;  %v2730_v13 = vsel %vm8234_vm2, %v2725_v5, %v2729_v53  ;;  %v2748_v14 = vor.u32 %v2747_v7, %v2744_v6  ;;  %v2759_v27 = vrot.slane %v2758_v16, 4  ;;  %v2775_v28 = vshll.u32 %v6437_v20, 16  ;;  %v6507_v5 = vld [vmem:[%s8211_s18 + $0x10] sm:$0xf]  ;;  %v6508_v6 = vld [vmem:[%s8211_s18 + $0x14] sm:$0x1] }
  0x30   : > { %7277 = vmatprep.mubr.bf16.mxu1 %v8008_v36  ;;  %7306 = vmatpush3.bf16.msra.mxu1 %v8010_v54  ;;  %v6486_v21 = vcombine.low %v2730_v13, %v2740_v15  ;;  %v2773_v51 = vrot.slane %v2772_v42, 4  ;;  %v2809_v53 = vshll.u32 %v6441_v45, 16  ;;  %v6554_v7 = vrot.slane %v6506_v0, 9  ;;  %v8021_v13 = vld [vmem:[%s9334_s1 + $0x180] sm:$0xff]   ;;  %v6510_v20 = vld [vmem:[%s8211_s18 + $0x1c] sm:$0xf] }
  0x31   : > { %7498 = vmatpush3.bf16.msra.mxu0 %v8006_v31  ;;  %v2749_v22 = vrot.slane %v2748_v14, 4  ;;  %v2764_v35 = vsel %vm8234_vm2, %v2759_v27, %v2763_v17  ;;  %v2777_v36 = vrot.slane %v2775_v28, 5  ;;  %7307 = vmatprep.subr.bf16.mxu1 %v8015_v40  ;;  %v3489_v9 = vrot.slane %v6507_v5, 5  ;;  %v8019_v17 = vld [vmem:[%s8211_s18 + $0x6c] sm:$0xff]   ;;  %v8023_v42 = vld [vmem:[%s8211_s18 + $0x84] sm:$0xff]  }
  0x32   : > { %7466 = vmatmul.mubr.bf16.gmra.mrb[4].mxu0 %v6485_v59  ;;  %7499 = vmatprep.subr.bf16.mxu0 %v8007_v47  ;;  %v2805_v59 = vrot.slane %v2803_v52, 4  ;;  %v2811_v3 = vrot.slane %v2809_v53, 5  ;;  %v3496_v26 = vrot.slane %v6510_v20, 5  ;;  %v6556_v34 = vrot.slane %v6512_v29, 9  ;;  %v6516_v44 = vld [vmem:[%s8211_s18 + $0x34] sm:$0xf] }
  0x33   : > { %7469 = vmatprep.mubr.bf16.mxu0 %v6486_v21  ;;  %v2754_v31 = vsel %vm8234_vm2, %v2749_v22, %v2753_v11  ;;  %v2782_v46 = vor.u32 %v2781_v37, %v2777_v36  ;;  %v2778_v58 = vsel %vm8234_vm2, %v2773_v51, %v2777_v36  ;;  %v8020_v11 = vld [vmem:[%s9334_s1 + $0x60] sm:$0xff]   ;;  %v3490_v15 = vsel %vm8334_vm5, %v6554_v7, %v3489_v9  ;;  %v6521_v0 = vld [vmem:[%s8211_s18 + $0x48] sm:$0xe]  ;;  %v6522_v5 = vld [vmem:[%s8211_s18 + $0x4c] sm:$0xf] }
  0x34   : > { %v6487_v41 = vcombine.low %v2754_v31, %v2764_v35  ;;  %7308 = vmatpush3.bf16.msra.mxu1 %v8015_v40  ;;  %v2806_v2 = vor.u32 %v2805_v59, %v2801_v57  ;;  %v3491_v16 = vrot.slane %v3489_v9, 4  ;;  %v6511_v21 = vld [vmem:[%s8211_s18 + $0x20] sm:$0x1]  ;;  %v3498_v30 = vrot.slane %v3496_v26, 4  ;;  %v6513_v31 = vld [vmem:[%s8211_s18 + $0x28] sm:$0xf] }
  0x35   : > { %7500 = vmatpush3.bf16.msra.mxu0 %v8007_v47  ;;  %v2790_v47 = vshrl.u32 %v6439_v43, 16  ;;  %v2783_v54 = vrot.slane %v2782_v46, 4  ;;  %7309 = vmatprep.subr.bf16.mxu1 %v8020_v11  ;;  %v3499_v27 = vrot.slane %v6511_v21, 5  ;;  %v3503_v36 = vrot.slane %v6513_v31, 5  ;;  %v6515_v43 = vld [vmem:[%s8211_s18 + $0x30] sm:$0xe] }
  0x36   : > { %7501 = vmatprep.subr.bf16.mxu0 %v8011_v8  ;;  %v2807_v12 = vrot.slane %v2806_v2, 4  ;;  %v3506_v37 = vrot.slane %v6514_v32, 5  ;;  %v6517_v46 = vld [vmem:[%s8211_s18 + $0x38] sm:$0x1]  ;;  %v8028_v59 = vld [vmem:[%s9334_s1 + $0x70] sm:$0xff]   ;;  %v6559_v7 = vrot.slane %v6521_v0, 9 }
  0x37   : > { %7278 = vmatmul.mubr.bf16.gmra.mrb[8].mxu1 %v8009_v10  ;;  %v2792_v55 = vrot.slane %v2790_v47, 4  ;;  %v2788_v61 = vsel %vm8234_vm2, %v2783_v54, %v2787_v38  ;;  %v3492_v10 = vrot.slane %v6508_v6, 5  ;;  %v3500_v38 = vsel %vm8334_vm5, %v3498_v30, %v3499_v27  ;;  %v8026_v54 = vld [vmem:[%s8211_s18 + $0x90] sm:$0xff]   ;;  %v6527_v27 = vld [vmem:[%s8211_s18 + $0x60] sm:$0xe]  ;;  %v8033_v31 = vld [vmem:[%s9334_s1 + $0x198] sm:$0xff]  }
  0x38   : > { %7281 = vmatprep.mubr.bf16.mxu1 %v8013_v18  ;;  %v6488_v1 = vcombine.low %v2778_v58, %v2788_v61  ;;  %v6509_v18 = vld [vmem:[%s8211_s18 + $0x18] sm:$0xe]  ;;  %v2812_v19 = vsel %vm8234_vm2, %v2807_v12, %v2811_v3  ;;  %7310 = vmatpush3.bf16.msra.mxu1 %v8020_v11  ;;  %v3504_v40 = vsel %vm8334_vm5, %v6556_v34, %v3503_v36  ;;  %v3510_v47 = vrot.slane %v6516_v44, 5  ;;  %v8027_v3 = vld [vmem:[%s8211_s18 + $0x9c] sm:$0xff]   ;;  %v6523_v6 = vld [vmem:[%s8211_s18 + $0x50] sm:$0x1] }
  0x39   : > { %7502 = vmatpush3.bf16.msra.mxu0 %v8011_v8  ;;  %v2796_v62 = vor.u32 %v2795_v56, %v2792_v55  ;;  %v6555_v22 = vrot.slane %v6509_v18, 9  ;;  %v3493_v25 = vsel %vm8334_vm5, %v3491_v16, %v3492_v10  ;;  %v3513_v51 = vrot.slane %v6517_v46, 5  ;;  %v6518_v55 = vld [vmem:[%s8211_s18 + $0x3c] sm:$0xe]  ;;  %v6519_v56 = vld [vmem:[%s8211_s18 + $0x40] sm:$0xf] }
  0x3a   : > { %7503 = vmatprep.subr.bf16.mxu0 %v8012_v23  ;;  %7470 = vmatmul.mubr.bf16.gmra.mrb[8].mxu0 %v6487_v41  ;;  %v6586_v28 = vcombine.low %v3490_v15, %v3493_v25  ;;  %v3505_v41 = vrot.slane %v3503_v36, 4  ;;  %v3512_v53 = vrot.slane %v3510_v47, 4  ;;  %v6558_v58 = vrot.slane %v6518_v55, 9  ;;  %v8029_v12 = vld [vmem:[%s9334_s1 + $0x190] sm:$0xff]   ;;  %v8030_v15 = vld [vmem:[%s8211_s18 + $0xa8] sm:$0xff]  }
  0x3b   : > { %v2797_v8 = vrot.slane %v2796_v62, 4  ;;  %7473 = vmatprep.mubr.bf16.mxu0 %v6488_v1  ;;  %v3497_v35 = vsel %vm8334_vm5, %v6555_v22, %v3496_v26  ;;  %v3527_v11 = vrot.slane %v6523_v6, 5  ;;  %v6524_v16 = vld [vmem:[%s8211_s18 + $0x54] sm:$0xe]  ;;  %v6526_v18 = vld [vmem:[%s8211_s18 + $0x5c] sm:$0x1] }
  0x3c   : > { %v6587_v45 = vcombine.low %v3497_v35, %v3500_v38  ;;  %v3507_v49 = vsel %vm8334_vm5, %v3505_v41, %v3506_v37  ;;  %v3534_v21 = vrot.slane %v6526_v18, 5  ;;  %v8032_v26 = vld [vmem:[%s9334_s1 + $0x78] sm:$0xff]   ;;  %v6529_v29 = vld [vmem:[%s8211_s18 + $0x68] sm:$0x1]  ;;  %v6561_v30 = vrot.slane %v6527_v27, 9 }
  0x3d   : > { %7504 = vmatpush3.bf16.msra.mxu0 %v8012_v23  ;;  %v2802_v14 = vsel %vm8234_vm2, %v2797_v8, %v2801_v57  ;;  %v8022_v23 = vld [vmem:[%s8211_s18 + $0x78] sm:$0xff]   ;;  %v6588_v52 = vcombine.low %v3504_v40, %v3507_v49  ;;  %v6520_v57 = vld [vmem:[%s8211_s18 + $0x44] sm:$0x1]  ;;  %v3524_v8 = vrot.slane %v6522_v5, 5  ;;  %v3541_v36 = vrot.slane %v6529_v29, 5 }
  0x3e   : > { %7505 = vmatprep.subr.bf16.mxu0 %v8016_v50  ;;  %v6489_v24 = vcombine.low %v2802_v14, %v2812_v19  ;;  %v3520_v61 = vrot.slane %v6520_v57, 5  ;;  %v6560_v19 = vrot.slane %v6524_v16, 9  ;;  %v8031_v34 = vld [vmem:[%s8211_s18 + $0xb4] sm:$0xff]   ;;  %v705_v40 = vld [vmem:[%s8211_s18 + $0x4] sm:$0xf] }
  0x3f   : > { %7282 = vmatmul.mubr.bf16.gmra.mrb[12].mxu1 %v8014_v39  ;;  %v8024_v39 = vld [vmem:[%s9334_s1 + $0x68] sm:$0xff]   ;;  %v3526_v14 = vrot.slane %v3524_v8, 4  ;;  %v3525_v22 = vsel %vm8334_vm5, %v6559_v7, %v3524_v8  ;;  %v769_v49 = vshrl.u32 %v705_v40, 16  ;;  %v708_v5 = vld [vmem:[%s8211_s18 + $0x10] sm:$0xf] }
  0x40   : > { %7285 = vmatprep.mubr.bf16.mxu1 %v8018_v63  ;;  %7311 = vmatprep.subr.bf16.mxu1 %v8024_v39  ;;  %v3514_v63 = vsel %vm8334_vm5, %v3512_v53, %v3513_v51  ;;  %v706_v41 = vld [vmem:[%s8211_s18 + $0x8] sm:$0x1]  ;;  %v6530_v46 = vld [vmem:[%s8211_s18 + $0x6c] sm:$0xe]  ;;  %v6531_v51 = vld [vmem:[%s8211_s18 + $0x70] sm:$0xf] }
  0x41   : > { %7506 = vmatpush3.bf16.msra.mxu0 %v8016_v50  ;;  %v6557_v50 = vrot.slane %v6515_v43, 9  ;;  %7312 = vmatpush3.bf16.msra.mxu1 %v8024_v39  ;;  %v704_v39 = vld [vmem:[%s8211_s18] sm:$0xf]  ;;  %v3545_v57 = vrot.slane %v6531_v51, 5  ;;  %v709_v6 = vld [vmem:[%s8211_s18 + $0x14] sm:$0x1] }
  0x42   : > { %7507 = vmatprep.subr.bf16.mxu0 %v8017_v60  ;;  %7474 = vmatmul.mubr.bf16.gmra.mrb[12].mxu0 %v6489_v24  ;;  %v756_v44 = vshrl.u32 %v704_v39, 16  ;;  %v6535_v29 = vld [vmem:[%s8211_s18 + $0x80] sm:$0x1] }
  0x43   : > { %7509 = vmatprep.mubr.bf16.mxu0 %v6586_v28  ;;  %v3511_v62 = vsel %vm8334_vm5, %v6557_v50, %v3510_v47  ;;  %7313 = vmatprep.subr.bf16.mxu1 %v8028_v59  ;;  %v6528_v28 = vld [vmem:[%s8211_s18 + $0x64] sm:$0xf]  ;;  %v775_v50 = vshll.u32 %v706_v41, 16  ;;  %v711_v41 = vld [vmem:[%s8211_s18 + $0x1c] sm:$0xf] }
  0x44   : > { %v6589_v9 = vcombine.low %v3511_v62, %v3514_v63  ;;  %v3538_v35 = vrot.slane %v6528_v28, 5  ;;  %v8435_v47 = vld [vmem:[%s9334_s1 + $0x80] sm:$0xff]   ;;  %v707_v63 = vld [vmem:[%s8211_s18 + $0xc] sm:$0xf]  ;;  %v817_v51 = vshrl.u32 %v711_v41, 16 }
  0x45   : > { %7508 = vmatpush3.bf16.msra.mxu0 %v8017_v60  ;;  %v3517_v60 = vrot.slane %v6519_v56, 5  ;;  %7314 = vmatpush3.bf16.msra.mxu1 %v8028_v59  ;;  %v6532_v56 = vld [vmem:[%s8211_s18 + $0x74] sm:$0x1]  ;;  %v777_v62 = vrot.slane %v775_v50, 5  ;;  %v780_v8 = vshrl.u32 %v707_v63, 16 }
  0x46   : > { %7541 = vmatprep.subr.bf16.mxu0 %v8021_v13  ;;  %7315 = vmatprep.subr.bf16.mxu1 %v8032_v26  ;;  %v3540_v43 = vrot.slane %v3538_v35, 4 }
  0x47   : > { %7286 = vmatmul.mubr.bf16.gmra.mrb[16].mxu1 %v8019_v17  ;;  %v3518_v1 = vsel %vm8334_vm5, %v6558_v58, %v3517_v60  ;;  %v3519_v2 = vrot.slane %v3517_v60, 4  ;;  %v6525_v17 = vld [vmem:[%s8211_s18 + $0x58] sm:$0xf]  ;;  %v8035_v58 = vld [vmem:[%s9334_s1 + $0x1a0] sm:$0xff]   ;;  %v782_v18 = vrot.slane %v780_v8, 4 }
  0x48   : > { %7289 = vmatprep.mubr.bf16.mxu1 %v8022_v23  ;;  %v3531_v20 = vrot.slane %v6525_v17, 5  ;;  %v3528_v23 = vsel %vm8334_vm5, %v3526_v14, %v3527_v11  ;;  %v3542_v53 = vsel %vm8334_vm5, %v3540_v43, %v3541_v36  ;;  %v8037_v11 = vld [vmem:[%s9334_s1 + $0x1a8] sm:$0xff]   ;;  %v793_v14 = vshrl.u32 %v708_v5, 16  ;;  %v710_v36 = vld [vmem:[%s8211_s18 + $0x18] sm:$0xf] }
  0x49   : > { %v3521_v10 = vsel %vm8334_vm5, %v3519_v2, %v3520_v61  ;;  %v6591_v37 = vcombine.low %v3525_v22, %v3528_v23  ;;  %7316 = vmatpush3.bf16.msra.mxu1 %v8032_v26  ;;  %v771_v61 = vrot.slane %v769_v49, 4  ;;  %v3547_v2 = vrot.slane %v3545_v57, 4  ;;  %v6534_v26 = vld [vmem:[%s8211_s18 + $0x7c] sm:$0xf] }
  0x4a   : > { %7510 = vmatmul.mubr.bf16.vlgmr.msra.gmra.mrb[0].mxu0 %v6587_v45  ;;  %v3532_v24 = vsel %vm8334_vm5, %v6560_v19, %v3531_v20  ;;  %v3533_v25 = vrot.slane %v3531_v20, 4  ;;  %v759_v45 = vshll.u32 %v704_v39, 16  ;;  %7349 = vmatprep.subr.bf16.mxu1 %v8435_v47  ;;  %v6533_v20 = vld [vmem:[%s8211_s18 + $0x78] sm:$0xe] }
  0x4b   : > { %7542 = vmatpush3.bf16.msra.mxu0 %v8021_v13  ;;  %7513 = vmatprep.mubr.bf16.mxu0 %v6588_v52  ;;  %v6590_v13 = vcombine.low %v3518_v1, %v3521_v10  ;;  %v6562_v52 = vrot.slane %v6530_v46, 9  ;;  %v789_v10 = vshll.u32 %v708_v5, 16  ;;  %v813_v46 = vshll.u32 %v711_v41, 16 }
  0x4c   : > { %7543 = vmatprep.subr.bf16.mxu0 %v8025_v48  ;;  %v3535_v32 = vsel %vm8334_vm5, %v3533_v25, %v3534_v21  ;;  %v761_v55 = vrot.slane %v759_v45, 5  ;;  %v8039_v21 = vld [vmem:[%s9334_s1 + $0x1b0] sm:$0xff]   ;;  %v807_v45 = vshll.u32 %v710_v36, 16 }
  0x4d   : > { %v6592_v38 = vcombine.low %v3532_v24, %v3535_v32  ;;  %v3546_v1 = vsel %vm8334_vm5, %v6562_v52, %v3545_v57  ;;  %v791_v23 = vrot.slane %v789_v10, 5  ;;  %v795_v24 = vrot.slane %v793_v14, 4 }
  0x4f   : > { %7290 = vmatmul.mubr.bf16.gmra.mrb[20].mxu1 %v8023_v42  ;;  %7544 = vmatpush3.bf16.msra.mxu0 %v8025_v48  ;;  %v8429_v42 = vsel %vm8334_vm5, %v6561_v30, %v3538_v35  ;;  %v765_v48 = vshll.u32 %v705_v40, 16  ;;  %v6563_v30 = vrot.slane %v6533_v20, 9  ;;  %v3555_v35 = vrot.slane %v6535_v29, 5 }
  0x50   : > { %7293 = vmatprep.mubr.bf16.mxu1 %v8026_v54  ;;  %7545 = vmatprep.subr.bf16.mxu0 %v8029_v12  ;;  %v758_v54 = vrot.slane %v756_v44, 4  ;;  %v6593_v59 = vcombine.low %v8429_v42, %v3542_v53  ;;  %v712_v42 = vld [vmem:[%s8211_s18 + $0x20] sm:$0x1]  ;;  %v804_v44 = vshrl.u32 %v710_v36, 16  ;;  %v6537_v53 = vld [vmem:[%s8211_s18 + $0x88] sm:$0xf] }
  0x51   : > { %v767_v60 = vrot.slane %v765_v48, 5  ;;  %v6536_v48 = vld [vmem:[%s8211_s18 + $0x84] sm:$0xe]  ;;  %v823_v52 = vshll.u32 %v712_v42, 16 }
  0x52   : > { %7514 = vmatmul.mubr.bf16.gmra.mrb[4].mxu0 %v6589_v9  ;;  %v762_v0 = vor.u32 %v761_v55, %v758_v54  ;;  %v783_v9 = vshll.u32 %v707_v63, 16  ;;  %v6538_v54 = vld [vmem:[%s8211_s18 + $0x8c] sm:$0x1]  ;;  %v806_v57 = vrot.slane %v804_v44, 4  ;;  %v819_v63 = vrot.slane %v817_v51, 4 }
  0x53   : > { %7517 = vmatprep.mubr.bf16.mxu0 %v6590_v13  ;;  %7546 = vmatpush3.bf16.msra.mxu0 %v8029_v12  ;;  %v772_v7 = vor.u32 %v771_v61, %v767_v60  ;;  %v6564_v5 = vrot.slane %v6536_v48, 9  ;;  %v6543_v51 = vld [vmem:[%s8211_s18 + $0xa0] sm:$0xf] }
  0x54   : > { %7547 = vmatprep.subr.bf16.mxu0 %v8033_v31  ;;  %v763_v12 = vrot.slane %v762_v0, 4  ;;  %v785_v19 = vrot.slane %v783_v9, 5  ;;  %v825_v0 = vrot.slane %v823_v52, 5 }
  0x55   : > { %v773_v16 = vrot.slane %v772_v7, 4  ;;  %v3562_v7 = vrot.slane %v6538_v54, 5 }
  0x56   : > { %v768_v22 = vsel %vm8234_vm2, %v763_v12, %v767_v60  ;;  %v786_v28 = vor.u32 %v785_v19, %v782_v18  ;;  %v714_v60 = vld [vmem:[%s8211_s18 + $0x28] sm:$0xf]  ;;  %v8038_v12 = vld [vmem:[%s9334_s1 + $0x90] sm:$0xff]   ;;  %v8499_v18 = vld [vmem:[%s9334_s1 + $0x1c0] sm:$0xff]  }
  0x57   : > { %7294 = vmatmul.mubr.bf16.gmra.mrb[24].mxu1 %v8027_v3  ;;  %7548 = vmatpush3.bf16.msra.mxu0 %v8033_v31  ;;  %v3548_v3 = vrot.slane %v6532_v56, 5  ;;  %v778_v27 = vsel %vm8234_vm2, %v773_v16, %v777_v62  ;;  %v3552_v31 = vrot.slane %v6534_v26, 5  ;;  %v815_v62 = vrot.slane %v813_v46, 5 }
  0x58   : > { %7297 = vmatprep.mubr.bf16.mxu1 %v8030_v15  ;;  %7549 = vmatprep.subr.bf16.mxu0 %v8035_v58  ;;  %v799_v15 = vshll.u32 %v709_v6, 16  ;;  %v6266_v32 = vcombine.low %v768_v22, %v778_v27  ;;  %v3559_v6 = vrot.slane %v6537_v53, 5  ;;  %v841_v16 = vshrl.u32 %v714_v60, 16  ;;  %v6541_v27 = vld [vmem:[%s8211_s18 + $0x98] sm:$0x1] }
  0x59   : > { %v3549_v13 = vsel %vm8334_vm5, %v3547_v2, %v3548_v3  ;;  %v3553_v39 = vsel %vm8334_vm5, %v6563_v30, %v3552_v31  ;;  %v3554_v40 = vrot.slane %v3552_v31, 4  ;;  %v8036_v2 = vld [vmem:[%s9334_s1 + $0x88] sm:$0xff]   ;;  %v820_v8 = vor.u32 %v819_v63, %v815_v62 }
  0x5a   : > { %7518 = vmatmul.mubr.bf16.gmra.mrb[8].mxu0 %v6591_v37  ;;  %v6594_v17 = vcombine.low %v3546_v1, %v3549_v13  ;;  %v801_v25 = vrot.slane %v799_v15, 5  ;;  %v8041_v37 = vld [vmem:[%s9334_s1 + $0x1b8] sm:$0xff]   ;;  %v715_v1 = vld [vmem:[%s8211_s18 + $0x2c] sm:$0x1]  ;;  %v3560_v14 = vsel %vm8334_vm5, %v6564_v5, %v3559_v6  ;;  %v3561_v15 = vrot.slane %v3559_v6, 4  ;;  %v8043_v5 = vld [vmem:[%s9334_s1 + $0xa0] sm:$0xff]  }
  0x5b   : > { %7521 = vmatprep.mubr.bf16.mxu0 %v6592_v38  ;;  %7550 = vmatpush3.bf16.msra.mxu0 %v8035_v58  ;;  %v787_v38 = vrot.slane %v786_v28, 4  ;;  %v3556_v50 = vsel %vm8334_vm5, %v3554_v40, %v3555_v35  ;;  %v809_v58 = vrot.slane %v807_v45, 5  ;;  %v821_v19 = vrot.slane %v820_v8, 4  ;;  %v718_v40 = vld [vmem:[%s8211_s18 + $0x38] sm:$0x1] }
  0x5c   : > { %7551 = vmatprep.subr.bf16.mxu0 %v8037_v11  ;;  %v6595_v56 = vcombine.low %v3553_v39, %v3556_v50  ;;  %v847_v26 = vshll.u32 %v715_v1, 16  ;;  %v717_v39 = vld [vmem:[%s8211_s18 + $0x34] sm:$0xf]  ;;  %v3569_v42 = vrot.slane %v6541_v27, 5  ;;  %v6542_v45 = vld [vmem:[%s8211_s18 + $0x9c] sm:$0xe] }
  0x5d   : > { %v792_v49 = vsel %vm8234_vm2, %v787_v38, %v791_v23  ;;  %v810_v3 = vor.u32 %v809_v58, %v806_v57  ;;  %v826_v28 = vsel %vm8234_vm2, %v821_v19, %v825_v0  ;;  %v861_v50 = vshll.u32 %v717_v39, 16 }
  0x5e   : > { %v3573_v8 = vrot.slane %v6543_v51, 5 }
  0x5f   : > { %7298 = vmatmul.mubr.bf16.gmra.mrb[28].mxu1 %v8031_v34  ;;  %v796_v34 = vor.u32 %v795_v24, %v791_v23  ;;  %7552 = vmatpush3.bf16.msra.mxu0 %v8037_v11  ;;  %v837_v11 = vshll.u32 %v714_v60, 16  ;;  %v811_v13 = vrot.slane %v810_v3, 4  ;;  %v3563_v24 = vsel %vm8334_vm5, %v3561_v15, %v3562_v7  ;;  %v721_v3 = vld [vmem:[%s8211_s18 + $0x44] sm:$0x1] }
  0x60   : > { %7553 = vmatprep.subr.bf16.mxu0 %v8039_v21  ;;  %7317 = vmatprep.mubr.bf16.mxu1 %v6266_v32  ;;  %v6596_v29 = vcombine.low %v3560_v14, %v3563_v24  ;;  %v716_v32 = vld [vmem:[%s8211_s18 + $0x30] sm:$0xf]  ;;  %v871_v60 = vshll.u32 %v718_v40, 16  ;;  %v6566_v7 = vrot.slane %v6542_v45, 9  ;;  %v6545_v14 = vld [vmem:[%s8211_s18 + $0xa8] sm:$0xe] }
  0x61   : > { %v797_v43 = vrot.slane %v796_v34, 4  ;;  %v839_v22 = vrot.slane %v837_v11, 5  ;;  %v816_v23 = vsel %vm8234_vm2, %v811_v13, %v815_v62  ;;  %v8040_v34 = vld [vmem:[%s9334_s1 + $0x98] sm:$0xff]   ;;  %v855_v44 = vshll.u32 %v716_v32, 16  ;;  %v720_v62 = vld [vmem:[%s8211_s18 + $0x40] sm:$0xf] }
  0x62   : > { %7522 = vmatmul.mubr.bf16.gmra.mrb[12].mxu0 %v6593_v59  ;;  %v713_v59 = vld [vmem:[%s8211_s18 + $0x24] sm:$0xf]  ;;  %v6268_v35 = vcombine.low %v816_v23, %v826_v28  ;;  %v873_v6 = vrot.slane %v871_v60, 5  ;;  %v3574_v15 = vsel %vm8334_vm5, %v6566_v7, %v3573_v8  ;;  %v889_v19 = vshrl.u32 %v720_v62, 16  ;;  %v6547_v24 = vld [vmem:[%s8211_s18 + $0xb0] sm:$0x1] }
  0x63   : > { %7525 = vmatprep.mubr.bf16.mxu0 %v6594_v17  ;;  %v802_v55 = vsel %vm8234_vm2, %v797_v43, %v801_v25  ;;  %7554 = vmatpush3.bf16.msra.mxu0 %v8039_v21  ;;  %v828_v9 = vshrl.u32 %v713_v59, 16  ;;  %v831_v10 = vshll.u32 %v713_v59, 16  ;;  %v6539_v17 = vld [vmem:[%s8211_s18 + $0x90] sm:$0xe]  ;;  %v843_v25 = vrot.slane %v841_v16, 4  ;;  %v8055_v7 = vld [vmem:[%s9334_s1 + $0xb8] sm:$0xff]  }
  0x64   : > { %v6267_v61 = vcombine.low %v792_v49, %v802_v55  ;;  %7555 = vmatprep.subr.bf16.mxu0 %v8041_v37  ;;  %v6565_v31 = vrot.slane %v6539_v17, 9  ;;  %v852_v43 = vshrl.u32 %v716_v32, 16  ;;  %v857_v54 = vrot.slane %v855_v44, 5 }
  0x65   : > { %v830_v20 = vrot.slane %v828_v9, 4  ;;  %v833_v21 = vrot.slane %v831_v10, 5  ;;  %v844_v36 = vor.u32 %v843_v25, %v839_v22  ;;  %v865_v55 = vshrl.u32 %v717_v39, 16  ;;  %v8047_v25 = vld [vmem:[%s9334_s1 + $0xa8] sm:$0xff]  }
  0x66   : > { %v854_v53 = vrot.slane %v852_v43, 4  ;;  %v863_v59 = vrot.slane %v861_v50, 5  ;;  %v3575_v16 = vrot.slane %v3573_v8, 4  ;;  %v885_v17 = vshll.u32 %v720_v62, 16 }
  0x67   : > { %7318 = vmatmul.mubr.bf16.vlgmr.msra.gmra.mrb[0].mxu1 %v6267_v61  ;;  %7556 = vmatpush3.bf16.msra.mxu0 %v8041_v37  ;;  %v834_v30 = vor.u32 %v833_v21, %v830_v20  ;;  %v849_v37 = vrot.slane %v847_v26, 5  ;;  %v845_v46 = vrot.slane %v844_v36, 4  ;;  %v719_v61 = vld [vmem:[%s8211_s18 + $0x3c] sm:$0xf]  ;;  %v6546_v20 = vld [vmem:[%s8211_s18 + $0xac] sm:$0xf] }
  0x68   : > { %7350 = vmatpush3.bf16.msra.mxu1 %v8435_v47  ;;  %v6540_v47 = vld [vmem:[%s8211_s18 + $0x94] sm:$0xf]  ;;  %7589 = vmatprep.subr.bf16.mxu0 %v8499_v18  ;;  %v858_v1 = vor.u32 %v857_v54, %v854_v53  ;;  %v879_v13 = vshll.u32 %v719_v61, 16  ;;  %v887_v27 = vrot.slane %v885_v17, 5  ;;  %v891_v28 = vrot.slane %v889_v19, 4 }
  0x69   : > { %7351 = vmatprep.subr.bf16.mxu1 %v8036_v2  ;;  %v3566_v38 = vrot.slane %v6540_v47, 5  ;;  %v835_v41 = vrot.slane %v834_v30, 4  ;;  %7321 = vmatprep.mubr.bf16.mxu1 %v6268_v35  ;;  %v850_v57 = vsel %vm8234_vm2, %v845_v46, %v849_v37  ;;  %v722_v35 = vld [vmem:[%s8211_s18 + $0x48] sm:$0xf]  ;;  %v8051_v36 = vld [vmem:[%s9334_s1 + $0xb0] sm:$0xff]   ;;  %v3580_v40 = vrot.slane %v6546_v20, 5 }
  0x6a   : > { %7526 = vmatmul.mubr.bf16.gmra.mrb[16].mxu0 %v6595_v56  ;;  %v6544_v56 = vld [vmem:[%s8211_s18 + $0xa4] sm:$0x1]  ;;  %v859_v10 = vrot.slane %v858_v1, 4  ;;  %v881_v23 = vrot.slane %v879_v13, 5  ;;  %v3583_v44 = vrot.slane %v6547_v24, 5  ;;  %v900_v45 = vshrl.u32 %v722_v35, 16 }
  0x6b   : > { %7529 = vmatprep.mubr.bf16.mxu0 %v6596_v29  ;;  %v3567_v48 = vsel %vm8334_vm5, %v6565_v31, %v3566_v38  ;;  %v3568_v49 = vrot.slane %v3566_v38, 4  ;;  %v840_v52 = vsel %vm8234_vm2, %v835_v41, %v839_v22  ;;  %v3576_v9 = vrot.slane %v6544_v56, 5  ;;  %v723_v41 = vld [vmem:[%s8211_s18 + $0x4c] sm:$0xf]  ;;  %v6549_v53 = vld [vmem:[%s8211_s18 + $0xb8] sm:$0xf] }
  0x6c   : > { %7352 = vmatpush3.bf16.msra.mxu1 %v8036_v2  ;;  %v6269_v63 = vcombine.low %v840_v52, %v850_v57  ;;  %v867_v2 = vrot.slane %v865_v55, 4  ;;  %v864_v21 = vsel %vm8234_vm2, %v859_v10, %v863_v59  ;;  %v895_v29 = vshll.u32 %v721_v3, 16 }
  0x6d   : > { %7353 = vmatprep.subr.bf16.mxu1 %v8038_v12  ;;  %v3570_v58 = vsel %vm8334_vm5, %v3568_v49, %v3569_v42  ;;  %v3577_v26 = vsel %vm8334_vm5, %v3575_v16, %v3576_v9  ;;  %v892_v38 = vor.u32 %v891_v28, %v887_v27  ;;  %v724_v42 = vld [vmem:[%s8211_s18 + $0x50] sm:$0x1]  ;;  %v903_v46 = vshll.u32 %v722_v35, 16  ;;  %v6551_v16 = vld [vmem:[%s8211_s18 + $0xc0] sm:$0xe] }
  0x6e   : > { %v6597_v0 = vcombine.low %v3567_v48, %v3570_v58  ;;  %v868_v11 = vor.u32 %v867_v2, %v863_v59  ;;  %v6598_v31 = vcombine.low %v3574_v15, %v3577_v26  ;;  %v897_v39 = vrot.slane %v895_v29, 5  ;;  %v6548_v48 = vld [vmem:[%s8211_s18 + $0xb4] sm:$0xe]  ;;  %v6550_v58 = vld [vmem:[%s8211_s18 + $0xbc] sm:$0x1] }
  0x6f   : > { %7322 = vmatmul.mubr.bf16.gmra.mrb[4].mxu1 %v6269_v63  ;;  %v893_v49 = vrot.slane %v892_v38, 4  ;;  %v3582_v51 = vrot.slane %v3580_v40, 4  ;;  %v909_v52 = vshll.u32 %v723_v41, 16  ;;  %v902_v55 = vrot.slane %v900_v45, 4  ;;  %v725_v63 = vld [vmem:[%s8211_s18 + $0x54] sm:$0xf] }
  0x70   : > { %7354 = vmatpush3.bf16.msra.mxu1 %v8038_v12  ;;  %v876_v12 = vshrl.u32 %v719_v61, 16  ;;  %v869_v22 = vrot.slane %v868_v11, 4  ;;  %v905_v56 = vrot.slane %v903_v46, 5  ;;  %v913_v57 = vshrl.u32 %v723_v41, 16  ;;  %v6553_v26 = vld [vmem:[%s8211_s18 + $0xc8] sm:$0x1] }
  0x71   : > { %7355 = vmatprep.subr.bf16.mxu1 %v8040_v34  ;;  %v898_v59 = vsel %vm8234_vm2, %v893_v49, %v897_v39  ;;  %v3584_v60 = vsel %vm8334_vm5, %v3582_v51, %v3583_v44  ;;  %v911_v61 = vrot.slane %v909_v52, 5  ;;  %v919_v62 = vshll.u32 %v724_v42, 16  ;;  %v729_v42 = vld [vmem:[%s8211_s18 + $0x64] sm:$0xf] }
  0x72   : > { %7530 = vmatmul.mubr.bf16.gmra.mrb[20].mxu0 %v6597_v0  ;;  %v878_v47 = vrot.slane %v876_v12, 4  ;;  %v874_v30 = vsel %vm8234_vm2, %v869_v22, %v873_v6  ;;  %v726_v0 = vld [vmem:[%s8211_s18 + $0x58] sm:$0xf]  ;;  %v906_v3 = vor.u32 %v905_v56, %v902_v55  ;;  %v727_v6 = vld [vmem:[%s8211_s18 + $0x5c] sm:$0x1]  ;;  %v6568_v9 = vrot.slane %v6548_v48, 9 }
  0x73   : > { %v6270_v37 = vcombine.low %v864_v21, %v874_v30  ;;  %7533 = vmatprep.mubr.bf16.mxu0 %v6598_v31  ;;  %v921_v8 = vrot.slane %v919_v62, 5  ;;  %v3587_v10 = vrot.slane %v6549_v53, 5  ;;  %v3590_v11 = vrot.slane %v6550_v58, 5  ;;  %v6552_v22 = vld [vmem:[%s8211_s18 + $0xc4] sm:$0xf] }
  0x74   : > { %7356 = vmatpush3.bf16.msra.mxu1 %v8040_v34  ;;  %v882_v32 = vor.u32 %v881_v23, %v878_v47  ;;  %v6567_v34 = vrot.slane %v6545_v14, 9  ;;  %v907_v12 = vrot.slane %v906_v3, 4  ;;  %v924_v14 = vshrl.u32 %v725_v63, 16  ;;  %v731_v58 = vld [vmem:[%s8211_s18 + $0x6c] sm:$0xf] }
  0x75   : > { %7357 = vmatprep.subr.bf16.mxu1 %v8043_v5  ;;  %7325 = vmatprep.mubr.bf16.mxu1 %v6270_v37  ;;  %v927_v15 = vshll.u32 %v725_v63, 16  ;;  %v3588_v17 = vsel %vm8334_vm5, %v6568_v9, %v3587_v10  ;;  %v3589_v19 = vrot.slane %v3587_v10, 4  ;;  %v933_v20 = vshll.u32 %v726_v0, 16  ;;  %v728_v37 = vld [vmem:[%s8211_s18 + $0x60] sm:$0xf] }
  0x76   : > { %v883_v43 = vrot.slane %v882_v32, 4  ;;  %v3581_v50 = vsel %vm8334_vm5, %v6567_v34, %v3580_v40  ;;  %v937_v21 = vshrl.u32 %v726_v0, 16  ;;  %v912_v47 = vsel %vm8234_vm2, %v907_v12, %v911_v61  ;;  %v732_v63 = vld [vmem:[%s8211_s18 + $0x70] sm:$0xf]  ;;  %v733_v0 = vld [vmem:[%s8211_s18 + $0x74] sm:$0x1] }
  0x77   : > { %v6599_v2 = vcombine.low %v3581_v50, %v3584_v60  ;;  %v926_v24 = vrot.slane %v924_v14, 4  ;;  %v3591_v28 = vsel %vm8334_vm5, %v3589_v19, %v3590_v11  ;;  %v935_v29 = vrot.slane %v933_v20, 5 }
  0x78   : > { %7358 = vmatpush3.bf16.msra.mxu1 %v8043_v5  ;;  %v888_v54 = vsel %vm8234_vm2, %v883_v43, %v887_v27  ;;  %v915_v5 = vrot.slane %v913_v57, 4  ;;  %v8580_v27 = vld [vmem:[%s9334_s1 + $0xc0] sm:$0xff]   ;;  %v939_v30 = vrot.slane %v937_v21, 4  ;;  %v943_v31 = vshll.u32 %v727_v6, 16  ;;  %v730_v43 = vld [vmem:[%s8211_s18 + $0x68] sm:$0x1] }
  0x79   : > { %7359 = vmatprep.subr.bf16.mxu1 %v8047_v25  ;;  %v6271_v1 = vcombine.low %v888_v54, %v898_v59  ;;  %v6600_v34 = vcombine.low %v3588_v17, %v3591_v28  ;;  %v3594_v41 = vrot.slane %v6552_v22, 5  ;;  %v3597_v45 = vrot.slane %v6553_v26, 5  ;;  %v8042_v57 = vld [vmem:[%s8211_s18 + $0x18] sm:$0xff]   ;;  %v8044_v22 = vld [vmem:[%s8211_s18 + $0x24] sm:$0xff]   ;;  %v8046_v26 = vld [vmem:[%s8211_s18 + $0x30] sm:$0xff]  }
  0x7a   : > { %7534 = vmatmul.mubr.bf16.gmra.mrb[24].mxu0 %v6599_v2  ;;  %v916_v13 = vor.u32 %v915_v5, %v911_v61  ;;  %v940_v39 = vor.u32 %v939_v30, %v935_v29  ;;  %v945_v40 = vrot.slane %v943_v31, 5  ;;  %v948_v46 = vshrl.u32 %v728_v37, 16 }
  0x7b   : > { %7326 = vmatmul.mubr.bf16.gmra.mrb[8].mxu1 %v6271_v1  ;;  %7537 = vmatprep.mubr.bf16.mxu0 %v6600_v34  ;;  %v951_v48 = vshll.u32 %v728_v37, 16  ;;  %v3596_v51 = vrot.slane %v3594_v41, 4  ;;  %v957_v52 = vshll.u32 %v729_v42, 16  ;;  %v961_v56 = vshrl.u32 %v729_v42, 16  ;;  %v737_v37 = vld [vmem:[%s8211_s18 + $0x84] sm:$0xf] }
  0x7c   : > { %7360 = vmatpush3.bf16.msra.mxu1 %v8047_v25  ;;  %v917_v23 = vrot.slane %v916_v13, 4  ;;  %v929_v25 = vrot.slane %v927_v15, 5  ;;  %v941_v49 = vrot.slane %v940_v39, 4  ;;  %v950_v54 = vrot.slane %v948_v46, 4 }
  0x7d   : > { %7361 = vmatprep.subr.bf16.mxu1 %v8051_v36  ;;  %v953_v55 = vrot.slane %v951_v48, 5  ;;  %v3598_v60 = vsel %vm8334_vm5, %v3596_v51, %v3597_v45  ;;  %v959_v61 = vrot.slane %v957_v52, 5  ;;  %v967_v62 = vshll.u32 %v730_v43, 16  ;;  %v738_v43 = vld [vmem:[%s8211_s18 + $0x88] sm:$0xf] }
  0x7e   : > { %v922_v32 = vsel %vm8234_vm2, %v917_v23, %v921_v8  ;;  %v930_v35 = vor.u32 %v929_v25, %v926_v24  ;;  %v946_v59 = vsel %vm8234_vm2, %v941_v49, %v945_v40  ;;  %v963_v5 = vrot.slane %v961_v56, 4  ;;  %v734_v23 = vld [vmem:[%s8211_s18 + $0x78] sm:$0xf]  ;;  %v735_v24 = vld [vmem:[%s8211_s18 + $0x7c] sm:$0xf] }
  0x7f   : > { %v6272_v38 = vcombine.low %v912_v47, %v922_v32  ;;  %v954_v3 = vor.u32 %v953_v55, %v950_v54  ;;  %v969_v6 = vrot.slane %v967_v62, 5  ;;  %v975_v8 = vshll.u32 %v731_v58, 16  ;;  %v736_v25 = vld [vmem:[%s8211_s18 + $0x80] sm:$0x1]  ;;  %v739_v48 = vld [vmem:[%s8211_s18 + $0x8c] sm:$0x1] }
  0x80   : > { %7362 = vmatpush3.bf16.msra.mxu1 %v8051_v36  ;;  %v6569_v36 = vrot.slane %v6551_v16, 9  ;;  %v931_v44 = vrot.slane %v930_v35, 4  ;;  %v981_v9 = vshll.u32 %v732_v63, 16  ;;  %v964_v11 = vor.u32 %v963_v5, %v959_v61  ;;  %v8053_v54 = vld [vmem:[%s9334_s1 + $0x1d0] sm:$0xff]  }
  0x81   : > { %7363 = vmatprep.subr.bf16.mxu1 %v8055_v7  ;;  %7329 = vmatprep.mubr.bf16.mxu1 %v6272_v38  ;;  %v955_v10 = vrot.slane %v954_v3, 4  ;;  %v985_v12 = vshrl.u32 %v732_v63, 16  ;;  %v991_v13 = vshll.u32 %v733_v0, 16  ;;  %v977_v15 = vrot.slane %v975_v8, 5  ;;  %v8049_v38 = vld [vmem:[%s9334_s1 + $0x1c8] sm:$0xff]   ;;  %v8048_v63 = vld [vmem:[%s8211_s18 + $0x3c] sm:$0xff]  }
  0x82   : > { %v3595_v50 = vsel %vm8334_vm5, %v6569_v36, %v3594_v41  ;;  %v936_v53 = vsel %vm8234_vm2, %v931_v44, %v935_v29  ;;  %v983_v16 = vrot.slane %v981_v9, 5  ;;  %v965_v19 = vrot.slane %v964_v11, 4  ;;  %v8050_v3 = vld [vmem:[%s8211_s18 + $0x48] sm:$0xff]   ;;  %v741_v8 = vld [vmem:[%s8211_s18 + $0x94] sm:$0xf] }
  0x83   : > { %v6273_v1 = vcombine.low %v936_v53, %v946_v59  ;;  %v6601_v2 = vcombine.low %v3595_v50, %v3598_v60  ;;  %v960_v17 = vsel %vm8234_vm2, %v955_v10, %v959_v61  ;;  %v987_v20 = vrot.slane %v985_v12, 4  ;;  %v742_v9 = vld [vmem:[%s8211_s18 + $0x98] sm:$0x1] }
  0x84   : > { %7364 = vmatpush3.bf16.msra.mxu1 %v8055_v7  ;;  %v972_v7 = vshrl.u32 %v731_v58, 16  ;;  %v993_v21 = vrot.slane %v991_v13, 5  ;;  %v970_v28 = vsel %vm8234_vm2, %v965_v19, %v969_v6  ;;  %v996_v30 = vshrl.u32 %v734_v23, 16 }
  0x85   : > { %7397 = vmatprep.subr.bf16.mxu1 %v8580_v27  ;;  %7330 = vmatmul.mubr.bf16.gmra.mrb[12].mxu1 %v6273_v1  ;;  %v988_v29 = vor.u32 %v987_v20, %v983_v16  ;;  %v999_v31 = vshll.u32 %v734_v23, 16  ;;  %v6274_v32 = vcombine.low %v960_v17, %v970_v28  ;;  %v1005_v35 = vshll.u32 %v735_v24, 16  ;;  %v743_v20 = vld [vmem:[%s8211_s18 + $0x9c] sm:$0xf] }
  0x86   : > { %7538 = vmatmul.mubr.bf16.gmra.mrb[28].mxu0 %v6601_v2  ;;  %v974_v14 = vrot.slane %v972_v7, 4  ;;  %v1009_v36 = vshrl.u32 %v735_v24, 16  ;;  %v998_v40 = vrot.slane %v996_v30, 4  ;;  %v1015_v42 = vshll.u32 %v736_v25, 16  ;;  %v740_v2 = vld [vmem:[%s8211_s18 + $0x90] sm:$0xf] }
  0x87   : > { %7557 = vmatprep.mubr.bf16.mxu0 %v8042_v57  ;;  %v989_v39 = vrot.slane %v988_v29, 4  ;;  %v1001_v41 = vrot.slane %v999_v31, 5  ;;  %7333 = vmatprep.mubr.bf16.mxu1 %v6274_v32  ;;  %v1007_v45 = vrot.slane %v1005_v35, 5  ;;  %v1020_v49 = vshrl.u32 %v737_v37, 16  ;;  %v744_v24 = vld [vmem:[%s8211_s18 + $0xa0] sm:$0xf] }
  0x88   : > { %v978_v47 = vor.u32 %v977_v15, %v974_v14  ;;  %v1011_v46 = vrot.slane %v1009_v36, 4  ;;  %v1017_v52 = vrot.slane %v1015_v42, 5  ;;  %v1023_v53 = vshll.u32 %v737_v37, 16  ;;  %v8057_v14 = vld [vmem:[%s9334_s1 + $0x1d8] sm:$0xff]   ;;  %v745_v29 = vld [vmem:[%s8211_s18 + $0xa4] sm:$0x1] }
  0x89   : > { %v994_v50 = vsel %vm8234_vm2, %v989_v39, %v993_v21  ;;  %v1002_v51 = vor.u32 %v1001_v41, %v998_v40  ;;  %v1022_v57 = vrot.slane %v1020_v49, 4  ;;  %v1029_v58 = vshll.u32 %v738_v43, 16  ;;  %v8061_v36 = vld [vmem:[%s9334_s1 + $0x1e0] sm:$0xff]  }
  0x8a   : > { %v979_v34 = vrot.slane %v978_v47, 4  ;;  %v1012_v56 = vor.u32 %v1011_v46, %v1007_v45  ;;  %v1025_v60 = vrot.slane %v1023_v53, 5  ;;  %v1033_v61 = vshrl.u32 %v738_v43, 16  ;;  %v746_v53 = vld [vmem:[%s8211_s18 + $0xa8] sm:$0xf] }
  0x8b   : > { %v1003_v59 = vrot.slane %v1002_v51, 4  ;;  %v1039_v62 = vshll.u32 %v739_v48, 16  ;;  %v1031_v1 = vrot.slane %v1029_v58, 5  ;;  %v1044_v11 = vshrl.u32 %v740_v2, 16  ;;  %v748_v58 = vld [vmem:[%s8211_s18 + $0xb0] sm:$0x1] }
  0x8c   : > { %v984_v44 = vsel %vm8234_vm2, %v979_v34, %v983_v16  ;;  %v1013_v0 = vrot.slane %v1012_v56, 4  ;;  %v1026_v5 = vor.u32 %v1025_v60, %v1022_v57  ;;  %v1035_v6 = vrot.slane %v1033_v61, 4 }
  0x8d   : > { %v6275_v55 = vcombine.low %v984_v44, %v994_v50  ;;  %v1041_v7 = vrot.slane %v1039_v62, 5  ;;  %v1047_v12 = vshll.u32 %v740_v2, 16  ;;  %v1053_v13 = vshll.u32 %v741_v8, 16  ;;  %v8054_v50 = vld [vmem:[%s8211_s18 + $0x60] sm:$0xff]  }
  0x8e   : > { %7558 = vmatmul.mubr.bf16.vlgmr.msra.gmra.mrb[0].mxu0 %v8044_v22  ;;  %v1018_v10 = vsel %vm8234_vm2, %v1013_v0, %v1017_v52  ;;  %v1027_v16 = vrot.slane %v1026_v5, 4  ;;  %v1036_v17 = vor.u32 %v1035_v6, %v1031_v1  ;;  %v1057_v19 = vshrl.u32 %v741_v8, 16  ;;  %v8065_v0 = vld [vmem:[%s9334_s1 + $0x1e8] sm:$0xff]   ;;  %v749_v5 = vld [vmem:[%s8211_s18 + $0xb4] sm:$0xf] }
  0x8f   : > { %7590 = vmatpush3.bf16.msra.mxu0 %v8499_v18  ;;  %7561 = vmatprep.mubr.bf16.mxu0 %v8046_v26  ;;  %v1008_v18 = vsel %vm8234_vm2, %v1003_v59, %v1007_v45  ;;  %v1046_v21 = vrot.slane %v1044_v11, 4  ;;  %v1049_v22 = vrot.slane %v1047_v12, 5  ;;  %v1055_v47 = vrot.slane %v1053_v13, 5  ;;  %v8052_v45 = vld [vmem:[%s8211_s18 + $0x54] sm:$0xff]  }
  0x90   : > { %7591 = vmatprep.subr.bf16.mxu0 %v8049_v38  ;;  %7334 = vmatmul.mubr.bf16.gmra.mrb[16].mxu1 %v6275_v55  ;;  %v6276_v15 = vcombine.low %v1008_v18, %v1018_v10  ;;  %v1063_v23 = vshll.u32 %v742_v9, 16  ;;  %v1032_v25 = vsel %vm8234_vm2, %v1027_v16, %v1031_v1  ;;  %v1037_v26 = vrot.slane %v1036_v17, 4  ;;  %v750_v9 = vld [vmem:[%s8211_s18 + $0xb8] sm:$0xf]  ;;  %v751_v10 = vld [vmem:[%s8211_s18 + $0xbc] sm:$0x1] }
  0x91   : > { %v1059_v28 = vrot.slane %v1057_v19, 4  ;;  %v1068_v30 = vshrl.u32 %v743_v20, 16  ;;  %v1050_v31 = vor.u32 %v1049_v22, %v1046_v21  ;;  %v1071_v34 = vshll.u32 %v743_v20, 16 }
  0x92   : > { %7337 = vmatprep.mubr.bf16.mxu1 %v6276_v15  ;;  %v1065_v32 = vrot.slane %v1063_v23, 5  ;;  %v1077_v35 = vshll.u32 %v744_v24, 16  ;;  %v1042_v37 = vsel %vm8234_vm2, %v1037_v26, %v1041_v7  ;;  %v1081_v40 = vshrl.u32 %v744_v24, 16  ;;  %v8069_v15 = vld [vmem:[%s9334_s1 + $0x1f0] sm:$0xff]  }
  0x93   : > { %7592 = vmatpush3.bf16.msra.mxu0 %v8049_v38  ;;  %v1060_v38 = vor.u32 %v1059_v28, %v1055_v47  ;;  %v1070_v39 = vrot.slane %v1068_v30, 4  ;;  %v6277_v41 = vcombine.low %v1032_v25, %v1042_v37  ;;  %v1051_v42 = vrot.slane %v1050_v31, 4  ;;  %v8056_v24 = vld [vmem:[%s8211_s18 + $0x6c] sm:$0xff]   ;;  %v1525_v37 = vld [vmem:[%s8211_s18] sm:$0xe] }
  0x94   : > { %7593 = vmatprep.subr.bf16.mxu0 %v8053_v54  ;;  %v1073_v43 = vrot.slane %v1071_v34, 5  ;;  %v1079_v44 = vrot.slane %v1077_v35, 5  ;;  %v1083_v48 = vrot.slane %v1081_v40, 4  ;;  %v1087_v49 = vshll.u32 %v745_v29, 16  ;;  %v8058_v29 = vld [vmem:[%s8211_s18 + $0x78] sm:$0xff]  }
  0x95   : > { %v1061_v46 = vrot.slane %v1060_v38, 4  ;;  %v1056_v51 = vsel %vm8234_vm2, %v1051_v42, %v1055_v47  ;;  %v1092_v59 = vshrl.u32 %v746_v53, 16  ;;  %v1095_v62 = vshll.u32 %v746_v53, 16  ;;  %v8073_v34 = vld [vmem:[%s9334_s1 + $0x1f8] sm:$0xff]   ;;  %v1526_v38 = vld [vmem:[%s8211_s18 + $0x4] sm:$0xf] }
  0x96   : > { %7562 = vmatmul.mubr.bf16.gmra.mrb[4].mxu0 %v8048_v63  ;;  %v1074_v52 = vor.u32 %v1073_v43, %v1070_v39  ;;  %v1084_v56 = vor.u32 %v1083_v48, %v1079_v44  ;;  %v1089_v57 = vrot.slane %v1087_v49, 5  ;;  %v1111_v18 = vshll.u32 %v748_v58, 16  ;;  %v1527_v39 = vld [vmem:[%s8211_s18 + $0x8] sm:$0x1]  ;;  %v1528_v48 = vld [vmem:[%s8211_s18 + $0xc] sm:$0xe] }
  0x97   : > { %7565 = vmatprep.mubr.bf16.mxu0 %v8050_v3  ;;  %7594 = vmatpush3.bf16.msra.mxu0 %v8053_v54  ;;  %v747_v54 = vld [vmem:[%s8211_s18 + $0xac] sm:$0xf]  ;;  %v1066_v55 = vsel %vm8234_vm2, %v1061_v46, %v1065_v32  ;;  %v1094_v2 = vrot.slane %v1092_v59, 4  ;;  %v1097_v7 = vrot.slane %v1095_v62, 5  ;;  %v1119_v19 = vshll.u32 %v749_v5, 16 }
  0x98   : > { %7595 = vmatprep.subr.bf16.mxu0 %v8057_v14  ;;  %7338 = vmatmul.mubr.bf16.gmra.mrb[20].mxu1 %v6277_v41  ;;  %v6278_v60 = vcombine.low %v1056_v51, %v1066_v55  ;;  %v1075_v61 = vrot.slane %v1074_v52, 4  ;;  %v1101_v63 = vshll.u32 %v747_v54, 16  ;;  %v1085_v1 = vrot.slane %v1084_v56, 4  ;;  %v1529_v49 = vld [vmem:[%s8211_s18 + $0x10] sm:$0xf]  ;;  %v8060_v55 = vld [vmem:[%s8211_s18 + $0x84] sm:$0xff]  }
  0x99   : > { %v1105_v3 = vshrl.u32 %v747_v54, 16  ;;  %v1113_v13 = vrot.slane %v1111_v18, 5  ;;  %v1098_v17 = vor.u32 %v1097_v7, %v1094_v2  ;;  %v1125_v20 = vshll.u32 %v750_v9, 16  ;;  %v1530_v53 = vld [vmem:[%s8211_s18 + $0x14] sm:$0x1]  ;;  %v8690_v56 = vld [vmem:[%s9334_s1 + $0x200] sm:$0xff]  }
  0x9a   : > { %7341 = vmatprep.mubr.bf16.mxu1 %v6278_v60  ;;  %v1080_v6 = vsel %vm8234_vm2, %v1075_v61, %v1079_v44  ;;  %v1103_v8 = vrot.slane %v1101_v63, 5  ;;  %v1090_v11 = vsel %vm8234_vm2, %v1085_v1, %v1089_v57  ;;  %v1129_v47 = vshrl.u32 %v750_v9, 16  ;;  %v1531_v1 = vld [vmem:[%s8211_s18 + $0x18] sm:$0xe]  ;;  %v8062_v2 = vld [vmem:[%s8211_s18 + $0x90] sm:$0xff]  }
  0x9b   : > { %7596 = vmatpush3.bf16.msra.mxu0 %v8057_v14  ;;  %v1107_v12 = vrot.slane %v1105_v3, 4  ;;  %v1116_v14 = vshrl.u32 %v749_v5, 16  ;;  %v6279_v16 = vcombine.low %v1080_v6, %v1090_v11  ;;  %v1135_v23 = vshll.u32 %v751_v10, 16  ;;  %v1532_v3 = vld [vmem:[%s8211_s18 + $0x1c] sm:$0xf] }
  0x9c   : > { %7597 = vmatprep.subr.bf16.mxu0 %v8061_v36  ;;  %v1099_v25 = vrot.slane %v1098_v17, 4  ;;  %v1121_v26 = vrot.slane %v1119_v19, 5  ;;  %v1127_v28 = vrot.slane %v1125_v20, 5  ;;  %v1131_v31 = vrot.slane %v1129_v47, 4  ;;  %v1533_v18 = vld [vmem:[%s8211_s18 + $0x20] sm:$0x1] }
  0x9d   : > { %v1108_v21 = vor.u32 %v1107_v12, %v1103_v8  ;;  %v1118_v22 = vrot.slane %v1116_v14, 4  ;;  %v1137_v32 = vrot.slane %v1135_v23, 5  ;;  %v6290_v42 = vrot.slane %v1525_v37, 9  ;;  %v1534_v10 = vld [vmem:[%s8211_s18 + $0x24] sm:$0xe]  ;;  %v8064_v47 = vld [vmem:[%s8211_s18 + $0x9c] sm:$0xff]  }
  0x9e   : > { %7566 = vmatmul.mubr.bf16.gmra.mrb[8].mxu0 %v8052_v45  ;;  %v1104_v35 = vsel %vm8234_vm2, %v1099_v25, %v1103_v8  ;;  %v1132_v41 = vor.u32 %v1131_v31, %v1127_v28  ;;  %v1626_v43 = vrot.slane %v1526_v38, 5  ;;  %v1629_v46 = vrot.slane %v1527_v39, 5  ;;  %v1535_v11 = vld [vmem:[%s8211_s18 + $0x28] sm:$0xf]  ;;  %v1536_v12 = vld [vmem:[%s8211_s18 + $0x2c] sm:$0x1] }
  0x9f   : > { %7569 = vmatprep.mubr.bf16.mxu0 %v8054_v50  ;;  %7598 = vmatpush3.bf16.msra.mxu0 %v8061_v36  ;;  %v1109_v30 = vrot.slane %v1108_v21, 4  ;;  %v1122_v36 = vor.u32 %v1121_v26, %v1118_v22  ;;  %v6291_v54 = vrot.slane %v1528_v48, 9  ;;  %v1633_v58 = vrot.slane %v1529_v49, 5  ;;  %v8063_v22 = vld [vmem:[%s9334_s1 + $0xc8] sm:$0xff]   ;;  %v1538_v25 = vld [vmem:[%s8211_s18 + $0x34] sm:$0xf] }
  0xa0   : > { %7599 = vmatprep.subr.bf16.mxu0 %v8065_v0  ;;  %7342 = vmatmul.mubr.bf16.gmra.mrb[24].mxu1 %v6279_v16  ;;  %v1133_v50 = vrot.slane %v1132_v41, 4  ;;  %v1627_v51 = vsel %vm8334_vm5, %v6290_v42, %v1626_v43  ;;  %v1628_v52 = vrot.slane %v1626_v43, 4  ;;  %v1636_v59 = vrot.slane %v1530_v53, 5  ;;  %v1539_v26 = vld [vmem:[%s8211_s18 + $0x38] sm:$0x1]  ;;  %v8066_v31 = vld [vmem:[%s8211_s18 + $0xa8] sm:$0xff]  }
  0xa1   : > { %v1114_v40 = vsel %vm8234_vm2, %v1109_v30, %v1113_v13  ;;  %v1123_v45 = vrot.slane %v1122_v36, 4  ;;  %v6292_v5 = vrot.slane %v1531_v1, 9  ;;  %v1640_v6 = vrot.slane %v1532_v3, 5  ;;  %v1542_v36 = vld [vmem:[%s8211_s18 + $0x44] sm:$0x1]  ;;  %v8068_v48 = vld [vmem:[%s8211_s18 + $0xb4] sm:$0xff]  }
  0xa2   : > { %v6280_v44 = vcombine.low %v1104_v35, %v1114_v40  ;;  %v1138_v60 = vsel %vm8234_vm2, %v1133_v50, %v1137_v32  ;;  %v1630_v61 = vsel %vm8334_vm5, %v1628_v52, %v1629_v46  ;;  %v1643_v7 = vrot.slane %v1533_v18, 5  ;;  %v1540_v32 = vld [vmem:[%s8211_s18 + $0x3c] sm:$0xe]  ;;  %v1541_v35 = vld [vmem:[%s8211_s18 + $0x40] sm:$0xf]  ;;  %v8067_v40 = vld [vmem:[%s9334_s1 + $0xd0] sm:$0xff]  }
  0xa3   : > { %7600 = vmatpush3.bf16.msra.mxu0 %v8065_v0  ;;  %v1128_v57 = vsel %vm8234_vm2, %v1123_v45, %v1127_v28  ;;  %v6322_v63 = vcombine.low %v1627_v51, %v1630_v61  ;;  %v1635_v0 = vrot.slane %v1633_v58, 4  ;;  %v1634_v8 = vsel %vm8334_vm5, %v6291_v54, %v1633_v58  ;;  %v1544_v49 = vld [vmem:[%s8211_s18 + $0x4c] sm:$0xf]  ;;  %v1545_v50 = vld [vmem:[%s8211_s18 + $0x50] sm:$0x1]  ;;  %v8071_v52 = vld [vmem:[%s9334_s1 + $0xd8] sm:$0xff]  }
  0xa4   : > { %7601 = vmatprep.subr.bf16.mxu0 %v8069_v15  ;;  %7345 = vmatprep.mubr.bf16.mxu1 %v6280_v44  ;;  %v6281_v62 = vcombine.low %v1128_v57, %v1138_v60  ;;  %v1641_v13 = vsel %vm8334_vm5, %v6292_v5, %v1640_v6  ;;  %v1642_v14 = vrot.slane %v1640_v6, 4  ;;  %v6293_v16 = vrot.slane %v1534_v10, 9  ;;  %v1543_v44 = vld [vmem:[%s8211_s18 + $0x48] sm:$0xe]  ;;  %v1546_v57 = vld [vmem:[%s8211_s18 + $0x54] sm:$0xe] }
  0xa5   : > { %v1637_v9 = vsel %vm8334_vm5, %v1635_v0, %v1636_v59  ;;  %v1650_v21 = vrot.slane %v1536_v12, 5  ;;  %v1657_v30 = vrot.slane %v1539_v26, 5  ;;  %v1661_v39 = vrot.slane %v1541_v35, 5  ;;  %v1547_v58 = vld [vmem:[%s8211_s18 + $0x58] sm:$0xf]  ;;  %v8070_v61 = vld [vmem:[%s8211_s18 + $0xc0] sm:$0xff]  }
  0xa6   : > { %7570 = vmatmul.mubr.bf16.gmra.mrb[12].mxu0 %v8056_v24  ;;  %v6323_v17 = vcombine.low %v1634_v8, %v1637_v9  ;;  %v1644_v19 = vsel %vm8334_vm5, %v1642_v14, %v1643_v7  ;;  %v1537_v24 = vld [vmem:[%s8211_s18 + $0x30] sm:$0xe]  ;;  %v6295_v42 = vrot.slane %v1540_v32, 9  ;;  %v1664_v43 = vrot.slane %v1542_v36, 5  ;;  %v1548_v59 = vld [vmem:[%s8211_s18 + $0x5c] sm:$0x1] }
  0xa7   : > { %7573 = vmatprep.mubr.bf16.mxu0 %v8058_v29  ;;  %7602 = vmatpush3.bf16.msra.mxu0 %v8069_v15  ;;  %v1647_v15 = vrot.slane %v1535_v11, 5  ;;  %v6324_v23 = vcombine.low %v1641_v13, %v1644_v19  ;;  %v6294_v28 = vrot.slane %v1537_v24, 9  ;;  %v1654_v29 = vrot.slane %v1538_v25, 5  ;;  %v8074_v6 = vld [vmem:[%s9334_s1 + $0xe0] sm:$0xff]   ;;  %v1551_v11 = vld [vmem:[%s8211_s18 + $0x68] sm:$0x1] }
  0xa8   : > { %7603 = vmatprep.subr.bf16.mxu0 %v8073_v34  ;;  %7346 = vmatmul.mubr.bf16.gmra.mrb[28].mxu1 %v6281_v62  ;;  %v1663_v46 = vrot.slane %v1661_v39, 4  ;;  %v6296_v51 = vrot.slane %v1543_v44, 9  ;;  %v1668_v54 = vrot.slane %v1544_v49, 5  ;;  %v6297_v62 = vrot.slane %v1546_v57, 9  ;;  %v1549_v7 = vld [vmem:[%s8211_s18 + $0x60] sm:$0xe] }
  0xa9   : > { %7365 = vmatprep.mubr.bf16.mxu1 %v6322_v63  ;;  %v1649_v20 = vrot.slane %v1647_v15, 4  ;;  %v1648_v37 = vsel %vm8334_vm5, %v6293_v16, %v1647_v15  ;;  %v1675_v63 = vrot.slane %v1547_v58, 5  ;;  %v1662_v0 = vsel %vm8334_vm5, %v6295_v42, %v1661_v39  ;;  %v1550_v8 = vld [vmem:[%s8211_s18 + $0x64] sm:$0xf]  ;;  %v6682_v13 = vld [vmem:[%s8211_s18 + $0x18] sm:$0xf] }
  0xaa   : > { %v1670_v60 = vrot.slane %v1668_v54, 4  ;;  %v1665_v1 = vsel %vm8334_vm5, %v1663_v46, %v1664_v43  ;;  %v1669_v3 = vsel %vm8334_vm5, %v6296_v51, %v1668_v54  ;;  %v1682_v12 = vrot.slane %v1550_v8, 5  ;;  %v8072_v16 = vld [vmem:[%s8211_s18 + $0xcc] sm:$0xff]   ;;  %v6683_v19 = vld [vmem:[%s8211_s18 + $0x1c] sm:$0xf] }
  0xab   : > { %7604 = vmatpush3.bf16.msra.mxu0 %v8073_v34  ;;  %v1656_v34 = vrot.slane %v1654_v29, 4  ;;  %v1651_v38 = vsel %vm8334_vm5, %v1649_v20, %v1650_v21  ;;  %v1677_v5 = vrot.slane %v1675_v63, 4  ;;  %v6327_v9 = vcombine.low %v1662_v0, %v1665_v1  ;;  %v6684_v20 = vld [vmem:[%s8211_s18 + $0x20] sm:$0x1]  ;;  %v1552_v26 = vld [vmem:[%s8211_s18 + $0x6c] sm:$0xe] }
  0xac   : > { %7637 = vmatprep.subr.bf16.mxu0 %v8690_v56  ;;  %v6325_v45 = vcombine.low %v1648_v37, %v1651_v38  ;;  %v8763_v10 = vsel %vm8334_vm5, %v6297_v62, %v1675_v63  ;;  %v4485_v21 = vshrl.u32 %v6682_v13, 16  ;;  %v4488_v24 = vshll.u32 %v6682_v13, 16  ;;  %v1554_v36 = vld [vmem:[%s8211_s18 + $0x74] sm:$0x1]  ;;  %v6685_v46 = vld [vmem:[%s8211_s18 + $0x24] sm:$0xf] }
  0xad   : > { %v1658_v41 = vsel %vm8334_vm5, %v1656_v34, %v1657_v30  ;;  %v4494_v25 = vshll.u32 %v6683_v19, 16  ;;  %v4504_v30 = vshll.u32 %v6684_v20, 16  ;;  %v6299_v32 = vrot.slane %v1552_v26, 9  ;;  %v6687_v51 = vld [vmem:[%s8211_s18 + $0x2c] sm:$0x1] }
  0xae   : > { %7574 = vmatmul.mubr.bf16.gmra.mrb[16].mxu0 %v8060_v55  ;;  %v1671_v55 = vrot.slane %v1545_v50, 5  ;;  %v4490_v34 = vrot.slane %v4488_v24, 5  ;;  %v6686_v50 = vld [vmem:[%s8211_s18 + $0x28] sm:$0xf]  ;;  %v1557_v8 = vld [vmem:[%s8211_s18 + $0x80] sm:$0x1] }
  0xaf   : > { %7577 = vmatprep.mubr.bf16.mxu0 %v8062_v2  ;;  %v1678_v2 = vrot.slane %v1548_v59, 5  ;;  %v4496_v35 = vrot.slane %v4494_v25, 5  ;;  %v4506_v44 = vrot.slane %v4504_v30, 5  ;;  %v4518_v57 = vshll.u32 %v6686_v50, 16  ;;  %v6690_v20 = vld [vmem:[%s8211_s18 + $0x38] sm:$0x1] }
  0xb0   : > { %7366 = vmatmul.mubr.bf16.vlgmr.msra.gmra.mrb[0].mxu1 %v6323_v17  ;;  %v1672_v18 = vsel %vm8334_vm5, %v1670_v60, %v1671_v55  ;;  %v6298_v17 = vrot.slane %v1549_v7, 9  ;;  %v4522_v58 = vshrl.u32 %v6686_v50, 16  ;;  %v1556_v7 = vld [vmem:[%s8211_s18 + $0x7c] sm:$0xf]  ;;  %v1558_v26 = vld [vmem:[%s8211_s18 + $0x84] sm:$0xe] }
  0xb1   : > { %7398 = vmatpush3.bf16.msra.mxu1 %v8580_v27  ;;  %7369 = vmatprep.mubr.bf16.mxu1 %v6324_v23  ;;  %v1655_v27 = vsel %vm8334_vm5, %v6294_v28, %v1654_v29  ;;  %v6328_v14 = vcombine.low %v1669_v3, %v1672_v18  ;;  %v8769_v15 = vsel %vm8334_vm5, %v1677_v5, %v1678_v2  ;;  %v1685_v23 = vrot.slane %v1551_v11, 5  ;;  %v1555_v3 = vld [vmem:[%s8211_s18 + $0x78] sm:$0xe] }
  0xb2   : > { %7399 = vmatprep.subr.bf16.mxu1 %v8063_v22  ;;  %v6326_v53 = vcombine.low %v1655_v27, %v1658_v41  ;;  %v4487_v28 = vrot.slane %v4485_v21, 4  ;;  %v4498_v29 = vshrl.u32 %v6683_v19, 16  ;;  %v6329_v38 = vcombine.low %v8763_v10, %v8769_v15  ;;  %v8078_v41 = vld [vmem:[%s9334_s1 + $0xf0] sm:$0xff]   ;;  %v8080_v10 = vld [vmem:[%s9334_s1 + $0xf8] sm:$0xff]  }
  0xb3   : > { %v1683_v39 = vsel %vm8334_vm5, %v6298_v17, %v1682_v12  ;;  %v1692_v27 = vrot.slane %v1554_v36, 5  ;;  %v4520_v0 = vrot.slane %v4518_v57, 5  ;;  %v4524_v1 = vrot.slane %v4522_v58, 4  ;;  %v6688_v15 = vld [vmem:[%s8211_s18 + $0x30] sm:$0xf] }
  0xb4   : > { %v4491_v43 = vor.u32 %v4490_v34, %v4487_v28  ;;  %v4528_v2 = vshll.u32 %v6687_v51, 16  ;;  %v1699_v19 = vrot.slane %v1557_v8, 5  ;;  %v4533_v21 = vshrl.u32 %v6688_v15, 16 }
  0xb5   : > { %7400 = vmatpush3.bf16.msra.mxu1 %v8063_v22  ;;  %v8076_v22 = vld [vmem:[%s9334_s1 + $0xe8] sm:$0xff]  }
  0xb6   : > { %7578 = vmatmul.mubr.bf16.gmra.mrb[20].mxu0 %v8064_v47  ;;  %7401 = vmatprep.subr.bf16.mxu1 %v8067_v40  ;;  %v1684_v47 = vrot.slane %v1682_v12, 4  ;;  %v4492_v54 = vrot.slane %v4491_v43, 4  ;;  %v4525_v12 = vor.u32 %v4524_v1, %v4520_v0  ;;  %v4530_v13 = vrot.slane %v4528_v2, 5  ;;  %v6691_v43 = vld [vmem:[%s8211_s18 + $0x3c] sm:$0xf] }
  0xb7   : > { %7581 = vmatprep.mubr.bf16.mxu0 %v8066_v31  ;;  %v1553_v31 = vld [vmem:[%s8211_s18 + $0x70] sm:$0xf] }
  0xb8   : > { %7370 = vmatmul.mubr.bf16.gmra.mrb[4].mxu1 %v6325_v45  ;;  %v1689_v37 = vrot.slane %v1553_v31, 5  ;;  %v1686_v42 = vsel %vm8334_vm5, %v1684_v47, %v1685_v23  ;;  %v4497_v63 = vsel %vm8234_vm2, %v4492_v54, %v4496_v35  ;;  %v4526_v47 = vrot.slane %v4525_v12, 4  ;;  %v8081_v12 = vld [vmem:[%s9334_s1 + $0x218] sm:$0xff]  }
  0xb9   : > { %7373 = vmatprep.mubr.bf16.mxu1 %v6326_v53  ;;  %7402 = vmatpush3.bf16.msra.mxu1 %v8067_v40  ;;  %v4500_v40 = vrot.slane %v4498_v29, 4  ;;  %v4512_v53 = vshll.u32 %v6685_v46, 16  ;;  %v6330_v59 = vcombine.low %v1683_v39, %v1686_v42  ;;  %v4535_v29 = vrot.slane %v4533_v21, 4 }
  0xba   : > { %7403 = vmatprep.subr.bf16.mxu1 %v8071_v52  ;;  %v1691_v45 = vrot.slane %v1689_v37, 4  ;;  %v8792_v49 = vsel %vm8334_vm5, %v6299_v32, %v1689_v37  ;;  %v1559_v32 = vld [vmem:[%s8211_s18 + $0x88] sm:$0xf]  ;;  %v4531_v34 = vsel %vm8234_vm2, %v4526_v47, %v4530_v13  ;;  %v4552_v37 = vshll.u32 %v6690_v20, 16 }
  0xbb   : > { %v4514_v62 = vrot.slane %v4512_v53, 5  ;;  %v4557_v53 = vshrl.u32 %v6691_v43, 16  ;;  %v4560_v54 = vshll.u32 %v6691_v43, 16 }
  0xbc   : > { %v8798_v55 = vsel %vm8334_vm5, %v1691_v45, %v1692_v27  ;;  %v6301_v45 = vrot.slane %v1558_v26, 9 }
  0xbd   : > { %7404 = vmatpush3.bf16.msra.mxu1 %v8071_v52  ;;  %v4509_v52 = vshrl.u32 %v6685_v46, 16  ;;  %v6331_v5 = vcombine.low %v8792_v49, %v8798_v55  ;;  %v1703_v46 = vrot.slane %v1559_v32, 5  ;;  %v6692_v49 = vld [vmem:[%s8211_s18 + $0x40] sm:$0xf] }
  0xbe   : > { %7582 = vmatmul.mubr.bf16.gmra.mrb[24].mxu0 %v8068_v48  ;;  %7405 = vmatprep.subr.bf16.mxu1 %v8074_v6  ;;  %v4501_v48 = vor.u32 %v4500_v40, %v4496_v35  ;;  %v4566_v58 = vshll.u32 %v6692_v49, 16 }
  0xbf   : > { %7585 = vmatprep.mubr.bf16.mxu0 %v8070_v61  ;;  %v4511_v61 = vrot.slane %v4509_v52, 4  ;;  %v6693_v52 = vld [vmem:[%s8211_s18 + $0x44] sm:$0x1]  ;;  %v1704_v55 = vsel %vm8334_vm5, %v6301_v45, %v1703_v46  ;;  %v1705_v57 = vrot.slane %v1703_v46, 4 }
  0xc0   : > { %7374 = vmatmul.mubr.bf16.gmra.mrb[8].mxu1 %v6327_v9  ;;  %v4502_v60 = vrot.slane %v4501_v48, 4  ;;  %v6300_v9 = vrot.slane %v1555_v3, 9  ;;  %v4568_v2 = vrot.slane %v4566_v58, 5  ;;  %v8084_v45 = vld [vmem:[%s9334_s1 + $0x220] sm:$0xff]  }
  0xc1   : > { %7377 = vmatprep.mubr.bf16.mxu1 %v6328_v14  ;;  %7406 = vmatpush3.bf16.msra.mxu1 %v8074_v6  ;;  %v4515_v6 = vor.u32 %v4514_v62, %v4511_v61  ;;  %v1696_v14 = vrot.slane %v1556_v7, 5  ;;  %v4559_v62 = vrot.slane %v4557_v53, 4 }
  0xc2   : > { %7407 = vmatprep.subr.bf16.mxu1 %v8076_v22  ;;  %v4507_v18 = vsel %vm8234_vm2, %v4502_v60, %v4506_v44  ;;  %v4554_v44 = vrot.slane %v4552_v37, 5  ;;  %v8838_v60 = vld [vmem:[%s9334_s1 + $0x100] sm:$0xff]  }
  0xc3   : > { %v6746_v11 = vcombine.low %v4497_v63, %v4507_v18  ;;  %v4516_v17 = vrot.slane %v4515_v6, 4  ;;  %v1697_v23 = vsel %vm8334_vm5, %v6300_v9, %v1696_v14  ;;  %v1698_v24 = vrot.slane %v1696_v14, 4  ;;  %v1562_v9 = vld [vmem:[%s8211_s18 + $0x94] sm:$0xf] }
  0xc4   : > { %v4562_v63 = vrot.slane %v4560_v54, 5  ;;  %v4576_v18 = vshll.u32 %v6693_v52, 16  ;;  %v6699_v54 = vld [vmem:[%s8211_s18 + $0x5c] sm:$0x1] }
  0xc5   : > { %7408 = vmatpush3.bf16.msra.mxu1 %v8076_v22  ;;  %v4536_v22 = vshll.u32 %v6688_v15, 16  ;;  %v4521_v28 = vsel %vm8234_vm2, %v4516_v17, %v4520_v0  ;;  %v1700_v35 = vsel %vm8334_vm5, %v1698_v24, %v1699_v19  ;;  %v8079_v0 = vld [vmem:[%s9334_s1 + $0x210] sm:$0xff]   ;;  %v6694_v17 = vld [vmem:[%s8211_s18 + $0x48] sm:$0xf]  ;;  %v6695_v19 = vld [vmem:[%s8211_s18 + $0x4c] sm:$0xf] }
  0xc6   : > { %7586 = vmatmul.mubr.bf16.gmra.mrb[28].mxu0 %v8072_v16  ;;  %7409 = vmatprep.subr.bf16.mxu1 %v8078_v41  ;;  %v6689_v16 = vld [vmem:[%s8211_s18 + $0x34] sm:$0xf]  ;;  %v6747_v39 = vcombine.low %v4521_v28, %v4531_v34  ;;  %v6332_v40 = vcombine.low %v1697_v23, %v1700_v35  ;;  %v4563_v8 = vor.u32 %v4562_v63, %v4559_v62  ;;  %v4578_v15 = vrot.slane %v4576_v18, 5  ;;  %v1565_v35 = vld [vmem:[%s8211_s18 + $0xa0] sm:$0xf] }
  0xc7   : > { %7605 = vmatprep.mubr.bf16.mxu0 %v6746_v11  ;;  %v4542_v25 = vshll.u32 %v6689_v16, 16  ;;  %v4538_v30 = vrot.slane %v4536_v22, 5  ;;  %v4546_v31 = vshrl.u32 %v6689_v16, 16  ;;  %v1710_v16 = vrot.slane %v1562_v9, 5  ;;  %v6696_v22 = vld [vmem:[%s8211_s18 + $0x50] sm:$0x1] }
  0xc8   : > { %7378 = vmatmul.mubr.bf16.gmra.mrb[12].mxu1 %v6329_v38  ;;  %v1560_v38 = vld [vmem:[%s8211_s18 + $0x8c] sm:$0x1]  ;;  %v4564_v20 = vrot.slane %v4563_v8, 4  ;;  %v4581_v47 = vshrl.u32 %v6694_v17, 16  ;;  %v4584_v23 = vshll.u32 %v6694_v17, 16  ;;  %v4590_v28 = vshll.u32 %v6695_v19, 16 }
  0xc9   : > { %7381 = vmatprep.mubr.bf16.mxu1 %v6330_v59  ;;  %7410 = vmatpush3.bf16.msra.mxu1 %v8078_v41  ;;  %v4544_v36 = vrot.slane %v4542_v25, 5  ;;  %v4539_v27 = vor.u32 %v4538_v30, %v4535_v29  ;;  %v4548_v42 = vrot.slane %v4546_v31, 4  ;;  %v8077_v41 = vld [vmem:[%s9334_s1 + $0x208] sm:$0xff]   ;;  %v1706_v48 = vrot.slane %v1560_v38, 5  ;;  %v1564_v29 = vld [vmem:[%s8211_s18 + $0x9c] sm:$0xe] }
  0xca   : > { %7411 = vmatprep.subr.bf16.mxu1 %v8080_v10  ;;  %v4570_v59 = vshrl.u32 %v6692_v49, 16  ;;  %v1712_v26 = vrot.slane %v1710_v16, 4  ;;  %v4569_v30 = vsel %vm8234_vm2, %v4564_v20, %v4568_v2  ;;  %v4583_v31 = vrot.slane %v4581_v47, 4  ;;  %v6700_v20 = vld [vmem:[%s8211_s18 + $0x60] sm:$0xf] }
  0xcb   : > { %v4540_v50 = vrot.slane %v4539_v27, 4  ;;  %v4549_v51 = vor.u32 %v4548_v42, %v4544_v36  ;;  %v1707_v1 = vsel %vm8334_vm5, %v1705_v57, %v1706_v48  ;;  %v4586_v32 = vrot.slane %v4584_v23, 5  ;;  %v6702_v23 = vld [vmem:[%s8211_s18 + $0x68] sm:$0x1] }
  0xcc   : > { %v4572_v3 = vrot.slane %v4570_v59, 4  ;;  %v6333_v7 = vcombine.low %v1704_v55, %v1707_v1  ;;  %v4594_v34 = vshrl.u32 %v6695_v19, 16  ;;  %v4592_v38 = vrot.slane %v4590_v28, 5 }
  0xcd   : > { %7412 = vmatpush3.bf16.msra.mxu1 %v8080_v10  ;;  %v4545_v61 = vsel %vm8234_vm2, %v4540_v50, %v4544_v36  ;;  %v1563_v10 = vld [vmem:[%s8211_s18 + $0x98] sm:$0x1]  ;;  %v4587_v43 = vor.u32 %v4586_v32, %v4583_v31  ;;  %v6303_v48 = vrot.slane %v1564_v29, 9  ;;  %v1717_v49 = vrot.slane %v1565_v35, 5  ;;  %v1570_v31 = vld [vmem:[%s8211_s18 + $0xb4] sm:$0xe] }
  0xce   : > { %7606 = vmatmul.mubr.bf16.vlgmr.msra.gmra.mrb[0].mxu0 %v6747_v39  ;;  %7685 = vmatprep.subr.bf16.mxu1 %v8838_v60  ;;  %v4573_v14 = vor.u32 %v4572_v3, %v4568_v2  ;;  %v1713_v21 = vrot.slane %v1563_v10, 5  ;;  %v4600_v39 = vshll.u32 %v6696_v22, 16  ;;  %v8087_v2 = vld [vmem:[%s9334_s1 + $0x228] sm:$0xff]  }
  0xcf   : > { %7638 = vmatpush3.bf16.msra.mxu0 %v8690_v56  ;;  %v4550_v56 = vrot.slane %v4549_v51, 4  ;;  %v6698_v51 = vld [vmem:[%s8211_s18 + $0x58] sm:$0xf]  ;;  %v4588_v52 = vrot.slane %v4587_v43, 4  ;;  %v1718_v58 = vsel %vm8334_vm5, %v6303_v48, %v1717_v49  ;;  %v1719_v59 = vrot.slane %v1717_v49, 4 }
  0xd0   : > { %7382 = vmatmul.mubr.bf16.gmra.mrb[16].mxu1 %v6331_v5  ;;  %7639 = vmatprep.subr.bf16.mxu0 %v8077_v41  ;;  %v1561_v5 = vld [vmem:[%s8211_s18 + $0x90] sm:$0xe]  ;;  %v4574_v24 = vrot.slane %v4573_v14, 4  ;;  %v1714_v37 = vsel %vm8334_vm5, %v1712_v26, %v1713_v21  ;;  %v4602_v46 = vrot.slane %v4600_v39, 5  ;;  %v6701_v21 = vld [vmem:[%s8211_s18 + $0x64] sm:$0xf] }
  0xd1   : > { %7385 = vmatprep.mubr.bf16.mxu1 %v6332_v40  ;;  %v4555_v6 = vsel %vm8234_vm2, %v4550_v56, %v4554_v44  ;;  %v6302_v11 = vrot.slane %v1561_v5, 9  ;;  %v1566_v40 = vld [vmem:[%s8211_s18 + $0xa4] sm:$0x1]  ;;  %v6697_v44 = vld [vmem:[%s8211_s18 + $0x54] sm:$0xf]  ;;  %v4618_v56 = vshrl.u32 %v6698_v51, 16  ;;  %v4593_v62 = vsel %vm8234_vm2, %v4588_v52, %v4592_v38 }
  0xd2   : > { %v6748_v13 = vcombine.low %v4545_v61, %v4555_v6  ;;  %v4579_v36 = vsel %vm8234_vm2, %v4574_v24, %v4578_v15  ;;  %v1720_v50 = vrot.slane %v1566_v40, 5  ;;  %v4605_v55 = vshrl.u32 %v6697_v44, 16  ;;  %v8090_v14 = vld [vmem:[%s9334_s1 + $0x230] sm:$0xff]   ;;  %v8093_v48 = vld [vmem:[%s9334_s1 + $0x238] sm:$0xff]  }
  0xd3   : > { %7640 = vmatpush3.bf16.msra.mxu0 %v8077_v41  ;;  %v1711_v25 = vsel %vm8334_vm5, %v6302_v11, %v1710_v16  ;;  %v6749_v27 = vcombine.low %v4569_v30, %v4579_v36  ;;  %v4596_v41 = vrot.slane %v4594_v34, 4  ;;  %v4608_v57 = vshll.u32 %v6697_v44, 16  ;;  %v1568_v11 = vld [vmem:[%s8211_s18 + $0xac] sm:$0xf] }
  0xd4   : > { %7641 = vmatprep.subr.bf16.mxu0 %v8079_v0  ;;  %7609 = vmatprep.mubr.bf16.mxu0 %v6748_v13  ;;  %v6334_v42 = vcombine.low %v1711_v25, %v1714_v37  ;;  %v4614_v61 = vshll.u32 %v6698_v51, 16  ;;  %v1721_v3 = vsel %vm8334_vm5, %v1719_v59, %v1720_v50  ;;  %v4620_v5 = vrot.slane %v4618_v56, 4  ;;  %v1571_v37 = vld [vmem:[%s8211_s18 + $0xb8] sm:$0xf] }
  0xd5   : > { %v4597_v53 = vor.u32 %v4596_v41, %v4592_v38  ;;  %v4610_v1 = vrot.slane %v4608_v57, 5  ;;  %v4624_v6 = vshll.u32 %v6699_v54, 16  ;;  %v6335_v9 = vcombine.low %v1718_v58, %v1721_v3  ;;  %v6705_v57 = vld [vmem:[%s8211_s18 + $0x74] sm:$0x1] }
  0xd6   : > { %7610 = vmatmul.mubr.bf16.gmra.mrb[4].mxu0 %v6749_v27  ;;  %v4616_v18 = vrot.slane %v4614_v61, 5  ;;  %v1724_v19 = vrot.slane %v1568_v11, 5  ;;  %v4629_v24 = vshrl.u32 %v6700_v20, 16  ;;  %v4632_v25 = vshll.u32 %v6700_v20, 16 }
  0xd7   : > { %7642 = vmatpush3.bf16.msra.mxu0 %v8079_v0  ;;  %v4598_v63 = vrot.slane %v4597_v53, 4  ;;  %v4607_v0 = vrot.slane %v4605_v55, 4  ;;  %v4626_v17 = vrot.slane %v4624_v6, 5  ;;  %v4638_v30 = vshll.u32 %v6701_v21, 16  ;;  %v6704_v53 = vld [vmem:[%s8211_s18 + $0x70] sm:$0xf] }
  0xd8   : > { %7386 = vmatmul.mubr.bf16.gmra.mrb[20].mxu1 %v6333_v7  ;;  %7643 = vmatprep.subr.bf16.mxu0 %v8081_v12  ;;  %v1567_v7 = vld [vmem:[%s8211_s18 + $0xa8] sm:$0xe]  ;;  %v4621_v16 = vor.u32 %v4620_v5, %v4616_v18  ;;  %v1726_v29 = vrot.slane %v1724_v19, 4  ;;  %v4631_v34 = vrot.slane %v4629_v24, 4  ;;  %v4634_v35 = vrot.slane %v4632_v25, 5 }
  0xd9   : > { %7389 = vmatprep.mubr.bf16.mxu1 %v6334_v42  ;;  %v4603_v8 = vsel %vm8234_vm2, %v4598_v63, %v4602_v46  ;;  %v4611_v10 = vor.u32 %v4610_v1, %v4607_v0  ;;  %v6304_v13 = vrot.slane %v1567_v7, 9  ;;  %v4642_v36 = vshrl.u32 %v6701_v21, 16  ;;  %v1572_v42 = vld [vmem:[%s8211_s18 + $0xbc] sm:$0x1]  ;;  %v6703_v46 = vld [vmem:[%s8211_s18 + $0x6c] sm:$0xf] }
  0xda   : > { %v6750_v15 = vcombine.low %v4593_v62, %v4603_v8  ;;  %v4622_v26 = vrot.slane %v4621_v16, 4  ;;  %v4640_v40 = vrot.slane %v4638_v30, 5  ;;  %v4648_v27 = vshll.u32 %v6702_v23, 16  ;;  %v8082_v8 = vld [vmem:[%s8211_s18 + $0xc] sm:$0xff]  }
  0xdb   : > { %7644 = vmatpush3.bf16.msra.mxu0 %v8081_v12  ;;  %v1569_v12 = vld [vmem:[%s8211_s18 + $0xb0] sm:$0x1]  ;;  %v4612_v22 = vrot.slane %v4611_v10, 4  ;;  %v1725_v28 = vsel %vm8334_vm5, %v6304_v13, %v1724_v19  ;;  %v4635_v44 = vor.u32 %v4634_v35, %v4631_v34  ;;  %v6305_v50 = vrot.slane %v1570_v31, 9  ;;  %v6707_v13 = vld [vmem:[%s8211_s18 + $0x7c] sm:$0xf] }
  0xdc   : > { %7645 = vmatprep.subr.bf16.mxu0 %v8084_v45  ;;  %v1727_v47 = vrot.slane %v1569_v12, 5  ;;  %7613 = vmatprep.mubr.bf16.mxu0 %v6750_v15  ;;  %v4627_v38 = vsel %vm8234_vm2, %v4622_v26, %v4626_v17  ;;  %v4650_v49 = vrot.slane %v4648_v27, 5  ;;  %v1731_v51 = vrot.slane %v1571_v37, 5  ;;  %v6706_v12 = vld [vmem:[%s8211_s18 + $0x78] sm:$0xf] }
  0xdd   : > { %v4617_v32 = vsel %vm8234_vm2, %v4612_v22, %v4616_v18  ;;  %v1734_v52 = vrot.slane %v1572_v42, 5  ;;  %v4636_v54 = vrot.slane %v4635_v44, 4  ;;  %v4653_v58 = vshrl.u32 %v6703_v46, 16  ;;  %v6708_v17 = vld [vmem:[%s8211_s18 + $0x80] sm:$0x1] }
  0xde   : > { %v1728_v39 = vsel %vm8334_vm5, %v1726_v29, %v1727_v47  ;;  %v6751_v43 = vcombine.low %v4617_v32, %v4627_v38  ;;  %v4656_v59 = vshll.u32 %v6703_v46, 16  ;;  %v1732_v61 = vsel %vm8334_vm5, %v6305_v50, %v1731_v51  ;;  %v6709_v26 = vld [vmem:[%s8211_s18 + $0x84] sm:$0xf]  ;;  %v6710_v32 = vld [vmem:[%s8211_s18 + $0x88] sm:$0xf] }
  0xdf   : > { %7646 = vmatpush3.bf16.msra.mxu0 %v8084_v45  ;;  %v6336_v41 = vcombine.low %v1725_v28, %v1728_v39  ;;  %v4644_v45 = vrot.slane %v4642_v36, 4  ;;  %v1733_v56 = vrot.slane %v1731_v51, 4  ;;  %v4662_v62 = vshll.u32 %v6704_v53, 16  ;;  %v8083_v36 = vld [vmem:[%s8211_s18 + $0x18] sm:$0xff]   ;;  %v6711_v37 = vld [vmem:[%s8211_s18 + $0x8c] sm:$0x1] }
  0xe0   : > { %7390 = vmatmul.mubr.bf16.gmra.mrb[24].mxu1 %v6335_v9  ;;  %7647 = vmatprep.subr.bf16.mxu0 %v8087_v2  ;;  %v4666_v63 = vshrl.u32 %v6704_v53, 16  ;;  %v4641_v0 = vsel %vm8234_vm2, %v4636_v54, %v4640_v40  ;;  %v4658_v3 = vrot.slane %v4656_v59, 5  ;;  %v4672_v7 = vshll.u32 %v6705_v57, 16  ;;  %v6713_v57 = vld [vmem:[%s8211_s18 + $0x94] sm:$0xf] }
  0xe1   : > { %7614 = vmatmul.mubr.bf16.gmra.mrb[8].mxu0 %v6751_v43  ;;  %7393 = vmatprep.mubr.bf16.mxu1 %v6336_v41  ;;  %v4645_v55 = vor.u32 %v4644_v45, %v4640_v40  ;;  %v1735_v18 = vsel %vm8334_vm5, %v1733_v56, %v1734_v52  ;;  %v4664_v5 = vrot.slane %v4662_v62, 5  ;;  %v4677_v19 = vshrl.u32 %v6706_v12, 16  ;;  %v8085_v41 = vld [vmem:[%s8211_s18 + $0x24] sm:$0xff]  }
  0xe2   : > { %v4668_v6 = vrot.slane %v4666_v63, 4  ;;  %v6337_v10 = vcombine.low %v1732_v61, %v1735_v18  ;;  %v4674_v16 = vrot.slane %v4672_v7, 5  ;;  %v4680_v21 = vshll.u32 %v6706_v12, 16  ;;  %v6714_v61 = vld [vmem:[%s8211_s18 + $0x98] sm:$0x1] }
  0xe3   : > { %7648 = vmatpush3.bf16.msra.mxu0 %v8087_v2  ;;  %v4646_v1 = vrot.slane %v4645_v55, 4  ;;  %v4655_v2 = vrot.slane %v4653_v58, 4  ;;  %v4686_v22 = vshll.u32 %v6707_v13, 16  ;;  %v4690_v47 = vshrl.u32 %v6707_v13, 16  ;;  %v6712_v55 = vld [vmem:[%s8211_s18 + $0x90] sm:$0xf] }
  0xe4   : > { %7649 = vmatprep.subr.bf16.mxu0 %v8090_v14  ;;  %v4669_v15 = vor.u32 %v4668_v6, %v4664_v5  ;;  %v4679_v24 = vrot.slane %v4677_v19, 4  ;;  %v4696_v25 = vshll.u32 %v6708_v17, 16  ;;  %v4682_v29 = vrot.slane %v4680_v21, 5  ;;  %v6717_v12 = vld [vmem:[%s8211_s18 + $0xa4] sm:$0x1]  ;;  %v8086_v17 = vld [vmem:[%s8211_s18 + $0x30] sm:$0xff]  }
  0xe5   : > { %v4651_v9 = vsel %vm8234_vm2, %v4646_v1, %v4650_v49  ;;  %v4659_v11 = vor.u32 %v4658_v3, %v4655_v2  ;;  %v4688_v30 = vrot.slane %v4686_v22, 5  ;;  %v4692_v31 = vrot.slane %v4690_v47, 4  ;;  %v6715_v3 = vld [vmem:[%s8211_s18 + $0x9c] sm:$0xf] }
  0xe6   : > { %v4670_v23 = vrot.slane %v4669_v15, 4  ;;  %v4698_v35 = vrot.slane %v4696_v25, 5  ;;  %v4701_v38 = vshrl.u32 %v6709_v26, 16  ;;  %v4704_v39 = vshll.u32 %v6709_v26, 16 }
  0xe7   : > { %7650 = vmatpush3.bf16.msra.mxu0 %v8090_v14  ;;  %v6752_v14 = vcombine.low %v4641_v0, %v4651_v9  ;;  %v4660_v20 = vrot.slane %v4659_v11, 4  ;;  %v4683_v27 = vor.u32 %v4682_v29, %v4679_v24  ;;  %v4693_v42 = vor.u32 %v4692_v31, %v4688_v30  ;;  %v6716_v9 = vld [vmem:[%s8211_s18 + $0xa0] sm:$0xf]  ;;  %v8104_v29 = vld [vmem:[%s9334_s1 + $0x110] sm:$0xff]  }
  0xe8   : > { %7651 = vmatprep.subr.bf16.mxu0 %v8093_v48  ;;  %7394 = vmatmul.mubr.bf16.gmra.mrb[28].mxu1 %v6337_v10  ;;  %v4675_v34 = vsel %vm8234_vm2, %v4670_v23, %v4674_v16  ;;  %v4710_v43 = vshll.u32 %v6710_v32, 16  ;;  %v4703_v44 = vrot.slane %v4701_v38, 4  ;;  %v4706_v45 = vrot.slane %v4704_v39, 5  ;;  %v8088_v23 = vld [vmem:[%s8211_s18 + $0x3c] sm:$0xff]   ;;  %v6719_v38 = vld [vmem:[%s8211_s18 + $0xac] sm:$0xf] }
  0xe9   : > { %7617 = vmatprep.mubr.bf16.mxu0 %v6752_v14  ;;  %7413 = vmatprep.mubr.bf16.mxu1 %v8082_v8  ;;  %v4665_v28 = vsel %vm8234_vm2, %v4660_v20, %v4664_v5  ;;  %v4714_v46 = vshrl.u32 %v6710_v32, 16  ;;  %v4684_v49 = vrot.slane %v4683_v27, 4  ;;  %v4694_v50 = vrot.slane %v4693_v42, 4  ;;  %v8103_v8 = vld [vmem:[%s9334_s1 + $0x108] sm:$0xff]   ;;  %v6720_v39 = vld [vmem:[%s8211_s18 + $0xb0] sm:$0x1] }
  0xea   : > { %v6753_v40 = vcombine.low %v4665_v28, %v4675_v34  ;;  %v4712_v51 = vrot.slane %v4710_v43, 5  ;;  %v4707_v52 = vor.u32 %v4706_v45, %v4703_v44  ;;  %v4725_v56 = vshrl.u32 %v6712_v55, 16  ;;  %v6718_v34 = vld [vmem:[%s8211_s18 + $0xa8] sm:$0xf] }
  0xeb   : > { %7652 = vmatpush3.bf16.msra.mxu0 %v8093_v48  ;;  %v4720_v48 = vshll.u32 %v6711_v37, 16  ;;  %v4716_v53 = vrot.slane %v4714_v46, 4  ;;  %v4689_v58 = vsel %vm8234_vm2, %v4684_v49, %v4688_v30  ;;  %v4699_v59 = vsel %vm8234_vm2, %v4694_v50, %v4698_v35  ;;  %v8089_v49 = vld [vmem:[%s8211_s18 + $0x48] sm:$0xff]   ;;  %v8105_v50 = vld [vmem:[%s9334_s1 + $0x118] sm:$0xff]  }
  0xec   : > { %7618 = vmatmul.mubr.bf16.gmra.mrb[12].mxu0 %v6753_v40  ;;  %v4728_v62 = vshll.u32 %v6712_v55, 16  ;;  %v6754_v63 = vcombine.low %v4689_v58, %v4699_v59  ;;  %v4708_v0 = vrot.slane %v4707_v52, 4  ;;  %v4734_v2 = vshll.u32 %v6713_v57, 16  ;;  %v6721_v55 = vld [vmem:[%s8211_s18 + $0xb4] sm:$0xf] }
  0xed   : > { %v4722_v54 = vrot.slane %v4720_v48, 5  ;;  %v4717_v1 = vor.u32 %v4716_v53, %v4712_v51  ;;  %v4727_v18 = vrot.slane %v4725_v56, 4  ;;  %v4738_v6 = vshrl.u32 %v6713_v57, 16  ;;  %v8091_v57 = vld [vmem:[%s8211_s18 + $0x54] sm:$0xff]  }
  0xee   : > { %v4730_v5 = vrot.slane %v4728_v62, 5  ;;  %v4744_v7 = vshll.u32 %v6714_v61, 16  ;;  %7621 = vmatprep.mubr.bf16.mxu0 %v6754_v63  ;;  %v4713_v10 = vsel %vm8234_vm2, %v4708_v0, %v4712_v51  ;;  %v4736_v11 = vrot.slane %v4734_v2, 5  ;;  %v6722_v56 = vld [vmem:[%s8211_s18 + $0xb8] sm:$0xf] }
  0xef   : > { %v4749_v13 = vshrl.u32 %v6715_v3, 16  ;;  %v4740_v15 = vrot.slane %v4738_v6, 4  ;;  %v4752_v19 = vshll.u32 %v6715_v3, 16  ;;  %v4758_v22 = vshll.u32 %v6716_v9, 16  ;;  %v6723_v62 = vld [vmem:[%s8211_s18 + $0xbc] sm:$0x1] }
  0xf0   : > { %7414 = vmatmul.mubr.bf16.vlgmr.msra.gmra.mrb[0].mxu1 %v8083_v36  ;;  %v4731_v14 = vor.u32 %v4730_v5, %v4727_v18  ;;  %v4746_v16 = vrot.slane %v4744_v7, 5  ;;  %v4762_v47 = vshrl.u32 %v6716_v9, 16  ;;  %v4768_v32 = vshll.u32 %v6717_v12, 16  ;;  %v8106_v7 = vld [vmem:[%s9334_s1 + $0x120] sm:$0xff]  }
  0xf1   : > { %7693 = vmatpush3.bf16.msra.mxu1 %v8838_v60  ;;  %7417 = vmatprep.mubr.bf16.mxu1 %v8085_v41  ;;  %v4718_v60 = vrot.slane %v4717_v1, 4  ;;  %v4751_v21 = vrot.slane %v4749_v13, 4  ;;  %v4741_v26 = vor.u32 %v4740_v15, %v4736_v11  ;;  %v4754_v28 = vrot.slane %v4752_v19, 5  ;;  %v6725_v15 = vld [vmem:[%s8211_s18 + $0xc4] sm:$0xf] }
  0xf2   : > { %7686 = vmatprep.subr.bf16.mxu1 %v8103_v8  ;;  %v4732_v25 = vrot.slane %v4731_v14, 4  ;;  %v4760_v30 = vrot.slane %v4758_v22, 5  ;;  %v4764_v31 = vrot.slane %v4762_v47, 4  ;;  %v4773_v40 = vshrl.u32 %v6718_v34, 16 }
  0xf3   : > { %v4723_v20 = vsel %vm8234_vm2, %v4718_v60, %v4722_v54  ;;  %v4742_v36 = vrot.slane %v4741_v26, 4  ;;  %v4755_v37 = vor.u32 %v4754_v28, %v4751_v21  ;;  %v4770_v42 = vrot.slane %v4768_v32, 5  ;;  %v6726_v21 = vld [vmem:[%s8211_s18 + $0xc8] sm:$0x1]  ;;  %v8092_v26 = vld [vmem:[%s8211_s18 + $0x60] sm:$0xff]  }
  0xf4   : > { %v6755_v24 = vcombine.low %v4713_v10, %v4723_v20  ;;  %v4737_v35 = vsel %vm8234_vm2, %v4732_v25, %v4736_v11  ;;  %v4765_v27 = vor.u32 %v4764_v31, %v4760_v30  ;;  %v4776_v43 = vshll.u32 %v6718_v34, 16  ;;  %v6724_v11 = vld [vmem:[%s8211_s18 + $0xc0] sm:$0xf]  ;;  %v8107_v28 = vld [vmem:[%s9334_s1 + $0x128] sm:$0xff]  }
  0xf5   : > { %7694 = vmatpush3.bf16.msra.mxu1 %v8103_v8  ;;  %v4782_v41 = vshll.u32 %v6719_v38, 16  ;;  %v4747_v44 = vsel %vm8234_vm2, %v4742_v36, %v4746_v16  ;;  %v4756_v45 = vrot.slane %v4755_v37, 4  ;;  %v4775_v46 = vrot.slane %v4773_v40, 4  ;;  %v6727_v34 = vld [vmem:[%s8211_s18 + $0xcc] sm:$0xf] }
  0xf6   : > { %7687 = vmatprep.subr.bf16.mxu1 %v8104_v29  ;;  %7622 = vmatmul.mubr.bf16.gmra.mrb[16].mxu0 %v6755_v24  ;;  %v4786_v48 = vshrl.u32 %v6719_v38, 16  ;;  %v6756_v51 = vcombine.low %v4737_v35, %v4747_v44  ;;  %v4766_v52 = vrot.slane %v4765_v27, 4  ;;  %v4778_v53 = vrot.slane %v4776_v43, 5  ;;  %v6728_v35 = vld [vmem:[%s8211_s18 + $0xd0] sm:$0xf] }
  0xf7   : > { %v4784_v54 = vrot.slane %v4782_v41, 5  ;;  %v4761_v58 = vsel %vm8234_vm2, %v4756_v45, %v4760_v30  ;;  %v4792_v61 = vshll.u32 %v6720_v39, 16  ;;  %v4797_v1 = vshrl.u32 %v6721_v55, 16  ;;  %v8094_v36 = vld [vmem:[%s8211_s18 + $0x6c] sm:$0xff]   ;;  %v6729_v40 = vld [vmem:[%s8211_s18 + $0xd4] sm:$0x1] }
  0xf8   : > { %7418 = vmatmul.mubr.bf16.gmra.mrb[4].mxu1 %v8086_v17  ;;  %v4788_v59 = vrot.slane %v4786_v48, 4  ;;  %7625 = vmatprep.mubr.bf16.mxu0 %v6756_v51  ;;  %v4771_v63 = vsel %vm8234_vm2, %v4766_v52, %v4770_v42  ;;  %v4779_v0 = vor.u32 %v4778_v53, %v4775_v46  ;;  %v4800_v2 = vshll.u32 %v6721_v55, 16 }
  0xf9   : > { %7421 = vmatprep.mubr.bf16.mxu1 %v8088_v23  ;;  %7695 = vmatpush3.bf16.msra.mxu1 %v8104_v29  ;;  %v6757_v3 = vcombine.low %v4761_v58, %v4771_v63  ;;  %v4794_v5 = vrot.slane %v4792_v61, 5  ;;  %v4806_v6 = vshll.u32 %v6722_v56, 16  ;;  %v4799_v9 = vrot.slane %v4797_v1, 4  ;;  %v6770_v61 = vld [vmem:[%s8211_s18 + $0x18] sm:$0xe] }
  0xfa   : > { %7688 = vmatprep.subr.bf16.mxu1 %v8105_v50  ;;  %v4789_v18 = vor.u32 %v4788_v59, %v4784_v54  ;;  %v4780_v8 = vrot.slane %v4779_v0, 4  ;;  %v4802_v10 = vrot.slane %v4800_v2, 5  ;;  %v4810_v60 = vshrl.u32 %v6722_v56, 16  ;;  %v6771_v56 = vld [vmem:[%s8211_s18 + $0x1c] sm:$0xf] }
  0xfb   : > { %v4808_v13 = vrot.slane %v4806_v6, 5  ;;  %v4816_v14 = vshll.u32 %v6723_v62, 16  ;;  %v4821_v16 = vshrl.u32 %v6724_v11, 16  ;;  %v4824_v22 = vshll.u32 %v6724_v11, 16  ;;  %v6772_v0 = vld [vmem:[%s8211_s18 + $0x20] sm:$0x1] }
  0xfc   : > { %v4790_v12 = vrot.slane %v4789_v18, 4  ;;  %v4785_v17 = vsel %vm8234_vm2, %v4780_v8, %v4784_v54  ;;  %v4803_v19 = vor.u32 %v4802_v10, %v4799_v9  ;;  %v4812_v20 = vrot.slane %v4810_v60, 4  ;;  %v8095_v6 = vld [vmem:[%s8211_s18 + $0x78] sm:$0xff]   ;;  %v6773_v60 = vld [vmem:[%s8211_s18 + $0x24] sm:$0xe] }
  0xfd   : > { %7696 = vmatpush3.bf16.msra.mxu1 %v8105_v50  ;;  %v4818_v23 = vrot.slane %v4816_v14, 5  ;;  %v4823_v24 = vrot.slane %v4821_v16, 4  ;;  %v4830_v25 = vshll.u32 %v6725_v15, 16  ;;  %v4826_v32 = vrot.slane %v4824_v22, 5  ;;  %v8108_v50 = vld [vmem:[%s9334_s1 + $0x130] sm:$0xff]   ;;  %v8096_v16 = vld [vmem:[%s8211_s18 + $0x84] sm:$0xff]  }
  0xfe   : > { %7689 = vmatprep.subr.bf16.mxu1 %v8106_v7  ;;  %7626 = vmatmul.mubr.bf16.gmra.mrb[20].mxu0 %v6757_v3  ;;  %v4795_v47 = vsel %vm8234_vm2, %v4790_v12, %v4794_v5  ;;  %v4804_v30 = vrot.slane %v4803_v19, 4  ;;  %v4813_v31 = vor.u32 %v4812_v20, %v4808_v13  ;;  %v4834_v38 = vshrl.u32 %v6725_v15, 16  ;;  %v6774_v11 = vld [vmem:[%s8211_s18 + $0x28] sm:$0xf]  ;;  %v6775_v15 = vld [vmem:[%s8211_s18 + $0x2c] sm:$0x1] }
  0xff   : > { %v6758_v29 = vcombine.low %v4785_v17, %v4795_v47  ;;  %v4832_v37 = vrot.slane %v4830_v25, 5  ;;  %v4840_v39 = vshll.u32 %v6726_v21, 16  ;;  %v4845_v27 = vshrl.u32 %v6727_v34, 16  ;;  %v6776_v22 = vld [vmem:[%s8211_s18 + $0x30] sm:$0xe] }
 0x100   : > { %7422 = vmatmul.mubr.bf16.gmra.mrb[8].mxu1 %v8089_v49  ;;  %v4809_v42 = vsel %vm8234_vm2, %v4804_v30, %v4808_v13  ;;  %v4814_v43 = vrot.slane %v4813_v31, 4  ;;  %v4827_v41 = vor.u32 %v4826_v32, %v4823_v24  ;;  %v4848_v44 = vshll.u32 %v6727_v34, 16  ;;  %v6777_v25 = vld [vmem:[%s8211_s18 + $0x34] sm:$0xf] }
 0x101   : > { %7425 = vmatprep.mubr.bf16.mxu1 %v8091_v57  ;;  %7697 = vmatpush3.bf16.msra.mxu1 %v8106_v7  ;;  %v4836_v45 = vrot.slane %v4834_v38, 4  ;;  %v4842_v46 = vrot.slane %v4840_v39, 5  ;;  %v4847_v48 = vrot.slane %v4845_v27, 4  ;;  %v4854_v49 = vshll.u32 %v6728_v35, 16  ;;  %v8109_v7 = vld [vmem:[%s9334_s1 + $0x138] sm:$0xff]  }
 0x102   : > { %7690 = vmatprep.subr.bf16.mxu1 %v8107_v28  ;;  %7629 = vmatprep.mubr.bf16.mxu0 %v6758_v29  ;;  %v4819_v51 = vsel %vm8234_vm2, %v4814_v43, %v4818_v23  ;;  %v4828_v52 = vrot.slane %v4827_v41, 4  ;;  %v4850_v53 = vrot.slane %v4848_v44, 5  ;;  %v4858_v54 = vshrl.u32 %v6728_v35, 16  ;;  %v6781_v38 = vld [vmem:[%s8211_s18 + $0x44] sm:$0x1] }
 0x103   : > { %v6759_v55 = vcombine.low %v4809_v42, %v4819_v51  ;;  %v4837_v57 = vor.u32 %v4836_v45, %v4832_v37  ;;  %v4856_v58 = vrot.slane %v4854_v49, 5  ;;  %v4864_v59 = vshll.u32 %v6729_v40, 16  ;;  %v8097_v42 = vld [vmem:[%s8211_s18 + $0x90] sm:$0xff]   ;;  %v6782_v41 = vld [vmem:[%s8211_s18 + $0x48] sm:$0xe] }
 0x104   : > { %v4851_v62 = vor.u32 %v4850_v53, %v4847_v48  ;;  %v4860_v63 = vrot.slane %v4858_v54, 4  ;;  %v6818_v1 = vrot.slane %v6770_v61, 9  ;;  %v4833_v2 = vsel %vm8234_vm2, %v4828_v52, %v4832_v37  ;;  %v6780_v37 = vld [vmem:[%s8211_s18 + $0x40] sm:$0xf]  ;;  %v6783_v49 = vld [vmem:[%s8211_s18 + $0x4c] sm:$0xf] }
 0x105   : > { %7698 = vmatpush3.bf16.msra.mxu1 %v8107_v28  ;;  %v4838_v3 = vrot.slane %v4837_v57, 4  ;;  %v5352_v18 = vrot.slane %v6771_v56, 5  ;;  %v5355_v5 = vrot.slane %v6772_v0, 5  ;;  %v4866_v10 = vrot.slane %v4864_v59, 5  ;;  %v8098_v48 = vld [vmem:[%s8211_s18 + $0x9c] sm:$0xff]  }
 0x106   : > { %7691 = vmatprep.subr.bf16.mxu1 %v8108_v50  ;;  %7630 = vmatmul.mubr.bf16.gmra.mrb[24].mxu0 %v6759_v55  ;;  %v4852_v8 = vrot.slane %v4851_v62, 4  ;;  %v4861_v9 = vor.u32 %v4860_v63, %v4856_v58  ;;  %v5359_v21 = vrot.slane %v6774_v11, 5  ;;  %v6819_v23 = vrot.slane %v6773_v60, 9  ;;  %v6785_v57 = vld [vmem:[%s8211_s18 + $0x54] sm:$0xe] }
 0x107   : > { %v4843_v12 = vsel %vm8234_vm2, %v4838_v3, %v4842_v46  ;;  %v5353_v13 = vsel %vm8334_vm5, %v6818_v1, %v5352_v18  ;;  %v5354_v14 = vrot.slane %v5352_v18, 4  ;;  %v5362_v24 = vrot.slane %v6775_v15, 5  ;;  %v6787_v59 = vld [vmem:[%s8211_s18 + $0x5c] sm:$0x1]  ;;  %v6788_v18 = vld [vmem:[%s8211_s18 + $0x60] sm:$0xe] }
 0x108   : > { %7426 = vmatmul.mubr.bf16.gmra.mrb[12].mxu1 %v8092_v26  ;;  %v6760_v17 = vcombine.low %v4833_v2, %v4843_v12  ;;  %v4857_v19 = vsel %vm8234_vm2, %v4852_v8, %v4856_v58  ;;  %v4862_v20 = vrot.slane %v4861_v9, 4  ;;  %v6778_v26 = vld [vmem:[%s8211_s18 + $0x38] sm:$0x1]  ;;  %v5361_v30 = vrot.slane %v5359_v21, 4  ;;  %v6790_v8 = vld [vmem:[%s8211_s18 + $0x68] sm:$0x1] }
 0x109   : > { %7429 = vmatprep.mubr.bf16.mxu1 %v8094_v36  ;;  %7699 = vmatpush3.bf16.msra.mxu1 %v8108_v50  ;;  %v5356_v47 = vsel %vm8334_vm5, %v5354_v14, %v5355_v5  ;;  %v6820_v31 = vrot.slane %v6776_v22, 9  ;;  %v5366_v34 = vrot.slane %v6777_v25, 5  ;;  %v5369_v35 = vrot.slane %v6778_v26, 5  ;;  %v6779_v36 = vld [vmem:[%s8211_s18 + $0x3c] sm:$0xe]  ;;  %v8099_v15 = vld [vmem:[%s8211_s18 + $0xa8] sm:$0xff]  }
 0x10a   : > { %7692 = vmatprep.subr.bf16.mxu1 %v8109_v7  ;;  %7633 = vmatprep.mubr.bf16.mxu0 %v6760_v17  ;;  %v4867_v28 = vsel %vm8234_vm2, %v4862_v20, %v4866_v10  ;;  %v6850_v29 = vcombine.low %v5353_v13, %v5356_v47  ;;  %v6821_v39 = vrot.slane %v6779_v36, 9  ;;  %v5373_v40 = vrot.slane %v6780_v37, 5  ;;  %v6784_v50 = vld [vmem:[%s8211_s18 + $0x50] sm:$0x1]  ;;  %v6786_v58 = vld [vmem:[%s8211_s18 + $0x58] sm:$0xf] }
 0x10b   : > { %v6761_v32 = vcombine.low %v4857_v19, %v4867_v28  ;;  %v5368_v27 = vrot.slane %v5366_v34, 4  ;;  %v5376_v43 = vrot.slane %v6781_v38, 5  ;;  %v5360_v44 = vsel %vm8334_vm5, %v6819_v23, %v5359_v21  ;;  %v6789_v5 = vld [vmem:[%s8211_s18 + $0x64] sm:$0xf]  ;;  %v6791_v13 = vld [vmem:[%s8211_s18 + $0x6c] sm:$0xe] }
 0x10c   : > { %v5363_v45 = vsel %vm8334_vm5, %v5361_v30, %v5362_v24  ;;  %v5375_v46 = vrot.slane %v5373_v40, 4  ;;  %v6822_v51 = vrot.slane %v6782_v41, 9  ;;  %v5367_v52 = vsel %vm8334_vm5, %v6820_v31, %v5366_v34  ;;  %v6792_v19 = vld [vmem:[%s8211_s18 + $0x70] sm:$0xf]  ;;  %v6793_v20 = vld [vmem:[%s8211_s18 + $0x74] sm:$0x1] }
 0x10d   : > { %7700 = vmatpush3.bf16.msra.mxu1 %v8109_v7  ;;  %v5370_v53 = vsel %vm8334_vm5, %v5368_v27, %v5369_v35  ;;  %v5380_v54 = vrot.slane %v6783_v49, 5  ;;  %v5383_v55 = vrot.slane %v6784_v50, 5  ;;  %v6851_v61 = vcombine.low %v5360_v44, %v5363_v45  ;;  %v8100_v23 = vld [vmem:[%s8211_s18 + $0xb4] sm:$0xff]   ;;  %v6442_v26 = vld [vmem:[%s8211_s18 + $0x6c] sm:$0xf] }
 0x10e   : > { %7634 = vmatmul.mubr.bf16.gmra.mrb[28].mxu0 %v6761_v32  ;;  %v9048_v56 = vsel %vm8334_vm5, %v6821_v39, %v5373_v40  ;;  %v6823_v63 = vrot.slane %v6785_v57, 9  ;;  %v6852_v0 = vcombine.low %v5367_v52, %v5370_v53  ;;  %v9052_v1 = vsel %vm8334_vm5, %v5375_v46, %v5376_v43  ;;  %v6443_v28 = vld [vmem:[%s8211_s18 + $0x70] sm:$0xf]  ;;  %v6444_v31 = vld [vmem:[%s8211_s18 + $0x74] sm:$0x1] }
 0x10f   : > { %7653 = vmatprep.mubr.bf16.mxu0 %v6850_v29  ;;  %v5382_v62 = vrot.slane %v5380_v54, 4  ;;  %v5387_v2 = vrot.slane %v6786_v58, 5  ;;  %v5390_v3 = vrot.slane %v6787_v59, 5  ;;  %v6824_v9 = vrot.slane %v6788_v18, 9  ;;  %v6794_v35 = vld [vmem:[%s8211_s18 + $0x78] sm:$0xe] }
 0x110   : > { %7430 = vmatmul.mubr.bf16.gmra.mrb[16].mxu1 %v8095_v6  ;;  %v9058_v6 = vsel %vm8334_vm5, %v6822_v51, %v5380_v54  ;;  %v5394_v10 = vrot.slane %v6789_v5, 5  ;;  %v5397_v12 = vrot.slane %v6790_v8, 5  ;;  %v6853_v14 = vcombine.low %v9048_v56, %v9052_v1  ;;  %v6795_v40 = vld [vmem:[%s8211_s18 + $0x7c] sm:$0xf]  ;;  %v6796_v27 = vld [vmem:[%s8211_s18 + $0x80] sm:$0x1] }
 0x111   : > { %7433 = vmatprep.mubr.bf16.mxu1 %v8096_v16  ;;  %v9062_v7 = vsel %vm8334_vm5, %v5382_v62, %v5383_v55  ;;  %v9067_v60 = vsel %vm8334_vm5, %v6823_v63, %v5387_v2  ;;  %v5389_v11 = vrot.slane %v5387_v2, 4  ;;  %v6825_v21 = vrot.slane %v6791_v13, 9  ;;  %v6445_v45 = vld [vmem:[%s8211_s18 + $0x78] sm:$0xf]  ;;  %v6446_v51 = vld [vmem:[%s8211_s18 + $0x7c] sm:$0xf] }
 0x112   : > { %v9075_v16 = vsel %vm8334_vm5, %v6824_v9, %v5394_v10  ;;  %v5396_v17 = vrot.slane %v5394_v10, 4  ;;  %v6854_v22 = vcombine.low %v9058_v6, %v9062_v7  ;;  %v5401_v24 = vrot.slane %v6792_v19, 5  ;;  %v6447_v57 = vld [vmem:[%s8211_s18 + $0x80] sm:$0x1]  ;;  %v6797_v62 = vld [vmem:[%s8211_s18 + $0x84] sm:$0xe] }
 0x113   : > { %v9083_v47 = vsel %vm8334_vm5, %v5389_v11, %v5390_v3  ;;  %v5404_v25 = vrot.slane %v6793_v20, 5  ;;  %v2814_v32 = vshrl.u32 %v6442_v26, 16  ;;  %v2817_v34 = vshll.u32 %v6442_v26, 16  ;;  %v6798_v3 = vld [vmem:[%s8211_s18 + $0x88] sm:$0xf]  ;;  %v8101_v9 = vld [vmem:[%s8211_s18 + $0xc0] sm:$0xff]  }
 0x114   : > { %v6855_v29 = vcombine.low %v9067_v60, %v9083_v47  ;;  %v9092_v30 = vsel %vm8334_vm5, %v5396_v17, %v5397_v12  ;;  %v9100_v37 = vsel %vm8334_vm5, %v6825_v21, %v5401_v24  ;;  %v5403_v38 = vrot.slane %v5401_v24, 4  ;;  %v6799_v8 = vld [vmem:[%s8211_s18 + $0x8c] sm:$0x1]  ;;  %v6449_v21 = vld [vmem:[%s8211_s18 + $0x88] sm:$0xf] }
 0x115   : > { %v6856_v36 = vcombine.low %v9075_v16, %v9092_v30  ;;  %v2823_v39 = vshll.u32 %v6443_v28, 16  ;;  %v2819_v43 = vrot.slane %v2817_v34, 5  ;;  %v2827_v41 = vshrl.u32 %v6443_v28, 16 }
 0x116   : > { %7654 = vmatmul.mubr.bf16.vlgmr.msra.gmra.mrb[0].mxu0 %v6851_v61  ;;  %v2833_v44 = vshll.u32 %v6444_v31, 16  ;;  %v9107_v46 = vsel %vm8334_vm5, %v5403_v38, %v5404_v25  ;;  %v6826_v49 = vrot.slane %v6794_v35, 9  ;;  %v5408_v50 = vrot.slane %v6795_v40, 5  ;;  %v6450_v31 = vld [vmem:[%s8211_s18 + $0x8c] sm:$0x1] }
 0x117   : > { %7657 = vmatprep.mubr.bf16.mxu0 %v6852_v0  ;;  %v6857_v52 = vcombine.low %v9100_v37, %v9107_v46  ;;  %v2829_v54 = vrot.slane %v2827_v41, 4  ;;  %v5411_v61 = vrot.slane %v6796_v27, 5  ;;  %v2838_v56 = vshrl.u32 %v6445_v45, 16  ;;  %v6800_v27 = vld [vmem:[%s8211_s18 + $0x90] sm:$0xe] }
 0x118   : > { %7434 = vmatmul.mubr.bf16.gmra.mrb[20].mxu1 %v8097_v42  ;;  %v2816_v42 = vrot.slane %v2814_v32, 4  ;;  %v2835_v55 = vrot.slane %v2833_v44, 5  ;;  %v9115_v58 = vsel %vm8334_vm5, %v6826_v49, %v5408_v50  ;;  %v5410_v59 = vrot.slane %v5408_v50, 4 }
 0x119   : > { %7437 = vmatprep.mubr.bf16.mxu1 %v8098_v48  ;;  %v2825_v48 = vrot.slane %v2823_v39, 5  ;;  %v2841_v1 = vshll.u32 %v6445_v45, 16  ;;  %v2847_v2 = vshll.u32 %v6446_v51, 16  ;;  %v2840_v5 = vrot.slane %v2838_v56, 4  ;;  %v6801_v45 = vld [vmem:[%s8211_s18 + $0x94] sm:$0xf] }
 0x11a   : > { %v2820_v53 = vor.u32 %v2819_v43, %v2816_v42  ;;  %v9121_v18 = vsel %vm8334_vm5, %v5410_v59, %v5411_v61  ;;  %v2851_v6 = vshrl.u32 %v6446_v51, 16  ;;  %v2857_v7 = vshll.u32 %v6447_v57, 16  ;;  %v6452_v57 = vld [vmem:[%s8211_s18 + $0x94] sm:$0xf] }
 0x11b   : > { %v2830_v0 = vor.u32 %v2829_v54, %v2825_v48  ;;  %v6858_v12 = vcombine.low %v9115_v58, %v9121_v18  ;;  %v2843_v13 = vrot.slane %v2841_v1, 5  ;;  %v6827_v20 = vrot.slane %v6797_v62, 9  ;;  %v6451_v54 = vld [vmem:[%s8211_s18 + $0x90] sm:$0xf]  ;;  %v6803_v1 = vld [vmem:[%s8211_s18 + $0x9c] sm:$0xe] }
 0x11c   : > { %v2821_v63 = vrot.slane %v2820_v53, 4  ;;  %v2853_v17 = vrot.slane %v2851_v6, 4  ;;  %v2859_v19 = vrot.slane %v2857_v7, 5  ;;  %v5415_v24 = vrot.slane %v6798_v3, 5  ;;  %v6802_v53 = vld [vmem:[%s8211_s18 + $0x98] sm:$0x1] }
 0x11d   : > { %v2831_v11 = vrot.slane %v2830_v0, 4  ;;  %v5418_v25 = vrot.slane %v6799_v8, 5  ;;  %v2871_v40 = vshll.u32 %v6449_v21, 16  ;;  %v2875_v44 = vshrl.u32 %v6449_v21, 16  ;;  %v6804_v7 = vld [vmem:[%s8211_s18 + $0xa0] sm:$0xf] }
 0x11e   : > { %7658 = vmatmul.mubr.bf16.gmra.mrb[4].mxu0 %v6853_v14  ;;  %v2826_v10 = vsel %vm8234_vm2, %v2821_v63, %v2825_v48  ;;  %v6448_v14 = vld [vmem:[%s8211_s18 + $0x84] sm:$0xf]  ;;  %v9136_v38 = vsel %vm8334_vm5, %v6827_v20, %v5415_v24  ;;  %v5417_v39 = vrot.slane %v5415_v24, 4  ;;  %v2881_v51 = vshll.u32 %v6450_v31, 16  ;;  %v6453_v63 = vld [vmem:[%s8211_s18 + $0x98] sm:$0x1] }
 0x11f   : > { %7661 = vmatprep.mubr.bf16.mxu0 %v6854_v22  ;;  %v2836_v22 = vsel %vm8234_vm2, %v2831_v11, %v2835_v55  ;;  %v2862_v32 = vshrl.u32 %v6448_v14, 16  ;;  %v2865_v34 = vshll.u32 %v6448_v14, 16  ;;  %v2873_v50 = vrot.slane %v2871_v40, 5  ;;  %v6454_v20 = vld [vmem:[%s8211_s18 + $0x9c] sm:$0xf] }
 0x120   : > { %7438 = vmatmul.mubr.bf16.gmra.mrb[24].mxu1 %v8099_v15  ;;  %v2849_v15 = vrot.slane %v2847_v2, 5  ;;  %v6490_v26 = vcombine.low %v2826_v10, %v2836_v22  ;;  %v9147_v49 = vsel %vm8334_vm5, %v5417_v39, %v5418_v25  ;;  %v2877_v55 = vrot.slane %v2875_v44, 4  ;;  %v6455_v25 = vld [vmem:[%s8211_s18 + $0xa0] sm:$0xf]  ;;  %v6456_v39 = vld [vmem:[%s8211_s18 + $0xa4] sm:$0x1] }
 0x121   : > { %7441 = vmatprep.mubr.bf16.mxu1 %v8100_v23  ;;  %v2844_v23 = vor.u32 %v2843_v13, %v2840_v5  ;;  %v2864_v43 = vrot.slane %v2862_v32, 4  ;;  %v2867_v41 = vrot.slane %v2865_v34, 5  ;;  %v6859_v47 = vcombine.low %v9136_v38, %v9147_v49  ;;  %v6805_v13 = vld [vmem:[%s8211_s18 + $0xa4] sm:$0x1]  ;;  %v6807_v44 = vld [vmem:[%s8211_s18 + $0xac] sm:$0xf] }
 0x122   : > { %v2854_v28 = vor.u32 %v2853_v17, %v2849_v15  ;;  %v2883_v61 = vrot.slane %v2881_v51, 5  ;;  %v6828_v56 = vrot.slane %v6800_v27, 9  ;;  %v5422_v62 = vrot.slane %v6801_v45, 5 }
 0x123   : > { %v2845_v35 = vrot.slane %v2844_v23, 4  ;;  %v2878_v16 = vor.u32 %v2877_v55, %v2873_v50  ;;  %v5425_v30 = vrot.slane %v6802_v53, 5  ;;  %v2889_v5 = vshll.u32 %v6451_v54, 16  ;;  %v6808_v53 = vld [vmem:[%s8211_s18 + $0xb0] sm:$0x1] }
 0x124   : > { %v2855_v42 = vrot.slane %v2854_v28, 4  ;;  %v9163_v2 = vsel %vm8334_vm5, %v6828_v56, %v5422_v62  ;;  %v5424_v3 = vrot.slane %v5422_v62, 4  ;;  %v2895_v6 = vshll.u32 %v6452_v57, 16 }
 0x125   : > { %v2850_v48 = vsel %vm8234_vm2, %v2845_v35, %v2849_v15  ;;  %v2899_v11 = vshrl.u32 %v6452_v57, 16  ;;  %v2891_v15 = vrot.slane %v2889_v5, 5  ;;  %v6829_v24 = vrot.slane %v6803_v1, 9 }
 0x126   : > { %7662 = vmatmul.mubr.bf16.gmra.mrb[8].mxu0 %v6855_v29  ;;  %v2860_v60 = vsel %vm8234_vm2, %v2855_v42, %v2859_v19  ;;  %v2868_v29 = vor.u32 %v2867_v41, %v2864_v43  ;;  %v5426_v14 = vsel %vm8334_vm5, %v5424_v3, %v5425_v30  ;;  %v2897_v17 = vrot.slane %v2895_v6, 5  ;;  %v6806_v43 = vld [vmem:[%s8211_s18 + $0xa8] sm:$0xe] }
 0x127   : > { %7665 = vmatprep.mubr.bf16.mxu0 %v6856_v36  ;;  %v6491_v59 = vcombine.low %v2850_v48, %v2860_v60  ;;  %v2886_v36 = vshrl.u32 %v6451_v54, 16  ;;  %v2905_v19 = vshll.u32 %v6453_v63, 16  ;;  %v6860_v22 = vcombine.low %v9163_v2, %v5426_v14  ;;  %v6457_v54 = vld [vmem:[%s8211_s18 + $0xa8] sm:$0xf]  ;;  %v6809_v2 = vld [vmem:[%s8211_s18 + $0xb4] sm:$0xe] }
 0x128   : > { %7442 = vmatmul.mubr.bf16.gmra.mrb[28].mxu1 %v8101_v9  ;;  %v2869_v0 = vrot.slane %v2868_v29, 4  ;;  %v2879_v9 = vrot.slane %v2878_v16, 4  ;;  %v2901_v23 = vrot.slane %v2899_v11, 4  ;;  %v5429_v32 = vrot.slane %v6804_v7, 5  ;;  %v6811_v14 = vld [vmem:[%s8211_s18 + $0xbc] sm:$0x1] }
 0x129   : > { %7477 = vmatprep.mubr.bf16.mxu1 %v6490_v26  ;;  %v2888_v10 = vrot.slane %v2886_v36, 4  ;;  %v2907_v31 = vrot.slane %v2905_v19, 5  ;;  %v5432_v35 = vrot.slane %v6805_v13, 5  ;;  %v2910_v40 = vshrl.u32 %v6454_v20, 16 }
 0x12a   : > { %v2874_v8 = vsel %vm8234_vm2, %v2869_v0, %v2873_v50  ;;  %v2884_v21 = vsel %vm8234_vm2, %v2879_v9, %v2883_v61  ;;  %v2902_v34 = vor.u32 %v2901_v23, %v2897_v17  ;;  %v2913_v27 = vshll.u32 %v6454_v20, 16  ;;  %v6459_v0 = vld [vmem:[%s8211_s18 + $0xb0] sm:$0x1]  ;;  %v6461_v23 = vld [vmem:[%s8211_s18 + $0xb8] sm:$0xf] }
 0x12b   : > { %v6492_v26 = vcombine.low %v2874_v8, %v2884_v21  ;;  %v2892_v28 = vor.u32 %v2891_v15, %v2888_v10  ;;  %v9185_v46 = vsel %vm8334_vm5, %v6829_v24, %v5429_v32  ;;  %v2919_v42 = vshll.u32 %v6455_v25, 16  ;;  %v6810_v8 = vld [vmem:[%s8211_s18 + $0xb8] sm:$0xf] }
 0x12c   : > { %v2903_v58 = vrot.slane %v2902_v34, 4  ;;  %v2912_v18 = vrot.slane %v2910_v40, 4  ;;  %v2923_v41 = vshrl.u32 %v6455_v25, 16  ;;  %v2929_v51 = vshll.u32 %v6456_v39, 16  ;;  %v6462_v34 = vld [vmem:[%s8211_s18 + $0xbc] sm:$0x1] }
 0x12d   : > { %v2893_v37 = vrot.slane %v2892_v28, 4  ;;  %v2921_v50 = vrot.slane %v2919_v42, 5  ;;  %v6830_v62 = vrot.slane %v6806_v43, 9  ;;  %v5436_v63 = vrot.slane %v6807_v44, 5 }
 0x12e   : > { %7666 = vmatmul.mubr.bf16.gmra.mrb[12].mxu0 %v6857_v52  ;;  %v5431_v52 = vrot.slane %v5429_v32, 4  ;;  %v2908_v60 = vsel %vm8234_vm2, %v2903_v58, %v2907_v31  ;;  %v2925_v57 = vrot.slane %v2923_v41, 4  ;;  %v2931_v56 = vrot.slane %v2929_v51, 5  ;;  %v6463_v51 = vld [vmem:[%s8211_s18 + $0xc0] sm:$0xf] }
 0x12f   : > { %7669 = vmatprep.mubr.bf16.mxu0 %v6858_v12  ;;  %v2915_v12 = vrot.slane %v2913_v27, 5  ;;  %v2898_v45 = vsel %vm8234_vm2, %v2893_v37, %v2897_v17  ;;  %v5439_v36 = vrot.slane %v6808_v53, 5  ;;  %v2934_v1 = vshrl.u32 %v6457_v54, 16  ;;  %v6460_v17 = vld [vmem:[%s8211_s18 + $0xb4] sm:$0xf] }
 0x130   : > { %7478 = vmatmul.mubr.bf16.vlgmr.msra.gmra.mrb[16].mxu1 %v6491_v59  ;;  %v9193_v48 = vsel %vm8334_vm5, %v5431_v52, %v5432_v35  ;;  %v6458_v59 = vld [vmem:[%s8211_s18 + $0xac] sm:$0xf]  ;;  %v6493_v61 = vcombine.low %v2898_v45, %v2908_v60  ;;  %v2926_v30 = vor.u32 %v2925_v57, %v2921_v50  ;;  %v5437_v3 = vsel %vm8334_vm5, %v6830_v62, %v5436_v63  ;;  %v6812_v52 = vld [vmem:[%s8211_s18 + $0xc0] sm:$0xe] }
 0x131   : > { %7481 = vmatprep.mubr.bf16.mxu1 %v6492_v26  ;;  %v6861_v29 = vcombine.low %v9185_v46, %v9193_v48  ;;  %v2916_v55 = vor.u32 %v2915_v12, %v2912_v18  ;;  %v5438_v5 = vrot.slane %v5436_v63, 4  ;;  %v2937_v6 = vshll.u32 %v6457_v54, 16  ;;  %v6813_v12 = vld [vmem:[%s8211_s18 + $0xc4] sm:$0xf] }
 0x132   : > { %v2943_v7 = vshll.u32 %v6458_v59, 16  ;;  %v2927_v10 = vrot.slane %v2926_v30, 4  ;;  %v2936_v11 = vrot.slane %v2934_v1, 4  ;;  %v2947_v13 = vshrl.u32 %v6458_v59, 16 }
 0x133   : > { %v2917_v16 = vrot.slane %v2916_v55, 4  ;;  %v5440_v38 = vsel %vm8334_vm5, %v5438_v5, %v5439_v36  ;;  %v2939_v49 = vrot.slane %v2937_v6, 5  ;;  %v2953_v15 = vshll.u32 %v6459_v0, 16  ;;  %v6815_v5 = vld [vmem:[%s8211_s18 + $0xcc] sm:$0xe] }
 0x134   : > { %v2932_v19 = vsel %vm8234_vm2, %v2927_v10, %v2931_v56  ;;  %v6862_v20 = vcombine.low %v5437_v3, %v5440_v38  ;;  %v2949_v21 = vrot.slane %v2947_v13, 4  ;;  %v5443_v28 = vrot.slane %v6810_v8, 5  ;;  %v6816_v10 = vld [vmem:[%s8211_s18 + $0xd0] sm:$0xf] }
 0x135   : > { %v2922_v9 = vsel %vm8234_vm2, %v2917_v16, %v2921_v50  ;;  %v2940_v25 = vor.u32 %v2939_v49, %v2936_v11  ;;  %v2955_v26 = vrot.slane %v2953_v15, 5  ;;  %v5446_v32 = vrot.slane %v6811_v14, 5  ;;  %v6814_v50 = vld [vmem:[%s8211_s18 + $0xc8] sm:$0x1]  ;;  %v6817_v49 = vld [vmem:[%s8211_s18 + $0xd4] sm:$0x1] }
 0x136   : > { %7670 = vmatmul.mubr.bf16.gmra.mrb[16].mxu0 %v6859_v47  ;;  %v2945_v47 = vrot.slane %v2943_v7, 5  ;;  %v6494_v24 = vcombine.low %v2922_v9, %v2932_v19  ;;  %v2958_v35 = vshrl.u32 %v6460_v17, 16  ;;  %v2961_v39 = vshll.u32 %v6460_v17, 16  ;;  %v6465_v16 = vld [vmem:[%s8211_s18 + $0xc8] sm:$0x1] }
 0x137   : > { %7673 = vmatprep.mubr.bf16.mxu0 %v6860_v22  ;;  %v6831_v22 = vrot.slane %v6809_v2, 9  ;;  %v2941_v40 = vrot.slane %v2940_v25, 4  ;;  %v5445_v37 = vrot.slane %v5443_v28, 4  ;;  %v2967_v46 = vshll.u32 %v6461_v23, 16 }
 0x138   : > { %7482 = vmatmul.mubr.bf16.gmra.mrb[20].mxu1 %v6493_v61  ;;  %v2950_v31 = vor.u32 %v2949_v21, %v2945_v47  ;;  %v2960_v43 = vrot.slane %v2958_v35, 4  ;;  %v2963_v58 = vrot.slane %v2961_v39, 5  ;;  %v2971_v18 = vshrl.u32 %v6461_v23, 16 }
 0x139   : > { %7485 = vmatprep.mubr.bf16.mxu1 %v6494_v24  ;;  %v5444_v27 = vsel %vm8334_vm5, %v6831_v22, %v5443_v28  ;;  %v2946_v41 = vsel %vm8234_vm2, %v2941_v40, %v2945_v47  ;;  %v5447_v44 = vsel %vm8334_vm5, %v5445_v37, %v5446_v32  ;;  %v2969_v45 = vrot.slane %v2967_v46, 5 }
 0x13a   : > { %v2951_v42 = vrot.slane %v2950_v31, 4  ;;  %v2977_v48 = vshll.u32 %v6462_v34, 16  ;;  %v6863_v54 = vcombine.low %v5444_v27, %v5447_v44  ;;  %v2964_v60 = vor.u32 %v2963_v58, %v2960_v43 }
 0x13b   : > { %v2973_v55 = vrot.slane %v2971_v18, 4  ;;  %v6832_v61 = vrot.slane %v6812_v52, 9  ;;  %v5450_v56 = vrot.slane %v6813_v12, 5  ;;  %v5453_v0 = vrot.slane %v6814_v50, 5 }
 0x13c   : > { %v2956_v53 = vsel %vm8234_vm2, %v2951_v42, %v2955_v26  ;;  %v2979_v59 = vrot.slane %v2977_v48, 5  ;;  %v2965_v62 = vrot.slane %v2964_v60, 4  ;;  %v2982_v30 = vshrl.u32 %v6463_v51, 16 }
 0x13d   : > { %v6495_v57 = vcombine.low %v2946_v41, %v2956_v53  ;;  %v2974_v63 = vor.u32 %v2973_v55, %v2969_v45  ;;  %v5451_v36 = vsel %vm8334_vm5, %v6832_v61, %v5450_v56  ;;  %v5452_v1 = vrot.slane %v5450_v56, 4 }
 0x13e   : > { %7674 = vmatmul.mubr.bf16.gmra.mrb[20].mxu0 %v6861_v29  ;;  %v6464_v29 = vld [vmem:[%s8211_s18 + $0xc4] sm:$0xf]  ;;  %v2985_v2 = vshll.u32 %v6463_v51, 16  ;;  %v2970_v6 = vsel %vm8234_vm2, %v2965_v62, %v2969_v45  ;;  %v2984_v8 = vrot.slane %v2982_v30, 4  ;;  %v3001_v38 = vshll.u32 %v6465_v16, 16 }
 0x13f   : > { %7677 = vmatprep.mubr.bf16.mxu0 %v6862_v20  ;;  %v2991_v3 = vshll.u32 %v6464_v29, 16  ;;  %v2975_v7 = vrot.slane %v2974_v63, 4  ;;  %v2995_v9 = vshrl.u32 %v6464_v29, 16  ;;  %v5454_v11 = vsel %vm8334_vm5, %v5452_v1, %v5453_v0 }
 0x140   : > { %7486 = vmatmul.mubr.bf16.gmra.mrb[24].mxu1 %v6495_v57  ;;  %v2987_v13 = vrot.slane %v2985_v2, 5  ;;  %v6864_v15 = vcombine.low %v5451_v36, %v5454_v11  ;;  %v6833_v19 = vrot.slane %v6815_v5, 9  ;;  %v5457_v22 = vrot.slane %v6816_v10, 5 }
 0x141   : > { %v2993_v14 = vrot.slane %v2991_v3, 5  ;;  %v2980_v47 = vsel %vm8234_vm2, %v2975_v7, %v2979_v59  ;;  %v2997_v17 = vrot.slane %v2995_v9, 4  ;;  %v3003_v24 = vrot.slane %v3001_v38, 5 }
 0x142   : > { %v6496_v20 = vcombine.low %v2970_v6, %v2980_v47  ;;  %v2988_v21 = vor.u32 %v2987_v13, %v2984_v8  ;;  %v5460_v25 = vrot.slane %v6817_v49, 5  ;;  %v5458_v28 = vsel %vm8334_vm5, %v6833_v19, %v5457_v22 }
 0x143   : > { %v2998_v23 = vor.u32 %v2997_v17, %v2993_v14  ;;  %v5459_v31 = vrot.slane %v5457_v22, 4 }
 0x144   : > { %7489 = vmatprep.mubr.bf16.mxu1 %v6496_v20  ;;  %v2989_v26 = vrot.slane %v2988_v21, 4 }
 0x145   : > { %v2999_v32 = vrot.slane %v2998_v23, 4  ;;  %v5461_v35 = vsel %vm8334_vm5, %v5459_v31, %v5460_v25 }
 0x146   : > { %7678 = vmatmul.mubr.bf16.gmra.mrb[24].mxu0 %v6863_v54  ;;  %v2994_v34 = vsel %vm8234_vm2, %v2989_v26, %v2993_v14  ;;  %v6865_v40 = vcombine.low %v5458_v28, %v5461_v35  ;;  %v9264_v54 = vld [vmem:[%s9335_s2] ss:$0 sm:$0xff] }
 0x147   : > { %7681 = vmatprep.mubr.bf16.mxu0 %v6864_v15  ;;  %v3004_v39 = vsel %vm8234_vm2, %v2999_v32, %v3003_v24 }
 0x148   : > { %v6497_v27 = vcombine.low %v2994_v34, %v3004_v39 }
 0x14a   : > { %7490 = vmatmul.mubr.bf16.gmra.mrb[28].mxu1 %v6497_v27 }
 0x14e   : > { %7682 = vmatmul.mubr.bf16.gmra.mrb[28].mxu0 %v6865_v40 }
 0x1c3   : > { %v7415_v37 = vpop.f32.mrb[0].mxu1 }
 0x1c4   : > { %v2382_v46 = vpop.f32.mrb[1].mxu1 }
 0x1c5   : > { %v7416_v52 = vpop.f32.mrb[2].mxu1 }
 0x1c6   : > { %v2385_v42 = vpop.f32.mrb[3].mxu1 }
 0x1cb   : > { %v7419_v43 = vpop.f32.mrb[4].mxu1 }
 0x1cc   : > { %v2398_v58 = vpop.f32.mrb[5].mxu1 }
 0x1cd   : > { %v7420_v18 = vpop.f32.mrb[6].mxu1 }
 0x1ce   : > { %v2401_v12 = vpop.f32.mrb[7].mxu1 }
 0x1d3   : > { %v7423_v41 = vpop.f32.mrb[8].mxu1 }
 0x1d4   : > { %v2414_v44 = vpop.f32.mrb[9].mxu1 }
 0x1d5   : > { %v7424_v45 = vpop.f32.mrb[10].mxu1 }
 0x1d6   : > { %v2417_v4 = vpop.f32.mrb[11].mxu1 }
 0x1db   : > { %v9253_v48 = vpop.f32.mrb[12].mxu1 }
 0x1dc   : > { %v9255_v33 = vpop.f32.mrb[13].mxu1 }
 0x1dd   : > { %v9257_v50 = vpop.f32.mrb[14].mxu1 }
 0x1de   : > { %v9259_v51 = vpop.f32.mrb[15].mxu1 }
 0x1e9   : > { %v7655_v53 = vpop.f32.mrb[0].mxu0 }
 0x1ea   : > { %v7701_v60 = vadd.f32 %v7655_v53, %v7415_v37  ;;  %v5657_v55 = vpop.f32.mrb[1].mxu0 }
 0x1eb   : > { %v7702_v29 = vadd.f32 %v5657_v55, %v2382_v46  ;;  %v7656_v57 = vpop.f32.mrb[2].mxu0 }
 0x1ec   : > { %v5889_v59 = vadd.f32 %v7701_v60, %v9264_v54  ;;  %v7703_v61 = vadd.f32 %v7656_v57, %v7416_v52  ;;  %v5660_v56 = vpop.f32.mrb[3].mxu0 }
 0x1ed   : > { %v5887_v62 = vadd.f32 %v7702_v29, %v9264_v54  ;;  %v7704_v63 = vadd.f32 %v5660_v56, %v2385_v42 }
 0x1ee   : > { %v5890_v0 = vadd.f32 %v7703_v61, %v9264_v54  ;;  %v5921_v30 = vmax.f32 %v5889_v59, 0.0 }
 0x1ef   : > { %v5888_v16 = vadd.f32 %v7704_v63, %v9264_v54  ;;  %v5919_v1 = vmax.f32 %v5887_v62, 0.0 }
 0x1f0   : > { %v5922_v36 = vmax.f32 %v5890_v0, 0.0 }
 0x1f1   : > { %v5920_v2 = vmax.f32 %v5888_v16, 0.0  ;;  %v7659_v3 = vpop.f32.mrb[4].mxu0 }
 0x1f2   : > { %v6950_v5 = vpack.c.bf16 %v5922_v36, %v5921_v30  ;;  %v7705_v6 = vadd.f32 %v7659_v3, %v7419_v43  ;;  %v5673_v7 = vpop.f32.mrb[5].mxu0 }
 0x1f3   : > { %v6945_v8 = vpack.c.bf16 %v5920_v2, %v5919_v1  ;;  %v7706_v9 = vadd.f32 %v5673_v7, %v2398_v58  ;;  %v7660_v10 = vpop.f32.mrb[6].mxu0 }
 0x1f4   : > { %7022 = vst [vmem:[%s9274_s29 + $0x8] sm:$0xff] %v6950_v5   ;;  %v5893_v11 = vadd.f32 %v7705_v6, %v9264_v54  ;;  %v7707_v13 = vadd.f32 %v7660_v10, %v7420_v18  ;;  %v5676_v14 = vpop.f32.mrb[7].mxu0 }
 0x1f5   : > { %6946 = vst [vmem:[%s9274_s29] sm:$0xff] %v6945_v8   ;;  %v5891_v38 = vadd.f32 %v7706_v9, %v9264_v54  ;;  %v7708_v49 = vadd.f32 %v5676_v14, %v2401_v12 }
 0x1f6   : > { %v5894_v47 = vadd.f32 %v7707_v13, %v9264_v54  ;;  %v5925_v17 = vmax.f32 %v5893_v11, 0.0 }
 0x1f7   : > { %v5892_v15 = vadd.f32 %v7708_v49, %v9264_v54  ;;  %v5923_v20 = vmax.f32 %v5891_v38, 0.0 }
 0x1f8   : > { %v5926_v19 = vmax.f32 %v5894_v47, 0.0 }
 0x1f9   : > { %v5924_v21 = vmax.f32 %v5892_v15, 0.0  ;;  %v7663_v22 = vpop.f32.mrb[8].mxu0 }
 0x1fa   : > { %v6960_v23 = vpack.c.bf16 %v5926_v19, %v5925_v17  ;;  %v7709_v24 = vadd.f32 %v7663_v22, %v7423_v41  ;;  %v5689_v25 = vpop.f32.mrb[9].mxu0 }
 0x1fb   : > { %v6955_v26 = vpack.c.bf16 %v5924_v21, %v5923_v20  ;;  %v7710_v28 = vadd.f32 %v5689_v25, %v2414_v44  ;;  %v7664_v31 = vpop.f32.mrb[10].mxu0 }
 0x1fc   : > { %7024 = vst [vmem:[%s9274_s29 + $0x18] sm:$0xff] %v6960_v23   ;;  %v5897_v32 = vadd.f32 %v7709_v24, %v9264_v54  ;;  %v7711_v34 = vadd.f32 %v7664_v31, %v7424_v45  ;;  %v5692_v35 = vpop.f32.mrb[11].mxu0 }
 0x1fd   : > { %7023 = vst [vmem:[%s9274_s29 + $0x10] sm:$0xff] %v6955_v26   ;;  %v5895_v39 = vadd.f32 %v7710_v28, %v9264_v54  ;;  %v7712_v40 = vadd.f32 %v5692_v35, %v2417_v4 }
 0x1fe   : > { %v5898_v27 = vadd.f32 %v7711_v34, %v9264_v54  ;;  %v5929_v52 = vmax.f32 %v5897_v32, 0.0 }
 0x1ff   : > { %v5896_v37 = vadd.f32 %v7712_v40, %v9264_v54  ;;  %v5927_v58 = vmax.f32 %v5895_v39, 0.0 }
 0x200   : > { %v5930_v42 = vmax.f32 %v5898_v27, 0.0 }
 0x201   : > { %v5928_v18 = vmax.f32 %v5896_v37, 0.0  ;;  %v7667_v12 = vpop.f32.mrb[12].mxu0 }
 0x202   : > { %v6970_v44 = vpack.c.bf16 %v5930_v42, %v5929_v52  ;;  %v7713_v45 = vadd.f32 %v7667_v12, %v9253_v48  ;;  %v5705_v53 = vpop.f32.mrb[13].mxu0 }
 0x203   : > { %v7479_v46 = vpop.f32.mrb[16].mxu1  ;;  %v6965_v4 = vpack.c.bf16 %v5928_v18, %v5927_v58  ;;  %v7714_v55 = vadd.f32 %v5705_v53, %v9255_v33  ;;  %v7668_v29 = vpop.f32.mrb[14].mxu0 }
 0x204   : > { %v3264_v43 = vpop.f32.mrb[17].mxu1  ;;  %7026 = vst [vmem:[%s9274_s29 + $0x28] sm:$0xff] %v6970_v44   ;;  %v5901_v57 = vadd.f32 %v7713_v45, %v9264_v54  ;;  %v7715_v59 = vadd.f32 %v7668_v29, %v9257_v50  ;;  %v5708_v61 = vpop.f32.mrb[15].mxu0 }
 0x205   : > { %v7480_v41 = vpop.f32.mrb[18].mxu1  ;;  %7025 = vst [vmem:[%s9274_s29 + $0x20] sm:$0xff] %v6965_v4   ;;  %v5899_v56 = vadd.f32 %v7714_v55, %v9264_v54  ;;  %v7716_v62 = vadd.f32 %v5708_v61, %v9259_v51 }
 0x206   : > { %v3267_v60 = vpop.f32.mrb[19].mxu1  ;;  %v5902_v63 = vadd.f32 %v7715_v59, %v9264_v54  ;;  %v5933_v0 = vmax.f32 %v5901_v57, 0.0 }
 0x207   : > { %v5900_v48 = vadd.f32 %v7716_v62, %v9264_v54  ;;  %v5931_v33 = vmax.f32 %v5899_v56, 0.0 }
 0x208   : > { %v5934_v16 = vmax.f32 %v5902_v63, 0.0 }
 0x209   : > { %v5932_v30 = vmax.f32 %v5900_v48, 0.0  ;;  %v7671_v36 = vpop.f32.mrb[16].mxu0 }
 0x20a   : > { %v6980_v2 = vpack.c.bf16 %v5934_v16, %v5933_v0  ;;  %v7717_v50 = vadd.f32 %v7671_v36, %v7479_v46  ;;  %v5721_v3 = vpop.f32.mrb[17].mxu0 }
 0x20b   : > { %v7483_v1 = vpop.f32.mrb[20].mxu1  ;;  %v6975_v6 = vpack.c.bf16 %v5932_v30, %v5931_v33  ;;  %v7718_v7 = vadd.f32 %v5721_v3, %v3264_v43  ;;  %v7672_v8 = vpop.f32.mrb[18].mxu0 }
 0x20c   : > { %v3280_v5 = vpop.f32.mrb[21].mxu1  ;;  %7028 = vst [vmem:[%s9274_s29 + $0x38] sm:$0xff] %v6980_v2   ;;  %v5905_v9 = vadd.f32 %v7717_v50, %v9264_v54  ;;  %v7719_v10 = vadd.f32 %v7672_v8, %v7480_v41  ;;  %v5724_v11 = vpop.f32.mrb[19].mxu0 }
 0x20d   : > { %v7484_v51 = vpop.f32.mrb[22].mxu1  ;;  %7027 = vst [vmem:[%s9274_s29 + $0x30] sm:$0xff] %v6975_v6   ;;  %v5903_v14 = vadd.f32 %v7718_v7, %v9264_v54  ;;  %v7720_v38 = vadd.f32 %v5724_v11, %v3267_v60 }
 0x20e   : > { %v3283_v13 = vpop.f32.mrb[23].mxu1  ;;  %v5906_v49 = vadd.f32 %v7719_v10, %v9264_v54  ;;  %v5937_v15 = vmax.f32 %v5905_v9, 0.0 }
 0x20f   : > { %v5904_v47 = vadd.f32 %v7720_v38, %v9264_v54  ;;  %v5935_v19 = vmax.f32 %v5903_v14, 0.0 }
 0x210   : > { %v5938_v17 = vmax.f32 %v5906_v49, 0.0 }
 0x211   : > { %v5936_v20 = vmax.f32 %v5904_v47, 0.0  ;;  %v7675_v21 = vpop.f32.mrb[20].mxu0 }
 0x212   : > { %v6990_v22 = vpack.c.bf16 %v5938_v17, %v5937_v15  ;;  %v7721_v23 = vadd.f32 %v7675_v21, %v7483_v1  ;;  %v5737_v24 = vpop.f32.mrb[21].mxu0 }
 0x213   : > { %v6985_v25 = vpack.c.bf16 %v5936_v20, %v5935_v19  ;;  %v7722_v26 = vadd.f32 %v5737_v24, %v3280_v5  ;;  %v7676_v28 = vpop.f32.mrb[22].mxu0  ;;  %v7487_v40 = vpop.f32.mrb[24].mxu1 }
 0x214   : > { %7030 = vst [vmem:[%s9274_s29 + $0x48] sm:$0xff] %v6990_v22   ;;  %v5909_v31 = vadd.f32 %v7721_v23, %v9264_v54  ;;  %v7723_v32 = vadd.f32 %v7676_v28, %v7484_v51  ;;  %v5740_v34 = vpop.f32.mrb[23].mxu0  ;;  %v3296_v37 = vpop.f32.mrb[25].mxu1 }
 0x215   : > { %7029 = vst [vmem:[%s9274_s29 + $0x40] sm:$0xff] %v6985_v25   ;;  %v5907_v35 = vadd.f32 %v7722_v26, %v9264_v54  ;;  %v7724_v39 = vadd.f32 %v5740_v34, %v3283_v13  ;;  %v7488_v52 = vpop.f32.mrb[26].mxu1 }
 0x216   : > { %v5910_v27 = vadd.f32 %v7723_v32, %v9264_v54  ;;  %v5941_v42 = vmax.f32 %v5909_v31, 0.0  ;;  %v3299_v58 = vpop.f32.mrb[27].mxu1 }
 0x217   : > { %v5908_v46 = vadd.f32 %v7724_v39, %v9264_v54  ;;  %v5939_v18 = vmax.f32 %v5907_v35, 0.0 }
 0x218   : > { %v5942_v43 = vmax.f32 %v5910_v27, 0.0 }
 0x219   : > { %v5940_v12 = vmax.f32 %v5908_v46, 0.0  ;;  %v7679_v41 = vpop.f32.mrb[24].mxu0 }
 0x21a   : > { %v7000_v44 = vpack.c.bf16 %v5942_v43, %v5941_v42  ;;  %v7725_v45 = vadd.f32 %v7679_v41, %v7487_v40  ;;  %v5753_v53 = vpop.f32.mrb[25].mxu0 }
 0x21b   : > { %v6995_v60 = vpack.c.bf16 %v5940_v12, %v5939_v18  ;;  %v7726_v4 = vadd.f32 %v5753_v53, %v3296_v37  ;;  %v7680_v55 = vpop.f32.mrb[26].mxu0 }
 0x21c   : > { %7032 = vst [vmem:[%s9274_s29 + $0x58] sm:$0xff] %v7000_v44   ;;  %v5913_v29 = vadd.f32 %v7725_v45, %v9264_v54  ;;  %v7727_v57 = vadd.f32 %v7680_v55, %v7488_v52  ;;  %v5756_v59 = vpop.f32.mrb[27].mxu0 }
 0x21d   : > { %7031 = vst [vmem:[%s9274_s29 + $0x50] sm:$0xff] %v6995_v60   ;;  %v5911_v61 = vadd.f32 %v7726_v4, %v9264_v54  ;;  %v7728_v56 = vadd.f32 %v5756_v59, %v3299_v58  ;;  %v7491_v30 = vpop.f32.mrb[28].mxu1 }
 0x21e   : > { %v5914_v62 = vadd.f32 %v7727_v57, %v9264_v54  ;;  %v5945_v48 = vmax.f32 %v5913_v29, 0.0  ;;  %v3312_v50 = vpop.f32.mrb[29].mxu1 }
 0x21f   : > { %v5912_v63 = vadd.f32 %v7728_v56, %v9264_v54  ;;  %v5943_v16 = vmax.f32 %v5911_v61, 0.0  ;;  %v7492_v7 = vpop.f32.mrb[30].mxu1 }
 0x220   : > { %v5946_v0 = vmax.f32 %v5914_v62, 0.0  ;;  %v3315_v10 = vpop.f32.mrb[31].mxu1 }
 0x221   : > { %v5944_v33 = vmax.f32 %v5912_v63, 0.0  ;;  %v7683_v36 = vpop.f32.mrb[28].mxu0 }
 0x222   : > { %v7010_v1 = vpack.c.bf16 %v5946_v0, %v5945_v48  ;;  %v7729_v2 = vadd.f32 %v7683_v36, %v7491_v30  ;;  %v5769_v3 = vpop.f32.mrb[29].mxu0 }
 0x223   : > { %v7005_v5 = vpack.c.bf16 %v5944_v33, %v5943_v16  ;;  %v7730_v6 = vadd.f32 %v5769_v3, %v3312_v50  ;;  %v7684_v8 = vpop.f32.mrb[30].mxu0 }
 0x224   : > { %7034 = vst [vmem:[%s9274_s29 + $0x68] sm:$0xff] %v7010_v1   ;;  %v5917_v51 = vadd.f32 %v7729_v2, %v9264_v54  ;;  %v7731_v9 = vadd.f32 %v7684_v8, %v7492_v7  ;;  %v5772_v11 = vpop.f32.mrb[31].mxu0 }
 0x225   : > { %7033 = vst [vmem:[%s9274_s29 + $0x60] sm:$0xff] %v7005_v5   ;;  %v5915_v13 = vadd.f32 %v7730_v6, %v9264_v54  ;;  %v7732_v14 = vadd.f32 %v5772_v11, %v3315_v10 }
 0x226   : > { %v5918_v38 = vadd.f32 %v7731_v9, %v9264_v54  ;;  %v5949_v47 = vmax.f32 %v5917_v51, 0.0 }
 0x227   : > { %v5916_v49 = vadd.f32 %v7732_v14, %v9264_v54  ;;  %v5947_v17 = vmax.f32 %v5915_v13, 0.0 }
 0x228   : > { %v5950_v15 = vmax.f32 %v5918_v38, 0.0 }
 0x229   : > { %v5948_v19 = vmax.f32 %v5916_v49, 0.0 }
 0x22a   : > { %v7020_v20 = vpack.c.bf16 %v5950_v15, %v5949_v47 }
 0x22b   : > { %v7015_v21 = vpack.c.bf16 %v5948_v19, %v5947_v17 }
 0x22c   : > { %7036 = vst [vmem:[%s9274_s29 + $0x78] sm:$0xff] %v7020_v20  }
 0x22d   : > { %7035 = vst [vmem:[%s9274_s29 + $0x70] sm:$0xff] %v7015_v21  }
 0x22e PF: > { %s13_s14 = sadd.s32 1, %s8132_s14   ;;  %s9341_s12 = smov %s8128_s13 }
 0x22f   : > { %p10_p5 = scmp.ge.s32.totalorder %s13_s14, 4   ;;  %s9342_s13 = smov %s9344_s15 }
 0x231   :  { %12 = sbr.rel (!%p10_p5) target bundleno = 2 (0x2), region = 78 }

</bundles_post_ra>
